<compile_context>
chip_gen: v6e
topology: v6e:2x2x1
jax: 0.10.0
libtpu: 0.0.40
codegen_flags: <defaults>
</compile_context>

<pallas_src>
import math
import functools

import jax
import jax.numpy as jnp
from jax import lax
from jax.experimental import pallas as pl
from jax.experimental.pallas import tpu as pltpu

# ----------------------------- model config (small, TPU-friendly) -------------
NUM_ENC_LAYERS = 2
NUM_DEC_LAYERS = 2
EMB = 128            # d_model   (default 512 shrunk for a small synthetic run)
NHEAD = 4            # head_dim = 32
FFN = 128            # dim_feedforward
SRC_VOCAB = 128
TGT_VOCAB = 256
MAX_LEN = 64
LN_EPS = 1e-5
NEG_INF = -1e9

# MXU operand dtype.  Keep float32 to match the PyTorch reference numerics; set
# to jnp.bfloat16 on v6e/v7x for scaled-up models (f32 accumulation is kept via
# preferred_element_type, all elementwise math stays f32 -> safe on v5e too).
MXU_DTYPE = jnp.float32


# ----------------------------- in-kernel helpers -------------------------------
def _mm(a, b):
    """Matmul on the MXU with f32 accumulation; operands optionally bf16."""
    return jnp.dot(a.astype(MXU_DTYPE), b.astype(MXU_DTYPE),
                   preferred_element_type=jnp.float32)


def _ln(x, g_ref, b_ref):
    """LayerNorm over the last dim (f32 math)."""
    mu = jnp.mean(x, axis=-1, keepdims=True)
    xc = x - mu
    var = jnp.mean(xc * xc, axis=-1, keepdims=True)
    return xc * lax.rsqrt(var + LN_EPS) * g_ref[...] + b_ref[...]


def _mha_block(xq, xkv, wq, bq, wkv, bkv, wo, bo, bias, nhead, scale):
    """Full multi-head attention for one batch element, entirely in VMEM.

    xq:(Tq,D) xkv:(Tk,D); wq:(D,D) wkv:(D,2D) wo:(D,D) are refs;
    bias is an additive (Tq,Tk) f32 value shared across heads, or None.
    """
    D = xq.shape[-1]
    hd = D // nhead
    q = _mm(xq, wq[...]) + bq[...]            # (Tq, D)
    kv = _mm(xkv, wkv[...]) + bkv[...]        # (Tk, 2D)  fused K/V projection
    k = kv[:, :D]
    v = kv[:, D:]
    heads = []
    for h in range(nhead):                    # static unroll; tiny head count
        qh = q[:, h * hd:(h + 1) * hd]
        kh = k[:, h * hd:(h + 1) * hd]
        vh = v[:, h * hd:(h + 1) * hd]
        # contract last dims directly -> no explicit transpose of k
        s = lax.dot_general(qh.astype(MXU_DTYPE), kh.astype(MXU_DTYPE),
                            (((1,), (1,)), ((), ())),
                            preferred_element_type=jnp.float32) * scale
        if bias is not None:
            s = s + bias
        m = jnp.max(s, axis=-1, keepdims=True)
        p = jnp.exp(s - m)
        p = p * pl.reciprocal(jnp.sum(p, axis=-1, keepdims=True), approx=True)
        heads.append(_mm(p, vh))              # (Tq, hd)
    attn = jnp.concatenate(heads, axis=-1)    # (Tq, D) lane-dense
    return _mm(attn, wo[...]) + bo[...]


# ----------------------------- fused layer kernels -----------------------------
def _enc_layer_kernel(x_ref, *refs, nhead, scale, use_bias):
    if use_bias:
        bias = refs[0][0]                     # (T, T), broadcast over heads
        refs = refs[1:]
    else:
        bias = None
    (wq, bq, wkv, bkv, wo, bo, g1, be1,
     w1, bb1, w2, bb2, g2, be2, o_ref) = refs

    x = x_ref[0]                              # (T, D)
    a = _mha_block(x, x, wq, bq, wkv, bkv, wo, bo, bias, nhead, scale)
    y = _ln(x + a, g1, be1)                   # residual + LN fused
    h = jnp.maximum(_mm(y, w1[...]) + bb1[...], 0.0)     # fused FFN
    z = _mm(h, w2[...]) + bb2[...]
    o_ref[0] = _ln(y + z, g2, be2).astype(o_ref.dtype)


def _dec_layer_kernel(x_ref, mem_ref, *refs, nhead, scale,
                      use_self_bias, use_cross_bias):
    idx = 0
    sbias = None
    cbias = None
    if use_self_bias:
        sbias = refs[idx][0]
        idx += 1
    if use_cross_bias:
        cbias = refs[idx][0]
        idx += 1
    (swq, sbq, swkv, sbkv, swo, sbo, g1, be1,
     cwq, cbq, cwkv, cbkv, cwo, cbo, g2, be2,
     w1, bb1, w2, bb2, g3, be3, o_ref) = refs[idx:]

    x = x_ref[0]                              # (T, D)
    mem = mem_ref[0]                          # (S, D)
    a = _mha_block(x, x, swq, sbq, swkv, sbkv, swo, sbo, sbias, nhead, scale)
    y = _ln(x + a, g1, be1)
    c = _mha_block(y, mem, cwq, cbq, cwkv, cbkv, cwo, cbo, cbias, nhead, scale)
    y2 = _ln(y + c, g2, be2)
    h = jnp.maximum(_mm(y2, w1[...]) + bb1[...], 0.0)
    z = _mm(h, w2[...]) + bb2[...]
    o_ref[0] = _ln(y2 + z, g3, be3).astype(o_ref.dtype)


def _layernorm_kernel(x_ref, g_ref, b_ref, o_ref):
    o_ref[...] = _ln(x_ref[...], g_ref, b_ref).astype(o_ref.dtype)


def _norm_gen_kernel(x_ref, g_ref, b_ref, w_ref, wb_ref, o_ref):
    y = _ln(x_ref[...], g_ref, b_ref)
    o_ref[...] = (_mm(y, w_ref[...]) + wb_ref[...]).astype(o_ref.dtype)


# ----------------------------- pallas_call wrappers ----------------------------
def _as2d(w):
    return w if w.ndim == 2 else w.reshape(1, -1)


def _const_spec(shape):
    nd = len(shape)
    return pl.BlockSpec(shape, lambda b: (0,) * nd)


def encoder_layer(x, p, bias, nhead):
    """x:(B,T,D) -> (B,T,D). One pallas_call for the whole layer, grid=(B,)."""
    B, T, D = x.shape
    scale = 1.0 / math.sqrt(D // nhead)
    use_bias = bias is not None

    weights = [_as2d(w) for w in
               (p["wq"], p["bq"], p["wkv"], p["bkv"], p["wo"], p["bo"],
                p["ln1_g"], p["ln1_b"],
                p["w1"], p["b1"], p["w2"], p["b2"],
                p["ln2_g"], p["ln2_b"])]
    w_specs = [_const_spec(w.shape) for w in weights]

    inputs = [x] + ([bias] if use_bias else []) + weights
    in_specs = ([pl.BlockSpec((1, T, D), lambda b: (b, 0, 0))]
                + ([pl.BlockSpec((1, T, bias.shape[-1]), lambda b: (b, 0, 0))]
                   if use_bias else [])
                + w_specs)

    return pl.pallas_call(
        functools.partial(_enc_layer_kernel, nhead=nhead, scale=scale,
                          use_bias=use_bias),
        out_shape=jax.ShapeDtypeStruct((B, T, D), jnp.float32),
        grid=(B,),
        in_specs=in_specs,
        out_specs=pl.BlockSpec((1, T, D), lambda b: (b, 0, 0)),
        compiler_params=pltpu.CompilerParams(dimension_semantics=("parallel",)),
    )(*inputs)


def decoder_layer(x, memory, p, self_bias, cross_bias, nhead):
    """x:(B,T,D), memory:(B,S,D) -> (B,T,D). One pallas_call per layer."""
    B, T, D = x.shape
    S = memory.shape[1]
    scale = 1.0 / math.sqrt(D // nhead)
    use_sb = self_bias is not None
    use_cb = cross_bias is not None

    sa, ca = p["self_attn"], p["cross_attn"]
    weights = [_as2d(w) for w in
               (sa["wq"], sa["bq"], sa["wkv"], sa["bkv"], sa["wo"], sa["bo"],
                p["ln1_g"], p["ln1_b"],
                ca["wq"], ca["bq"], ca["wkv"], ca["bkv"], ca["wo"], ca["bo"],
                p["ln2_g"], p["ln2_b"],
                p["w1"], p["b1"], p["w2"], p["b2"],
                p["ln3_g"], p["ln3_b"])]
    w_specs = [_const_spec(w.shape) for w in weights]

    inputs = [x, memory]
    in_specs = [pl.BlockSpec((1, T, D), lambda b: (b, 0, 0)),
                pl.BlockSpec((1, S, D), lambda b: (b, 0, 0))]
    if use_sb:
        inputs.append(self_bias)
        in_specs.append(pl.BlockSpec((1, T, T), lambda b: (b, 0, 0)))
    if use_cb:
        inputs.append(cross_bias)
        in_specs.append(pl.BlockSpec((1, T, S), lambda b: (b, 0, 0)))
    inputs += weights
    in_specs += w_specs

    return pl.pallas_call(
        functools.partial(_dec_layer_kernel, nhead=nhead, scale=scale,
                          use_self_bias=use_sb, use_cross_bias=use_cb),
        out_shape=jax.ShapeDtypeStruct((B, T, D), jnp.float32),
        grid=(B,),
        in_specs=in_specs,
        out_specs=pl.BlockSpec((1, T, D), lambda b: (b, 0, 0)),
        compiler_params=pltpu.CompilerParams(dimension_semantics=("parallel",)),
    )(*inputs)


def layer_norm(x2d, gamma, beta):
    M, D = x2d.shape
    return pl.pallas_call(
        _layernorm_kernel,
        out_shape=jax.ShapeDtypeStruct((M, D), jnp.float32),
        grid=(1,),
        in_specs=[pl.BlockSpec((M, D), lambda i: (0, 0)),
                  pl.BlockSpec((1, D), lambda i: (0, 0)),
                  pl.BlockSpec((1, D), lambda i: (0, 0))],
        out_specs=pl.BlockSpec((M, D), lambda i: (0, 0)),
    )(x2d, gamma.reshape(1, D), beta.reshape(1, D))


def norm_generator(x2d, gamma, beta, w, b):
    """Fused final decoder LayerNorm + generator linear; lane-dense N=256 out."""
    M, D = x2d.shape
    N = w.shape[1]
    return pl.pallas_call(
        _norm_gen_kernel,
        out_shape=jax.ShapeDtypeStruct((M, N), jnp.float32),
        grid=(1,),
        in_specs=[pl.BlockSpec((M, D), lambda i: (0, 0)),
                  pl.BlockSpec((1, D), lambda i: (0, 0)),
                  pl.BlockSpec((1, D), lambda i: (0, 0)),
                  pl.BlockSpec((D, N), lambda i: (0, 0)),
                  pl.BlockSpec((1, N), lambda i: (0, 0))],
        out_specs=pl.BlockSpec((M, N), lambda i: (0, 0)),
    )(x2d, gamma.reshape(1, D), beta.reshape(1, D), w, b.reshape(1, N))


# ----------------------------- glue (plain JAX) --------------------------------
def build_bias(attn_mask, key_padding, B, Tq, Tk):
    """Additive bias (B,Tq,Tk) broadcast over heads in-kernel; None if no mask."""
    if attn_mask is None and key_padding is None:
        return None
    bias = jnp.zeros((B, Tq, Tk), jnp.float32)
    if attn_mask is not None:
        bias = bias + attn_mask.astype(jnp.float32)[None, :, :]
    if key_padding is not None:
        bias = bias + jnp.where(key_padding[:, None, :], NEG_INF, 0.0)
    return bias


def positional_encoding_table(max_len, d_model):
    position = jnp.arange(max_len, dtype=jnp.float32)[:, None]
    div_term = jnp.exp(jnp.arange(0, d_model, 2, dtype=jnp.float32)
                       * (-math.log(10000.0) / d_model))
    pe = jnp.zeros((max_len, d_model), jnp.float32)
    pe = pe.at[:, 0::2].set(jnp.sin(position * div_term))
    pe = pe.at[:, 1::2].set(jnp.cos(position * div_term))
    return pe


def token_embed(table, tokens, emb_size):
    return jnp.take(table, tokens, axis=0) * math.sqrt(emb_size)


# ----------------------------- forward ----------------------------------------
def forward(params, src, tgt, src_mask, tgt_mask, src_pad, tgt_pad, mem_pad):
    S, B = src.shape
    T = tgt.shape[0]
    D, H = EMB, NHEAD

    # batch-major (B, T, D) internally: only the int token matrices get transposed
    src_emb = token_embed(params["src_emb"], src.T, D) + params["pe"][None, :S, :]
    tgt_emb = token_embed(params["tgt_emb"], tgt.T, D) + params["pe"][None, :T, :]
    # dropout(p=0.1) -> identity (eval mode)

    enc_bias = build_bias(src_mask, src_pad, B, S, S)
    memory = src_emb
    for lp in params["enc_layers"]:
        memory = encoder_layer(memory, lp, enc_bias, H)
    memory = layer_norm(memory.reshape(B * S, D),
                        params["enc_norm_g"], params["enc_norm_b"]).reshape(B, S, D)

    self_bias = build_bias(tgt_mask, tgt_pad, B, T, T)
    cross_bias = build_bias(None, mem_pad, B, T, S)
    x = tgt_emb
    for lp in params["dec_layers"]:
        x = decoder_layer(x, memory, lp, self_bias, cross_bias, H)

    logits = norm_generator(x.reshape(B * T, D),
                            params["dec_norm_g"], params["dec_norm_b"],
                            params["gen_w"], params["gen_b"])
    return logits.reshape(B, T, TGT_VOCAB).transpose(1, 0, 2)   # (T, B, V)


# ----------------------------- deterministic init ------------------------------
def _init_mha(key, D):
    ks = jax.random.split(key, 4)
    wk = 0.02 * jax.random.normal(ks[1], (D, D), jnp.float32)
    wv = 0.02 * jax.random.normal(ks[2], (D, D), jnp.float32)
    return {
        "wq": 0.02 * jax.random.normal(ks[0], (D, D), jnp.float32),
        "bq": jnp.zeros((D,), jnp.float32),
        "wkv": jnp.concatenate([wk, wv], axis=1),        # fused K/V projection
        "bkv": jnp.zeros((2 * D,), jnp.float32),
        "wo": 0.02 * jax.random.normal(ks[3], (D, D), jnp.float32),
        "bo": jnp.zeros((D,), jnp.float32),
    }


def _init_enc_layer(key, D, F):
    k1, k2, k3 = jax.random.split(key, 3)
    return {
        "wq": None, **{},  # placeholder removed below
    } if False else {
        **_init_mha(k1, D),
        "w1": 0.02 * jax.random.normal(k2, (D, F), jnp.float32),
        "b1": jnp.zeros((F,), jnp.float32),
        "w2": 0.02 * jax.random.normal(k3, (F, D), jnp.float32),
        "b2": jnp.zeros((D,), jnp.float32),
        "ln1_g": jnp.ones((D,), jnp.float32), "ln1_b": jnp.zeros((D,), jnp.float32),
        "ln2_g": jnp.ones((D,), jnp.float32), "ln2_b": jnp.zeros((D,), jnp.float32),
    }


def _init_dec_layer(key, D, F):
    k1, k2, k3, k4 = jax.random.split(key, 4)
    return {
        "self_attn": _init_mha(k1, D),
        "cross_attn": _init_mha(k2, D),
        "w1": 0.02 * jax.random.normal(k3, (D, F), jnp.float32),
        "b1": jnp.zeros((F,), jnp.float32),
        "w2": 0.02 * jax.random.normal(k4, (F, D), jnp.float32),
        "b2": jnp.zeros((D,), jnp.float32),
        "ln1_g": jnp.ones((D,), jnp.float32), "ln1_b": jnp.zeros((D,), jnp.float32),
        "ln2_g": jnp.ones((D,), jnp.float32), "ln2_b": jnp.zeros((D,), jnp.float32),
        "ln3_g": jnp.ones((D,), jnp.float32), "ln3_b": jnp.zeros((D,), jnp.float32),
    }


def init_params(key):
    keys = jax.random.split(key, 3 + NUM_ENC_LAYERS + NUM_DEC_LAYERS)
    return {
        "src_emb": 0.02 * jax.random.normal(keys[0], (SRC_VOCAB, EMB), jnp.float32),
        "tgt_emb": 0.02 * jax.random.normal(keys[1], (TGT_VOCAB, EMB), jnp.float32),
        "gen_w": 0.02 * jax.random.normal(keys[2], (EMB, TGT_VOCAB), jnp.float32),
        "gen_b": jnp.zeros((TGT_VOCAB,), jnp.float32),
        "pe": positional_encoding_table(MAX_LEN, EMB),
        "enc_norm_g": jnp.ones((EMB,), jnp.float32),
        "enc_norm_b": jnp.zeros((EMB,), jnp.float32),
        "dec_norm_g": jnp.ones((EMB,), jnp.float32),
        "dec_norm_b": jnp.zeros((EMB,), jnp.float32),
        "enc_layers": [_init_enc_layer(keys[3 + i], EMB, FFN)
                       for i in range(NUM_ENC_LAYERS)],
        "dec_layers": [_init_dec_layer(keys[3 + NUM_ENC_LAYERS + i], EMB, FFN)
                       for i in range(NUM_DEC_LAYERS)],
    }


# ----------------------------- main --------------------------------------------
if __name__ == "__main__":
    S, T, B = 8, 8, 2
    key = jax.random.PRNGKey(0)
    k_src, k_tgt = jax.random.split(key)

    src = jax.random.randint(k_src, (S, B), 0, SRC_VOCAB, dtype=jnp.int32)
    tgt = jax.random.randint(k_tgt, (T, B), 0, TGT_VOCAB, dtype=jnp.int32)

    src_mask = jnp.zeros((S, S), jnp.float32)
    causal = jnp.triu(jnp.ones((T, T), bool), k=1)
    tgt_mask = jnp.where(causal, NEG_INF, 0.0).astype(jnp.float32)
    src_padding_mask = jnp.zeros((B, S), bool)
    tgt_padding_mask = jnp.zeros((B, T), bool)
    memory_key_padding_mask = src_padding_mask

    params = init_params(jax.random.PRNGKey(1))

    fwd = jax.jit(forward)
    out = fwd(params, src, tgt, src_mask, tgt_mask,
              src_padding_mask, tgt_padding_mask, memory_key_padding_mask)
    out = jax.block_until_ready(out)

    assert out.shape == (T, B, TGT_VOCAB), out.shape
    assert bool(jnp.all(jnp.isfinite(out)))
    print("KERNEL_OK")
</pallas_src>

<mosaic_0001>
module attributes {stable_mosaic.version = 11 : i64} {
  func.func @_layernorm_kernel(%arg0: i32, %arg1: memref<16x128xf32, #tpu.memory_space<vmem>>, %arg2: memref<1x128xf32, #tpu.memory_space<vmem>>, %arg3: memref<1x128xf32, #tpu.memory_space<vmem>>, %arg4: memref<16x128xf32, #tpu.memory_space<vmem>>) attributes {dimension_semantics = [#tpu.dimension_semantics<arbitrary>], iteration_bounds = array<i64: 1>, scalar_prefetch = 0 : i64, scratch_operands = 0 : i64, tpu.core_type = #tpu.core_type<tc>, window_params = [{pipeline_mode = #tpu.pipeline_mode<synchronous>, transform_indices = @transform_0, window_bounds = array<i64: 16, 128>}, {pipeline_mode = #tpu.pipeline_mode<synchronous>, transform_indices = @transform_1, window_bounds = array<i64: 1, 128>}, {pipeline_mode = #tpu.pipeline_mode<synchronous>, transform_indices = @transform_2, window_bounds = array<i64: 1, 128>}, {pipeline_mode = #tpu.pipeline_mode<synchronous>, transform_indices = @transform_3, window_bounds = array<i64: 16, 128>}]} {
    %c0 = arith.constant 0 : index
    %c0_0 = arith.constant 0 : index
    %0 = vector.load %arg1[%c0, %c0_0] : memref<16x128xf32, #tpu.memory_space<vmem>>, vector<16x128xf32>
    %cst = arith.constant dense<0.000000e+00> : vector<16xf32>
    %1 = vector.multi_reduction <add>, %0, %cst [1] : vector<16x128xf32> to vector<16xf32>
    %2 = vector.shape_cast %1 : vector<16xf32> to vector<16x1xf32>
    %cst_1 = arith.constant 1.280000e+02 : f32
    %3 = vector.broadcast %cst_1 : f32 to vector<16x1xf32>
    %4 = arith.divf %2, %3 : vector<16x1xf32>
    %5 = vector.broadcast %4 : vector<16x1xf32> to vector<16x128xf32>
    %6 = arith.subf %0, %5 : vector<16x128xf32>
    %7 = arith.mulf %6, %6 : vector<16x128xf32>
    %cst_2 = arith.constant dense<0.000000e+00> : vector<16xf32>
    %8 = vector.multi_reduction <add>, %7, %cst_2 [1] : vector<16x128xf32> to vector<16xf32>
    %9 = vector.shape_cast %8 : vector<16xf32> to vector<16x1xf32>
    %cst_3 = arith.constant 1.280000e+02 : f32
    %10 = vector.broadcast %cst_3 : f32 to vector<16x1xf32>
    %11 = arith.divf %9, %10 : vector<16x1xf32>
    %cst_4 = arith.constant 9.99999974E-6 : f32
    %12 = vector.broadcast %cst_4 : f32 to vector<16x1xf32>
    %13 = arith.addf %11, %12 : vector<16x1xf32>
    %14 = math.rsqrt %13 : vector<16x1xf32>
    %15 = vector.broadcast %14 : vector<16x1xf32> to vector<16x128xf32>
    %16 = arith.mulf %6, %15 : vector<16x128xf32>
    %c0_5 = arith.constant 0 : index
    %c0_6 = arith.constant 0 : index
    %17 = vector.load %arg2[%c0_5, %c0_6] : memref<1x128xf32, #tpu.memory_space<vmem>>, vector<1x128xf32>
    %18 = vector.broadcast %17 : vector<1x128xf32> to vector<16x128xf32>
    %19 = arith.mulf %16, %18 : vector<16x128xf32>
    %c0_7 = arith.constant 0 : index
    %c0_8 = arith.constant 0 : index
    %20 = vector.load %arg3[%c0_7, %c0_8] : memref<1x128xf32, #tpu.memory_space<vmem>>, vector<1x128xf32>
    %21 = vector.broadcast %20 : vector<1x128xf32> to vector<16x128xf32>
    %22 = arith.addf %19, %21 : vector<16x128xf32>
    %c0_9 = arith.constant 0 : index
    %c0_10 = arith.constant 0 : index
    %23 = vector.load %arg4[%c0_9, %c0_10] : memref<16x128xf32, #tpu.memory_space<vmem>>, vector<16x128xf32>
    tpu.vector_store %arg4[%c0_9, %c0_10], %22 {strides = array<i32>} : memref<16x128xf32, #tpu.memory_space<vmem>>, vector<16x128xf32>,
    return
  }
  func.func @transform_0(%arg0: i32) -> (i32, i32) {
    %c0_i32 = arith.constant 0 : i32
    %c0_i32_0 = arith.constant 0 : i32
    %c0_i32_1 = arith.constant 0 : i32
    return %c0_i32, %c0_i32_0 : i32, i32
  }
  func.func @transform_1(%arg0: i32) -> (i32, i32) {
    %c0_i32 = arith.constant 0 : i32
    %c0_i32_0 = arith.constant 0 : i32
    %c0_i32_1 = arith.constant 0 : i32
    return %c0_i32, %c0_i32_0 : i32, i32
  }
  func.func @transform_2(%arg0: i32) -> (i32, i32) {
    %c0_i32 = arith.constant 0 : i32
    %c0_i32_0 = arith.constant 0 : i32
    %c0_i32_1 = arith.constant 0 : i32
    return %c0_i32, %c0_i32_0 : i32, i32
  }
  func.func @transform_3(%arg0: i32) -> (i32, i32) {
    %c0_i32 = arith.constant 0 : i32
    %c0_i32_0 = arith.constant 0 : i32
    %c0_i32_1 = arith.constant 0 : i32
    return %c0_i32, %c0_i32_0 : i32, i32
  }
}

module attributes {stable_mosaic.version = 11 : i64} {
  func.func @_enc_layer_kernel(%arg0: i32, %arg1: memref<1x8x128xf32, #tpu.memory_space<vmem>>, %arg2: memref<1x8x8xf32, #tpu.memory_space<vmem>>, %arg3: memref<128x128xf32, #tpu.memory_space<vmem>>, %arg4: memref<1x128xf32, #tpu.memory_space<vmem>>, %arg5: memref<128x256xf32, #tpu.memory_space<vmem>>, %arg6: memref<1x256xf32, #tpu.memory_space<vmem>>, %arg7: memref<128x128xf32, #tpu.memory_space<vmem>>, %arg8: memref<1x128xf32, #tpu.memory_space<vmem>>, %arg9: memref<1x128xf32, #tpu.memory_space<vmem>>, %arg10: memref<1x128xf32, #tpu.memory_space<vmem>>, %arg11: memref<128x128xf32, #tpu.memory_space<vmem>>, %arg12: memref<1x128xf32, #tpu.memory_space<vmem>>, %arg13: memref<128x128xf32, #tpu.memory_space<vmem>>, %arg14: memref<1x128xf32, #tpu.memory_space<vmem>>, %arg15: memref<1x128xf32, #tpu.memory_space<vmem>>, %arg16: memref<1x128xf32, #tpu.memory_space<vmem>>, %arg17: memref<1x8x128xf32, #tpu.memory_space<vmem>>) attributes {dimension_semantics = [#tpu.dimension_semantics<parallel>], iteration_bounds = array<i64: 2>, scalar_prefetch = 0 : i64, scratch_operands = 0 : i64, tpu.core_type = #tpu.core_type<tc>, window_params = [{transform_indices = @transform_0, window_bounds = array<i64: 1, 8, 128>}, {transform_indices = @transform_1, window_bounds = array<i64: 1, 8, 8>}, {pipeline_mode = #tpu.pipeline_mode<synchronous>, transform_indices = @transform_2, window_bounds = array<i64: 128, 128>}, {pipeline_mode = #tpu.pipeline_mode<synchronous>, transform_indices = @transform_3, window_bounds = array<i64: 1, 128>}, {pipeline_mode = #tpu.pipeline_mode<synchronous>, transform_indices = @transform_4, window_bounds = array<i64: 128, 256>}, {pipeline_mode = #tpu.pipeline_mode<synchronous>, transform_indices = @transform_5, window_bounds = array<i64: 1, 256>}, {pipeline_mode = #tpu.pipeline_mode<synchronous>, transform_indices = @transform_6, window_bounds = array<i64: 128, 128>}, {pipeline_mode = #tpu.pipeline_mode<synchronous>, transform_indices = @transform_7, window_bounds = array<i64: 1, 128>}, {pipeline_mode = #tpu.pipeline_mode<synchronous>, transform_indices = @transform_8, window_bounds = array<i64: 1, 128>}, {pipeline_mode = #tpu.pipeline_mode<synchronous>, transform_indices = @transform_9, window_bounds = array<i64: 1, 128>}, {pipeline_mode = #tpu.pipeline_mode<synchronous>, transform_indices = @transform_10, window_bounds = array<i64: 128, 128>}, {pipeline_mode = #tpu.pipeline_mode<synchronous>, transform_indices = @transform_11, window_bounds = array<i64: 1, 128>}, {pipeline_mode = #tpu.pipeline_mode<synchronous>, transform_indices = @transform_12, window_bounds = array<i64: 128, 128>}, {pipeline_mode = #tpu.pipeline_mode<synchronous>, transform_indices = @transform_13, window_bounds = array<i64: 1, 128>}, {pipeline_mode = #tpu.pipeline_mode<synchronous>, transform_indices = @transform_14, window_bounds = array<i64: 1, 128>}, {pipeline_mode = #tpu.pipeline_mode<synchronous>, transform_indices = @transform_15, window_bounds = array<i64: 1, 128>}, {transform_indices = @transform_16, window_bounds = array<i64: 1, 8, 128>}]} {
    %c0 = arith.constant 0 : index
    %c0_0 = arith.constant 0 : index
    %c0_1 = arith.constant 0 : index
    %0 = vector.load %arg2[%c0, %c0_0, %c0_1] : memref<1x8x8xf32, #tpu.memory_space<vmem>>, vector<1x8x8xf32>
    %1 = vector.shape_cast %0 : vector<1x8x8xf32> to vector<8x8xf32>
    %c0_2 = arith.constant 0 : index
    %c0_3 = arith.constant 0 : index
    %c0_4 = arith.constant 0 : index
    %2 = vector.load %arg1[%c0_2, %c0_3, %c0_4] : memref<1x8x128xf32, #tpu.memory_space<vmem>>, vector<1x8x128xf32>
    %3 = vector.shape_cast %2 : vector<1x8x128xf32> to vector<8x128xf32>
    %c0_5 = arith.constant 0 : index
    %c0_6 = arith.constant 0 : index
    %4 = vector.load %arg3[%c0_5, %c0_6] : memref<128x128xf32, #tpu.memory_space<vmem>>, vector<128x128xf32>
    %cst = arith.constant dense<0.000000e+00> : vector<8x128xf32>
    %5 = tpu.matmul %3, %4, %cst {dimension_numbers = #tpu.dot_dimension_numbers<[1], [0], [0], [1], [0, 0, 1, 1], [], []>} : vector<8x128xf32>, vector<128x128xf32>, vector<8x128xf32> -> vector<8x128xf32>
    %c0_7 = arith.constant 0 : index
    %c0_8 = arith.constant 0 : index
    %6 = vector.load %arg4[%c0_7, %c0_8] : memref<1x128xf32, #tpu.memory_space<vmem>>, vector<1x128xf32>
    %7 = vector.broadcast %6 : vector<1x128xf32> to vector<8x128xf32>
    %8 = arith.addf %5, %7 : vector<8x128xf32>
    %c0_9 = arith.constant 0 : index
    %c0_10 = arith.constant 0 : index
    %9 = vector.load %arg5[%c0_9, %c0_10] : memref<128x256xf32, #tpu.memory_space<vmem>>, vector<128x256xf32>
    %cst_11 = arith.constant dense<0.000000e+00> : vector<8x256xf32>
    %10 = tpu.matmul %3, %9, %cst_11 {dimension_numbers = #tpu.dot_dimension_numbers<[1], [0], [0], [1], [0, 0, 1, 1], [], []>} : vector<8x128xf32>, vector<128x256xf32>, vector<8x256xf32> -> vector<8x256xf32>
    %c0_12 = arith.constant 0 : index
    %c0_13 = arith.constant 0 : index
    %11 = vector.load %arg6[%c0_12, %c0_13] : memref<1x256xf32, #tpu.memory_space<vmem>>, vector<1x256xf32>
    %12 = vector.broadcast %11 : vector<1x256xf32> to vector<8x256xf32>
    %13 = arith.addf %10, %12 : vector<8x256xf32>
    %14 = vector.extract_strided_slice %13 {offsets = [0, 0], sizes = [8, 128], strides = [1, 1]} : vector<8x256xf32> to vector<8x128xf32>
    %15 = vector.extract_strided_slice %13 {offsets = [0, 128], sizes = [8, 128], strides = [1, 1]} : vector<8x256xf32> to vector<8x128xf32>
    %16 = vector.extract_strided_slice %8 {offsets = [0, 0], sizes = [8, 32], strides = [1, 1]} : vector<8x128xf32> to vector<8x32xf32>
    %17 = vector.extract_strided_slice %14 {offsets = [0, 0], sizes = [8, 32], strides = [1, 1]} : vector<8x128xf32> to vector<8x32xf32>
    %18 = vector.extract_strided_slice %15 {offsets = [0, 0], sizes = [8, 32], strides = [1, 1]} : vector<8x128xf32> to vector<8x32xf32>
    %cst_14 = arith.constant dense<0.000000e+00> : vector<8x8xf32>
    %19 = tpu.matmul %16, %17, %cst_14 {dimension_numbers = #tpu.dot_dimension_numbers<[1], [1], [0], [0], [0, 0, 1, 0], [], []>} : vector<8x32xf32>, vector<8x32xf32>, vector<8x8xf32> -> vector<8x8xf32>
    %cst_15 = arith.constant 0.176776692 : f32
    %20 = vector.broadcast %cst_15 : f32 to vector<8x8xf32>
    %21 = arith.mulf %19, %20 : vector<8x8xf32>
    %22 = arith.addf %21, %1 : vector<8x8xf32>
    %cst_16 = arith.constant dense<0xFF800000> : vector<8xf32>
    %23 = vector.multi_reduction <maximumf>, %22, %cst_16 [1] : vector<8x8xf32> to vector<8xf32>
    %24 = vector.shape_cast %23 : vector<8xf32> to vector<8x1xf32>
    %25 = vector.broadcast %24 : vector<8x1xf32> to vector<8x8xf32>
    %26 = arith.subf %22, %25 : vector<8x8xf32>
    %27 = math.exp %26 : vector<8x8xf32>
    %cst_17 = arith.constant dense<0.000000e+00> : vector<8xf32>
    %28 = vector.multi_reduction <add>, %27, %cst_17 [1] : vector<8x8xf32> to vector<8xf32>
    %29 = vector.shape_cast %28 : vector<8xf32> to vector<8x1xf32>
    %30 = tpu.reciprocal %29 {approx = true} : vector<8x1xf32> -> vector<8x1xf32>
    %31 = vector.broadcast %30 : vector<8x1xf32> to vector<8x8xf32>
    %32 = arith.mulf %27, %31 : vector<8x8xf32>
    %cst_18 = arith.constant dense<0.000000e+00> : vector<8x32xf32>
    %33 = tpu.matmul %32, %18, %cst_18 {dimension_numbers = #tpu.dot_dimension_numbers<[1], [0], [0], [1], [0, 0, 1, 1], [], []>} : vector<8x8xf32>, vector<8x32xf32>, vector<8x32xf32> -> vector<8x32xf32>
    %34 = vector.extract_strided_slice %8 {offsets = [0, 32], sizes = [8, 32], strides = [1, 1]} : vector<8x128xf32> to vector<8x32xf32>
    %35 = vector.extract_strided_slice %14 {offsets = [0, 32], sizes = [8, 32], strides = [1, 1]} : vector<8x128xf32> to vector<8x32xf32>
    %36 = vector.extract_strided_slice %15 {offsets = [0, 32], sizes = [8, 32], strides = [1, 1]} : vector<8x128xf32> to vector<8x32xf32>
    %cst_19 = arith.constant dense<0.000000e+00> : vector<8x8xf32>
    %37 = tpu.matmul %34, %35, %cst_19 {dimension_numbers = #tpu.dot_dimension_numbers<[1], [1], [0], [0], [0, 0, 1, 0], [], []>} : vector<8x32xf32>, vector<8x32xf32>, vector<8x8xf32> -> vector<8x8xf32>
    %cst_20 = arith.constant 0.176776692 : f32
    %38 = vector.broadcast %cst_20 : f32 to vector<8x8xf32>
    %39 = arith.mulf %37, %38 : vector<8x8xf32>
    %40 = arith.addf %39, %1 : vector<8x8xf32>
    %cst_21 = arith.constant dense<0xFF800000> : vector<8xf32>
    %41 = vector.multi_reduction <maximumf>, %40, %cst_21 [1] : vector<8x8xf32> to vector<8xf32>
    %42 = vector.shape_cast %41 : vector<8xf32> to vector<8x1xf32>
    %43 = vector.broadcast %42 : vector<8x1xf32> to vector<8x8xf32>
    %44 = arith.subf %40, %43 : vector<8x8xf32>
    %45 = math.exp %44 : vector<8x8xf32>
    %cst_22 = arith.constant dense<0.000000e+00> : vector<8xf32>
    %46 = vector.multi_reduction <add>, %45, %cst_22 [1] : vector<8x8xf32> to vector<8xf32>
    %47 = vector.shape_cast %46 : vector<8xf32> to vector<8x1xf32>
    %48 = tpu.reciprocal %47 {approx = true} : vector<8x1xf32> -> vector<8x1xf32>
    %49 = vector.broadcast %48 : vector<8x1xf32> to vector<8x8xf32>
    %50 = arith.mulf %45, %49 : vector<8x8xf32>
    %cst_23 = arith.constant dense<0.000000e+00> : vector<8x32xf32>
    %51 = tpu.matmul %50, %36, %cst_23 {dimension_numbers = #tpu.dot_dimension_numbers<[1], [0], [0], [1], [0, 0, 1, 1], [], []>} : vector<8x8xf32>, vector<8x32xf32>, vector<8x32xf32> -> vector<8x32xf32>
    %52 = vector.extract_strided_slice %8 {offsets = [0, 64], sizes = [8, 32], strides = [1, 1]} : vector<8x128xf32> to vector<8x32xf32>
    %53 = vector.extract_strided_slice %14 {offsets = [0, 64], sizes = [8, 32], strides = [1, 1]} : vector<8x128xf32> to vector<8x32xf32>
    %54 = vector.extract_strided_slice %15 {offsets = [0, 64], sizes = [8, 32], strides = [1, 1]} : vector<8x128xf32> to vector<8x32xf32>
    %cst_24 = arith.constant dense<0.000000e+00> : vector<8x8xf32>
    %55 = tpu.matmul %52, %53, %cst_24 {dimension_numbers = #tpu.dot_dimension_numbers<[1], [1], [0], [0], [0, 0, 1, 0], [], []>} : vector<8x32xf32>, vector<8x32xf32>, vector<8x8xf32> -> vector<8x8xf32>
    %cst_25 = arith.constant 0.176776692 : f32
    %56 = vector.broadcast %cst_25 : f32 to vector<8x8xf32>
    %57 = arith.mulf %55, %56 : vector<8x8xf32>
    %58 = arith.addf %57, %1 : vector<8x8xf32>
    %cst_26 = arith.constant dense<0xFF800000> : vector<8xf32>
    %59 = vector.multi_reduction <maximumf>, %58, %cst_26 [1] : vector<8x8xf32> to vector<8xf32>
    %60 = vector.shape_cast %59 : vector<8xf32> to vector<8x1xf32>
    %61 = vector.broadcast %60 : vector<8x1xf32> to vector<8x8xf32>
    %62 = arith.subf %58, %61 : vector<8x8xf32>
    %63 = math.exp %62 : vector<8x8xf32>
    %cst_27 = arith.constant dense<0.000000e+00> : vector<8xf32>
    %64 = vector.multi_reduction <add>, %63, %cst_27 [1] : vector<8x8xf32> to vector<8xf32>
    %65 = vector.shape_cast %64 : vector<8xf32> to vector<8x1xf32>
    %66 = tpu.reciprocal %65 {approx = true} : vector<8x1xf32> -> vector<8x1xf32>
    %67 = vector.broadcast %66 : vector<8x1xf32> to vector<8x8xf32>
    %68 = arith.mulf %63, %67 : vector<8x8xf32>
    %cst_28 = arith.constant dense<0.000000e+00> : vector<8x32xf32>
    %69 = tpu.matmul %68, %54, %cst_28 {dimension_numbers = #tpu.dot_dimension_numbers<[1], [0], [0], [1], [0, 0, 1, 1], [], []>} : vector<8x8xf32>, vector<8x32xf32>, vector<8x32xf32> -> vector<8x32xf32>
    %70 = vector.extract_strided_slice %8 {offsets = [0, 96], sizes = [8, 32], strides = [1, 1]} : vector<8x128xf32> to vector<8x32xf32>
    %71 = vector.extract_strided_slice %14 {offsets = [0, 96], sizes = [8, 32], strides = [1, 1]} : vector<8x128xf32> to vector<8x32xf32>
    %72 = vector.extract_strided_slice %15 {offsets = [0, 96], sizes = [8, 32], strides = [1, 1]} : vector<8x128xf32> to vector<8x32xf32>
    %cst_29 = arith.constant dense<0.000000e+00> : vector<8x8xf32>
    %73 = tpu.matmul %70, %71, %cst_29 {dimension_numbers = #tpu.dot_dimension_numbers<[1], [1], [0], [0], [0, 0, 1, 0], [], []>} : vector<8x32xf32>, vector<8x32xf32>, vector<8x8xf32> -> vector<8x8xf32>
    %cst_30 = arith.constant 0.176776692 : f32
    %74 = vector.broadcast %cst_30 : f32 to vector<8x8xf32>
    %75 = arith.mulf %73, %74 : vector<8x8xf32>
    %76 = arith.addf %75, %1 : vector<8x8xf32>
    %cst_31 = arith.constant dense<0xFF800000> : vector<8xf32>
    %77 = vector.multi_reduction <maximumf>, %76, %cst_31 [1] : vector<8x8xf32> to vector<8xf32>
    %78 = vector.shape_cast %77 : vector<8xf32> to vector<8x1xf32>
    %79 = vector.broadcast %78 : vector<8x1xf32> to vector<8x8xf32>
    %80 = arith.subf %76, %79 : vector<8x8xf32>
    %81 = math.exp %80 : vector<8x8xf32>
    %cst_32 = arith.constant dense<0.000000e+00> : vector<8xf32>
    %82 = vector.multi_reduction <add>, %81, %cst_32 [1] : vector<8x8xf32> to vector<8xf32>
    %83 = vector.shape_cast %82 : vector<8xf32> to vector<8x1xf32>
    %84 = tpu.reciprocal %83 {approx = true} : vector<8x1xf32> -> vector<8x1xf32>
    %85 = vector.broadcast %84 : vector<8x1xf32> to vector<8x8xf32>
    %86 = arith.mulf %81, %85 : vector<8x8xf32>
    %cst_33 = arith.constant dense<0.000000e+00> : vector<8x32xf32>
    %87 = tpu.matmul %86, %72, %cst_33 {dimension_numbers = #tpu.dot_dimension_numbers<[1], [0], [0], [1], [0, 0, 1, 1], [], []>} : vector<8x8xf32>, vector<8x32xf32>, vector<8x32xf32> -> vector<8x32xf32>
    %88 = tpu.concatenate %33, %51, %69, %87 in 1 : vector<8x32xf32>, vector<8x32xf32>, vector<8x32xf32>, vector<8x32xf32> -> vector<8x128xf32>
    %c0_34 = arith.constant 0 : index
    %c0_35 = arith.constant 0 : index
    %89 = vector.load %arg7[%c0_34, %c0_35] : memref<128x128xf32, #tpu.memory_space<vmem>>, vector<128x128xf32>
    %cst_36 = arith.constant dense<0.000000e+00> : vector<8x128xf32>
    %90 = tpu.matmul %88, %89, %cst_36 {dimension_numbers = #tpu.dot_dimension_numbers<[1], [0], [0], [1], [0, 0, 1, 1], [], []>} : vector<8x128xf32>, vector<128x128xf32>, vector<8x128xf32> -> vector<8x128xf32>
    %c0_37 = arith.constant 0 : index
    %c0_38 = arith.constant 0 : index
    %91 = vector.load %arg8[%c0_37, %c0_38] : memref<1x128xf32, #tpu.memory_space<vmem>>, vector<1x128xf32>
    %92 = vector.broadcast %91 : vector<1x128xf32> to vector<8x128xf32>
    %93 = arith.addf %90, %92 : vector<8x128xf32>
    %94 = arith.addf %3, %93 : vector<8x128xf32>
    %cst_39 = arith.constant dense<0.000000e+00> : vector<8xf32>
    %95 = vector.multi_reduction <add>, %94, %cst_39 [1] : vector<8x128xf32> to vector<8xf32>
    %96 = vector.shape_cast %95 : vector<8xf32> to vector<8x1xf32>
    %cst_40 = arith.constant 1.280000e+02 : f32
    %97 = vector.broadcast %cst_40 : f32 to vector<8x1xf32>
    %98 = arith.divf %96, %97 : vector<8x1xf32>
    %99 = vector.broadcast %98 : vector<8x1xf32> to vector<8x128xf32>
    %100 = arith.subf %94, %99 : vector<8x128xf32>
    %101 = arith.mulf %100, %100 : vector<8x128xf32>
    %cst_41 = arith.constant dense<0.000000e+00> : vector<8xf32>
    %102 = vector.multi_reduction <add>, %101, %cst_41 [1] : vector<8x128xf32> to vector<8xf32>
    %103 = vector.shape_cast %102 : vector<8xf32> to vector<8x1xf32>
    %cst_42 = arith.constant 1.280000e+02 : f32
    %104 = vector.broadcast %cst_42 : f32 to vector<8x1xf32>
    %105 = arith.divf %103, %104 : vector<8x1xf32>
    %cst_43 = arith.constant 9.99999974E-6 : f32
    %106 = vector.broadcast %cst_43 : f32 to vector<8x1xf32>
    %107 = arith.addf %105, %106 : vector<8x1xf32>
    %108 = math.rsqrt %107 : vector<8x1xf32>
    %109 = vector.broadcast %108 : vector<8x1xf32> to vector<8x128xf32>
    %110 = arith.mulf %100, %109 : vector<8x128xf32>
    %c0_44 = arith.constant 0 : index
    %c0_45 = arith.constant 0 : index
    %111 = vector.load %arg9[%c0_44, %c0_45] : memref<1x128xf32, #tpu.memory_space<vmem>>, vector<1x128xf32>
    %112 = vector.broadcast %111 : vector<1x128xf32> to vector<8x128xf32>
    %113 = arith.mulf %110, %112 : vector<8x128xf32>
    %c0_46 = arith.constant 0 : index
    %c0_47 = arith.constant 0 : index
    %114 = vector.load %arg10[%c0_46, %c0_47] : memref<1x128xf32, #tpu.memory_space<vmem>>, vector<1x128xf32>
    %115 = vector.broadcast %114 : vector<1x128xf32> to vector<8x128xf32>
    %116 = arith.addf %113, %115 : vector<8x128xf32>
    %c0_48 = arith.constant 0 : index
    %c0_49 = arith.constant 0 : index
    %117 = vector.load %arg11[%c0_48, %c0_49] : memref<128x128xf32, #tpu.memory_space<vmem>>, vector<128x128xf32>
    %cst_50 = arith.constant dense<0.000000e+00> : vector<8x128xf32>
    %118 = tpu.matmul %116, %117, %cst_50 {dimension_numbers = #tpu.dot_dimension_numbers<[1], [0], [0], [1], [0, 0, 1, 1], [], []>} : vector<8x128xf32>, vector<128x128xf32>, vector<8x128xf32> -> vector<8x128xf32>
    %c0_51 = arith.constant 0 : index
    %c0_52 = arith.constant 0 : index
    %119 = vector.load %arg12[%c0_51, %c0_52] : memref<1x128xf32, #tpu.memory_space<vmem>>, vector<1x128xf32>
    %120 = vector.broadcast %119 : vector<1x128xf32> to vector<8x128xf32>
    %121 = arith.addf %118, %120 : vector<8x128xf32>
    %cst_53 = arith.constant 0.000000e+00 : f32
    %122 = vector.broadcast %cst_53 : f32 to vector<8x128xf32>
    %123 = arith.maximumf %121, %122 : vector<8x128xf32>
    %c0_54 = arith.constant 0 : index
    %c0_55 = arith.constant 0 : index
    %124 = vector.load %arg13[%c0_54, %c0_55] : memref<128x128xf32, #tpu.memory_space<vmem>>, vector<128x128xf32>
    %cst_56 = arith.constant dense<0.000000e+00> : vector<8x128xf32>
    %125 = tpu.matmul %123, %124, %cst_56 {dimension_numbers = #tpu.dot_dimension_numbers<[1], [0], [0], [1], [0, 0, 1, 1], [], []>} : vector<8x128xf32>, vector<128x128xf32>, vector<8x128xf32> -> vector<8x128xf32>
    %c0_57 = arith.constant 0 : index
    %c0_58 = arith.constant 0 : index
    %126 = vector.load %arg14[%c0_57, %c0_58] : memref<1x128xf32, #tpu.memory_space<vmem>>, vector<1x128xf32>
    %127 = vector.broadcast %126 : vector<1x128xf32> to vector<8x128xf32>
    %128 = arith.addf %125, %127 : vector<8x128xf32>
    %129 = arith.addf %116, %128 : vector<8x128xf32>
    %cst_59 = arith.constant dense<0.000000e+00> : vector<8xf32>
    %130 = vector.multi_reduction <add>, %129, %cst_59 [1] : vector<8x128xf32> to vector<8xf32>
    %131 = vector.shape_cast %130 : vector<8xf32> to vector<8x1xf32>
    %cst_60 = arith.constant 1.280000e+02 : f32
    %132 = vector.broadcast %cst_60 : f32 to vector<8x1xf32>
    %133 = arith.divf %131, %132 : vector<8x1xf32>
    %134 = vector.broadcast %133 : vector<8x1xf32> to vector<8x128xf32>
    %135 = arith.subf %129, %134 : vector<8x128xf32>
    %136 = arith.mulf %135, %135 : vector<8x128xf32>
    %cst_61 = arith.constant dense<0.000000e+00> : vector<8xf32>
    %137 = vector.multi_reduction <add>, %136, %cst_61 [1] : vector<8x128xf32> to vector<8xf32>
    %138 = vector.shape_cast %137 : vector<8xf32> to vector<8x1xf32>
    %cst_62 = arith.constant 1.280000e+02 : f32
    %139 = vector.broadcast %cst_62 : f32 to vector<8x1xf32>
    %140 = arith.divf %138, %139 : vector<8x1xf32>
    %cst_63 = arith.constant 9.99999974E-6 : f32
    %141 = vector.broadcast %cst_63 : f32 to vector<8x1xf32>
    %142 = arith.addf %140, %141 : vector<8x1xf32>
    %143 = math.rsqrt %142 : vector<8x1xf32>
    %144 = vector.broadcast %143 : vector<8x1xf32> to vector<8x128xf32>
    %145 = arith.mulf %135, %144 : vector<8x128xf32>
    %c0_64 = arith.constant 0 : index
    %c0_65 = arith.constant 0 : index
    %146 = vector.load %arg15[%c0_64, %c0_65] : memref<1x128xf32, #tpu.memory_space<vmem>>, vector<1x128xf32>
    %147 = vector.broadcast %146 : vector<1x128xf32> to vector<8x128xf32>
    %148 = arith.mulf %145, %147 : vector<8x128xf32>
    %c0_66 = arith.constant 0 : index
    %c0_67 = arith.constant 0 : index
    %149 = vector.load %arg16[%c0_66, %c0_67] : memref<1x128xf32, #tpu.memory_space<vmem>>, vector<1x128xf32>
    %150 = vector.broadcast %149 : vector<1x128xf32> to vector<8x128xf32>
    %151 = arith.addf %148, %150 : vector<8x128xf32>
    %c0_68 = arith.constant 0 : index
    %c0_69 = arith.constant 0 : index
    %c0_70 = arith.constant 0 : index
    %152 = vector.load %arg17[%c0_68, %c0_69, %c0_70] : memref<1x8x128xf32, #tpu.memory_space<vmem>>, vector<1x8x128xf32>
    %153 = vector.shape_cast %152 : vector<1x8x128xf32> to vector<8x128xf32>
    %154 = vector.shape_cast %151 : vector<8x128xf32> to vector<1x8x128xf32>
    tpu.vector_store %arg17[%c0_68, %c0_69, %c0_70], %154 {strides = array<i32>} : memref<1x8x128xf32, #tpu.memory_space<vmem>>, vector<1x8x128xf32>,
    return
  }
  func.func @transform_0(%arg0: i32) -> (i32, i32, i32) {
    %c0_i32 = arith.constant 0 : i32
    %c0_i32_0 = arith.constant 0 : i32
    %c0_i32_1 = arith.constant 0 : i32
    return %arg0, %c0_i32, %c0_i32_0 : i32, i32, i32
  }
  func.func @transform_1(%arg0: i32) -> (i32, i32, i32) {
    %c0_i32 = arith.constant 0 : i32
    %c0_i32_0 = arith.constant 0 : i32
    %c0_i32_1 = arith.constant 0 : i32
    return %arg0, %c0_i32, %c0_i32_0 : i32, i32, i32
  }
  func.func @transform_2(%arg0: i32) -> (i32, i32) {
    %c0_i32 = arith.constant 0 : i32
    %c0_i32_0 = arith.constant 0 : i32
    %c0_i32_1 = arith.constant 0 : i32
    return %c0_i32, %c0_i32_0 : i32, i32
  }
  func.func @transform_3(%arg0: i32) -> (i32, i32) {
    %c0_i32 = arith.constant 0 : i32
    %c0_i32_0 = arith.constant 0 : i32
    %c0_i32_1 = arith.constant 0 : i32
    return %c0_i32, %c0_i32_0 : i32, i32
  }
  func.func @transform_4(%arg0: i32) -> (i32, i32) {
    %c0_i32 = arith.constant 0 : i32
    %c0_i32_0 = arith.constant 0 : i32
    %c0_i32_1 = arith.constant 0 : i32
    return %c0_i32, %c0_i32_0 : i32, i32
  }
  func.func @transform_5(%arg0: i32) -> (i32, i32) {
    %c0_i32 = arith.constant 0 : i32
    %c0_i32_0 = arith.constant 0 : i32
    %c0_i32_1 = arith.constant 0 : i32
    return %c0_i32, %c0_i32_0 : i32, i32
  }
  func.func @transform_6(%arg0: i32) -> (i32, i32) {
    %c0_i32 = arith.constant 0 : i32
    %c0_i32_0 = arith.constant 0 : i32
    %c0_i32_1 = arith.constant 0 : i32
    return %c0_i32, %c0_i32_0 : i32, i32
  }
  func.func @transform_7(%arg0: i32) -> (i32, i32) {
    %c0_i32 = arith.constant 0 : i32
    %c0_i32_0 = arith.constant 0 : i32
    %c0_i32_1 = arith.constant 0 : i32
    return %c0_i32, %c0_i32_0 : i32, i32
  }
  func.func @transform_8(%arg0: i32) -> (i32, i32) {
    %c0_i32 = arith.constant 0 : i32
    %c0_i32_0 = arith.constant 0 : i32
    %c0_i32_1 = arith.constant 0 : i32
    return %c0_i32, %c0_i32_0 : i32, i32
  }
  func.func @transform_9(%arg0: i32) -> (i32, i32) {
    %c0_i32 = arith.constant 0 : i32
    %c0_i32_0 = arith.constant 0 : i32
    %c0_i32_1 = arith.constant 0 : i32
    return %c0_i32, %c0_i32_0 : i32, i32
  }
  func.func @transform_10(%arg0: i32) -> (i32, i32) {
    %c0_i32 = arith.constant 0 : i32
    %c0_i32_0 = arith.constant 0 : i32
    %c0_i32_1 = arith.constant 0 : i32
    return %c0_i32, %c0_i32_0 : i32, i32
  }
  func.func @transform_11(%arg0: i32) -> (i32, i32) {
    %c0_i32 = arith.constant 0 : i32
    %c0_i32_0 = arith.constant 0 : i32
    %c0_i32_1 = arith.constant 0 : i32
    return %c0_i32, %c0_i32_0 : i32, i32
  }
  func.func @transform_12(%arg0: i32) -> (i32, i32) {
    %c0_i32 = arith.constant 0 : i32
    %c0_i32_0 = arith.constant 0 : i32
    %c0_i32_1 = arith.constant 0 : i32
    return %c0_i32, %c0_i32_0 : i32, i32
  }
  func.func @transform_13(%arg0: i32) -> (i32, i32) {
    %c0_i32 = arith.constant 0 : i32
    %c0_i32_0 = arith.constant 0 : i32
    %c0_i32_1 = arith.constant 0 : i32
    return %c0_i32, %c0_i32_0 : i32, i32
  }
  func.func @transform_14(%arg0: i32) -> (i32, i32) {
    %c0_i32 = arith.constant 0 : i32
    %c0_i32_0 = arith.constant 0 : i32
    %c0_i32_1 = arith.constant 0 : i32
    return %c0_i32, %c0_i32_0 : i32, i32
  }
  func.func @transform_15(%arg0: i32) -> (i32, i32) {
    %c0_i32 = arith.constant 0 : i32
    %c0_i32_0 = arith.constant 0 : i32
    %c0_i32_1 = arith.constant 0 : i32
    return %c0_i32, %c0_i32_0 : i32, i32
  }
  func.func @transform_16(%arg0: i32) -> (i32, i32, i32) {
    %c0_i32 = arith.constant 0 : i32
    %c0_i32_0 = arith.constant 0 : i32
    %c0_i32_1 = arith.constant 0 : i32
    return %arg0, %c0_i32, %c0_i32_0 : i32, i32, i32
  }
}

module attributes {stable_mosaic.version = 11 : i64} {
  func.func @_dec_layer_kernel(%arg0: i32, %arg1: memref<1x8x128xf32, #tpu.memory_space<vmem>>, %arg2: memref<1x8x128xf32, #tpu.memory_space<vmem>>, %arg3: memref<1x8x8xf32, #tpu.memory_space<vmem>>, %arg4: memref<1x8x8xf32, #tpu.memory_space<vmem>>, %arg5: memref<128x128xf32, #tpu.memory_space<vmem>>, %arg6: memref<1x128xf32, #tpu.memory_space<vmem>>, %arg7: memref<128x256xf32, #tpu.memory_space<vmem>>, %arg8: memref<1x256xf32, #tpu.memory_space<vmem>>, %arg9: memref<128x128xf32, #tpu.memory_space<vmem>>, %arg10: memref<1x128xf32, #tpu.memory_space<vmem>>, %arg11: memref<1x128xf32, #tpu.memory_space<vmem>>, %arg12: memref<1x128xf32, #tpu.memory_space<vmem>>, %arg13: memref<128x128xf32, #tpu.memory_space<vmem>>, %arg14: memref<1x128xf32, #tpu.memory_space<vmem>>, %arg15: memref<128x256xf32, #tpu.memory_space<vmem>>, %arg16: memref<1x256xf32, #tpu.memory_space<vmem>>, %arg17: memref<128x128xf32, #tpu.memory_space<vmem>>, %arg18: memref<1x128xf32, #tpu.memory_space<vmem>>, %arg19: memref<1x128xf32, #tpu.memory_space<vmem>>, %arg20: memref<1x128xf32, #tpu.memory_space<vmem>>, %arg21: memref<128x128xf32, #tpu.memory_space<vmem>>, %arg22: memref<1x128xf32, #tpu.memory_space<vmem>>, %arg23: memref<128x128xf32, #tpu.memory_space<vmem>>, %arg24: memref<1x128xf32, #tpu.memory_space<vmem>>, %arg25: memref<1x128xf32, #tpu.memory_space<vmem>>, %arg26: memref<1x128xf32, #tpu.memory_space<vmem>>, %arg27: memref<1x8x128xf32, #tpu.memory_space<vmem>>) attributes {dimension_semantics = [#tpu.dimension_semantics<parallel>], iteration_bounds = array<i64: 2>, scalar_prefetch = 0 : i64, scratch_operands = 0 : i64, tpu.core_type = #tpu.core_type<tc>, window_params = [{transform_indices = @transform_0, window_bounds = array<i64: 1, 8, 128>}, {transform_indices = @transform_1, window_bounds = array<i64: 1, 8, 128>}, {transform_indices = @transform_2, window_bounds = array<i64: 1, 8, 8>}, {transform_indices = @transform_3, window_bounds = array<i64: 1, 8, 8>}, {pipeline_mode = #tpu.pipeline_mode<synchronous>, transform_indices = @transform_4, window_bounds = array<i64: 128, 128>}, {pipeline_mode = #tpu.pipeline_mode<synchronous>, transform_indices = @transform_5, window_bounds = array<i64: 1, 128>}, {pipeline_mode = #tpu.pipeline_mode<synchronous>, transform_indices = @transform_6, window_bounds = array<i64: 128, 256>}, {pipeline_mode = #tpu.pipeline_mode<synchronous>, transform_indices = @transform_7, window_bounds = array<i64: 1, 256>}, {pipeline_mode = #tpu.pipeline_mode<synchronous>, transform_indices = @transform_8, window_bounds = array<i64: 128, 128>}, {pipeline_mode = #tpu.pipeline_mode<synchronous>, transform_indices = @transform_9, window_bounds = array<i64: 1, 128>}, {pipeline_mode = #tpu.pipeline_mode<synchronous>, transform_indices = @transform_10, window_bounds = array<i64: 1, 128>}, {pipeline_mode = #tpu.pipeline_mode<synchronous>, transform_indices = @transform_11, window_bounds = array<i64: 1, 128>}, {pipeline_mode = #tpu.pipeline_mode<synchronous>, transform_indices = @transform_12, window_bounds = array<i64: 128, 128>}, {pipeline_mode = #tpu.pipeline_mode<synchronous>, transform_indices = @transform_13, window_bounds = array<i64: 1, 128>}, {pipeline_mode = #tpu.pipeline_mode<synchronous>, transform_indices = @transform_14, window_bounds = array<i64: 128, 256>}, {pipeline_mode = #tpu.pipeline_mode<synchronous>, transform_indices = @transform_15, window_bounds = array<i64: 1, 256>}, {pipeline_mode = #tpu.pipeline_mode<synchronous>, transform_indices = @transform_16, window_bounds = array<i64: 128, 128>}, {pipeline_mode = #tpu.pipeline_mode<synchronous>, transform_indices = @transform_17, window_bounds = array<i64: 1, 128>}, {pipeline_mode = #tpu.pipeline_mode<synchronous>, transform_indices = @transform_18, window_bounds = array<i64: 1, 128>}, {pipeline_mode = #tpu.pipeline_mode<synchronous>, transform_indices = @transform_19, window_bounds = array<i64: 1, 128>}, {pipeline_mode = #tpu.pipeline_mode<synchronous>, transform_indices = @transform_20, window_bounds = array<i64: 128, 128>}, {pipeline_mode = #tpu.pipeline_mode<synchronous>, transform_indices = @transform_21, window_bounds = array<i64: 1, 128>}, {pipeline_mode = #tpu.pipeline_mode<synchronous>, transform_indices = @transform_22, window_bounds = array<i64: 128, 128>}, {pipeline_mode = #tpu.pipeline_mode<synchronous>, transform_indices = @transform_23, window_bounds = array<i64: 1, 128>}, {pipeline_mode = #tpu.pipeline_mode<synchronous>, transform_indices = @transform_24, window_bounds = array<i64: 1, 128>}, {pipeline_mode = #tpu.pipeline_mode<synchronous>, transform_indices = @transform_25, window_bounds = array<i64: 1, 128>}, {transform_indices = @transform_26, window_bounds = array<i64: 1, 8, 128>}]} {
    %c0 = arith.constant 0 : index
    %c0_0 = arith.constant 0 : index
    %c0_1 = arith.constant 0 : index
    %0 = vector.load %arg3[%c0, %c0_0, %c0_1] : memref<1x8x8xf32, #tpu.memory_space<vmem>>, vector<1x8x8xf32>
    %1 = vector.shape_cast %0 : vector<1x8x8xf32> to vector<8x8xf32>
    %c0_2 = arith.constant 0 : index
    %c0_3 = arith.constant 0 : index
    %c0_4 = arith.constant 0 : index
    %2 = vector.load %arg4[%c0_2, %c0_3, %c0_4] : memref<1x8x8xf32, #tpu.memory_space<vmem>>, vector<1x8x8xf32>
    %3 = vector.shape_cast %2 : vector<1x8x8xf32> to vector<8x8xf32>
    %c0_5 = arith.constant 0 : index
    %c0_6 = arith.constant 0 : index
    %c0_7 = arith.constant 0 : index
    %4 = vector.load %arg1[%c0_5, %c0_6, %c0_7] : memref<1x8x128xf32, #tpu.memory_space<vmem>>, vector<1x8x128xf32>
    %5 = vector.shape_cast %4 : vector<1x8x128xf32> to vector<8x128xf32>
    %c0_8 = arith.constant 0 : index
    %c0_9 = arith.constant 0 : index
    %c0_10 = arith.constant 0 : index
    %6 = vector.load %arg2[%c0_8, %c0_9, %c0_10] : memref<1x8x128xf32, #tpu.memory_space<vmem>>, vector<1x8x128xf32>
    %7 = vector.shape_cast %6 : vector<1x8x128xf32> to vector<8x128xf32>
    %c0_11 = arith.constant 0 : index
    %c0_12 = arith.constant 0 : index
    %8 = vector.load %arg5[%c0_11, %c0_12] : memref<128x128xf32, #tpu.memory_space<vmem>>, vector<128x128xf32>
    %cst = arith.constant dense<0.000000e+00> : vector<8x128xf32>
    %9 = tpu.matmul %5, %8, %cst {dimension_numbers = #tpu.dot_dimension_numbers<[1], [0], [0], [1], [0, 0, 1, 1], [], []>} : vector<8x128xf32>, vector<128x128xf32>, vector<8x128xf32> -> vector<8x128xf32>
    %c0_13 = arith.constant 0 : index
    %c0_14 = arith.constant 0 : index
    %10 = vector.load %arg6[%c0_13, %c0_14] : memref<1x128xf32, #tpu.memory_space<vmem>>, vector<1x128xf32>
    %11 = vector.broadcast %10 : vector<1x128xf32> to vector<8x128xf32>
    %12 = arith.addf %9, %11 : vector<8x128xf32>
    %c0_15 = arith.constant 0 : index
    %c0_16 = arith.constant 0 : index
    %13 = vector.load %arg7[%c0_15, %c0_16] : memref<128x256xf32, #tpu.memory_space<vmem>>, vector<128x256xf32>
    %cst_17 = arith.constant dense<0.000000e+00> : vector<8x256xf32>
    %14 = tpu.matmul %5, %13, %cst_17 {dimension_numbers = #tpu.dot_dimension_numbers<[1], [0], [0], [1], [0, 0, 1, 1], [], []>} : vector<8x128xf32>, vector<128x256xf32>, vector<8x256xf32> -> vector<8x256xf32>
    %c0_18 = arith.constant 0 : index
    %c0_19 = arith.constant 0 : index
    %15 = vector.load %arg8[%c0_18, %c0_19] : memref<1x256xf32, #tpu.memory_space<vmem>>, vector<1x256xf32>
    %16 = vector.broadcast %15 : vector<1x256xf32> to vector<8x256xf32>
    %17 = arith.addf %14, %16 : vector<8x256xf32>
    %18 = vector.extract_strided_slice %17 {offsets = [0, 0], sizes = [8, 128], strides = [1, 1]} : vector<8x256xf32> to vector<8x128xf32>
    %19 = vector.extract_strided_slice %17 {offsets = [0, 128], sizes = [8, 128], strides = [1, 1]} : vector<8x256xf32> to vector<8x128xf32>
    %20 = vector.extract_strided_slice %12 {offsets = [0, 0], sizes = [8, 32], strides = [1, 1]} : vector<8x128xf32> to vector<8x32xf32>
    %21 = vector.extract_strided_slice %18 {offsets = [0, 0], sizes = [8, 32], strides = [1, 1]} : vector<8x128xf32> to vector<8x32xf32>
    %22 = vector.extract_strided_slice %19 {offsets = [0, 0], sizes = [8, 32], strides = [1, 1]} : vector<8x128xf32> to vector<8x32xf32>
    %cst_20 = arith.constant dense<0.000000e+00> : vector<8x8xf32>
    %23 = tpu.matmul %20, %21, %cst_20 {dimension_numbers = #tpu.dot_dimension_numbers<[1], [1], [0], [0], [0, 0, 1, 0], [], []>} : vector<8x32xf32>, vector<8x32xf32>, vector<8x8xf32> -> vector<8x8xf32>
    %cst_21 = arith.constant 0.176776692 : f32
    %24 = vector.broadcast %cst_21 : f32 to vector<8x8xf32>
    %25 = arith.mulf %23, %24 : vector<8x8xf32>
    %26 = arith.addf %25, %1 : vector<8x8xf32>
    %cst_22 = arith.constant dense<0xFF800000> : vector<8xf32>
    %27 = vector.multi_reduction <maximumf>, %26, %cst_22 [1] : vector<8x8xf32> to vector<8xf32>
    %28 = vector.shape_cast %27 : vector<8xf32> to vector<8x1xf32>
    %29 = vector.broadcast %28 : vector<8x1xf32> to vector<8x8xf32>
    %30 = arith.subf %26, %29 : vector<8x8xf32>
    %31 = math.exp %30 : vector<8x8xf32>
    %cst_23 = arith.constant dense<0.000000e+00> : vector<8xf32>
    %32 = vector.multi_reduction <add>, %31, %cst_23 [1] : vector<8x8xf32> to vector<8xf32>
    %33 = vector.shape_cast %32 : vector<8xf32> to vector<8x1xf32>
    %34 = tpu.reciprocal %33 {approx = true} : vector<8x1xf32> -> vector<8x1xf32>
    %35 = vector.broadcast %34 : vector<8x1xf32> to vector<8x8xf32>
    %36 = arith.mulf %31, %35 : vector<8x8xf32>
    %cst_24 = arith.constant dense<0.000000e+00> : vector<8x32xf32>
    %37 = tpu.matmul %36, %22, %cst_24 {dimension_numbers = #tpu.dot_dimension_numbers<[1], [0], [0], [1], [0, 0, 1, 1], [], []>} : vector<8x8xf32>, vector<8x32xf32>, vector<8x32xf32> -> vector<8x32xf32>
    %38 = vector.extract_strided_slice %12 {offsets = [0, 32], sizes = [8, 32], strides = [1, 1]} : vector<8x128xf32> to vector<8x32xf32>
    %39 = vector.extract_strided_slice %18 {offsets = [0, 32], sizes = [8, 32], strides = [1, 1]} : vector<8x128xf32> to vector<8x32xf32>
    %40 = vector.extract_strided_slice %19 {offsets = [0, 32], sizes = [8, 32], strides = [1, 1]} : vector<8x128xf32> to vector<8x32xf32>
    %cst_25 = arith.constant dense<0.000000e+00> : vector<8x8xf32>
    %41 = tpu.matmul %38, %39, %cst_25 {dimension_numbers = #tpu.dot_dimension_numbers<[1], [1], [0], [0], [0, 0, 1, 0], [], []>} : vector<8x32xf32>, vector<8x32xf32>, vector<8x8xf32> -> vector<8x8xf32>
    %cst_26 = arith.constant 0.176776692 : f32
    %42 = vector.broadcast %cst_26 : f32 to vector<8x8xf32>
    %43 = arith.mulf %41, %42 : vector<8x8xf32>
    %44 = arith.addf %43, %1 : vector<8x8xf32>
    %cst_27 = arith.constant dense<0xFF800000> : vector<8xf32>
    %45 = vector.multi_reduction <maximumf>, %44, %cst_27 [1] : vector<8x8xf32> to vector<8xf32>
    %46 = vector.shape_cast %45 : vector<8xf32> to vector<8x1xf32>
    %47 = vector.broadcast %46 : vector<8x1xf32> to vector<8x8xf32>
    %48 = arith.subf %44, %47 : vector<8x8xf32>
    %49 = math.exp %48 : vector<8x8xf32>
    %cst_28 = arith.constant dense<0.000000e+00> : vector<8xf32>
    %50 = vector.multi_reduction <add>, %49, %cst_28 [1] : vector<8x8xf32> to vector<8xf32>
    %51 = vector.shape_cast %50 : vector<8xf32> to vector<8x1xf32>
    %52 = tpu.reciprocal %51 {approx = true} : vector<8x1xf32> -> vector<8x1xf32>
    %53 = vector.broadcast %52 : vector<8x1xf32> to vector<8x8xf32>
    %54 = arith.mulf %49, %53 : vector<8x8xf32>
    %cst_29 = arith.constant dense<0.000000e+00> : vector<8x32xf32>
    %55 = tpu.matmul %54, %40, %cst_29 {dimension_numbers = #tpu.dot_dimension_numbers<[1], [0], [0], [1], [0, 0, 1, 1], [], []>} : vector<8x8xf32>, vector<8x32xf32>, vector<8x32xf32> -> vector<8x32xf32>
    %56 = vector.extract_strided_slice %12 {offsets = [0, 64], sizes = [8, 32], strides = [1, 1]} : vector<8x128xf32> to vector<8x32xf32>
    %57 = vector.extract_strided_slice %18 {offsets = [0, 64], sizes = [8, 32], strides = [1, 1]} : vector<8x128xf32> to vector<8x32xf32>
    %58 = vector.extract_strided_slice %19 {offsets = [0, 64], sizes = [8, 32], strides = [1, 1]} : vector<8x128xf32> to vector<8x32xf32>
    %cst_30 = arith.constant dense<0.000000e+00> : vector<8x8xf32>
    %59 = tpu.matmul %56, %57, %cst_30 {dimension_numbers = #tpu.dot_dimension_numbers<[1], [1], [0], [0], [0, 0, 1, 0], [], []>} : vector<8x32xf32>, vector<8x32xf32>, vector<8x8xf32> -> vector<8x8xf32>
    %cst_31 = arith.constant 0.176776692 : f32
    %60 = vector.broadcast %cst_31 : f32 to vector<8x8xf32>
    %61 = arith.mulf %59, %60 : vector<8x8xf32>
    %62 = arith.addf %61, %1 : vector<8x8xf32>
    %cst_32 = arith.constant dense<0xFF800000> : vector<8xf32>
    %63 = vector.multi_reduction <maximumf>, %62, %cst_32 [1] : vector<8x8xf32> to vector<8xf32>
    %64 = vector.shape_cast %63 : vector<8xf32> to vector<8x1xf32>
    %65 = vector.broadcast %64 : vector<8x1xf32> to vector<8x8xf32>
    %66 = arith.subf %62, %65 : vector<8x8xf32>
    %67 = math.exp %66 : vector<8x8xf32>
    %cst_33 = arith.constant dense<0.000000e+00> : vector<8xf32>
    %68 = vector.multi_reduction <add>, %67, %cst_33 [1] : vector<8x8xf32> to vector<8xf32>
    %69 = vector.shape_cast %68 : vector<8xf32> to vector<8x1xf32>
    %70 = tpu.reciprocal %69 {approx = true} : vector<8x1xf32> -> vector<8x1xf32>
    %71 = vector.broadcast %70 : vector<8x1xf32> to vector<8x8xf32>
    %72 = arith.mulf %67, %71 : vector<8x8xf32>
    %cst_34 = arith.constant dense<0.000000e+00> : vector<8x32xf32>
    %73 = tpu.matmul %72, %58, %cst_34 {dimension_numbers = #tpu.dot_dimension_numbers<[1], [0], [0], [1], [0, 0, 1, 1], [], []>} : vector<8x8xf32>, vector<8x32xf32>, vector<8x32xf32> -> vector<8x32xf32>
    %74 = vector.extract_strided_slice %12 {offsets = [0, 96], sizes = [8, 32], strides = [1, 1]} : vector<8x128xf32> to vector<8x32xf32>
    %75 = vector.extract_strided_slice %18 {offsets = [0, 96], sizes = [8, 32], strides = [1, 1]} : vector<8x128xf32> to vector<8x32xf32>
    %76 = vector.extract_strided_slice %19 {offsets = [0, 96], sizes = [8, 32], strides = [1, 1]} : vector<8x128xf32> to vector<8x32xf32>
    %cst_35 = arith.constant dense<0.000000e+00> : vector<8x8xf32>
    %77 = tpu.matmul %74, %75, %cst_35 {dimension_numbers = #tpu.dot_dimension_numbers<[1], [1], [0], [0], [0, 0, 1, 0], [], []>} : vector<8x32xf32>, vector<8x32xf32>, vector<8x8xf32> -> vector<8x8xf32>
    %cst_36 = arith.constant 0.176776692 : f32
    %78 = vector.broadcast %cst_36 : f32 to vector<8x8xf32>
    %79 = arith.mulf %77, %78 : vector<8x8xf32>
    %80 = arith.addf %79, %1 : vector<8x8xf32>
    %cst_37 = arith.constant dense<0xFF800000> : vector<8xf32>
    %81 = vector.multi_reduction <maximumf>, %80, %cst_37 [1] : vector<8x8xf32> to vector<8xf32>
    %82 = vector.shape_cast %81 : vector<8xf32> to vector<8x1xf32>
    %83 = vector.broadcast %82 : vector<8x1xf32> to vector<8x8xf32>
    %84 = arith.subf %80, %83 : vector<8x8xf32>
    %85 = math.exp %84 : vector<8x8xf32>
    %cst_38 = arith.constant dense<0.000000e+00> : vector<8xf32>
    %86 = vector.multi_reduction <add>, %85, %cst_38 [1] : vector<8x8xf32> to vector<8xf32>
    %87 = vector.shape_cast %86 : vector<8xf32> to vector<8x1xf32>
    %88 = tpu.reciprocal %87 {approx = true} : vector<8x1xf32> -> vector<8x1xf32>
    %89 = vector.broadcast %88 : vector<8x1xf32> to vector<8x8xf32>
    %90 = arith.mulf %85, %89 : vector<8x8xf32>
    %cst_39 = arith.constant dense<0.000000e+00> : vector<8x32xf32>
    %91 = tpu.matmul %90, %76, %cst_39 {dimension_numbers = #tpu.dot_dimension_numbers<[1], [0], [0], [1], [0, 0, 1, 1], [], []>} : vector<8x8xf32>, vector<8x32xf32>, vector<8x32xf32> -> vector<8x32xf32>
    %92 = tpu.concatenate %37, %55, %73, %91 in 1 : vector<8x32xf32>, vector<8x32xf32>, vector<8x32xf32>, vector<8x32xf32> -> vector<8x128xf32>
    %c0_40 = arith.constant 0 : index
    %c0_41 = arith.constant 0 : index
    %93 = vector.load %arg9[%c0_40, %c0_41] : memref<128x128xf32, #tpu.memory_space<vmem>>, vector<128x128xf32>
    %cst_42 = arith.constant dense<0.000000e+00> : vector<8x128xf32>
    %94 = tpu.matmul %92, %93, %cst_42 {dimension_numbers = #tpu.dot_dimension_numbers<[1], [0], [0], [1], [0, 0, 1, 1], [], []>} : vector<8x128xf32>, vector<128x128xf32>, vector<8x128xf32> -> vector<8x128xf32>
    %c0_43 = arith.constant 0 : index
    %c0_44 = arith.constant 0 : index
    %95 = vector.load %arg10[%c0_43, %c0_44] : memref<1x128xf32, #tpu.memory_space<vmem>>, vector<1x128xf32>
    %96 = vector.broadcast %95 : vector<1x128xf32> to vector<8x128xf32>
    %97 = arith.addf %94, %96 : vector<8x128xf32>
    %98 = arith.addf %5, %97 : vector<8x128xf32>
    %cst_45 = arith.constant dense<0.000000e+00> : vector<8xf32>
    %99 = vector.multi_reduction <add>, %98, %cst_45 [1] : vector<8x128xf32> to vector<8xf32>
    %100 = vector.shape_cast %99 : vector<8xf32> to vector<8x1xf32>
    %cst_46 = arith.constant 1.280000e+02 : f32
    %101 = vector.broadcast %cst_46 : f32 to vector<8x1xf32>
    %102 = arith.divf %100, %101 : vector<8x1xf32>
    %103 = vector.broadcast %102 : vector<8x1xf32> to vector<8x128xf32>
    %104 = arith.subf %98, %103 : vector<8x128xf32>
    %105 = arith.mulf %104, %104 : vector<8x128xf32>
    %cst_47 = arith.constant dense<0.000000e+00> : vector<8xf32>
    %106 = vector.multi_reduction <add>, %105, %cst_47 [1] : vector<8x128xf32> to vector<8xf32>
    %107 = vector.shape_cast %106 : vector<8xf32> to vector<8x1xf32>
    %cst_48 = arith.constant 1.280000e+02 : f32
    %108 = vector.broadcast %cst_48 : f32 to vector<8x1xf32>
    %109 = arith.divf %107, %108 : vector<8x1xf32>
    %cst_49 = arith.constant 9.99999974E-6 : f32
    %110 = vector.broadcast %cst_49 : f32 to vector<8x1xf32>
    %111 = arith.addf %109, %110 : vector<8x1xf32>
    %112 = math.rsqrt %111 : vector<8x1xf32>
    %113 = vector.broadcast %112 : vector<8x1xf32> to vector<8x128xf32>
    %114 = arith.mulf %104, %113 : vector<8x128xf32>
    %c0_50 = arith.constant 0 : index
    %c0_51 = arith.constant 0 : index
    %115 = vector.load %arg11[%c0_50, %c0_51] : memref<1x128xf32, #tpu.memory_space<vmem>>, vector<1x128xf32>
    %116 = vector.broadcast %115 : vector<1x128xf32> to vector<8x128xf32>
    %117 = arith.mulf %114, %116 : vector<8x128xf32>
    %c0_52 = arith.constant 0 : index
    %c0_53 = arith.constant 0 : index
    %118 = vector.load %arg12[%c0_52, %c0_53] : memref<1x128xf32, #tpu.memory_space<vmem>>, vector<1x128xf32>
    %119 = vector.broadcast %118 : vector<1x128xf32> to vector<8x128xf32>
    %120 = arith.addf %117, %119 : vector<8x128xf32>
    %c0_54 = arith.constant 0 : index
    %c0_55 = arith.constant 0 : index
    %121 = vector.load %arg13[%c0_54, %c0_55] : memref<128x128xf32, #tpu.memory_space<vmem>>, vector<128x128xf32>
    %cst_56 = arith.constant dense<0.000000e+00> : vector<8x128xf32>
    %122 = tpu.matmul %120, %121, %cst_56 {dimension_numbers = #tpu.dot_dimension_numbers<[1], [0], [0], [1], [0, 0, 1, 1], [], []>} : vector<8x128xf32>, vector<128x128xf32>, vector<8x128xf32> -> vector<8x128xf32>
    %c0_57 = arith.constant 0 : index
    %c0_58 = arith.constant 0 : index
    %123 = vector.load %arg14[%c0_57, %c0_58] : memref<1x128xf32, #tpu.memory_space<vmem>>, vector<1x128xf32>
    %124 = vector.broadcast %123 : vector<1x128xf32> to vector<8x128xf32>
    %125 = arith.addf %122, %124 : vector<8x128xf32>
    %c0_59 = arith.constant 0 : index
    %c0_60 = arith.constant 0 : index
    %126 = vector.load %arg15[%c0_59, %c0_60] : memref<128x256xf32, #tpu.memory_space<vmem>>, vector<128x256xf32>
    %cst_61 = arith.constant dense<0.000000e+00> : vector<8x256xf32>
    %127 = tpu.matmul %7, %126, %cst_61 {dimension_numbers = #tpu.dot_dimension_numbers<[1], [0], [0], [1], [0, 0, 1, 1], [], []>} : vector<8x128xf32>, vector<128x256xf32>, vector<8x256xf32> -> vector<8x256xf32>
    %c0_62 = arith.constant 0 : index
    %c0_63 = arith.constant 0 : index
    %128 = vector.load %arg16[%c0_62, %c0_63] : memref<1x256xf32, #tpu.memory_space<vmem>>, vector<1x256xf32>
    %129 = vector.broadcast %128 : vector<1x256xf32> to vector<8x256xf32>
    %130 = arith.addf %127, %129 : vector<8x256xf32>
    %131 = vector.extract_strided_slice %130 {offsets = [0, 0], sizes = [8, 128], strides = [1, 1]} : vector<8x256xf32> to vector<8x128xf32>
    %132 = vector.extract_strided_slice %130 {offsets = [0, 128], sizes = [8, 128], strides = [1, 1]} : vector<8x256xf32> to vector<8x128xf32>
    %133 = vector.extract_strided_slice %125 {offsets = [0, 0], sizes = [8, 32], strides = [1, 1]} : vector<8x128xf32> to vector<8x32xf32>
    %134 = vector.extract_strided_slice %131 {offsets = [0, 0], sizes = [8, 32], strides = [1, 1]} : vector<8x128xf32> to vector<8x32xf32>
    %135 = vector.extract_strided_slice %132 {offsets = [0, 0], sizes = [8, 32], strides = [1, 1]} : vector<8x128xf32> to vector<8x32xf32>
    %cst_64 = arith.constant dense<0.000000e+00> : vector<8x8xf32>
    %136 = tpu.matmul %133, %134, %cst_64 {dimension_numbers = #tpu.dot_dimension_numbers<[1], [1], [0], [0], [0, 0, 1, 0], [], []>} : vector<8x32xf32>, vector<8x32xf32>, vector<8x8xf32> -> vector<8x8xf32>
    %cst_65 = arith.constant 0.176776692 : f32
    %137 = vector.broadcast %cst_65 : f32 to vector<8x8xf32>
    %138 = arith.mulf %136, %137 : vector<8x8xf32>
    %139 = arith.addf %138, %3 : vector<8x8xf32>
    %cst_66 = arith.constant dense<0xFF800000> : vector<8xf32>
    %140 = vector.multi_reduction <maximumf>, %139, %cst_66 [1] : vector<8x8xf32> to vector<8xf32>
    %141 = vector.shape_cast %140 : vector<8xf32> to vector<8x1xf32>
    %142 = vector.broadcast %141 : vector<8x1xf32> to vector<8x8xf32>
    %143 = arith.subf %139, %142 : vector<8x8xf32>
    %144 = math.exp %143 : vector<8x8xf32>
    %cst_67 = arith.constant dense<0.000000e+00> : vector<8xf32>
    %145 = vector.multi_reduction <add>, %144, %cst_67 [1] : vector<8x8xf32> to vector<8xf32>
    %146 = vector.shape_cast %145 : vector<8xf32> to vector<8x1xf32>
    %147 = tpu.reciprocal %146 {approx = true} : vector<8x1xf32> -> vector<8x1xf32>
    %148 = vector.broadcast %147 : vector<8x1xf32> to vector<8x8xf32>
    %149 = arith.mulf %144, %148 : vector<8x8xf32>
    %cst_68 = arith.constant dense<0.000000e+00> : vector<8x32xf32>
    %150 = tpu.matmul %149, %135, %cst_68 {dimension_numbers = #tpu.dot_dimension_numbers<[1], [0], [0], [1], [0, 0, 1, 1], [], []>} : vector<8x8xf32>, vector<8x32xf32>, vector<8x32xf32> -> vector<8x32xf32>
    %151 = vector.extract_strided_slice %125 {offsets = [0, 32], sizes = [8, 32], strides = [1, 1]} : vector<8x128xf32> to vector<8x32xf32>
    %152 = vector.extract_strided_slice %131 {offsets = [0, 32], sizes = [8, 32], strides = [1, 1]} : vector<8x128xf32> to vector<8x32xf32>
    %153 = vector.extract_strided_slice %132 {offsets = [0, 32], sizes = [8, 32], strides = [1, 1]} : vector<8x128xf32> to vector<8x32xf32>
    %cst_69 = arith.constant dense<0.000000e+00> : vector<8x8xf32>
    %154 = tpu.matmul %151, %152, %cst_69 {dimension_numbers = #tpu.dot_dimension_numbers<[1], [1], [0], [0], [0, 0, 1, 0], [], []>} : vector<8x32xf32>, vector<8x32xf32>, vector<8x8xf32> -> vector<8x8xf32>
    %cst_70 = arith.constant 0.176776692 : f32
    %155 = vector.broadcast %cst_70 : f32 to vector<8x8xf32>
    %156 = arith.mulf %154, %155 : vector<8x8xf32>
    %157 = arith.addf %156, %3 : vector<8x8xf32>
    %cst_71 = arith.constant dense<0xFF800000> : vector<8xf32>
    %158 = vector.multi_reduction <maximumf>, %157, %cst_71 [1] : vector<8x8xf32> to vector<8xf32>
    %159 = vector.shape_cast %158 : vector<8xf32> to vector<8x1xf32>
    %160 = vector.broadcast %159 : vector<8x1xf32> to vector<8x8xf32>
    %161 = arith.subf %157, %160 : vector<8x8xf32>
    %162 = math.exp %161 : vector<8x8xf32>
    %cst_72 = arith.constant dense<0.000000e+00> : vector<8xf32>
    %163 = vector.multi_reduction <add>, %162, %cst_72 [1] : vector<8x8xf32> to vector<8xf32>
    %164 = vector.shape_cast %163 : vector<8xf32> to vector<8x1xf32>
    %165 = tpu.reciprocal %164 {approx = true} : vector<8x1xf32> -> vector<8x1xf32>
    %166 = vector.broadcast %165 : vector<8x1xf32> to vector<8x8xf32>
    %167 = arith.mulf %162, %166 : vector<8x8xf32>
    %cst_73 = arith.constant dense<0.000000e+00> : vector<8x32xf32>
    %168 = tpu.matmul %167, %153, %cst_73 {dimension_numbers = #tpu.dot_dimension_numbers<[1], [0], [0], [1], [0, 0, 1, 1], [], []>} : vector<8x8xf32>, vector<8x32xf32>, vector<8x32xf32> -> vector<8x32xf32>
    %169 = vector.extract_strided_slice %125 {offsets = [0, 64], sizes = [8, 32], strides = [1, 1]} : vector<8x128xf32> to vector<8x32xf32>
    %170 = vector.extract_strided_slice %131 {offsets = [0, 64], sizes = [8, 32], strides = [1, 1]} : vector<8x128xf32> to vector<8x32xf32>
    %171 = vector.extract_strided_slice %132 {offsets = [0, 64], sizes = [8, 32], strides = [1, 1]} : vector<8x128xf32> to vector<8x32xf32>
    %cst_74 = arith.constant dense<0.000000e+00> : vector<8x8xf32>
    %172 = tpu.matmul %169, %170, %cst_74 {dimension_numbers = #tpu.dot_dimension_numbers<[1], [1], [0], [0], [0, 0, 1, 0], [], []>} : vector<8x32xf32>, vector<8x32xf32>, vector<8x8xf32> -> vector<8x8xf32>
    %cst_75 = arith.constant 0.176776692 : f32
    %173 = vector.broadcast %cst_75 : f32 to vector<8x8xf32>
    %174 = arith.mulf %172, %173 : vector<8x8xf32>
    %175 = arith.addf %174, %3 : vector<8x8xf32>
    %cst_76 = arith.constant dense<0xFF800000> : vector<8xf32>
    %176 = vector.multi_reduction <maximumf>, %175, %cst_76 [1] : vector<8x8xf32> to vector<8xf32>
    %177 = vector.shape_cast %176 : vector<8xf32> to vector<8x1xf32>
    %178 = vector.broadcast %177 : vector<8x1xf32> to vector<8x8xf32>
    %179 = arith.subf %175, %178 : vector<8x8xf32>
    %180 = math.exp %179 : vector<8x8xf32>
    %cst_77 = arith.constant dense<0.000000e+00> : vector<8xf32>
    %181 = vector.multi_reduction <add>, %180, %cst_77 [1] : vector<8x8xf32> to vector<8xf32>
    %182 = vector.shape_cast %181 : vector<8xf32> to vector<8x1xf32>
    %183 = tpu.reciprocal %182 {approx = true} : vector<8x1xf32> -> vector<8x1xf32>
    %184 = vector.broadcast %183 : vector<8x1xf32> to vector<8x8xf32>
    %185 = arith.mulf %180, %184 : vector<8x8xf32>
    %cst_78 = arith.constant dense<0.000000e+00> : vector<8x32xf32>
    %186 = tpu.matmul %185, %171, %cst_78 {dimension_numbers = #tpu.dot_dimension_numbers<[1], [0], [0], [1], [0, 0, 1, 1], [], []>} : vector<8x8xf32>, vector<8x32xf32>, vector<8x32xf32> -> vector<8x32xf32>
    %187 = vector.extract_strided_slice %125 {offsets = [0, 96], sizes = [8, 32], strides = [1, 1]} : vector<8x128xf32> to vector<8x32xf32>
    %188 = vector.extract_strided_slice %131 {offsets = [0, 96], sizes = [8, 32], strides = [1, 1]} : vector<8x128xf32> to vector<8x32xf32>
    %189 = vector.extract_strided_slice %132 {offsets = [0, 96], sizes = [8, 32], strides = [1, 1]} : vector<8x128xf32> to vector<8x32xf32>
    %cst_79 = arith.constant dense<0.000000e+00> : vector<8x8xf32>
    %190 = tpu.matmul %187, %188, %cst_79 {dimension_numbers = #tpu.dot_dimension_numbers<[1], [1], [0], [0], [0, 0, 1, 0], [], []>} : vector<8x32xf32>, vector<8x32xf32>, vector<8x8xf32> -> vector<8x8xf32>
    %cst_80 = arith.constant 0.176776692 : f32
    %191 = vector.broadcast %cst_80 : f32 to vector<8x8xf32>
    %192 = arith.mulf %190, %191 : vector<8x8xf32>
    %193 = arith.addf %192, %3 : vector<8x8xf32>
    %cst_81 = arith.constant dense<0xFF800000> : vector<8xf32>
    %194 = vector.multi_reduction <maximumf>, %193, %cst_81 [1] : vector<8x8xf32> to vector<8xf32>
    %195 = vector.shape_cast %194 : vector<8xf32> to vector<8x1xf32>
    %196 = vector.broadcast %195 : vector<8x1xf32> to vector<8x8xf32>
    %197 = arith.subf %193, %196 : vector<8x8xf32>
    %198 = math.exp %197 : vector<8x8xf32>
    %cst_82 = arith.constant dense<0.000000e+00> : vector<8xf32>
    %199 = vector.multi_reduction <add>, %198, %cst_82 [1] : vector<8x8xf32> to vector<8xf32>
    %200 = vector.shape_cast %199 : vector<8xf32> to vector<8x1xf32>
    %201 = tpu.reciprocal %200 {approx = true} : vector<8x1xf32> -> vector<8x1xf32>
    %202 = vector.broadcast %201 : vector<8x1xf32> to vector<8x8xf32>
    %203 = arith.mulf %198, %202 : vector<8x8xf32>
    %cst_83 = arith.constant dense<0.000000e+00> : vector<8x32xf32>
    %204 = tpu.matmul %203, %189, %cst_83 {dimension_numbers = #tpu.dot_dimension_numbers<[1], [0], [0], [1], [0, 0, 1, 1], [], []>} : vector<8x8xf32>, vector<8x32xf32>, vector<8x32xf32> -> vector<8x32xf32>
    %205 = tpu.concatenate %150, %168, %186, %204 in 1 : vector<8x32xf32>, vector<8x32xf32>, vector<8x32xf32>, vector<8x32xf32> -> vector<8x128xf32>
    %c0_84 = arith.constant 0 : index
    %c0_85 = arith.constant 0 : index
    %206 = vector.load %arg17[%c0_84, %c0_85] : memref<128x128xf32, #tpu.memory_space<vmem>>, vector<128x128xf32>
    %cst_86 = arith.constant dense<0.000000e+00> : vector<8x128xf32>
    %207 = tpu.matmul %205, %206, %cst_86 {dimension_numbers = #tpu.dot_dimension_numbers<[1], [0], [0], [1], [0, 0, 1, 1], [], []>} : vector<8x128xf32>, vector<128x128xf32>, vector<8x128xf32> -> vector<8x128xf32>
    %c0_87 = arith.constant 0 : index
    %c0_88 = arith.constant 0 : index
    %208 = vector.load %arg18[%c0_87, %c0_88] : memref<1x128xf32, #tpu.memory_space<vmem>>, vector<1x128xf32>
    %209 = vector.broadcast %208 : vector<1x128xf32> to vector<8x128xf32>
    %210 = arith.addf %207, %209 : vector<8x128xf32>
    %211 = arith.addf %120, %210 : vector<8x128xf32>
    %cst_89 = arith.constant dense<0.000000e+00> : vector<8xf32>
    %212 = vector.multi_reduction <add>, %211, %cst_89 [1] : vector<8x128xf32> to vector<8xf32>
    %213 = vector.shape_cast %212 : vector<8xf32> to vector<8x1xf32>
    %cst_90 = arith.constant 1.280000e+02 : f32
    %214 = vector.broadcast %cst_90 : f32 to vector<8x1xf32>
    %215 = arith.divf %213, %214 : vector<8x1xf32>
    %216 = vector.broadcast %215 : vector<8x1xf32> to vector<8x128xf32>
    %217 = arith.subf %211, %216 : vector<8x128xf32>
    %218 = arith.mulf %217, %217 : vector<8x128xf32>
    %cst_91 = arith.constant dense<0.000000e+00> : vector<8xf32>
    %219 = vector.multi_reduction <add>, %218, %cst_91 [1] : vector<8x128xf32> to vector<8xf32>
    %220 = vector.shape_cast %219 : vector<8xf32> to vector<8x1xf32>
    %cst_92 = arith.constant 1.280000e+02 : f32
    %221 = vector.broadcast %cst_92 : f32 to vector<8x1xf32>
    %222 = arith.divf %220, %221 : vector<8x1xf32>
    %cst_93 = arith.constant 9.99999974E-6 : f32
    %223 = vector.broadcast %cst_93 : f32 to vector<8x1xf32>
    %224 = arith.addf %222, %223 : vector<8x1xf32>
    %225 = math.rsqrt %224 : vector<8x1xf32>
    %226 = vector.broadcast %225 : vector<8x1xf32> to vector<8x128xf32>
    %227 = arith.mulf %217, %226 : vector<8x128xf32>
    %c0_94 = arith.constant 0 : index
    %c0_95 = arith.constant 0 : index
    %228 = vector.load %arg19[%c0_94, %c0_95] : memref<1x128xf32, #tpu.memory_space<vmem>>, vector<1x128xf32>
    %229 = vector.broadcast %228 : vector<1x128xf32> to vector<8x128xf32>
    %230 = arith.mulf %227, %229 : vector<8x128xf32>
    %c0_96 = arith.constant 0 : index
    %c0_97 = arith.constant 0 : index
    %231 = vector.load %arg20[%c0_96, %c0_97] : memref<1x128xf32, #tpu.memory_space<vmem>>, vector<1x128xf32>
    %232 = vector.broadcast %231 : vector<1x128xf32> to vector<8x128xf32>
    %233 = arith.addf %230, %232 : vector<8x128xf32>
    %c0_98 = arith.constant 0 : index
    %c0_99 = arith.constant 0 : index
    %234 = vector.load %arg21[%c0_98, %c0_99] : memref<128x128xf32, #tpu.memory_space<vmem>>, vector<128x128xf32>
    %cst_100 = arith.constant dense<0.000000e+00> : vector<8x128xf32>
    %235 = tpu.matmul %233, %234, %cst_100 {dimension_numbers = #tpu.dot_dimension_numbers<[1], [0], [0], [1], [0, 0, 1, 1], [], []>} : vector<8x128xf32>, vector<128x128xf32>, vector<8x128xf32> -> vector<8x128xf32>
    %c0_101 = arith.constant 0 : index
    %c0_102 = arith.constant 0 : index
    %236 = vector.load %arg22[%c0_101, %c0_102] : memref<1x128xf32, #tpu.memory_space<vmem>>, vector<1x128xf32>
    %237 = vector.broadcast %236 : vector<1x128xf32> to vector<8x128xf32>
    %238 = arith.addf %235, %237 : vector<8x128xf32>
    %cst_103 = arith.constant 0.000000e+00 : f32
    %239 = vector.broadcast %cst_103 : f32 to vector<8x128xf32>
    %240 = arith.maximumf %238, %239 : vector<8x128xf32>
    %c0_104 = arith.constant 0 : index
    %c0_105 = arith.constant 0 : index
    %241 = vector.load %arg23[%c0_104, %c0_105] : memref<128x128xf32, #tpu.memory_space<vmem>>, vector<128x128xf32>
    %cst_106 = arith.constant dense<0.000000e+00> : vector<8x128xf32>
    %242 = tpu.matmul %240, %241, %cst_106 {dimension_numbers = #tpu.dot_dimension_numbers<[1], [0], [0], [1], [0, 0, 1, 1], [], []>} : vector<8x128xf32>, vector<128x128xf32>, vector<8x128xf32> -> vector<8x128xf32>
    %c0_107 = arith.constant 0 : index
    %c0_108 = arith.constant 0 : index
    %243 = vector.load %arg24[%c0_107, %c0_108] : memref<1x128xf32, #tpu.memory_space<vmem>>, vector<1x128xf32>
    %244 = vector.broadcast %243 : vector<1x128xf32> to vector<8x128xf32>
    %245 = arith.addf %242, %244 : vector<8x128xf32>
    %246 = arith.addf %233, %245 : vector<8x128xf32>
    %cst_109 = arith.constant dense<0.000000e+00> : vector<8xf32>
    %247 = vector.multi_reduction <add>, %246, %cst_109 [1] : vector<8x128xf32> to vector<8xf32>
    %248 = vector.shape_cast %247 : vector<8xf32> to vector<8x1xf32>
    %cst_110 = arith.constant 1.280000e+02 : f32
    %249 = vector.broadcast %cst_110 : f32 to vector<8x1xf32>
    %250 = arith.divf %248, %249 : vector<8x1xf32>
    %251 = vector.broadcast %250 : vector<8x1xf32> to vector<8x128xf32>
    %252 = arith.subf %246, %251 : vector<8x128xf32>
    %253 = arith.mulf %252, %252 : vector<8x128xf32>
    %cst_111 = arith.constant dense<0.000000e+00> : vector<8xf32>
    %254 = vector.multi_reduction <add>, %253, %cst_111 [1] : vector<8x128xf32> to vector<8xf32>
    %255 = vector.shape_cast %254 : vector<8xf32> to vector<8x1xf32>
    %cst_112 = arith.constant 1.280000e+02 : f32
    %256 = vector.broadcast %cst_112 : f32 to vector<8x1xf32>
    %257 = arith.divf %255, %256 : vector<8x1xf32>
    %cst_113 = arith.constant 9.99999974E-6 : f32
    %258 = vector.broadcast %cst_113 : f32 to vector<8x1xf32>
    %259 = arith.addf %257, %258 : vector<8x1xf32>
    %260 = math.rsqrt %259 : vector<8x1xf32>
    %261 = vector.broadcast %260 : vector<8x1xf32> to vector<8x128xf32>
    %262 = arith.mulf %252, %261 : vector<8x128xf32>
    %c0_114 = arith.constant 0 : index
    %c0_115 = arith.constant 0 : index
    %263 = vector.load %arg25[%c0_114, %c0_115] : memref<1x128xf32, #tpu.memory_space<vmem>>, vector<1x128xf32>
    %264 = vector.broadcast %263 : vector<1x128xf32> to vector<8x128xf32>
    %265 = arith.mulf %262, %264 : vector<8x128xf32>
    %c0_116 = arith.constant 0 : index
    %c0_117 = arith.constant 0 : index
    %266 = vector.load %arg26[%c0_116, %c0_117] : memref<1x128xf32, #tpu.memory_space<vmem>>, vector<1x128xf32>
    %267 = vector.broadcast %266 : vector<1x128xf32> to vector<8x128xf32>
    %268 = arith.addf %265, %267 : vector<8x128xf32>
    %c0_118 = arith.constant 0 : index
    %c0_119 = arith.constant 0 : index
    %c0_120 = arith.constant 0 : index
    %269 = vector.load %arg27[%c0_118, %c0_119, %c0_120] : memref<1x8x128xf32, #tpu.memory_space<vmem>>, vector<1x8x128xf32>
    %270 = vector.shape_cast %269 : vector<1x8x128xf32> to vector<8x128xf32>
    %271 = vector.shape_cast %268 : vector<8x128xf32> to vector<1x8x128xf32>
    tpu.vector_store %arg27[%c0_118, %c0_119, %c0_120], %271 {strides = array<i32>} : memref<1x8x128xf32, #tpu.memory_space<vmem>>, vector<1x8x128xf32>,
    return
  }
  func.func @transform_0(%arg0: i32) -> (i32, i32, i32) {
    %c0_i32 = arith.constant 0 : i32
    %c0_i32_0 = arith.constant 0 : i32
    %c0_i32_1 = arith.constant 0 : i32
    return %arg0, %c0_i32, %c0_i32_0 : i32, i32, i32
  }
  func.func @transform_1(%arg0: i32) -> (i32, i32, i32) {
    %c0_i32 = arith.constant 0 : i32
    %c0_i32_0 = arith.constant 0 : i32
    %c0_i32_1 = arith.constant 0 : i32
    return %arg0, %c0_i32, %c0_i32_0 : i32, i32, i32
  }
  func.func @transform_2(%arg0: i32) -> (i32, i32, i32) {
    %c0_i32 = arith.constant 0 : i32
    %c0_i32_0 = arith.constant 0 : i32
    %c0_i32_1 = arith.constant 0 : i32
    return %arg0, %c0_i32, %c0_i32_0 : i32, i32, i32
  }
  func.func @transform_3(%arg0: i32) -> (i32, i32, i32) {
    %c0_i32 = arith.constant 0 : i32
    %c0_i32_0 = arith.constant 0 : i32
    %c0_i32_1 = arith.constant 0 : i32
    return %arg0, %c0_i32, %c0_i32_0 : i32, i32, i32
  }
  func.func @transform_4(%arg0: i32) -> (i32, i32) {
    %c0_i32 = arith.constant 0 : i32
    %c0_i32_0 = arith.constant 0 : i32
    %c0_i32_1 = arith.constant 0 : i32
    return %c0_i32, %c0_i32_0 : i32, i32
  }
  func.func @transform_5(%arg0: i32) -> (i32, i32) {
    %c0_i32 = arith.constant 0 : i32
    %c0_i32_0 = arith.constant 0 : i32
    %c0_i32_1 = arith.constant 0 : i32
    return %c0_i32, %c0_i32_0 : i32, i32
  }
  func.func @transform_6(%arg0: i32) -> (i32, i32) {
    %c0_i32 = arith.constant 0 : i32
    %c0_i32_0 = arith.constant 0 : i32
    %c0_i32_1 = arith.constant 0 : i32
    return %c0_i32, %c0_i32_0 : i32, i32
  }
  func.func @transform_7(%arg0: i32) -> (i32, i32) {
    %c0_i32 = arith.constant 0 : i32
    %c0_i32_0 = arith.constant 0 : i32
    %c0_i32_1 = arith.constant 0 : i32
    return %c0_i32, %c0_i32_0 : i32, i32
  }
  func.func @transform_8(%arg0: i32) -> (i32, i32) {
    %c0_i32 = arith.constant 0 : i32
    %c0_i32_0 = arith.constant 0 : i32
    %c0_i32_1 = arith.constant 0 : i32
    return %c0_i32, %c0_i32_0 : i32, i32
  }
  func.func @transform_9(%arg0: i32) -> (i32, i32) {
    %c0_i32 = arith.constant 0 : i32
    %c0_i32_0 = arith.constant 0 : i32
    %c0_i32_1 = arith.constant 0 : i32
    return %c0_i32, %c0_i32_0 : i32, i32
  }
  func.func @transform_10(%arg0: i32) -> (i32, i32) {
    %c0_i32 = arith.constant 0 : i32
    %c0_i32_0 = arith.constant 0 : i32
    %c0_i32_1 = arith.constant 0 : i32
    return %c0_i32, %c0_i32_0 : i32, i32
  }
  func.func @transform_11(%arg0: i32) -> (i32, i32) {
    %c0_i32 = arith.constant 0 : i32
    %c0_i32_0 = arith.constant 0 : i32
    %c0_i32_1 = arith.constant 0 : i32
    return %c0_i32, %c0_i32_0 : i32, i32
  }
  func.func @transform_12(%arg0: i32) -> (i32, i32) {
    %c0_i32 = arith.constant 0 : i32
    %c0_i32_0 = arith.constant 0 : i32
    %c0_i32_1 = arith.constant 0 : i32
    return %c0_i32, %c0_i32_0 : i32, i32
  }
  func.func @transform_13(%arg0: i32) -> (i32, i32) {
    %c0_i32 = arith.constant 0 : i32
    %c0_i32_0 = arith.constant 0 : i32
    %c0_i32_1 = arith.constant 0 : i32
    return %c0_i32, %c0_i32_0 : i32, i32
  }
  func.func @transform_14(%arg0: i32) -> (i32, i32) {
    %c0_i32 = arith.constant 0 : i32
    %c0_i32_0 = arith.constant 0 : i32
    %c0_i32_1 = arith.constant 0 : i32
    return %c0_i32, %c0_i32_0 : i32, i32
  }
  func.func @transform_15(%arg0: i32) -> (i32, i32) {
    %c0_i32 = arith.constant 0 : i32
    %c0_i32_0 = arith.constant 0 : i32
    %c0_i32_1 = arith.constant 0 : i32
    return %c0_i32, %c0_i32_0 : i32, i32
  }
  func.func @transform_16(%arg0: i32) -> (i32, i32) {
    %c0_i32 = arith.constant 0 : i32
    %c0_i32_0 = arith.constant 0 : i32
    %c0_i32_1 = arith.constant 0 : i32
    return %c0_i32, %c0_i32_0 : i32, i32
  }
  func.func @transform_17(%arg0: i32) -> (i32, i32) {
    %c0_i32 = arith.constant 0 : i32
    %c0_i32_0 = arith.constant 0 : i32
    %c0_i32_1 = arith.constant 0 : i32
    return %c0_i32, %c0_i32_0 : i32, i32
  }
  func.func @transform_18(%arg0: i32) -> (i32, i32) {
    %c0_i32 = arith.constant 0 : i32
    %c0_i32_0 = arith.constant 0 : i32
    %c0_i32_1 = arith.constant 0 : i32
    return %c0_i32, %c0_i32_0 : i32, i32
  }
  func.func @transform_19(%arg0: i32) -> (i32, i32) {
    %c0_i32 = arith.constant 0 : i32
    %c0_i32_0 = arith.constant 0 : i32
    %c0_i32_1 = arith.constant 0 : i32
    return %c0_i32, %c0_i32_0 : i32, i32
  }
  func.func @transform_20(%arg0: i32) -> (i32, i32) {
    %c0_i32 = arith.constant 0 : i32
    %c0_i32_0 = arith.constant 0 : i32
    %c0_i32_1 = arith.constant 0 : i32
    return %c0_i32, %c0_i32_0 : i32, i32
  }
  func.func @transform_21(%arg0: i32) -> (i32, i32) {
    %c0_i32 = arith.constant 0 : i32
    %c0_i32_0 = arith.constant 0 : i32
    %c0_i32_1 = arith.constant 0 : i32
    return %c0_i32, %c0_i32_0 : i32, i32
  }
  func.func @transform_22(%arg0: i32) -> (i32, i32) {
    %c0_i32 = arith.constant 0 : i32
    %c0_i32_0 = arith.constant 0 : i32
    %c0_i32_1 = arith.constant 0 : i32
    return %c0_i32, %c0_i32_0 : i32, i32
  }
  func.func @transform_23(%arg0: i32) -> (i32, i32) {
    %c0_i32 = arith.constant 0 : i32
    %c0_i32_0 = arith.constant 0 : i32
    %c0_i32_1 = arith.constant 0 : i32
    return %c0_i32, %c0_i32_0 : i32, i32
  }
  func.func @transform_24(%arg0: i32) -> (i32, i32) {
    %c0_i32 = arith.constant 0 : i32
    %c0_i32_0 = arith.constant 0 : i32
    %c0_i32_1 = arith.constant 0 : i32
    return %c0_i32, %c0_i32_0 : i32, i32
  }
  func.func @transform_25(%arg0: i32) -> (i32, i32) {
    %c0_i32 = arith.constant 0 : i32
    %c0_i32_0 = arith.constant 0 : i32
    %c0_i32_1 = arith.constant 0 : i32
    return %c0_i32, %c0_i32_0 : i32, i32
  }
  func.func @transform_26(%arg0: i32) -> (i32, i32, i32) {
    %c0_i32 = arith.constant 0 : i32
    %c0_i32_0 = arith.constant 0 : i32
    %c0_i32_1 = arith.constant 0 : i32
    return %arg0, %c0_i32, %c0_i32_0 : i32, i32, i32
  }
}

module attributes {stable_mosaic.version = 11 : i64} {
  func.func @_dec_layer_kernel(%arg0: i32, %arg1: memref<1x8x128xf32, #tpu.memory_space<vmem>>, %arg2: memref<1x8x128xf32, #tpu.memory_space<vmem>>, %arg3: memref<1x8x8xf32, #tpu.memory_space<vmem>>, %arg4: memref<1x8x8xf32, #tpu.memory_space<vmem>>, %arg5: memref<128x128xf32, #tpu.memory_space<vmem>>, %arg6: memref<1x128xf32, #tpu.memory_space<vmem>>, %arg7: memref<128x256xf32, #tpu.memory_space<vmem>>, %arg8: memref<1x256xf32, #tpu.memory_space<vmem>>, %arg9: memref<128x128xf32, #tpu.memory_space<vmem>>, %arg10: memref<1x128xf32, #tpu.memory_space<vmem>>, %arg11: memref<1x128xf32, #tpu.memory_space<vmem>>, %arg12: memref<1x128xf32, #tpu.memory_space<vmem>>, %arg13: memref<128x128xf32, #tpu.memory_space<vmem>>, %arg14: memref<1x128xf32, #tpu.memory_space<vmem>>, %arg15: memref<128x256xf32, #tpu.memory_space<vmem>>, %arg16: memref<1x256xf32, #tpu.memory_space<vmem>>, %arg17: memref<128x128xf32, #tpu.memory_space<vmem>>, %arg18: memref<1x128xf32, #tpu.memory_space<vmem>>, %arg19: memref<1x128xf32, #tpu.memory_space<vmem>>, %arg20: memref<1x128xf32, #tpu.memory_space<vmem>>, %arg21: memref<128x128xf32, #tpu.memory_space<vmem>>, %arg22: memref<1x128xf32, #tpu.memory_space<vmem>>, %arg23: memref<128x128xf32, #tpu.memory_space<vmem>>, %arg24: memref<1x128xf32, #tpu.memory_space<vmem>>, %arg25: memref<1x128xf32, #tpu.memory_space<vmem>>, %arg26: memref<1x128xf32, #tpu.memory_space<vmem>>, %arg27: memref<1x8x128xf32, #tpu.memory_space<vmem>>) attributes {dimension_semantics = [#tpu.dimension_semantics<parallel>], iteration_bounds = array<i64: 2>, scalar_prefetch = 0 : i64, scratch_operands = 0 : i64, tpu.core_type = #tpu.core_type<tc>, window_params = [{transform_indices = @transform_0, window_bounds = array<i64: 1, 8, 128>}, {transform_indices = @transform_1, window_bounds = array<i64: 1, 8, 128>}, {transform_indices = @transform_2, window_bounds = array<i64: 1, 8, 8>}, {transform_indices = @transform_3, window_bounds = array<i64: 1, 8, 8>}, {pipeline_mode = #tpu.pipeline_mode<synchronous>, transform_indices = @transform_4, window_bounds = array<i64: 128, 128>}, {pipeline_mode = #tpu.pipeline_mode<synchronous>, transform_indices = @transform_5, window_bounds = array<i64: 1, 128>}, {pipeline_mode = #tpu.pipeline_mode<synchronous>, transform_indices = @transform_6, window_bounds = array<i64: 128, 256>}, {pipeline_mode = #tpu.pipeline_mode<synchronous>, transform_indices = @transform_7, window_bounds = array<i64: 1, 256>}, {pipeline_mode = #tpu.pipeline_mode<synchronous>, transform_indices = @transform_8, window_bounds = array<i64: 128, 128>}, {pipeline_mode = #tpu.pipeline_mode<synchronous>, transform_indices = @transform_9, window_bounds = array<i64: 1, 128>}, {pipeline_mode = #tpu.pipeline_mode<synchronous>, transform_indices = @transform_10, window_bounds = array<i64: 1, 128>}, {pipeline_mode = #tpu.pipeline_mode<synchronous>, transform_indices = @transform_11, window_bounds = array<i64: 1, 128>}, {pipeline_mode = #tpu.pipeline_mode<synchronous>, transform_indices = @transform_12, window_bounds = array<i64: 128, 128>}, {pipeline_mode = #tpu.pipeline_mode<synchronous>, transform_indices = @transform_13, window_bounds = array<i64: 1, 128>}, {pipeline_mode = #tpu.pipeline_mode<synchronous>, transform_indices = @transform_14, window_bounds = array<i64: 128, 256>}, {pipeline_mode = #tpu.pipeline_mode<synchronous>, transform_indices = @transform_15, window_bounds = array<i64: 1, 256>}, {pipeline_mode = #tpu.pipeline_mode<synchronous>, transform_indices = @transform_16, window_bounds = array<i64: 128, 128>}, {pipeline_mode = #tpu.pipeline_mode<synchronous>, transform_indices = @transform_17, window_bounds = array<i64: 1, 128>}, {pipeline_mode = #tpu.pipeline_mode<synchronous>, transform_indices = @transform_18, window_bounds = array<i64: 1, 128>}, {pipeline_mode = #tpu.pipeline_mode<synchronous>, transform_indices = @transform_19, window_bounds = array<i64: 1, 128>}, {pipeline_mode = #tpu.pipeline_mode<synchronous>, transform_indices = @transform_20, window_bounds = array<i64: 128, 128>}, {pipeline_mode = #tpu.pipeline_mode<synchronous>, transform_indices = @transform_21, window_bounds = array<i64: 1, 128>}, {pipeline_mode = #tpu.pipeline_mode<synchronous>, transform_indices = @transform_22, window_bounds = array<i64: 128, 128>}, {pipeline_mode = #tpu.pipeline_mode<synchronous>, transform_indices = @transform_23, window_bounds = array<i64: 1, 128>}, {pipeline_mode = #tpu.pipeline_mode<synchronous>, transform_indices = @transform_24, window_bounds = array<i64: 1, 128>}, {pipeline_mode = #tpu.pipeline_mode<synchronous>, transform_indices = @transform_25, window_bounds = array<i64: 1, 128>}, {transform_indices = @transform_26, window_bounds = array<i64: 1, 8, 128>}]} {
    %c0 = arith.constant 0 : index
    %c0_0 = arith.constant 0 : index
    %c0_1 = arith.constant 0 : index
    %0 = vector.load %arg3[%c0, %c0_0, %c0_1] : memref<1x8x8xf32, #tpu.memory_space<vmem>>, vector<1x8x8xf32>
    %1 = vector.shape_cast %0 : vector<1x8x8xf32> to vector<8x8xf32>
    %c0_2 = arith.constant 0 : index
    %c0_3 = arith.constant 0 : index
    %c0_4 = arith.constant 0 : index
    %2 = vector.load %arg4[%c0_2, %c0_3, %c0_4] : memref<1x8x8xf32, #tpu.memory_space<vmem>>, vector<1x8x8xf32>
    %3 = vector.shape_cast %2 : vector<1x8x8xf32> to vector<8x8xf32>
    %c0_5 = arith.constant 0 : index
    %c0_6 = arith.constant 0 : index
    %c0_7 = arith.constant 0 : index
    %4 = vector.load %arg1[%c0_5, %c0_6, %c0_7] : memref<1x8x128xf32, #tpu.memory_space<vmem>>, vector<1x8x128xf32>
    %5 = vector.shape_cast %4 : vector<1x8x128xf32> to vector<8x128xf32>
    %c0_8 = arith.constant 0 : index
    %c0_9 = arith.constant 0 : index
    %c0_10 = arith.constant 0 : index
    %6 = vector.load %arg2[%c0_8, %c0_9, %c0_10] : memref<1x8x128xf32, #tpu.memory_space<vmem>>, vector<1x8x128xf32>
    %7 = vector.shape_cast %6 : vector<1x8x128xf32> to vector<8x128xf32>
    %c0_11 = arith.constant 0 : index
    %c0_12 = arith.constant 0 : index
    %8 = vector.load %arg5[%c0_11, %c0_12] : memref<128x128xf32, #tpu.memory_space<vmem>>, vector<128x128xf32>
    %cst = arith.constant dense<0.000000e+00> : vector<8x128xf32>
    %9 = tpu.matmul %5, %8, %cst {dimension_numbers = #tpu.dot_dimension_numbers<[1], [0], [0], [1], [0, 0, 1, 1], [], []>} : vector<8x128xf32>, vector<128x128xf32>, vector<8x128xf32> -> vector<8x128xf32>
    %c0_13 = arith.constant 0 : index
    %c0_14 = arith.constant 0 : index
    %10 = vector.load %arg6[%c0_13, %c0_14] : memref<1x128xf32, #tpu.memory_space<vmem>>, vector<1x128xf32>
    %11 = vector.broadcast %10 : vector<1x128xf32> to vector<8x128xf32>
    %12 = arith.addf %9, %11 : vector<8x128xf32>
    %c0_15 = arith.constant 0 : index
    %c0_16 = arith.constant 0 : index
    %13 = vector.load %arg7[%c0_15, %c0_16] : memref<128x256xf32, #tpu.memory_space<vmem>>, vector<128x256xf32>
    %cst_17 = arith.constant dense<0.000000e+00> : vector<8x256xf32>
    %14 = tpu.matmul %5, %13, %cst_17 {dimension_numbers = #tpu.dot_dimension_numbers<[1], [0], [0], [1], [0, 0, 1, 1], [], []>} : vector<8x128xf32>, vector<128x256xf32>, vector<8x256xf32> -> vector<8x256xf32>
    %c0_18 = arith.constant 0 : index
    %c0_19 = arith.constant 0 : index
    %15 = vector.load %arg8[%c0_18, %c0_19] : memref<1x256xf32, #tpu.memory_space<vmem>>, vector<1x256xf32>
    %16 = vector.broadcast %15 : vector<1x256xf32> to vector<8x256xf32>
    %17 = arith.addf %14, %16 : vector<8x256xf32>
    %18 = vector.extract_strided_slice %17 {offsets = [0, 0], sizes = [8, 128], strides = [1, 1]} : vector<8x256xf32> to vector<8x128xf32>
    %19 = vector.extract_strided_slice %17 {offsets = [0, 128], sizes = [8, 128], strides = [1, 1]} : vector<8x256xf32> to vector<8x128xf32>
    %20 = vector.extract_strided_slice %12 {offsets = [0, 0], sizes = [8, 32], strides = [1, 1]} : vector<8x128xf32> to vector<8x32xf32>
    %21 = vector.extract_strided_slice %18 {offsets = [0, 0], sizes = [8, 32], strides = [1, 1]} : vector<8x128xf32> to vector<8x32xf32>
    %22 = vector.extract_strided_slice %19 {offsets = [0, 0], sizes = [8, 32], strides = [1, 1]} : vector<8x128xf32> to vector<8x32xf32>
    %cst_20 = arith.constant dense<0.000000e+00> : vector<8x8xf32>
    %23 = tpu.matmul %20, %21, %cst_20 {dimension_numbers = #tpu.dot_dimension_numbers<[1], [1], [0], [0], [0, 0, 1, 0], [], []>} : vector<8x32xf32>, vector<8x32xf32>, vector<8x8xf32> -> vector<8x8xf32>
    %cst_21 = arith.constant 0.176776692 : f32
    %24 = vector.broadcast %cst_21 : f32 to vector<8x8xf32>
    %25 = arith.mulf %23, %24 : vector<8x8xf32>
    %26 = arith.addf %25, %1 : vector<8x8xf32>
    %cst_22 = arith.constant dense<0xFF800000> : vector<8xf32>
    %27 = vector.multi_reduction <maximumf>, %26, %cst_22 [1] : vector<8x8xf32> to vector<8xf32>
    %28 = vector.shape_cast %27 : vector<8xf32> to vector<8x1xf32>
    %29 = vector.broadcast %28 : vector<8x1xf32> to vector<8x8xf32>
    %30 = arith.subf %26, %29 : vector<8x8xf32>
    %31 = math.exp %30 : vector<8x8xf32>
    %cst_23 = arith.constant dense<0.000000e+00> : vector<8xf32>
    %32 = vector.multi_reduction <add>, %31, %cst_23 [1] : vector<8x8xf32> to vector<8xf32>
    %33 = vector.shape_cast %32 : vector<8xf32> to vector<8x1xf32>
    %34 = tpu.reciprocal %33 {approx = true} : vector<8x1xf32> -> vector<8x1xf32>
    %35 = vector.broadcast %34 : vector<8x1xf32> to vector<8x8xf32>
    %36 = arith.mulf %31, %35 : vector<8x8xf32>
    %cst_24 = arith.constant dense<0.000000e+00> : vector<8x32xf32>
    %37 = tpu.matmul %36, %22, %cst_24 {dimension_numbers = #tpu.dot_dimension_numbers<[1], [0], [0], [1], [0, 0, 1, 1], [], []>} : vector<8x8xf32>, vector<8x32xf32>, vector<8x32xf32> -> vector<8x32xf32>
    %38 = vector.extract_strided_slice %12 {offsets = [0, 32], sizes = [8, 32], strides = [1, 1]} : vector<8x128xf32> to vector<8x32xf32>
    %39 = vector.extract_strided_slice %18 {offsets = [0, 32], sizes = [8, 32], strides = [1, 1]} : vector<8x128xf32> to vector<8x32xf32>
    %40 = vector.extract_strided_slice %19 {offsets = [0, 32], sizes = [8, 32], strides = [1, 1]} : vector<8x128xf32> to vector<8x32xf32>
    %cst_25 = arith.constant dense<0.000000e+00> : vector<8x8xf32>
    %41 = tpu.matmul %38, %39, %cst_25 {dimension_numbers = #tpu.dot_dimension_numbers<[1], [1], [0], [0], [0, 0, 1, 0], [], []>} : vector<8x32xf32>, vector<8x32xf32>, vector<8x8xf32> -> vector<8x8xf32>
    %cst_26 = arith.constant 0.176776692 : f32
    %42 = vector.broadcast %cst_26 : f32 to vector<8x8xf32>
    %43 = arith.mulf %41, %42 : vector<8x8xf32>
    %44 = arith.addf %43, %1 : vector<8x8xf32>
    %cst_27 = arith.constant dense<0xFF800000> : vector<8xf32>
    %45 = vector.multi_reduction <maximumf>, %44, %cst_27 [1] : vector<8x8xf32> to vector<8xf32>
    %46 = vector.shape_cast %45 : vector<8xf32> to vector<8x1xf32>
    %47 = vector.broadcast %46 : vector<8x1xf32> to vector<8x8xf32>
    %48 = arith.subf %44, %47 : vector<8x8xf32>
    %49 = math.exp %48 : vector<8x8xf32>
    %cst_28 = arith.constant dense<0.000000e+00> : vector<8xf32>
    %50 = vector.multi_reduction <add>, %49, %cst_28 [1] : vector<8x8xf32> to vector<8xf32>
    %51 = vector.shape_cast %50 : vector<8xf32> to vector<8x1xf32>
    %52 = tpu.reciprocal %51 {approx = true} : vector<8x1xf32> -> vector<8x1xf32>
    %53 = vector.broadcast %52 : vector<8x1xf32> to vector<8x8xf32>
    %54 = arith.mulf %49, %53 : vector<8x8xf32>
    %cst_29 = arith.constant dense<0.000000e+00> : vector<8x32xf32>
    %55 = tpu.matmul %54, %40, %cst_29 {dimension_numbers = #tpu.dot_dimension_numbers<[1], [0], [0], [1], [0, 0, 1, 1], [], []>} : vector<8x8xf32>, vector<8x32xf32>, vector<8x32xf32> -> vector<8x32xf32>
    %56 = vector.extract_strided_slice %12 {offsets = [0, 64], sizes = [8, 32], strides = [1, 1]} : vector<8x128xf32> to vector<8x32xf32>
    %57 = vector.extract_strided_slice %18 {offsets = [0, 64], sizes = [8, 32], strides = [1, 1]} : vector<8x128xf32> to vector<8x32xf32>
    %58 = vector.extract_strided_slice %19 {offsets = [0, 64], sizes = [8, 32], strides = [1, 1]} : vector<8x128xf32> to vector<8x32xf32>
    %cst_30 = arith.constant dense<0.000000e+00> : vector<8x8xf32>
    %59 = tpu.matmul %56, %57, %cst_30 {dimension_numbers = #tpu.dot_dimension_numbers<[1], [1], [0], [0], [0, 0, 1, 0], [], []>} : vector<8x32xf32>, vector<8x32xf32>, vector<8x8xf32> -> vector<8x8xf32>
    %cst_31 = arith.constant 0.176776692 : f32
    %60 = vector.broadcast %cst_31 : f32 to vector<8x8xf32>
    %61 = arith.mulf %59, %60 : vector<8x8xf32>
    %62 = arith.addf %61, %1 : vector<8x8xf32>
    %cst_32 = arith.constant dense<0xFF800000> : vector<8xf32>
    %63 = vector.multi_reduction <maximumf>, %62, %cst_32 [1] : vector<8x8xf32> to vector<8xf32>
    %64 = vector.shape_cast %63 : vector<8xf32> to vector<8x1xf32>
    %65 = vector.broadcast %64 : vector<8x1xf32> to vector<8x8xf32>
    %66 = arith.subf %62, %65 : vector<8x8xf32>
    %67 = math.exp %66 : vector<8x8xf32>
    %cst_33 = arith.constant dense<0.000000e+00> : vector<8xf32>
    %68 = vector.multi_reduction <add>, %67, %cst_33 [1] : vector<8x8xf32> to vector<8xf32>
    %69 = vector.shape_cast %68 : vector<8xf32> to vector<8x1xf32>
    %70 = tpu.reciprocal %69 {approx = true} : vector<8x1xf32> -> vector<8x1xf32>
    %71 = vector.broadcast %70 : vector<8x1xf32> to vector<8x8xf32>
    %72 = arith.mulf %67, %71 : vector<8x8xf32>
    %cst_34 = arith.constant dense<0.000000e+00> : vector<8x32xf32>
    %73 = tpu.matmul %72, %58, %cst_34 {dimension_numbers = #tpu.dot_dimension_numbers<[1], [0], [0], [1], [0, 0, 1, 1], [], []>} : vector<8x8xf32>, vector<8x32xf32>, vector<8x32xf32> -> vector<8x32xf32>
    %74 = vector.extract_strided_slice %12 {offsets = [0, 96], sizes = [8, 32], strides = [1, 1]} : vector<8x128xf32> to vector<8x32xf32>
    %75 = vector.extract_strided_slice %18 {offsets = [0, 96], sizes = [8, 32], strides = [1, 1]} : vector<8x128xf32> to vector<8x32xf32>
    %76 = vector.extract_strided_slice %19 {offsets = [0, 96], sizes = [8, 32], strides = [1, 1]} : vector<8x128xf32> to vector<8x32xf32>
    %cst_35 = arith.constant dense<0.000000e+00> : vector<8x8xf32>
    %77 = tpu.matmul %74, %75, %cst_35 {dimension_numbers = #tpu.dot_dimension_numbers<[1], [1], [0], [0], [0, 0, 1, 0], [], []>} : vector<8x32xf32>, vector<8x32xf32>, vector<8x8xf32> -> vector<8x8xf32>
    %cst_36 = arith.constant 0.176776692 : f32
    %78 = vector.broadcast %cst_36 : f32 to vector<8x8xf32>
    %79 = arith.mulf %77, %78 : vector<8x8xf32>
    %80 = arith.addf %79, %1 : vector<8x8xf32>
    %cst_37 = arith.constant dense<0xFF800000> : vector<8xf32>
    %81 = vector.multi_reduction <maximumf>, %80, %cst_37 [1] : vector<8x8xf32> to vector<8xf32>
    %82 = vector.shape_cast %81 : vector<8xf32> to vector<8x1xf32>
    %83 = vector.broadcast %82 : vector<8x1xf32> to vector<8x8xf32>
    %84 = arith.subf %80, %83 : vector<8x8xf32>
    %85 = math.exp %84 : vector<8x8xf32>
    %cst_38 = arith.constant dense<0.000000e+00> : vector<8xf32>
    %86 = vector.multi_reduction <add>, %85, %cst_38 [1] : vector<8x8xf32> to vector<8xf32>
    %87 = vector.shape_cast %86 : vector<8xf32> to vector<8x1xf32>
    %88 = tpu.reciprocal %87 {approx = true} : vector<8x1xf32> -> vector<8x1xf32>
    %89 = vector.broadcast %88 : vector<8x1xf32> to vector<8x8xf32>
    %90 = arith.mulf %85, %89 : vector<8x8xf32>
    %cst_39 = arith.constant dense<0.000000e+00> : vector<8x32xf32>
    %91 = tpu.matmul %90, %76, %cst_39 {dimension_numbers = #tpu.dot_dimension_numbers<[1], [0], [0], [1], [0, 0, 1, 1], [], []>} : vector<8x8xf32>, vector<8x32xf32>, vector<8x32xf32> -> vector<8x32xf32>
    %92 = tpu.concatenate %37, %55, %73, %91 in 1 : vector<8x32xf32>, vector<8x32xf32>, vector<8x32xf32>, vector<8x32xf32> -> vector<8x128xf32>
    %c0_40 = arith.constant 0 : index
    %c0_41 = arith.constant 0 : index
    %93 = vector.load %arg9[%c0_40, %c0_41] : memref<128x128xf32, #tpu.memory_space<vmem>>, vector<128x128xf32>
    %cst_42 = arith.constant dense<0.000000e+00> : vector<8x128xf32>
    %94 = tpu.matmul %92, %93, %cst_42 {dimension_numbers = #tpu.dot_dimension_numbers<[1], [0], [0], [1], [0, 0, 1, 1], [], []>} : vector<8x128xf32>, vector<128x128xf32>, vector<8x128xf32> -> vector<8x128xf32>
    %c0_43 = arith.constant 0 : index
    %c0_44 = arith.constant 0 : index
    %95 = vector.load %arg10[%c0_43, %c0_44] : memref<1x128xf32, #tpu.memory_space<vmem>>, vector<1x128xf32>
    %96 = vector.broadcast %95 : vector<1x128xf32> to vector<8x128xf32>
    %97 = arith.addf %94, %96 : vector<8x128xf32>
    %98 = arith.addf %5, %97 : vector<8x128xf32>
    %cst_45 = arith.constant dense<0.000000e+00> : vector<8xf32>
    %99 = vector.multi_reduction <add>, %98, %cst_45 [1] : vector<8x128xf32> to vector<8xf32>
    %100 = vector.shape_cast %99 : vector<8xf32> to vector<8x1xf32>
    %cst_46 = arith.constant 1.280000e+02 : f32
    %101 = vector.broadcast %cst_46 : f32 to vector<8x1xf32>
    %102 = arith.divf %100, %101 : vector<8x1xf32>
    %103 = vector.broadcast %102 : vector<8x1xf32> to vector<8x128xf32>
    %104 = arith.subf %98, %103 : vector<8x128xf32>
    %105 = arith.mulf %104, %104 : vector<8x128xf32>
    %cst_47 = arith.constant dense<0.000000e+00> : vector<8xf32>
    %106 = vector.multi_reduction <add>, %105, %cst_47 [1] : vector<8x128xf32> to vector<8xf32>
    %107 = vector.shape_cast %106 : vector<8xf32> to vector<8x1xf32>
    %cst_48 = arith.constant 1.280000e+02 : f32
    %108 = vector.broadcast %cst_48 : f32 to vector<8x1xf32>
    %109 = arith.divf %107, %108 : vector<8x1xf32>
    %cst_49 = arith.constant 9.99999974E-6 : f32
    %110 = vector.broadcast %cst_49 : f32 to vector<8x1xf32>
    %111 = arith.addf %109, %110 : vector<8x1xf32>
    %112 = math.rsqrt %111 : vector<8x1xf32>
    %113 = vector.broadcast %112 : vector<8x1xf32> to vector<8x128xf32>
    %114 = arith.mulf %104, %113 : vector<8x128xf32>
    %c0_50 = arith.constant 0 : index
    %c0_51 = arith.constant 0 : index
    %115 = vector.load %arg11[%c0_50, %c0_51] : memref<1x128xf32, #tpu.memory_space<vmem>>, vector<1x128xf32>
    %116 = vector.broadcast %115 : vector<1x128xf32> to vector<8x128xf32>
    %117 = arith.mulf %114, %116 : vector<8x128xf32>
    %c0_52 = arith.constant 0 : index
    %c0_53 = arith.constant 0 : index
    %118 = vector.load %arg12[%c0_52, %c0_53] : memref<1x128xf32, #tpu.memory_space<vmem>>, vector<1x128xf32>
    %119 = vector.broadcast %118 : vector<1x128xf32> to vector<8x128xf32>
    %120 = arith.addf %117, %119 : vector<8x128xf32>
    %c0_54 = arith.constant 0 : index
    %c0_55 = arith.constant 0 : index
    %121 = vector.load %arg13[%c0_54, %c0_55] : memref<128x128xf32, #tpu.memory_space<vmem>>, vector<128x128xf32>
    %cst_56 = arith.constant dense<0.000000e+00> : vector<8x128xf32>
    %122 = tpu.matmul %120, %121, %cst_56 {dimension_numbers = #tpu.dot_dimension_numbers<[1], [0], [0], [1], [0, 0, 1, 1], [], []>} : vector<8x128xf32>, vector<128x128xf32>, vector<8x128xf32> -> vector<8x128xf32>
    %c0_57 = arith.constant 0 : index
    %c0_58 = arith.constant 0 : index
    %123 = vector.load %arg14[%c0_57, %c0_58] : memref<1x128xf32, #tpu.memory_space<vmem>>, vector<1x128xf32>
    %124 = vector.broadcast %123 : vector<1x128xf32> to vector<8x128xf32>
    %125 = arith.addf %122, %124 : vector<8x128xf32>
    %c0_59 = arith.constant 0 : index
    %c0_60 = arith.constant 0 : index
    %126 = vector.load %arg15[%c0_59, %c0_60] : memref<128x256xf32, #tpu.memory_space<vmem>>, vector<128x256xf32>
    %cst_61 = arith.constant dense<0.000000e+00> : vector<8x256xf32>
    %127 = tpu.matmul %7, %126, %cst_61 {dimension_numbers = #tpu.dot_dimension_numbers<[1], [0], [0], [1], [0, 0, 1, 1], [], []>} : vector<8x128xf32>, vector<128x256xf32>, vector<8x256xf32> -> vector<8x256xf32>
    %c0_62 = arith.constant 0 : index
    %c0_63 = arith.constant 0 : index
    %128 = vector.load %arg16[%c0_62, %c0_63] : memref<1x256xf32, #tpu.memory_space<vmem>>, vector<1x256xf32>
    %129 = vector.broadcast %128 : vector<1x256xf32> to vector<8x256xf32>
    %130 = arith.addf %127, %129 : vector<8x256xf32>
    %131 = vector.extract_strided_slice %130 {offsets = [0, 0], sizes = [8, 128], strides = [1, 1]} : vector<8x256xf32> to vector<8x128xf32>
    %132 = vector.extract_strided_slice %130 {offsets = [0, 128], sizes = [8, 128], strides = [1, 1]} : vector<8x256xf32> to vector<8x128xf32>
    %133 = vector.extract_strided_slice %125 {offsets = [0, 0], sizes = [8, 32], strides = [1, 1]} : vector<8x128xf32> to vector<8x32xf32>
    %134 = vector.extract_strided_slice %131 {offsets = [0, 0], sizes = [8, 32], strides = [1, 1]} : vector<8x128xf32> to vector<8x32xf32>
    %135 = vector.extract_strided_slice %132 {offsets = [0, 0], sizes = [8, 32], strides = [1, 1]} : vector<8x128xf32> to vector<8x32xf32>
    %cst_64 = arith.constant dense<0.000000e+00> : vector<8x8xf32>
    %136 = tpu.matmul %133, %134, %cst_64 {dimension_numbers = #tpu.dot_dimension_numbers<[1], [1], [0], [0], [0, 0, 1, 0], [], []>} : vector<8x32xf32>, vector<8x32xf32>, vector<8x8xf32> -> vector<8x8xf32>
    %cst_65 = arith.constant 0.176776692 : f32
    %137 = vector.broadcast %cst_65 : f32 to vector<8x8xf32>
    %138 = arith.mulf %136, %137 : vector<8x8xf32>
    %139 = arith.addf %138, %3 : vector<8x8xf32>
    %cst_66 = arith.constant dense<0xFF800000> : vector<8xf32>
    %140 = vector.multi_reduction <maximumf>, %139, %cst_66 [1] : vector<8x8xf32> to vector<8xf32>
    %141 = vector.shape_cast %140 : vector<8xf32> to vector<8x1xf32>
    %142 = vector.broadcast %141 : vector<8x1xf32> to vector<8x8xf32>
    %143 = arith.subf %139, %142 : vector<8x8xf32>
    %144 = math.exp %143 : vector<8x8xf32>
    %cst_67 = arith.constant dense<0.000000e+00> : vector<8xf32>
    %145 = vector.multi_reduction <add>, %144, %cst_67 [1] : vector<8x8xf32> to vector<8xf32>
    %146 = vector.shape_cast %145 : vector<8xf32> to vector<8x1xf32>
    %147 = tpu.reciprocal %146 {approx = true} : vector<8x1xf32> -> vector<8x1xf32>
    %148 = vector.broadcast %147 : vector<8x1xf32> to vector<8x8xf32>
    %149 = arith.mulf %144, %148 : vector<8x8xf32>
    %cst_68 = arith.constant dense<0.000000e+00> : vector<8x32xf32>
    %150 = tpu.matmul %149, %135, %cst_68 {dimension_numbers = #tpu.dot_dimension_numbers<[1], [0], [0], [1], [0, 0, 1, 1], [], []>} : vector<8x8xf32>, vector<8x32xf32>, vector<8x32xf32> -> vector<8x32xf32>
    %151 = vector.extract_strided_slice %125 {offsets = [0, 32], sizes = [8, 32], strides = [1, 1]} : vector<8x128xf32> to vector<8x32xf32>
    %152 = vector.extract_strided_slice %131 {offsets = [0, 32], sizes = [8, 32], strides = [1, 1]} : vector<8x128xf32> to vector<8x32xf32>
    %153 = vector.extract_strided_slice %132 {offsets = [0, 32], sizes = [8, 32], strides = [1, 1]} : vector<8x128xf32> to vector<8x32xf32>
    %cst_69 = arith.constant dense<0.000000e+00> : vector<8x8xf32>
    %154 = tpu.matmul %151, %152, %cst_69 {dimension_numbers = #tpu.dot_dimension_numbers<[1], [1], [0], [0], [0, 0, 1, 0], [], []>} : vector<8x32xf32>, vector<8x32xf32>, vector<8x8xf32> -> vector<8x8xf32>
    %cst_70 = arith.constant 0.176776692 : f32
    %155 = vector.broadcast %cst_70 : f32 to vector<8x8xf32>
    %156 = arith.mulf %154, %155 : vector<8x8xf32>
    %157 = arith.addf %156, %3 : vector<8x8xf32>
    %cst_71 = arith.constant dense<0xFF800000> : vector<8xf32>
    %158 = vector.multi_reduction <maximumf>, %157, %cst_71 [1] : vector<8x8xf32> to vector<8xf32>
    %159 = vector.shape_cast %158 : vector<8xf32> to vector<8x1xf32>
    %160 = vector.broadcast %159 : vector<8x1xf32> to vector<8x8xf32>
    %161 = arith.subf %157, %160 : vector<8x8xf32>
    %162 = math.exp %161 : vector<8x8xf32>
    %cst_72 = arith.constant dense<0.000000e+00> : vector<8xf32>
    %163 = vector.multi_reduction <add>, %162, %cst_72 [1] : vector<8x8xf32> to vector<8xf32>
    %164 = vector.shape_cast %163 : vector<8xf32> to vector<8x1xf32>
    %165 = tpu.reciprocal %164 {approx = true} : vector<8x1xf32> -> vector<8x1xf32>
    %166 = vector.broadcast %165 : vector<8x1xf32> to vector<8x8xf32>
    %167 = arith.mulf %162, %166 : vector<8x8xf32>
    %cst_73 = arith.constant dense<0.000000e+00> : vector<8x32xf32>
    %168 = tpu.matmul %167, %153, %cst_73 {dimension_numbers = #tpu.dot_dimension_numbers<[1], [0], [0], [1], [0, 0, 1, 1], [], []>} : vector<8x8xf32>, vector<8x32xf32>, vector<8x32xf32> -> vector<8x32xf32>
    %169 = vector.extract_strided_slice %125 {offsets = [0, 64], sizes = [8, 32], strides = [1, 1]} : vector<8x128xf32> to vector<8x32xf32>
    %170 = vector.extract_strided_slice %131 {offsets = [0, 64], sizes = [8, 32], strides = [1, 1]} : vector<8x128xf32> to vector<8x32xf32>
    %171 = vector.extract_strided_slice %132 {offsets = [0, 64], sizes = [8, 32], strides = [1, 1]} : vector<8x128xf32> to vector<8x32xf32>
    %cst_74 = arith.constant dense<0.000000e+00> : vector<8x8xf32>
    %172 = tpu.matmul %169, %170, %cst_74 {dimension_numbers = #tpu.dot_dimension_numbers<[1], [1], [0], [0], [0, 0, 1, 0], [], []>} : vector<8x32xf32>, vector<8x32xf32>, vector<8x8xf32> -> vector<8x8xf32>
    %cst_75 = arith.constant 0.176776692 : f32
    %173 = vector.broadcast %cst_75 : f32 to vector<8x8xf32>
    %174 = arith.mulf %172, %173 : vector<8x8xf32>
    %175 = arith.addf %174, %3 : vector<8x8xf32>
    %cst_76 = arith.constant dense<0xFF800000> : vector<8xf32>
    %176 = vector.multi_reduction <maximumf>, %175, %cst_76 [1] : vector<8x8xf32> to vector<8xf32>
    %177 = vector.shape_cast %176 : vector<8xf32> to vector<8x1xf32>
    %178 = vector.broadcast %177 : vector<8x1xf32> to vector<8x8xf32>
    %179 = arith.subf %175, %178 : vector<8x8xf32>
    %180 = math.exp %179 : vector<8x8xf32>
    %cst_77 = arith.constant dense<0.000000e+00> : vector<8xf32>
    %181 = vector.multi_reduction <add>, %180, %cst_77 [1] : vector<8x8xf32> to vector<8xf32>
    %182 = vector.shape_cast %181 : vector<8xf32> to vector<8x1xf32>
    %183 = tpu.reciprocal %182 {approx = true} : vector<8x1xf32> -> vector<8x1xf32>
    %184 = vector.broadcast %183 : vector<8x1xf32> to vector<8x8xf32>
    %185 = arith.mulf %180, %184 : vector<8x8xf32>
    %cst_78 = arith.constant dense<0.000000e+00> : vector<8x32xf32>
    %186 = tpu.matmul %185, %171, %cst_78 {dimension_numbers = #tpu.dot_dimension_numbers<[1], [0], [0], [1], [0, 0, 1, 1], [], []>} : vector<8x8xf32>, vector<8x32xf32>, vector<8x32xf32> -> vector<8x32xf32>
    %187 = vector.extract_strided_slice %125 {offsets = [0, 96], sizes = [8, 32], strides = [1, 1]} : vector<8x128xf32> to vector<8x32xf32>
    %188 = vector.extract_strided_slice %131 {offsets = [0, 96], sizes = [8, 32], strides = [1, 1]} : vector<8x128xf32> to vector<8x32xf32>
    %189 = vector.extract_strided_slice %132 {offsets = [0, 96], sizes = [8, 32], strides = [1, 1]} : vector<8x128xf32> to vector<8x32xf32>
    %cst_79 = arith.constant dense<0.000000e+00> : vector<8x8xf32>
    %190 = tpu.matmul %187, %188, %cst_79 {dimension_numbers = #tpu.dot_dimension_numbers<[1], [1], [0], [0], [0, 0, 1, 0], [], []>} : vector<8x32xf32>, vector<8x32xf32>, vector<8x8xf32> -> vector<8x8xf32>
    %cst_80 = arith.constant 0.176776692 : f32
    %191 = vector.broadcast %cst_80 : f32 to vector<8x8xf32>
    %192 = arith.mulf %190, %191 : vector<8x8xf32>
    %193 = arith.addf %192, %3 : vector<8x8xf32>
    %cst_81 = arith.constant dense<0xFF800000> : vector<8xf32>
    %194 = vector.multi_reduction <maximumf>, %193, %cst_81 [1] : vector<8x8xf32> to vector<8xf32>
    %195 = vector.shape_cast %194 : vector<8xf32> to vector<8x1xf32>
    %196 = vector.broadcast %195 : vector<8x1xf32> to vector<8x8xf32>
    %197 = arith.subf %193, %196 : vector<8x8xf32>
    %198 = math.exp %197 : vector<8x8xf32>
    %cst_82 = arith.constant dense<0.000000e+00> : vector<8xf32>
    %199 = vector.multi_reduction <add>, %198, %cst_82 [1] : vector<8x8xf32> to vector<8xf32>
    %200 = vector.shape_cast %199 : vector<8xf32> to vector<8x1xf32>
    %201 = tpu.reciprocal %200 {approx = true} : vector<8x1xf32> -> vector<8x1xf32>
    %202 = vector.broadcast %201 : vector<8x1xf32> to vector<8x8xf32>
    %203 = arith.mulf %198, %202 : vector<8x8xf32>
    %cst_83 = arith.constant dense<0.000000e+00> : vector<8x32xf32>
    %204 = tpu.matmul %203, %189, %cst_83 {dimension_numbers = #tpu.dot_dimension_numbers<[1], [0], [0], [1], [0, 0, 1, 1], [], []>} : vector<8x8xf32>, vector<8x32xf32>, vector<8x32xf32> -> vector<8x32xf32>
    %205 = tpu.concatenate %150, %168, %186, %204 in 1 : vector<8x32xf32>, vector<8x32xf32>, vector<8x32xf32>, vector<8x32xf32> -> vector<8x128xf32>
    %c0_84 = arith.constant 0 : index
    %c0_85 = arith.constant 0 : index
    %206 = vector.load %arg17[%c0_84, %c0_85] : memref<128x128xf32, #tpu.memory_space<vmem>>, vector<128x128xf32>
    %cst_86 = arith.constant dense<0.000000e+00> : vector<8x128xf32>
    %207 = tpu.matmul %205, %206, %cst_86 {dimension_numbers = #tpu.dot_dimension_numbers<[1], [0], [0], [1], [0, 0, 1, 1], [], []>} : vector<8x128xf32>, vector<128x128xf32>, vector<8x128xf32> -> vector<8x128xf32>
    %c0_87 = arith.constant 0 : index
    %c0_88 = arith.constant 0 : index
    %208 = vector.load %arg18[%c0_87, %c0_88] : memref<1x128xf32, #tpu.memory_space<vmem>>, vector<1x128xf32>
    %209 = vector.broadcast %208 : vector<1x128xf32> to vector<8x128xf32>
    %210 = arith.addf %207, %209 : vector<8x128xf32>
    %211 = arith.addf %120, %210 : vector<8x128xf32>
    %cst_89 = arith.constant dense<0.000000e+00> : vector<8xf32>
    %212 = vector.multi_reduction <add>, %211, %cst_89 [1] : vector<8x128xf32> to vector<8xf32>
    %213 = vector.shape_cast %212 : vector<8xf32> to vector<8x1xf32>
    %cst_90 = arith.constant 1.280000e+02 : f32
    %214 = vector.broadcast %cst_90 : f32 to vector<8x1xf32>
    %215 = arith.divf %213, %214 : vector<8x1xf32>
    %216 = vector.broadcast %215 : vector<8x1xf32> to vector<8x128xf32>
    %217 = arith.subf %211, %216 : vector<8x128xf32>
    %218 = arith.mulf %217, %217 : vector<8x128xf32>
    %cst_91 = arith.constant dense<0.000000e+00> : vector<8xf32>
    %219 = vector.multi_reduction <add>, %218, %cst_91 [1] : vector<8x128xf32> to vector<8xf32>
    %220 = vector.shape_cast %219 : vector<8xf32> to vector<8x1xf32>
    %cst_92 = arith.constant 1.280000e+02 : f32
    %221 = vector.broadcast %cst_92 : f32 to vector<8x1xf32>
    %222 = arith.divf %220, %221 : vector<8x1xf32>
    %cst_93 = arith.constant 9.99999974E-6 : f32
    %223 = vector.broadcast %cst_93 : f32 to vector<8x1xf32>
    %224 = arith.addf %222, %223 : vector<8x1xf32>
    %225 = math.rsqrt %224 : vector<8x1xf32>
    %226 = vector.broadcast %225 : vector<8x1xf32> to vector<8x128xf32>
    %227 = arith.mulf %217, %226 : vector<8x128xf32>
    %c0_94 = arith.constant 0 : index
    %c0_95 = arith.constant 0 : index
    %228 = vector.load %arg19[%c0_94, %c0_95] : memref<1x128xf32, #tpu.memory_space<vmem>>, vector<1x128xf32>
    %229 = vector.broadcast %228 : vector<1x128xf32> to vector<8x128xf32>
    %230 = arith.mulf %227, %229 : vector<8x128xf32>
    %c0_96 = arith.constant 0 : index
    %c0_97 = arith.constant 0 : index
    %231 = vector.load %arg20[%c0_96, %c0_97] : memref<1x128xf32, #tpu.memory_space<vmem>>, vector<1x128xf32>
    %232 = vector.broadcast %231 : vector<1x128xf32> to vector<8x128xf32>
    %233 = arith.addf %230, %232 : vector<8x128xf32>
    %c0_98 = arith.constant 0 : index
    %c0_99 = arith.constant 0 : index
    %234 = vector.load %arg21[%c0_98, %c0_99] : memref<128x128xf32, #tpu.memory_space<vmem>>, vector<128x128xf32>
    %cst_100 = arith.constant dense<0.000000e+00> : vector<8x128xf32>
    %235 = tpu.matmul %233, %234, %cst_100 {dimension_numbers = #tpu.dot_dimension_numbers<[1], [0], [0], [1], [0, 0, 1, 1], [], []>} : vector<8x128xf32>, vector<128x128xf32>, vector<8x128xf32> -> vector<8x128xf32>
    %c0_101 = arith.constant 0 : index
    %c0_102 = arith.constant 0 : index
    %236 = vector.load %arg22[%c0_101, %c0_102] : memref<1x128xf32, #tpu.memory_space<vmem>>, vector<1x128xf32>
    %237 = vector.broadcast %236 : vector<1x128xf32> to vector<8x128xf32>
    %238 = arith.addf %235, %237 : vector<8x128xf32>
    %cst_103 = arith.constant 0.000000e+00 : f32
    %239 = vector.broadcast %cst_103 : f32 to vector<8x128xf32>
    %240 = arith.maximumf %238, %239 : vector<8x128xf32>
    %c0_104 = arith.constant 0 : index
    %c0_105 = arith.constant 0 : index
    %241 = vector.load %arg23[%c0_104, %c0_105] : memref<128x128xf32, #tpu.memory_space<vmem>>, vector<128x128xf32>
    %cst_106 = arith.constant dense<0.000000e+00> : vector<8x128xf32>
    %242 = tpu.matmul %240, %241, %cst_106 {dimension_numbers = #tpu.dot_dimension_numbers<[1], [0], [0], [1], [0, 0, 1, 1], [], []>} : vector<8x128xf32>, vector<128x128xf32>, vector<8x128xf32> -> vector<8x128xf32>
    %c0_107 = arith.constant 0 : index
    %c0_108 = arith.constant 0 : index
    %243 = vector.load %arg24[%c0_107, %c0_108] : memref<1x128xf32, #tpu.memory_space<vmem>>, vector<1x128xf32>
    %244 = vector.broadcast %243 : vector<1x128xf32> to vector<8x128xf32>
    %245 = arith.addf %242, %244 : vector<8x128xf32>
    %246 = arith.addf %233, %245 : vector<8x128xf32>
    %cst_109 = arith.constant dense<0.000000e+00> : vector<8xf32>
    %247 = vector.multi_reduction <add>, %246, %cst_109 [1] : vector<8x128xf32> to vector<8xf32>
    %248 = vector.shape_cast %247 : vector<8xf32> to vector<8x1xf32>
    %cst_110 = arith.constant 1.280000e+02 : f32
    %249 = vector.broadcast %cst_110 : f32 to vector<8x1xf32>
    %250 = arith.divf %248, %249 : vector<8x1xf32>
    %251 = vector.broadcast %250 : vector<8x1xf32> to vector<8x128xf32>
    %252 = arith.subf %246, %251 : vector<8x128xf32>
    %253 = arith.mulf %252, %252 : vector<8x128xf32>
    %cst_111 = arith.constant dense<0.000000e+00> : vector<8xf32>
    %254 = vector.multi_reduction <add>, %253, %cst_111 [1] : vector<8x128xf32> to vector<8xf32>
    %255 = vector.shape_cast %254 : vector<8xf32> to vector<8x1xf32>
    %cst_112 = arith.constant 1.280000e+02 : f32
    %256 = vector.broadcast %cst_112 : f32 to vector<8x1xf32>
    %257 = arith.divf %255, %256 : vector<8x1xf32>
    %cst_113 = arith.constant 9.99999974E-6 : f32
    %258 = vector.broadcast %cst_113 : f32 to vector<8x1xf32>
    %259 = arith.addf %257, %258 : vector<8x1xf32>
    %260 = math.rsqrt %259 : vector<8x1xf32>
    %261 = vector.broadcast %260 : vector<8x1xf32> to vector<8x128xf32>
    %262 = arith.mulf %252, %261 : vector<8x128xf32>
    %c0_114 = arith.constant 0 : index
    %c0_115 = arith.constant 0 : index
    %263 = vector.load %arg25[%c0_114, %c0_115] : memref<1x128xf32, #tpu.memory_space<vmem>>, vector<1x128xf32>
    %264 = vector.broadcast %263 : vector<1x128xf32> to vector<8x128xf32>
    %265 = arith.mulf %262, %264 : vector<8x128xf32>
    %c0_116 = arith.constant 0 : index
    %c0_117 = arith.constant 0 : index
    %266 = vector.load %arg26[%c0_116, %c0_117] : memref<1x128xf32, #tpu.memory_space<vmem>>, vector<1x128xf32>
    %267 = vector.broadcast %266 : vector<1x128xf32> to vector<8x128xf32>
    %268 = arith.addf %265, %267 : vector<8x128xf32>
    %c0_118 = arith.constant 0 : index
    %c0_119 = arith.constant 0 : index
    %c0_120 = arith.constant 0 : index
    %269 = vector.load %arg27[%c0_118, %c0_119, %c0_120] : memref<1x8x128xf32, #tpu.memory_space<vmem>>, vector<1x8x128xf32>
    %270 = vector.shape_cast %269 : vector<1x8x128xf32> to vector<8x128xf32>
    %271 = vector.shape_cast %268 : vector<8x128xf32> to vector<1x8x128xf32>
    tpu.vector_store %arg27[%c0_118, %c0_119, %c0_120], %271 {strides = array<i32>} : memref<1x8x128xf32, #tpu.memory_space<vmem>>, vector<1x8x128xf32>,
    return
  }
  func.func @transform_0(%arg0: i32) -> (i32, i32, i32) {
    %c0_i32 = arith.constant 0 : i32
    %c0_i32_0 = arith.constant 0 : i32
    %c0_i32_1 = arith.constant 0 : i32
    return %arg0, %c0_i32, %c0_i32_0 : i32, i32, i32
  }
  func.func @transform_1(%arg0: i32) -> (i32, i32, i32) {
    %c0_i32 = arith.constant 0 : i32
    %c0_i32_0 = arith.constant 0 : i32
    %c0_i32_1 = arith.constant 0 : i32
    return %arg0, %c0_i32, %c0_i32_0 : i32, i32, i32
  }
  func.func @transform_2(%arg0: i32) -> (i32, i32, i32) {
    %c0_i32 = arith.constant 0 : i32
    %c0_i32_0 = arith.constant 0 : i32
    %c0_i32_1 = arith.constant 0 : i32
    return %arg0, %c0_i32, %c0_i32_0 : i32, i32, i32
  }
  func.func @transform_3(%arg0: i32) -> (i32, i32, i32) {
    %c0_i32 = arith.constant 0 : i32
    %c0_i32_0 = arith.constant 0 : i32
    %c0_i32_1 = arith.constant 0 : i32
    return %arg0, %c0_i32, %c0_i32_0 : i32, i32, i32
  }
  func.func @transform_4(%arg0: i32) -> (i32, i32) {
    %c0_i32 = arith.constant 0 : i32
    %c0_i32_0 = arith.constant 0 : i32
    %c0_i32_1 = arith.constant 0 : i32
    return %c0_i32, %c0_i32_0 : i32, i32
  }
  func.func @transform_5(%arg0: i32) -> (i32, i32) {
    %c0_i32 = arith.constant 0 : i32
    %c0_i32_0 = arith.constant 0 : i32
    %c0_i32_1 = arith.constant 0 : i32
    return %c0_i32, %c0_i32_0 : i32, i32
  }
  func.func @transform_6(%arg0: i32) -> (i32, i32) {
    %c0_i32 = arith.constant 0 : i32
    %c0_i32_0 = arith.constant 0 : i32
    %c0_i32_1 = arith.constant 0 : i32
    return %c0_i32, %c0_i32_0 : i32, i32
  }
  func.func @transform_7(%arg0: i32) -> (i32, i32) {
    %c0_i32 = arith.constant 0 : i32
    %c0_i32_0 = arith.constant 0 : i32
    %c0_i32_1 = arith.constant 0 : i32
    return %c0_i32, %c0_i32_0 : i32, i32
  }
  func.func @transform_8(%arg0: i32) -> (i32, i32) {
    %c0_i32 = arith.constant 0 : i32
    %c0_i32_0 = arith.constant 0 : i32
    %c0_i32_1 = arith.constant 0 : i32
    return %c0_i32, %c0_i32_0 : i32, i32
  }
  func.func @transform_9(%arg0: i32) -> (i32, i32) {
    %c0_i32 = arith.constant 0 : i32
    %c0_i32_0 = arith.constant 0 : i32
    %c0_i32_1 = arith.constant 0 : i32
    return %c0_i32, %c0_i32_0 : i32, i32
  }
  func.func @transform_10(%arg0: i32) -> (i32, i32) {
    %c0_i32 = arith.constant 0 : i32
    %c0_i32_0 = arith.constant 0 : i32
    %c0_i32_1 = arith.constant 0 : i32
    return %c0_i32, %c0_i32_0 : i32, i32
  }
  func.func @transform_11(%arg0: i32) -> (i32, i32) {
    %c0_i32 = arith.constant 0 : i32
    %c0_i32_0 = arith.constant 0 : i32
    %c0_i32_1 = arith.constant 0 : i32
    return %c0_i32, %c0_i32_0 : i32, i32
  }
  func.func @transform_12(%arg0: i32) -> (i32, i32) {
    %c0_i32 = arith.constant 0 : i32
    %c0_i32_0 = arith.constant 0 : i32
    %c0_i32_1 = arith.constant 0 : i32
    return %c0_i32, %c0_i32_0 : i32, i32
  }
  func.func @transform_13(%arg0: i32) -> (i32, i32) {
    %c0_i32 = arith.constant 0 : i32
    %c0_i32_0 = arith.constant 0 : i32
    %c0_i32_1 = arith.constant 0 : i32
    return %c0_i32, %c0_i32_0 : i32, i32
  }
  func.func @transform_14(%arg0: i32) -> (i32, i32) {
    %c0_i32 = arith.constant 0 : i32
    %c0_i32_0 = arith.constant 0 : i32
    %c0_i32_1 = arith.constant 0 : i32
    return %c0_i32, %c0_i32_0 : i32, i32
  }
  func.func @transform_15(%arg0: i32) -> (i32, i32) {
    %c0_i32 = arith.constant 0 : i32
    %c0_i32_0 = arith.constant 0 : i32
    %c0_i32_1 = arith.constant 0 : i32
    return %c0_i32, %c0_i32_0 : i32, i32
  }
  func.func @transform_16(%arg0: i32) -> (i32, i32) {
    %c0_i32 = arith.constant 0 : i32
    %c0_i32_0 = arith.constant 0 : i32
    %c0_i32_1 = arith.constant 0 : i32
    return %c0_i32, %c0_i32_0 : i32, i32
  }
  func.func @transform_17(%arg0: i32) -> (i32, i32) {
    %c0_i32 = arith.constant 0 : i32
    %c0_i32_0 = arith.constant 0 : i32
    %c0_i32_1 = arith.constant 0 : i32
    return %c0_i32, %c0_i32_0 : i32, i32
  }
  func.func @transform_18(%arg0: i32) -> (i32, i32) {
    %c0_i32 = arith.constant 0 : i32
    %c0_i32_0 = arith.constant 0 : i32
    %c0_i32_1 = arith.constant 0 : i32
    return %c0_i32, %c0_i32_0 : i32, i32
  }
  func.func @transform_19(%arg0: i32) -> (i32, i32) {
    %c0_i32 = arith.constant 0 : i32
    %c0_i32_0 = arith.constant 0 : i32
    %c0_i32_1 = arith.constant 0 : i32
    return %c0_i32, %c0_i32_0 : i32, i32
  }
  func.func @transform_20(%arg0: i32) -> (i32, i32) {
    %c0_i32 = arith.constant 0 : i32
    %c0_i32_0 = arith.constant 0 : i32
    %c0_i32_1 = arith.constant 0 : i32
    return %c0_i32, %c0_i32_0 : i32, i32
  }
  func.func @transform_21(%arg0: i32) -> (i32, i32) {
    %c0_i32 = arith.constant 0 : i32
    %c0_i32_0 = arith.constant 0 : i32
    %c0_i32_1 = arith.constant 0 : i32
    return %c0_i32, %c0_i32_0 : i32, i32
  }
  func.func @transform_22(%arg0: i32) -> (i32, i32) {
    %c0_i32 = arith.constant 0 : i32
    %c0_i32_0 = arith.constant 0 : i32
    %c0_i32_1 = arith.constant 0 : i32
    return %c0_i32, %c0_i32_0 : i32, i32
  }
  func.func @transform_23(%arg0: i32) -> (i32, i32) {
    %c0_i32 = arith.constant 0 : i32
    %c0_i32_0 = arith.constant 0 : i32
    %c0_i32_1 = arith.constant 0 : i32
    return %c0_i32, %c0_i32_0 : i32, i32
  }
  func.func @transform_24(%arg0: i32) -> (i32, i32) {
    %c0_i32 = arith.constant 0 : i32
    %c0_i32_0 = arith.constant 0 : i32
    %c0_i32_1 = arith.constant 0 : i32
    return %c0_i32, %c0_i32_0 : i32, i32
  }
  func.func @transform_25(%arg0: i32) -> (i32, i32) {
    %c0_i32 = arith.constant 0 : i32
    %c0_i32_0 = arith.constant 0 : i32
    %c0_i32_1 = arith.constant 0 : i32
    return %c0_i32, %c0_i32_0 : i32, i32
  }
  func.func @transform_26(%arg0: i32) -> (i32, i32, i32) {
    %c0_i32 = arith.constant 0 : i32
    %c0_i32_0 = arith.constant 0 : i32
    %c0_i32_1 = arith.constant 0 : i32
    return %arg0, %c0_i32, %c0_i32_0 : i32, i32, i32
  }
}

module attributes {stable_mosaic.version = 11 : i64} {
  func.func @_norm_gen_kernel(%arg0: i32, %arg1: memref<16x128xf32, #tpu.memory_space<vmem>>, %arg2: memref<1x128xf32, #tpu.memory_space<vmem>>, %arg3: memref<1x128xf32, #tpu.memory_space<vmem>>, %arg4: memref<128x256xf32, #tpu.memory_space<vmem>>, %arg5: memref<1x256xf32, #tpu.memory_space<vmem>>, %arg6: memref<16x256xf32, #tpu.memory_space<vmem>>) attributes {dimension_semantics = [#tpu.dimension_semantics<arbitrary>], iteration_bounds = array<i64: 1>, scalar_prefetch = 0 : i64, scratch_operands = 0 : i64, tpu.core_type = #tpu.core_type<tc>, window_params = [{pipeline_mode = #tpu.pipeline_mode<synchronous>, transform_indices = @transform_0, window_bounds = array<i64: 16, 128>}, {pipeline_mode = #tpu.pipeline_mode<synchronous>, transform_indices = @transform_1, window_bounds = array<i64: 1, 128>}, {pipeline_mode = #tpu.pipeline_mode<synchronous>, transform_indices = @transform_2, window_bounds = array<i64: 1, 128>}, {pipeline_mode = #tpu.pipeline_mode<synchronous>, transform_indices = @transform_3, window_bounds = array<i64: 128, 256>}, {pipeline_mode = #tpu.pipeline_mode<synchronous>, transform_indices = @transform_4, window_bounds = array<i64: 1, 256>}, {pipeline_mode = #tpu.pipeline_mode<synchronous>, transform_indices = @transform_5, window_bounds = array<i64: 16, 256>}]} {
    %c0 = arith.constant 0 : index
    %c0_0 = arith.constant 0 : index
    %0 = vector.load %arg1[%c0, %c0_0] : memref<16x128xf32, #tpu.memory_space<vmem>>, vector<16x128xf32>
    %cst = arith.constant dense<0.000000e+00> : vector<16xf32>
    %1 = vector.multi_reduction <add>, %0, %cst [1] : vector<16x128xf32> to vector<16xf32>
    %2 = vector.shape_cast %1 : vector<16xf32> to vector<16x1xf32>
    %cst_1 = arith.constant 1.280000e+02 : f32
    %3 = vector.broadcast %cst_1 : f32 to vector<16x1xf32>
    %4 = arith.divf %2, %3 : vector<16x1xf32>
    %5 = vector.broadcast %4 : vector<16x1xf32> to vector<16x128xf32>
    %6 = arith.subf %0, %5 : vector<16x128xf32>
    %7 = arith.mulf %6, %6 : vector<16x128xf32>
    %cst_2 = arith.constant dense<0.000000e+00> : vector<16xf32>
    %8 = vector.multi_reduction <add>, %7, %cst_2 [1] : vector<16x128xf32> to vector<16xf32>
    %9 = vector.shape_cast %8 : vector<16xf32> to vector<16x1xf32>
    %cst_3 = arith.constant 1.280000e+02 : f32
    %10 = vector.broadcast %cst_3 : f32 to vector<16x1xf32>
    %11 = arith.divf %9, %10 : vector<16x1xf32>
    %cst_4 = arith.constant 9.99999974E-6 : f32
    %12 = vector.broadcast %cst_4 : f32 to vector<16x1xf32>
    %13 = arith.addf %11, %12 : vector<16x1xf32>
    %14 = math.rsqrt %13 : vector<16x1xf32>
    %15 = vector.broadcast %14 : vector<16x1xf32> to vector<16x128xf32>
    %16 = arith.mulf %6, %15 : vector<16x128xf32>
    %c0_5 = arith.constant 0 : index
    %c0_6 = arith.constant 0 : index
    %17 = vector.load %arg2[%c0_5, %c0_6] : memref<1x128xf32, #tpu.memory_space<vmem>>, vector<1x128xf32>
    %18 = vector.broadcast %17 : vector<1x128xf32> to vector<16x128xf32>
    %19 = arith.mulf %16, %18 : vector<16x128xf32>
    %c0_7 = arith.constant 0 : index
    %c0_8 = arith.constant 0 : index
    %20 = vector.load %arg3[%c0_7, %c0_8] : memref<1x128xf32, #tpu.memory_space<vmem>>, vector<1x128xf32>
    %21 = vector.broadcast %20 : vector<1x128xf32> to vector<16x128xf32>
    %22 = arith.addf %19, %21 : vector<16x128xf32>
    %c0_9 = arith.constant 0 : index
    %c0_10 = arith.constant 0 : index
    %23 = vector.load %arg4[%c0_9, %c0_10] : memref<128x256xf32, #tpu.memory_space<vmem>>, vector<128x256xf32>
    %cst_11 = arith.constant dense<0.000000e+00> : vector<16x256xf32>
    %24 = tpu.matmul %22, %23, %cst_11 {dimension_numbers = #tpu.dot_dimension_numbers<[1], [0], [0], [1], [0, 0, 1, 1], [], []>} : vector<16x128xf32>, vector<128x256xf32>, vector<16x256xf32> -> vector<16x256xf32>
    %c0_12 = arith.constant 0 : index
    %c0_13 = arith.constant 0 : index
    %25 = vector.load %arg5[%c0_12, %c0_13] : memref<1x256xf32, #tpu.memory_space<vmem>>, vector<1x256xf32>
    %26 = vector.broadcast %25 : vector<1x256xf32> to vector<16x256xf32>
    %27 = arith.addf %24, %26 : vector<16x256xf32>
    %c0_14 = arith.constant 0 : index
    %c0_15 = arith.constant 0 : index
    %28 = vector.load %arg6[%c0_14, %c0_15] : memref<16x256xf32, #tpu.memory_space<vmem>>, vector<16x256xf32>
    tpu.vector_store %arg6[%c0_14, %c0_15], %27 {strides = array<i32>} : memref<16x256xf32, #tpu.memory_space<vmem>>, vector<16x256xf32>,
    return
  }
  func.func @transform_0(%arg0: i32) -> (i32, i32) {
    %c0_i32 = arith.constant 0 : i32
    %c0_i32_0 = arith.constant 0 : i32
    %c0_i32_1 = arith.constant 0 : i32
    return %c0_i32, %c0_i32_0 : i32, i32
  }
  func.func @transform_1(%arg0: i32) -> (i32, i32) {
    %c0_i32 = arith.constant 0 : i32
    %c0_i32_0 = arith.constant 0 : i32
    %c0_i32_1 = arith.constant 0 : i32
    return %c0_i32, %c0_i32_0 : i32, i32
  }
  func.func @transform_2(%arg0: i32) -> (i32, i32) {
    %c0_i32 = arith.constant 0 : i32
    %c0_i32_0 = arith.constant 0 : i32
    %c0_i32_1 = arith.constant 0 : i32
    return %c0_i32, %c0_i32_0 : i32, i32
  }
  func.func @transform_3(%arg0: i32) -> (i32, i32) {
    %c0_i32 = arith.constant 0 : i32
    %c0_i32_0 = arith.constant 0 : i32
    %c0_i32_1 = arith.constant 0 : i32
    return %c0_i32, %c0_i32_0 : i32, i32
  }
  func.func @transform_4(%arg0: i32) -> (i32, i32) {
    %c0_i32 = arith.constant 0 : i32
    %c0_i32_0 = arith.constant 0 : i32
    %c0_i32_1 = arith.constant 0 : i32
    return %c0_i32, %c0_i32_0 : i32, i32
  }
  func.func @transform_5(%arg0: i32) -> (i32, i32) {
    %c0_i32 = arith.constant 0 : i32
    %c0_i32_0 = arith.constant 0 : i32
    %c0_i32_1 = arith.constant 0 : i32
    return %c0_i32, %c0_i32_0 : i32, i32
  }
}

</mosaic_0001>

<bundles_post_ra>
// kernel: forward.8
= control target key start
LH: loop header
LB: loop body
LE: loop exit
PB: predicated region body
PF: predicated region fallthrough
CT: control target
= control target key end

     0   :  { %s107_s0 = inlined_call_operand.vmem [shape: f32[16,128], index: 0, kind: input, shape index: {}]   ;;  %s108_s1 = inlined_call_operand.vmem [shape: f32[1,128], index: 1, kind: input, shape index: {}]   ;;  %s109_s2 = inlined_call_operand.vmem [shape: f32[1,128], index: 2, kind: input, shape index: {}]   ;;  %s110_s3 = inlined_call_operand.vmem [shape: f32[16,128], index: 3, kind: output, shape index: {}]  }
   0x1   :  { %v14_v0 = vld [vmem:[%s107_s0] sm:$0xff]  ;;  %v15_v1 = vld [vmem:[%s107_s0 + $0x8] sm:$0xff] }
   0x2   :  { %16 = vadd.xlane.f32.xlu0 %v14_v0  ;;  %v63_v17 = vld [vmem:[%s108_s1] ss:$0 sm:$0xff] }
   0x3   :  { %v64_v19 = vld [vmem:[%s109_s2] ss:$0 sm:$0xff] }
   0x6   :  { %18 = vadd.xlane.f32.xlu0 %v15_v1 }
  0x8b   :  { %v17_v2 = vpop.xlane.xlu0 %16 }
  0x8c   :  { %v21_v3 = vmul.f32 0.0078125, %v17_v2 }
  0x8e   :  { %v23_v4 = vsub.f32 %v14_v0, %v21_v3 }
  0x8f   :  { %v19_v5 = vpop.xlane.xlu0 %18 }
  0x90   :  { %v22_v6 = vmul.f32 0.0078125, %v19_v5  ;;  %v25_v7 = vmul.f32 %v23_v4, %v23_v4 }
  0x92   :  { %v24_v8 = vsub.f32 %v15_v1, %v22_v6  ;;  %27 = vadd.xlane.f32.xlu1 %v25_v7 }
  0x94   :  { %v26_v9 = vmul.f32 %v24_v8, %v24_v8 }
  0x96   :  { %29 = vadd.xlane.f32.xlu1 %v26_v9 }
 0x11b   :  { %v28_v10 = vpop.xlane.xlu1 %27 }
 0x11c   :  { %v31_v11 = vmul.f32 0.0078125, %v28_v10 }
 0x11e   :  { %v33_v12 = vadd.f32 1e-05, %v31_v11 }
 0x11f   :  { %v30_v13 = vpop.xlane.xlu1 %29 }
 0x120   :  { %65 = vrsqrt.f32 %v33_v12  ;;  %v32_v14 = vmul.f32 0.0078125, %v30_v13 }
 0x122   :  { %v34_v15 = vadd.f32 1e-05, %v32_v14 }
 0x124   :  { %67 = vrsqrt.f32 %v34_v15 }
 0x12d   :  { %v66_v16 = vpop.eup %65 }
 0x12e   :  { %v37_v18 = vmul.f32 %v66_v16, %v23_v4 }
 0x130   :  { %v46_v20 = vmul.f32 %v63_v17, %v37_v18 }
 0x131   :  { %v68_v21 = vpop.eup %67 }
 0x132   :  { %v55_v22 = vadd.f32 %v64_v19, %v46_v20  ;;  %v38_v23 = vmul.f32 %v68_v21, %v24_v8 }
 0x134   :  { %57 = vst [vmem:[%s110_s3] sm:$0xff] %v55_v22  ;;  %v47_v24 = vmul.f32 %v63_v17, %v38_v23 }
 0x136   :  { %v56_v25 = vadd.f32 %v64_v19, %v47_v24 }
 0x138   :  { %58 = vst [vmem:[%s110_s3 + $0x8] sm:$0xff] %v56_v25 }

// kernel: forward.6
= control target key start
LH: loop header
LB: loop body
LE: loop exit
PB: predicated region body
PF: predicated region fallthrough
CT: control target
= control target key end

     0   :  { %s2885_s0 = inlined_call_operand.vmem [shape: f32[2,8,128], index: 0, kind: input, shape index: {}]   ;;  %s2886_s1 = inlined_call_operand.vmem [shape: f32[2,8,8], index: 1, kind: input, shape index: {}]   ;;  %s2887_s2 = inlined_call_operand.vmem [shape: f32[128,128], index: 2, kind: input, shape index: {}]   ;;  %s2888_s3 = inlined_call_operand.vmem [shape: f32[1,128], index: 3, kind: input, shape index: {}]   ;;  %s2889_s4 = inlined_call_operand.vmem [shape: f32[128,256], index: 4, kind: input, shape index: {}]   ;;  %s2890_s5 = inlined_call_operand.vmem [shape: f32[1,256], index: 5, kind: input, shape index: {}]   ;;  %s2891_s6 = inlined_call_operand.hbm [shape: f32[128,128], index: 6, kind: input, shape index: {}]   ;;  %s2892_s7 = inlined_call_operand.vmem [shape: f32[1,128], index: 7, kind: input, shape index: {}]   ;;  %s2893_s8 = inlined_call_operand.vmem [shape: f32[1,128], index: 8, kind: input, shape index: {}]   ;;  %s2894_s9 = inlined_call_operand.vmem [shape: f32[1,128], index: 9, kind: input, shape index: {}]   ;;  %s2895_s10 = inlined_call_operand.hbm [shape: f32[128,128], index: 10, kind: input, shape index: {}]   ;;  %s2896_s11 = inlined_call_operand.vmem [shape: f32[1,128], index: 11, kind: input, shape index: {}]   ;;  %s2897_s12 = inlined_call_operand.hbm [shape: f32[128,128], index: 12, kind: input, shape index: {}]   ;;  %s2898_s13 = inlined_call_operand.vmem [shape: f32[1,128], index: 13, kind: input, shape index: {}]   ;;  %s2899_s14 = inlined_call_operand.vmem [shape: f32[1,128], index: 14, kind: input, shape index: {}]   ;;  %s2900_s15 = inlined_call_operand.vmem [shape: f32[1,128], index: 15, kind: input, shape index: {}]   ;;  %s2901_s16 = inlined_call_operand.vmem [shape: f32[2,8,128], index: 16, kind: output, shape index: {}]  }
   0x1   :  { %2902 = sst [smem:[#allocation9_spill]] %s2885_s0 }
   0x2   :  { %21 = vsyncpa [#allocation3], 0 }
   0x3   :  { %22 = vsyncpa [#allocation5], 0  ;;  %s2460_s21 = smov 0  }
   0x4 LB: > { %s2466_s22 = sadd.s32 4294967295, %s2363_s21   ;;  %p1907_p0 = scmp.ge.s32.totalorder %s2363_s21, 1  ;;  %s2363_s21 = sphi %s2460_s21, %s28_s21  }
   0x5   : > { %p405_p1 = scmp.lt.s32.totalorder %s2363_s21, 3  ;;  %p2227_p2 = scmp.eq.s32.totalorder %s2466_s22, 0 }
   0x6   : > { %s2365_s24 = smov [#allocation4]   ;;  %s2366_s26 = smov [#allocation2]  }
   0x7   : > { %p2471_p3 = pnand %p1907_p0, %p405_p1  ;;  %s451_s25 = sshll.u32 %s2365_s24, 4  ;;  %s452_s25 = int_to_ptr.vmem [resolvable:$true] %s451_s25 }
   0x8   : > { %s429_s27 = sshll.u32 %s2366_s26, 4  ;;  %s2367_s29 = smov [#allocation6]   ;;  %s430_s27 = int_to_ptr.vmem [resolvable:$true] %s429_s27 }
   0x9   : > { %p2217_p4 = pneg %p2471_p3  ;;  %s467_s30 = sshll.u32 %s2367_s29, 4  ;;  %s2483_s30 = int_to_ptr.vmem [resolvable:$true] %s467_s30 }
   0xa   : > { %s2282_s0 = scalar_lea.vmem %s452_s25, 2048  ;;  %p2290_p10 = scmp.lt.s32.totalorder %s452_s25, %s452_s25 }
   0xb   : > { %p2479_p5 = pnand %p2227_p2, %p2217_p4  ;;  %p2283_p7 = scmp.ne.s32.totalorder %s452_s25, %s2282_s0 }
   0xc   : > { %p2291_p11 = scmp.lt.s32.totalorder %s2282_s0, %s2282_s0 }
   0xd   : > { %p2273_p6 = pneg %p2479_p5 }
   0xe   : > { %p2292_p12 = por %p2291_p11, %p2290_p10 }
   0xf   : > { %p2285_p8 = pnand %p2283_p7, %p2273_p6 }
  0x11   : > { %p2286_p9 = pneg %p2285_p8 }
  0x13   : > { %p2293_p13 = pnand %p2292_p12, %p2286_p9 }
  0x15   : > { %2296 = shalt.err (!%p2293_p13)
}
  0x16   : > { %s2368_s17 = smov 128   ;;  %s2369_s18 = smov 8  }
  0x17   : > { %2223 = dma.hbm_to_vmem [thread:$0]  (!%p2479_p5), %s2895_s10, 2048, %s452_s25, [#allocation5], %s2368_s17, %s2368_s17, %s2369_s18  }
  0x18   : > { %s2308_s24 = scalar_lea.vmem %s430_s27, 2048  ;;  %p2316_p7 = scmp.lt.s32.totalorder %s430_s27, %s430_s27 }
  0x19   : > { %p2309_p0 = scmp.ne.s32.totalorder %s430_s27, %s2308_s24  ;;  %p2317_p8 = scmp.lt.s32.totalorder %s2308_s24, %s2308_s24 }
  0x1b   : > { %p2311_p1 = pnand %p2309_p0, %p2273_p6  ;;  %p2318_p10 = por %p2317_p8, %p2316_p7 }
  0x1d   : > { %p2312_p4 = pneg %p2311_p1 }
  0x1f   : > { %p2319_p9 = pnand %p2318_p10, %p2312_p4 }
  0x21   : > { %2322 = shalt.err (!%p2319_p9)
}
  0x22   : > { %2220 = dma.hbm_to_vmem [thread:$0]  (!%p2479_p5), %s2891_s6, 2048, %s430_s27, [#allocation3], %s2368_s17, %s2368_s17, %s2369_s18  }
  0x23   : > { %s2334_s25 = scalar_lea.vmem %s2483_s30, 2048  ;;  %p2342_p0 = scmp.lt.s32.totalorder %s2483_s30, %s2483_s30 }
  0x24   : > { %p2335_p11 = scmp.ne.s32.totalorder %s2483_s30, %s2334_s25  ;;  %p2343_p1 = scmp.lt.s32.totalorder %s2334_s25, %s2334_s25 }
  0x26   : > { %p2337_p12 = pnand %p2335_p11, %p2273_p6  ;;  %p2344_p4 = por %p2343_p1, %p2342_p0 }
  0x28   : > { %p2338_p13 = pneg %p2337_p12 }
  0x2a   : > { %p2345_p7 = pnand %p2344_p4, %p2338_p13 }
  0x2c   : > { %2348 = shalt.err (!%p2345_p7)
}
  0x2d   : > { %2226 = dma.hbm_to_vmem [thread:$0]  (!%p2479_p5), %s2897_s12, 2048, %s2483_s30, [#allocation5], %s2368_s17, %s2368_s17, %s2369_s18  }
  0x2e   : > { %506 = sbr.rel (%p2471_p3) target bundleno = 3847 (0xf07), region = 84 }
  0x33   : > { %2354 = dma.done.wait (%p2227_p2), [#allocation3], 2048  }
  0x34   : > { %2356 = vsyncadd (%p2227_p2), [#allocation3], 4294965248 }
  0x35   : > { %2358 = dma.done.wait (%p2227_p2), [#allocation5], 4096  }
  0x36   : > { %2360 = vsyncadd (%p2227_p2), [#allocation5], 4294963200  ;;  %v2370_v0 = vmov 0.0   ;;  %vm2371_vm0 = vmmov 0   ;;  %v704_v1 = vld [vmem:[%s2889_s4 + $0xf8] sm:$0xff]  ;;  %v703_v2 = vld [vmem:[%s2889_s4 + $0xf0] sm:$0xff]  ;;  %v707_v50 = vlaneseq }
  0x37   : > { %2025 = vmatprep.subr.mxu0 %v2370_v0  ;;  %781 = vmatprep.mubr.f32.mxu1 %v2370_v0  ;;  %v702_v3 = vld [vmem:[%s2889_s4 + $0xe8] sm:$0xff]  ;;  %v595_v4 = vld [vmem:[%s2887_s2 + $0x78] sm:$0xff]  ;;  %v701_v5 = vld [vmem:[%s2889_s4 + $0xe0] sm:$0xff]  ;;  %p566_p2 = scmp.lt.s32.totalorder %s2466_s22, 1  ;;  %s2905_s27 = sld [smem:[#allocation9_spill]]  ;;  %vm788_vm1 = vcmask 261120  }
  0x38   : > { %2057 = vmatprep.mubr.msk.f32.mxu0 %vm2371_vm0, %v2370_v0  ;;  %717 = vmatprep.subr.mxu1 %v704_v1  ;;  %v700_v6 = vld [vmem:[%s2889_s4 + $0xd8] sm:$0xff]  ;;  %v594_v7 = vld [vmem:[%s2887_s2 + $0x70] sm:$0xff]  ;;  %v593_v9 = vld [vmem:[%s2887_s2 + $0x68] sm:$0xff]  ;;  %v708_v51 = vshrl.u32 %v707_v50, 7  ;;  %s2372_s23 = smov 96   ;;  %vm867_vm2 = vcmask 64512  }
  0x39   : > { %718 = vmatpush1.msra.mxu1 %v703_v2  ;;  %2026 = vmatpush3.msra.mxu0 %v595_v4  ;;  %v699_v8 = vld [vmem:[%s2889_s4 + $0xd0] sm:$0xff]  ;;  %v698_v10 = vld [vmem:[%s2889_s4 + $0xc8] sm:$0xff]  ;;  %v697_v11 = vld [vmem:[%s2889_s4 + $0xc0] sm:$0xff]  ;;  %s2907_s22 = smov (!%p566_p2, %s2466_s22), 1  ;;  %s2373_s18 = smov 64   ;;  %vm1467_vm3 = vcmask 523264  }
  0x3a   : > { %719 = vmatprep.subr.mxu1 %v702_v3  ;;  %2027 = vmatprep.subr.mxu0 %v2370_v0  ;;  %v592_v12 = vld [vmem:[%s2887_s2 + $0x60] sm:$0xff]  ;;  %v696_v13 = vld [vmem:[%s2889_s4 + $0xb8] sm:$0xff]  ;;  %v695_v14 = vld [vmem:[%s2889_s4 + $0xb0] sm:$0xff]  ;;  %s2665_s28 = sshll.u32 %s2907_s22, 3  ;;  %v709_v52 = vsub.s32 0, %v708_v51  ;;  %v713_v55 = vsub.s32 1, %v708_v51 }
  0x3b   : > { %720 = vmatpush1.msra.mxu1 %v701_v5  ;;  %2028 = vmatpush3.msra.mxu0 %v594_v7  ;;  %v591_v15 = vld [vmem:[%s2887_s2 + $0x58] sm:$0xff]  ;;  %v694_v16 = vld [vmem:[%s2889_s4 + $0xa8] sm:$0xff]  ;;  %v693_v17 = vld [vmem:[%s2889_s4 + $0xa0] sm:$0xff]  ;;  %s573_s17 = scalar_lea.vmem %s2886_s1, %s2665_s28  ;;  %s2374_s20 = smov 32   ;;  %vm1469_vm4 = vcmask 785408  }
  0x3c   : > { %721 = vmatprep.subr.mxu1 %v700_v6  ;;  %2029 = vmatprep.subr.mxu0 %v2370_v0  ;;  %v590_v18 = vld [vmem:[%s2887_s2 + $0x50] sm:$0xff]  ;;  %v692_v19 = vld [vmem:[%s2889_s4 + $0x98] sm:$0xff]  ;;  %v589_v21 = vld [vmem:[%s2887_s2 + $0x48] sm:$0xff]  ;;  %s577_s29 = scalar_lea.vmem %s2901_s16, %s2665_s28 }
  0x3d   : > { %722 = vmatpush1.msra.mxu1 %v699_v8  ;;  %2030 = vmatpush3.msra.mxu0 %v593_v9  ;;  %v691_v20 = vld [vmem:[%s2889_s4 + $0x90] sm:$0xff]  ;;  %v690_v22 = vld [vmem:[%s2889_s4 + $0x88] sm:$0xff]  ;;  %v689_v23 = vld [vmem:[%s2889_s4 + $0x80] sm:$0xff]  ;;  %s569_s30 = scalar_lea.vmem %s2905_s27, %s2665_s28 }
  0x3e   : > { %723 = vmatprep.subr.mxu1 %v698_v10  ;;  %2031 = vmatprep.subr.mxu0 %v2370_v0  ;;  %v588_v24 = vld [vmem:[%s2887_s2 + $0x40] sm:$0xff]  ;;  %v688_v25 = vld [vmem:[%s2889_s4 + $0x78] sm:$0xff]  ;;  %v687_v26 = vld [vmem:[%s2889_s4 + $0x70] sm:$0xff] }
  0x3f   : > { %724 = vmatpush1.msra.mxu1 %v697_v11  ;;  %2032 = vmatpush3.msra.mxu0 %v592_v12  ;;  %v587_v27 = vld [vmem:[%s2887_s2 + $0x38] sm:$0xff]  ;;  %v686_v28 = vld [vmem:[%s2889_s4 + $0x68] sm:$0xff]  ;;  %v685_v29 = vld [vmem:[%s2889_s4 + $0x60] sm:$0xff] }
  0x40   : > { %725 = vmatprep.subr.mxu1 %v696_v13  ;;  %2033 = vmatprep.subr.mxu0 %v2370_v0  ;;  %v586_v30 = vld [vmem:[%s2887_s2 + $0x30] sm:$0xff]  ;;  %v684_v31 = vld [vmem:[%s2889_s4 + $0x58] sm:$0xff]  ;;  %v585_v33 = vld [vmem:[%s2887_s2 + $0x28] sm:$0xff] }
  0x41   : > { %726 = vmatpush1.msra.mxu1 %v695_v14  ;;  %2034 = vmatpush3.msra.mxu0 %v591_v15  ;;  %v683_v32 = vld [vmem:[%s2889_s4 + $0x50] sm:$0xff]  ;;  %v682_v34 = vld [vmem:[%s2889_s4 + $0x48] sm:$0xff]  ;;  %v681_v35 = vld [vmem:[%s2889_s4 + $0x40] sm:$0xff] }
  0x42   : > { %727 = vmatprep.subr.mxu1 %v694_v16  ;;  %2035 = vmatprep.subr.mxu0 %v2370_v0  ;;  %v584_v36 = vld [vmem:[%s2887_s2 + $0x20] sm:$0xff]  ;;  %v680_v37 = vld [vmem:[%s2889_s4 + $0x38] sm:$0xff]  ;;  %v679_v38 = vld [vmem:[%s2889_s4 + $0x30] sm:$0xff] }
  0x43   : > { %728 = vmatpush1.msra.mxu1 %v693_v17  ;;  %2036 = vmatpush3.msra.mxu0 %v590_v18  ;;  %v583_v39 = vld [vmem:[%s2887_s2 + $0x18] sm:$0xff]  ;;  %v678_v40 = vld [vmem:[%s2889_s4 + $0x28] sm:$0xff]  ;;  %v677_v41 = vld [vmem:[%s2889_s4 + $0x20] sm:$0xff] }
  0x44   : > { %729 = vmatprep.subr.mxu1 %v692_v19  ;;  %2037 = vmatprep.subr.mxu0 %v2370_v0  ;;  %v582_v42 = vld [vmem:[%s2887_s2 + $0x10] sm:$0xff]  ;;  %v676_v43 = vld [vmem:[%s2889_s4 + $0x18] sm:$0xff]  ;;  %v581_v45 = vld [vmem:[%s2887_s2 + $0x8] sm:$0xff] }
  0x45   : > { %730 = vmatpush1.msra.mxu1 %v691_v20  ;;  %2038 = vmatpush3.msra.mxu0 %v589_v21  ;;  %v675_v44 = vld [vmem:[%s2889_s4 + $0x10] sm:$0xff]  ;;  %v674_v46 = vld [vmem:[%s2889_s4 + $0x8] sm:$0xff]  ;;  %v673_v47 = vld [vmem:[%s2889_s4] sm:$0xff] }
  0x46   : > { %731 = vmatprep.subr.mxu1 %v690_v22  ;;  %2039 = vmatprep.subr.mxu0 %v2370_v0  ;;  %v580_v48 = vld [vmem:[%s2887_s2] sm:$0xff] }
  0x47   : > { %732 = vmatpush1.msra.mxu1 %v689_v23  ;;  %2040 = vmatpush3.msra.mxu0 %v588_v24  ;;  %v2698_v49 = vld [vmem:[%s569_s30] sm:$0xff] }
  0x48   : > { %733 = vmatprep.subr.mxu1 %v688_v25  ;;  %2041 = vmatprep.subr.mxu0 %v2370_v0  ;;  %v705_v53 = vld [vmem:[%s2890_s5] sm:$0x3] }
  0x49   : > { %734 = vmatpush1.msra.mxu1 %v687_v26  ;;  %2042 = vmatpush3.msra.mxu0 %v587_v27  ;;  %v710_v54 = vrot.slane %v705_v53, %v709_v52  ;;  %v1919_v56 = vld [vmem:[%s2888_s3] ss:$0 sm:$0xff]  ;;  %v714_v60 = vrot.slane %v705_v53, %v713_v55 }
  0x4a   : > { %735 = vmatprep.subr.mxu1 %v686_v28  ;;  %2043 = vmatprep.subr.mxu0 %v2370_v0  ;;  %v2738_v3 = vld [vmem:[%s573_s17] sm:$0xff] }
  0x4b   : > { %736 = vmatpush1.msra.mxu1 %v685_v29  ;;  %2044 = vmatpush3.msra.mxu0 %v586_v30 }
  0x4c   : > { %737 = vmatprep.subr.mxu1 %v684_v31  ;;  %2045 = vmatprep.subr.mxu0 %v2370_v0 }
  0x4d   : > { %738 = vmatpush1.msra.mxu1 %v683_v32  ;;  %2046 = vmatpush3.msra.mxu0 %v585_v33 }
  0x4e   : > { %739 = vmatprep.subr.mxu1 %v682_v34  ;;  %2047 = vmatprep.subr.mxu0 %v2370_v0 }
  0x4f   : > { %740 = vmatpush1.msra.mxu1 %v681_v35  ;;  %2048 = vmatpush3.msra.mxu0 %v584_v36 }
  0x50   : > { %741 = vmatprep.subr.mxu1 %v680_v37  ;;  %2049 = vmatprep.subr.mxu0 %v2370_v0 }
  0x51   : > { %742 = vmatpush1.msra.mxu1 %v679_v38  ;;  %2050 = vmatpush3.msra.mxu0 %v583_v39 }
  0x52   : > { %743 = vmatprep.subr.mxu1 %v678_v40  ;;  %2051 = vmatprep.subr.mxu0 %v2370_v0 }
  0x53   : > { %744 = vmatpush1.msra.mxu1 %v677_v41  ;;  %2052 = vmatpush3.msra.mxu0 %v582_v42 }
  0x54   : > { %745 = vmatprep.subr.mxu1 %v676_v43  ;;  %2053 = vmatprep.subr.mxu0 %v2370_v0 }
  0x55   : > { %746 = vmatpush1.msra.mxu1 %v675_v44  ;;  %2054 = vmatpush3.msra.mxu0 %v581_v45 }
  0x56   : > { %747 = vmatprep.subr.mxu1 %v674_v46  ;;  %2055 = vmatprep.subr.mxu0 %v2370_v0 }
  0x57   : > { %748 = vmatpush1.msra.mxu1 %v673_v47  ;;  %2056 = vmatpush3.msra.mxu0 %v580_v48 }
  0x58   : > { %782 = vmatmul.mubr.f32.vlgmr.msra.gmra.mxu1 %v2698_v49  ;;  %2058 = vmatmul.mubr.f32.vlgmr.msra.gmra.mxu0 %v2698_v49 }
  0x59   : > { %2060 = vmatprep.subr.mxu1 %v2370_v0  ;;  %2062 = vmatprep.mubr.msk.f32.mxu1 %vm2371_vm0, %v2370_v0 }
  0x5a   : > { %2100 = vmatprep.subr.mxu0 %v2370_v0  ;;  %2132 = vmatprep.mubr.msk.f32.mxu0 %vm2371_vm0, %v2370_v0 }
 0x118   : > { %v783_v57 = vpop.f32.mrf.mxu1  ;;  %v669_v58 = vpop.f32.mrf.mxu0 }
 0x119   : > { %v2715_v59 = vadd.f32 %v783_v57, %v710_v54  ;;  %v2717_v61 = vadd.f32 %v1919_v56, %v669_v58 }
 0x11a   : > { %v785_v62 = vpop.f32.mrf.mxu1  ;;  %v2059_v63 = vpop.f32.mrf.mxu0 }
 0x11b   : > { %954 = vrot.lane.b32.xlu1 %v2715_v59, %s2372_s23  ;;  %2061 = vmatpush3.xpose.msk.msra.mxu1 %vm788_vm1, %v2715_v59  ;;  %v2724_v1 = vadd.f32 %v785_v62, %v714_v60 }
 0x11c   : > { %2065 = vmatprep.subr.mxu1 %v2370_v0 }
 0x11e   : > { %2063 = vmatmul.mubr.msk.f32.vlgmr.msra.gmra.mxu1 %vm788_vm1, %v2717_v61 }
 0x11f   : > { %952 = vrot.lane.b32.xlu1 %v2717_v61, %s2372_s23  ;;  %2066 = vmatpush3.msra.mxu1 %v2724_v1 }
 0x120   : > { %2067 = vmatprep.mubr.msk.f32.mxu1 %vm2371_vm0, %v2370_v0  ;;  %2070 = vmatprep.subr.mxu1 %v2370_v0 }
 0x18d   : > { %v955_v15 = vpop.permute.xlu1 %954 }
 0x191   : > { %v953_v17 = vpop.permute.xlu1 %952 }
 0x1de   : > { %v861_v2 = vpop.f32.mrf.mxu1 }
 0x1df   : > { %v865_v4 = vmul.f32 0.17677669, %v861_v2 }
 0x1e0   : > { %v2064_v5 = vpop.f32.mrf.mxu1 }
 0x1e1   : > { %v866_v6 = vadd.f32 %v865_v4, %v2738_v3 }
 0x1e3   : > { %v868_v7 = vsel %vm867_vm2, %v866_v6, -inf }
 0x1e4   : > { %869 = vmax.xlane.f32.xlu0 %v868_v7 }
 0x26d   : > { %v870_v8 = vpop.xlane.xlu0 %869 }
 0x26e   : > { %v871_v9 = vsub.f32 %v866_v6, %v870_v8  ;;  %v1486_v8 = vld [vmem:[#allocation2 + $0x78] sm:$0xff] }
 0x26f   : > { %2101 = vmatpush3.msra.mxu0 %v1486_v8 }
 0x270   : > { %v872_v10 = vmul.f32 1.442695, %v871_v9  ;;  %v1485_v9 = vld [vmem:[#allocation2 + $0x70] sm:$0xff]  ;;  %2102 = vmatprep.subr.mxu0 %v2370_v0 }
 0x271   : > { %2103 = vmatpush3.msra.mxu0 %v1485_v9 }
 0x272   : > { %2251 = vpow2.f32 %v872_v10  ;;  %v1484_v10 = vld [vmem:[#allocation2 + $0x68] sm:$0xff]  ;;  %2104 = vmatprep.subr.mxu0 %v2370_v0 }
 0x273   : > { %2105 = vmatpush3.msra.mxu0 %v1484_v10 }
 0x274   : > { %2106 = vmatprep.subr.mxu0 %v2370_v0 }
 0x27f   : > { %v2252_v11 = vpop.eup %2251 }
 0x280   : > { %v874_v12 = vsel %vm867_vm2, %v2252_v11, 0.0 }
 0x281   : > { %875 = vadd.xlane.f32.xlu0 %v874_v12  ;;  %v1482_v12 = vld [vmem:[#allocation2 + $0x58] sm:$0xff] }
 0x30a   : > { %v876_v13 = vpop.xlane.xlu0 %875 }
 0x30b   : > { %2253 = vrcp.f32 %v876_v13  ;;  %v1481_v13 = vld [vmem:[#allocation2 + $0x50] sm:$0xff] }
 0x318   : > { %v2254_v14 = vpop.eup %2253 }
 0x319   : > { %v878_v16 = vmul.f32 %v2254_v14, %v2252_v11  ;;  %v1483_v11 = vld [vmem:[#allocation2 + $0x60] sm:$0xff]  ;;  %v1480_v14 = vld [vmem:[#allocation2 + $0x48] sm:$0xff] }
 0x31a   : > { %2107 = vmatpush3.msra.mxu0 %v1483_v11  ;;  %v1933_v11 = vld [vmem:[%s2893_s8] ss:$0 sm:$0xff] }
 0x31b   : > { %2068 = vmatmul.mubr.msk.f32.vlgmr.msra.gmra.mxu1 %vm867_vm2, %v878_v16  ;;  %2108 = vmatprep.subr.mxu0 %v2370_v0  ;;  %v1478_v16 = vld [vmem:[#allocation2 + $0x38] sm:$0xff] }
 0x31c   : > { %2071 = vmatpush3.xpose.msk.msra.mxu1 %vm788_vm1, %v955_v15  ;;  %2072 = vmatprep.mubr.msk.f32.mxu1 %vm2371_vm0, %v2370_v0  ;;  %v1479_v15 = vld [vmem:[#allocation2 + $0x40] sm:$0xff] }
 0x31d   : > { %2075 = vmatprep.subr.mxu1 %v2370_v0  ;;  %2109 = vmatpush3.msra.mxu0 %v1482_v12 }
 0x31e   : > { %2110 = vmatprep.subr.mxu0 %v2370_v0 }
 0x31f   : > { %2073 = vmatmul.mubr.msk.f32.vlgmr.msra.gmra.mxu1 %vm788_vm1, %v953_v17  ;;  %2111 = vmatpush3.msra.mxu0 %v1481_v13  ;;  %v1477_v17 = vld [vmem:[#allocation2 + $0x30] sm:$0xff]  ;;  %v1934_v13 = vld [vmem:[%s2894_s9] ss:$0 sm:$0xff] }
 0x320   : > { %2077 = vmatprep.mubr.msk.f32.mxu1 %vm2371_vm0, %v2370_v0  ;;  %2112 = vmatprep.subr.mxu0 %v2370_v0 }
 0x321   : > { %2113 = vmatpush3.msra.mxu0 %v1480_v14 }
 0x322   : > { %2114 = vmatprep.subr.mxu0 %v2370_v0 }
 0x323   : > { %2115 = vmatpush3.msra.mxu0 %v1479_v15 }
 0x324   : > { %2116 = vmatprep.subr.mxu0 %v2370_v0 }
 0x325   : > { %2117 = vmatpush3.msra.mxu0 %v1478_v16  ;;  %v1689_v16 = vld [vmem:[#allocation6 + $0x10] sm:$0xff] }
 0x326   : > { %2118 = vmatprep.subr.mxu0 %v2370_v0 }
 0x327   : > { %2119 = vmatpush3.msra.mxu0 %v1477_v17  ;;  %v1688_v17 = vld [vmem:[#allocation6 + $0x8] sm:$0xff] }
 0x328   : > { %2120 = vmatprep.subr.mxu0 %v2370_v0 }
 0x3db   : > { %v2751_v18 = vpop.f32.mrf.mxu1 }
 0x3dd   : > { %v2069_v19 = vpop.f32.mrf.mxu1 }
 0x3de   : > { %v1476_v19 = vld [vmem:[#allocation2 + $0x28] sm:$0xff] }
 0x3df   : > { %v1026_v20 = vpop.f32.mrf.mxu1  ;;  %2121 = vmatpush3.msra.mxu0 %v1476_v19  ;;  %v1687_v19 = vld [vmem:[#allocation6] sm:$0xff] }
 0x3e0   : > { %v1030_v21 = vmul.f32 0.17677669, %v1026_v20  ;;  %v1475_v20 = vld [vmem:[#allocation2 + $0x20] sm:$0xff]  ;;  %2122 = vmatprep.subr.mxu0 %v2370_v0 }
 0x3e1   : > { %v2074_v22 = vpop.f32.mrf.mxu1  ;;  %2123 = vmatpush3.msra.mxu0 %v1475_v20  ;;  %v1935_v20 = vld [vmem:[%s2896_s11] ss:$0 sm:$0xff] }
 0x3e2   : > { %v1031_v23 = vadd.f32 %v1030_v21, %v2738_v3  ;;  %v1474_v21 = vld [vmem:[#allocation2 + $0x18] sm:$0xff]  ;;  %2124 = vmatprep.subr.mxu0 %v2370_v0  ;;  %v1473_v22 = vld [vmem:[#allocation2 + $0x10] sm:$0xff] }
 0x3e3   : > { %2125 = vmatpush3.msra.mxu0 %v1474_v21 }
 0x3e4   : > { %v1032_v24 = vsel %vm867_vm2, %v1031_v23, -inf  ;;  %2126 = vmatprep.subr.mxu0 %v2370_v0 }
 0x3e5   : > { %1033 = vmax.xlane.f32.xlu0 %v1032_v24  ;;  %2127 = vmatpush3.msra.mxu0 %v1473_v22  ;;  %v1471_v24 = vld [vmem:[#allocation2] sm:$0xff] }
 0x3e6   : > { %2128 = vmatprep.subr.mxu0 %v2370_v0 }
 0x3fb   : > { %1044 = vrot.lane.b32.xlu0 %v2724_v1, %s2372_s23 }
 0x3ff   : > { %1122 = vrot.lane.b32.xlu0 %v2715_v59, %s2373_s18 }
 0x403   : > { %1120 = vrot.lane.b32.xlu0 %v2717_v61, %s2373_s18 }
 0x46e   : > { %v1034_v25 = vpop.xlane.xlu0 %1033 }
 0x46f   : > { %v1035_v26 = vsub.f32 %v1031_v23, %v1034_v25  ;;  %v1472_v23 = vld [vmem:[#allocation2 + $0x8] sm:$0xff] }
 0x470   : > { %2129 = vmatpush3.msra.mxu0 %v1472_v23 }
 0x471   : > { %v1036_v27 = vmul.f32 1.442695, %v1035_v26  ;;  %2130 = vmatprep.subr.mxu0 %v2370_v0 }
 0x472   : > { %v1045_v28 = vpop.permute.xlu0 %1044  ;;  %2131 = vmatpush3.msra.mxu0 %v1471_v24 }
 0x473   : > { %2255 = vpow2.f32 %v1036_v27  ;;  %2076 = vmatpush3.msra.mxu1 %v1045_v28  ;;  %2170 = vmatprep.subr.mxu0 %v2370_v0 }
 0x474   : > { %2080 = vmatprep.subr.mxu1 %v2370_v0 }
 0x476   : > { %v1123_v33 = vpop.permute.xlu0 %1122 }
 0x47a   : > { %v1121_v35 = vpop.permute.xlu0 %1120 }
 0x480   : > { %v2256_v29 = vpop.eup %2255 }
 0x481   : > { %v1038_v30 = vsel %vm867_vm2, %v2256_v29, 0.0 }
 0x482   : > { %1039 = vadd.xlane.f32.xlu1 %v1038_v30 }
 0x493   : > { %1211 = vrot.lane.b32.xlu1 %v2724_v1, %s2373_s18 }
 0x497   : > { %1289 = vrot.lane.b32.xlu1 %v2715_v59, %s2374_s20 }
 0x50b   : > { %v1040_v31 = vpop.xlane.xlu1 %1039 }
 0x50c   : > { %2257 = vrcp.f32 %v1040_v31 }
 0x50f   : > { %v1212_v36 = vpop.permute.xlu1 %1211 }
 0x513   : > { %v1290_v50 = vpop.permute.xlu1 %1289 }
 0x519   : > { %v2258_v32 = vpop.eup %2257 }
 0x51a   : > { %v1042_v34 = vmul.f32 %v2258_v32, %v2256_v29 }
 0x51c   : > { %2078 = vmatmul.mubr.msk.f32.vlgmr.msra.gmra.mxu1 %vm867_vm2, %v1042_v34 }
 0x51d   : > { %2081 = vmatpush3.xpose.msk.msra.mxu1 %vm788_vm1, %v1123_v33  ;;  %2082 = vmatprep.mubr.msk.f32.mxu1 %vm2371_vm0, %v2370_v0  ;;  %v1932_v33 = vld [vmem:[%s2892_s7] ss:$0 sm:$0xff] }
 0x51e   : > { %2085 = vmatprep.subr.mxu1 %v2370_v0 }
 0x520   : > { %2083 = vmatmul.mubr.msk.f32.vlgmr.msra.gmra.mxu1 %vm788_vm1, %v1121_v35 }
 0x521   : > { %2086 = vmatpush3.msra.mxu1 %v1212_v36  ;;  %2087 = vmatprep.mubr.msk.f32.mxu1 %vm2371_vm0, %v2370_v0 }
 0x522   : > { %2090 = vmatprep.subr.mxu1 %v2370_v0 }
 0x5dc   : > { %v1116_v37 = vpop.f32.mrf.mxu1 }
 0x5de   : > { %v2079_v38 = vpop.f32.mrf.mxu1 }
 0x5df   : > { %v1608_v38 = vld [vmem:[#allocation4 + $0x78] sm:$0xff] }
 0x5e0   : > { %v1194_v39 = vpop.f32.mrf.mxu1 }
 0x5e1   : > { %v1198_v40 = vmul.f32 0.17677669, %v1194_v39  ;;  %v1607_v39 = vld [vmem:[#allocation4 + $0x70] sm:$0xff] }
 0x5e2   : > { %v2084_v41 = vpop.f32.mrf.mxu1 }
 0x5e3   : > { %v1199_v42 = vadd.f32 %v1198_v40, %v2738_v3  ;;  %v1605_v40 = vld [vmem:[#allocation4 + $0x60] sm:$0xff] }
 0x5e5   : > { %v1200_v43 = vsel %vm867_vm2, %v1199_v42, -inf }
 0x5e6   : > { %1201 = vmax.xlane.f32.xlu0 %v1200_v43 }
 0x66f   : > { %v1202_v44 = vpop.xlane.xlu0 %1201 }
 0x670   : > { %v1203_v45 = vsub.f32 %v1199_v42, %v1202_v44  ;;  %v1604_v44 = vld [vmem:[#allocation4 + $0x58] sm:$0xff] }
 0x672   : > { %v1204_v46 = vmul.f32 1.442695, %v1203_v45  ;;  %v1603_v45 = vld [vmem:[#allocation4 + $0x50] sm:$0xff] }
 0x674   : > { %2259 = vpow2.f32 %v1204_v46  ;;  %v1602_v46 = vld [vmem:[#allocation4 + $0x48] sm:$0xff] }
 0x681   : > { %v2260_v47 = vpop.eup %2259 }
 0x682   : > { %v1206_v48 = vsel %vm867_vm2, %v2260_v47, 0.0 }
 0x683   : > { %1207 = vadd.xlane.f32.xlu1 %v1206_v48  ;;  %v1600_v48 = vld [vmem:[#allocation4 + $0x38] sm:$0xff] }
 0x694   : > { %1287 = vrot.lane.b32.xlu1 %v2717_v61, %s2374_s20 }
 0x70c   : > { %v1208_v51 = vpop.xlane.xlu1 %1207 }
 0x70d   : > { %2261 = vrcp.f32 %v1208_v51  ;;  %v1598_v51 = vld [vmem:[#allocation4 + $0x28] sm:$0xff] }
 0x710   : > { %v1288_v54 = vpop.permute.xlu1 %1287 }
 0x71a   : > { %v2262_v52 = vpop.eup %2261 }
 0x71b   : > { %v1210_v53 = vmul.f32 %v2262_v52, %v2260_v47  ;;  %v1601_v47 = vld [vmem:[#allocation4 + $0x40] sm:$0xff] }
 0x71c   : > { %v1597_v52 = vld [vmem:[#allocation4 + $0x20] sm:$0xff] }
 0x71d   : > { %2088 = vmatmul.mubr.msk.f32.vlgmr.msra.gmra.mxu1 %vm867_vm2, %v1210_v53  ;;  %v1596_v53 = vld [vmem:[#allocation4 + $0x18] sm:$0xff] }
 0x71e   : > { %2091 = vmatpush3.xpose.msk.msra.mxu1 %vm788_vm1, %v1290_v50  ;;  %2092 = vmatprep.mubr.msk.f32.mxu1 %vm2371_vm0, %v2370_v0  ;;  %v1599_v50 = vld [vmem:[#allocation4 + $0x30] sm:$0xff] }
 0x71f   : > { %2095 = vmatprep.subr.mxu1 %v2370_v0 }
 0x721   : > { %2093 = vmatmul.mubr.msk.f32.vlgmr.msra.gmra.mxu1 %vm788_vm1, %v1288_v54  ;;  %v1595_v54 = vld [vmem:[#allocation4 + $0x10] sm:$0xff] }
 0x722   : > { %2097 = vmatprep.mubr.msk.f32.mxu1 %vm2371_vm0, %v2370_v0 }
 0x7dd   : > { %v1283_v55 = vpop.f32.mrf.mxu1 }
 0x7df   : > { %v2089_v56 = vpop.f32.mrf.mxu1 }
 0x7e0   : > { %v1593_v56 = vld [vmem:[#allocation4] sm:$0xff] }
 0x7e1   : > { %v1361_v57 = vpop.f32.mrf.mxu1 }
 0x7e2   : > { %v1365_v58 = vmul.f32 0.17677669, %v1361_v57  ;;  %v1702_v57 = vld [vmem:[#allocation6 + $0x78] sm:$0xff] }
 0x7e3   : > { %v2094_v59 = vpop.f32.mrf.mxu1 }
 0x7e4   : > { %v1366_v60 = vadd.f32 %v1365_v58, %v2738_v3  ;;  %v1701_v58 = vld [vmem:[#allocation6 + $0x70] sm:$0xff]  ;;  %v1700_v59 = vld [vmem:[#allocation6 + $0x68] sm:$0xff] }
 0x7e6   : > { %v1367_v61 = vsel %vm867_vm2, %v1366_v60, -inf }
 0x7e7   : > { %1368 = vmax.xlane.f32.xlu0 %v1367_v61  ;;  %v1698_v61 = vld [vmem:[#allocation6 + $0x58] sm:$0xff] }
 0x7fd   : > { %1378 = vrot.lane.b32.xlu0 %v2724_v1, %s2374_s20 }
 0x801   : > { %1455 = vrot.lane.b32.xlu0 %v1116_v37, %s2374_s20 }
 0x805   : > { %1459 = vrot.lane.b32.xlu0 %v1283_v55, %s2373_s18  ;;  %v1594_v55 = vld [vmem:[#allocation4 + $0x8] sm:$0xff] }
 0x870   : > { %v1369_v62 = vpop.xlane.xlu0 %1368 }
 0x871   : > { %v1370_v63 = vsub.f32 %v1366_v60, %v1369_v62  ;;  %v1699_v60 = vld [vmem:[#allocation6 + $0x60] sm:$0xff]  ;;  %v1697_v62 = vld [vmem:[#allocation6 + $0x50] sm:$0xff] }
 0x873   : > { %v1371_v2 = vmul.f32 1.442695, %v1370_v63  ;;  %v1696_v63 = vld [vmem:[#allocation6 + $0x48] sm:$0xff] }
 0x874   : > { %v1379_v4 = vpop.permute.xlu0 %1378 }
 0x875   : > { %2263 = vpow2.f32 %v1371_v2  ;;  %2096 = vmatpush3.msra.mxu1 %v1379_v4  ;;  %v1695_v2 = vld [vmem:[#allocation6 + $0x40] sm:$0xff]  ;;  %v1694_v4 = vld [vmem:[#allocation6 + $0x38] sm:$0xff] }
 0x876   : > { %2135 = vmatprep.subr.mxu1 %v2370_v0 }
 0x878   : > { %v1456_v27 = vpop.permute.xlu0 %1455 }
 0x879   : > { %v1466_v29 = vsel %vm788_vm1, %v2751_v18, %v1456_v27  ;;  %v1606_v18 = vld [vmem:[#allocation4 + $0x68] sm:$0xff] }
 0x87c   : > { %v1460_v28 = vpop.permute.xlu0 %1459 }
 0x87d   : > { %v1468_v30 = vsel %vm1467_vm3, %v1466_v29, %v1460_v28 }
 0x882   : > { %v2264_v5 = vpop.eup %2263 }
 0x883   : > { %v1373_v3 = vsel %vm867_vm2, %v2264_v5, 0.0 }
 0x884   : > { %1374 = vadd.xlane.f32.xlu1 %v1373_v3  ;;  %v1692_v3 = vld [vmem:[#allocation6 + $0x28] sm:$0xff] }
 0x90d   : > { %v1375_v6 = vpop.xlane.xlu1 %1374 }
 0x90e   : > { %2265 = vrcp.f32 %v1375_v6  ;;  %v1691_v6 = vld [vmem:[#allocation6 + $0x20] sm:$0xff] }
 0x91b   : > { %v2266_v7 = vpop.eup %2265 }
 0x91c   : > { %v1377_v1 = vmul.f32 %v2266_v7, %v2264_v5  ;;  %v1693_v5 = vld [vmem:[#allocation6 + $0x30] sm:$0xff]  ;;  %v1690_v7 = vld [vmem:[#allocation6 + $0x18] sm:$0xff] }
 0x91e   : > { %2098 = vmatmul.mubr.msk.f32.vlgmr.msra.gmra.mxu1 %vm867_vm2, %v1377_v1 }
 0x91f   : > { %2167 = vmatprep.mubr.msk.f32.mxu1 %vm2371_vm0, %v2370_v0  ;;  %2136 = vmatpush3.msra.mxu1 %v1608_v38 }
 0x920   : > { %2137 = vmatprep.subr.mxu1 %v2370_v0 }
 0x921   : > { %2138 = vmatpush3.msra.mxu1 %v1607_v39  ;;  %v1938_v39 = vld [vmem:[%s2900_s15] ss:$0 sm:$0xff] }
 0x922   : > { %2139 = vmatprep.subr.mxu1 %v2370_v0 }
 0x923   : > { %2140 = vmatpush3.msra.mxu1 %v1606_v18 }
 0x924   : > { %2141 = vmatprep.subr.mxu1 %v2370_v0 }
 0x925   : > { %2142 = vmatpush3.msra.mxu1 %v1605_v40 }
 0x926   : > { %2143 = vmatprep.subr.mxu1 %v2370_v0 }
 0x927   : > { %2144 = vmatpush3.msra.mxu1 %v1604_v44 }
 0x928   : > { %2145 = vmatprep.subr.mxu1 %v2370_v0 }
 0x929   : > { %2146 = vmatpush3.msra.mxu1 %v1603_v45 }
 0x92a   : > { %2147 = vmatprep.subr.mxu1 %v2370_v0 }
 0x92b   : > { %2148 = vmatpush3.msra.mxu1 %v1602_v46 }
 0x92c   : > { %2149 = vmatprep.subr.mxu1 %v2370_v0 }
 0x92d   : > { %2150 = vmatpush3.msra.mxu1 %v1601_v47 }
 0x92e   : > { %2151 = vmatprep.subr.mxu1 %v2370_v0 }
 0x92f   : > { %2152 = vmatpush3.msra.mxu1 %v1600_v48 }
 0x930   : > { %2153 = vmatprep.subr.mxu1 %v2370_v0 }
 0x931   : > { %2154 = vmatpush3.msra.mxu1 %v1599_v50 }
 0x932   : > { %2155 = vmatprep.subr.mxu1 %v2370_v0 }
 0x933   : > { %2156 = vmatpush3.msra.mxu1 %v1598_v51 }
 0x934   : > { %2157 = vmatprep.subr.mxu1 %v2370_v0 }
 0x935   : > { %2158 = vmatpush3.msra.mxu1 %v1597_v52 }
 0x936   : > { %2159 = vmatprep.subr.mxu1 %v2370_v0 }
 0x937   : > { %2160 = vmatpush3.msra.mxu1 %v1596_v53 }
 0x938   : > { %2161 = vmatprep.subr.mxu1 %v2370_v0 }
 0x939   : > { %2162 = vmatpush3.msra.mxu1 %v1595_v54 }
 0x93a   : > { %2163 = vmatprep.subr.mxu1 %v2370_v0 }
 0x93b   : > { %2164 = vmatpush3.msra.mxu1 %v1594_v55 }
 0x93c   : > { %2165 = vmatprep.subr.mxu1 %v2370_v0 }
 0x93d   : > { %2166 = vmatpush3.msra.mxu1 %v1593_v56 }
 0x9de   : > { %v1450_v25 = vpop.f32.mrf.mxu1 }
 0x9df   : > { %1463 = vrot.lane.b32.xlu0 %v1450_v25, %s2372_s23  ;;  %v1936_v25 = vld [vmem:[%s2898_s13] ss:$0 sm:$0xff] }
 0x9e0   : > { %v2099_v26 = vpop.f32.mrf.mxu1 }
 0xa51   : > { %v1464_v31 = vpop.permute.xlu0 %1463 }
 0xa52   : > { %v1470_v32 = vsel %vm1469_vm4, %v1468_v30, %v1464_v31 }
 0xa53   : > { %2133 = vmatmul.mubr.f32.vlgmr.msra.gmra.mxu0 %v1470_v32 }
 0xa54   : > { %2202 = vmatprep.mubr.msk.f32.mxu0 %vm2371_vm0, %v2370_v0  ;;  %2171 = vmatpush3.msra.mxu0 %v1702_v57 }
 0xa55   : > { %2172 = vmatprep.subr.mxu0 %v2370_v0 }
 0xa56   : > { %2173 = vmatpush3.msra.mxu0 %v1701_v58 }
 0xa57   : > { %2174 = vmatprep.subr.mxu0 %v2370_v0 }
 0xa58   : > { %2175 = vmatpush3.msra.mxu0 %v1700_v59 }
 0xa59   : > { %2176 = vmatprep.subr.mxu0 %v2370_v0 }
 0xa5a   : > { %2177 = vmatpush3.msra.mxu0 %v1699_v60 }
 0xa5b   : > { %2178 = vmatprep.subr.mxu0 %v2370_v0 }
 0xa5c   : > { %2179 = vmatpush3.msra.mxu0 %v1698_v61 }
 0xa5d   : > { %2180 = vmatprep.subr.mxu0 %v2370_v0 }
 0xa5e   : > { %2181 = vmatpush3.msra.mxu0 %v1697_v62 }
 0xa5f   : > { %2182 = vmatprep.subr.mxu0 %v2370_v0 }
 0xa60   : > { %2183 = vmatpush3.msra.mxu0 %v1696_v63 }
 0xa61   : > { %2184 = vmatprep.subr.mxu0 %v2370_v0 }
 0xa62   : > { %2185 = vmatpush3.msra.mxu0 %v1695_v2 }
 0xa63   : > { %2186 = vmatprep.subr.mxu0 %v2370_v0 }
 0xa64   : > { %2187 = vmatpush3.msra.mxu0 %v1694_v4 }
 0xa65   : > { %2188 = vmatprep.subr.mxu0 %v2370_v0 }
 0xa66   : > { %2189 = vmatpush3.msra.mxu0 %v1693_v5 }
 0xa67   : > { %2190 = vmatprep.subr.mxu0 %v2370_v0 }
 0xa68   : > { %2191 = vmatpush3.msra.mxu0 %v1692_v3 }
 0xa69   : > { %2192 = vmatprep.subr.mxu0 %v2370_v0 }
 0xa6a   : > { %2193 = vmatpush3.msra.mxu0 %v1691_v6 }
 0xa6b   : > { %2194 = vmatprep.subr.mxu0 %v2370_v0 }
 0xa6c   : > { %2195 = vmatpush3.msra.mxu0 %v1690_v7 }
 0xa6d   : > { %2196 = vmatprep.subr.mxu0 %v2370_v0 }
 0xa6e   : > { %2197 = vmatpush3.msra.mxu0 %v1689_v16 }
 0xa6f   : > { %2198 = vmatprep.subr.mxu0 %v2370_v0 }
 0xa70   : > { %2199 = vmatpush3.msra.mxu0 %v1688_v17 }
 0xa71   : > { %2200 = vmatprep.subr.mxu0 %v2370_v0 }
 0xa72   : > { %2201 = vmatpush3.msra.mxu0 %v1687_v19 }
 0xb13   : > { %v1560_v34 = vpop.f32.mrf.mxu0 }
 0xb14   : > { %v1561_v35 = vadd.f32 %v1932_v33, %v1560_v34 }
 0xb15   : > { %v2134_v36 = vpop.f32.mrf.mxu0 }
 0xb16   : > { %v1564_v37 = vadd.f32 %v1561_v35, %v2698_v49 }
 0xb18   : > { %1565 = vadd.xlane.f32.xlu1 %v1564_v37 }
 0xba1   : > { %v1566_v41 = vpop.xlane.xlu1 %1565 }
 0xba2   : > { %v1568_v42 = vmul.f32 0.0078125, %v1566_v41 }
 0xba4   : > { %v2829_v49 = vsub.f32 %v1564_v37, %v1568_v42  ;;  %v1937_v37 = vld [vmem:[%s2899_s14] ss:$0 sm:$0xff] }
 0xba6   : > { %v1570_v43 = vmul.f32 %v2829_v49, %v2829_v49 }
 0xba8   : > { %1571 = vadd.xlane.f32.xlu0 %v1570_v43 }
 0xc31   : > { %v1572_v1 = vpop.xlane.xlu0 %1571 }
 0xc32   : > { %v1573_v8 = vmul.f32 0.0078125, %v1572_v1 }
 0xc34   : > { %v1574_v9 = vadd.f32 1e-05, %v1573_v8 }
 0xc36   : > { %2267 = vrsqrt.f32 %v1574_v9 }
 0xc43   : > { %v2268_v10 = vpop.eup %2267 }
 0xc44   : > { %v1576_v12 = vmul.f32 %v2268_v10, %v2829_v49 }
 0xc46   : > { %v1584_v14 = vmul.f32 %v1933_v11, %v1576_v12 }
 0xc48   : > { %v1592_v15 = vadd.f32 %v1934_v13, %v1584_v14 }
 0xc4a   : > { %2168 = vmatmul.mubr.f32.vlgmr.msra.gmra.mxu1 %v1592_v15 }
 0xd0a   : > { %v1682_v21 = vpop.f32.mrf.mxu1 }
 0xd0b   : > { %v1683_v22 = vadd.f32 %v1935_v20, %v1682_v21 }
 0xd0c   : > { %v2169_v23 = vpop.f32.mrf.mxu1 }
 0xd0d   : > { %v1686_v24 = vmax.f32 %v1683_v22, 0.0 }
 0xd0f   : > { %2203 = vmatmul.mubr.f32.vlgmr.msra.gmra.mxu0 %v1686_v24 }
 0xdcf   : > { %v1776_v26 = vpop.f32.mrf.mxu0 }
 0xdd0   : > { %v1777_v27 = vadd.f32 %v1936_v25, %v1776_v26 }
 0xdd1   : > { %v2204_v28 = vpop.f32.mrf.mxu0 }
 0xdd2   : > { %v1780_v29 = vadd.f32 %v1777_v27, %v1592_v15 }
 0xdd4   : > { %1781 = vadd.xlane.f32.xlu1 %v1780_v29 }
 0xe5d   : > { %v1782_v0 = vpop.xlane.xlu1 %1781 }
 0xe5e   : > { %v1783_v30 = vmul.f32 0.0078125, %v1782_v0 }
 0xe60   : > { %v1784_v31 = vsub.f32 %v1780_v29, %v1783_v30 }
 0xe62   : > { %v1785_v32 = vmul.f32 %v1784_v31, %v1784_v31 }
 0xe64   : > { %1786 = vadd.xlane.f32.xlu1 %v1785_v32 }
 0xeed   : > { %v1787_v33 = vpop.xlane.xlu1 %1786 }
 0xeee   : > { %v1788_v34 = vmul.f32 0.0078125, %v1787_v33 }
 0xef0   : > { %v1789_v35 = vadd.f32 1e-05, %v1788_v34 }
 0xef2   : > { %2269 = vrsqrt.f32 %v1789_v35 }
 0xeff   : > { %v2270_v36 = vpop.eup %2269 }
 0xf00   : > { %v1791_v38 = vmul.f32 %v2270_v36, %v1784_v31 }
 0xf02   : > { %v1799_v18 = vmul.f32 %v1937_v37, %v1791_v38 }
 0xf04   : > { %v1807_v40 = vadd.f32 %v1938_v39, %v1799_v18 }
 0xf06   : > { %1808 = vst [vmem:[%s577_s29] sm:$0xff] %v1807_v40 }
 0xf07 PF: > { %s28_s21 = sadd.s32 1, %s2363_s21  }
 0xf08   : > { %p25_p3 = scmp.ge.s32.totalorder %s28_s21, 4  }
 0xf0a   :  { %27 = sbr.rel (!%p25_p3) target bundleno = 4 (0x4), region = 130 }
 0xf0f   :  { %1828 = vsyncpa [#allocation3], 1 }
 0xf10   :  { %1830 = vsyncpa [#allocation3 + $0x1], 1 }
 0xf11   :  { %1831 = vsyncpa [#allocation5], 1 }

// kernel: forward.11
= control target key start
LH: loop header
LB: loop body
LE: loop exit
PB: predicated region body
PF: predicated region fallthrough
CT: control target
= control target key end

     0   :  { %v231_v42 = vmov 0.0   ;;  %v97_v59 = vlaneseq  ;;  %s395_s0 = inlined_call_operand.vmem [shape: f32[16,128], index: 0, kind: input, shape index: {}]   ;;  %s396_s3 = inlined_call_operand.vmem [shape: f32[128,256], index: 3, kind: input, shape index: {}]   ;;  %s397_s1 = inlined_call_operand.vmem [shape: f32[1,128], index: 1, kind: input, shape index: {}]   ;;  %s398_s2 = inlined_call_operand.vmem [shape: f32[1,128], index: 2, kind: input, shape index: {}]   ;;  %s399_s4 = inlined_call_operand.vmem [shape: f32[1,256], index: 4, kind: input, shape index: {}]   ;;  %s400_s5 = inlined_call_operand.vmem [shape: f32[16,256], index: 5, kind: output, shape index: {}]  }
   0x1   :  { %v20_v0 = vld [vmem:[%s395_s0] sm:$0xff]  ;;  %v21_v1 = vld [vmem:[%s395_s0 + $0x8] sm:$0xff]  ;;  %v94_v2 = vld [vmem:[%s396_s3 + $0xf8] sm:$0xff]  ;;  %171 = vmatprep.mubr.f32.mxu0 %v231_v42  ;;  %177 = vmatprep.mubr.f32.mxu1 %v231_v42 }
   0x2   :  { %22 = vadd.xlane.f32.xlu0 %v20_v0  ;;  %v93_v3 = vld [vmem:[%s396_s3 + $0xf0] sm:$0xff]  ;;  %v92_v4 = vld [vmem:[%s396_s3 + $0xe8] sm:$0xff]  ;;  %107 = vmatprep.subr.mxu0 %v94_v2  ;;  %v91_v5 = vld [vmem:[%s396_s3 + $0xe0] sm:$0xff]  ;;  %v98_v60 = vshrl.u32 %v97_v59, 7 }
   0x3   :  { %194 = vmatprep.subr.mxu1 %v94_v2  ;;  %108 = vmatpush1.msra.mxu0 %v93_v3  ;;  %v90_v6 = vld [vmem:[%s396_s3 + $0xd8] sm:$0xff]  ;;  %v89_v7 = vld [vmem:[%s396_s3 + $0xd0] sm:$0xff]  ;;  %v88_v8 = vld [vmem:[%s396_s3 + $0xc8] sm:$0xff] }
   0x4   :  { %210 = vmatpush1.msra.mxu1 %v93_v3  ;;  %109 = vmatprep.subr.mxu0 %v92_v4  ;;  %v87_v9 = vld [vmem:[%s396_s3 + $0xc0] sm:$0xff]  ;;  %v86_v18 = vld [vmem:[%s396_s3 + $0xb8] sm:$0xff]  ;;  %v85_v19 = vld [vmem:[%s396_s3 + $0xb0] sm:$0xff]  ;;  %v99_v61 = vsub.s32 0, %v98_v60  ;;  %v103_v63 = vsub.s32 1, %v98_v60 }
   0x5   :  { %195 = vmatprep.subr.mxu1 %v92_v4  ;;  %110 = vmatpush1.msra.mxu0 %v91_v5  ;;  %v84_v20 = vld [vmem:[%s396_s3 + $0xa8] sm:$0xff]  ;;  %v83_v21 = vld [vmem:[%s396_s3 + $0xa0] sm:$0xff]  ;;  %v82_v22 = vld [vmem:[%s396_s3 + $0x98] sm:$0xff] }
   0x6   :  { %24 = vadd.xlane.f32.xlu0 %v21_v1  ;;  %211 = vmatpush1.msra.mxu1 %v91_v5  ;;  %v81_v23 = vld [vmem:[%s396_s3 + $0x90] sm:$0xff]  ;;  %v80_v24 = vld [vmem:[%s396_s3 + $0x88] sm:$0xff]  ;;  %v79_v25 = vld [vmem:[%s396_s3 + $0x80] sm:$0xff] }
   0x7   :  { %111 = vmatprep.subr.mxu0 %v90_v6  ;;  %196 = vmatprep.subr.mxu1 %v90_v6  ;;  %v78_v26 = vld [vmem:[%s396_s3 + $0x78] sm:$0xff]  ;;  %v77_v27 = vld [vmem:[%s396_s3 + $0x70] sm:$0xff]  ;;  %v76_v28 = vld [vmem:[%s396_s3 + $0x68] sm:$0xff] }
   0x8   :  { %112 = vmatpush1.msra.mxu0 %v89_v7  ;;  %212 = vmatpush1.msra.mxu1 %v89_v7  ;;  %v75_v29 = vld [vmem:[%s396_s3 + $0x60] sm:$0xff]  ;;  %v74_v30 = vld [vmem:[%s396_s3 + $0x58] sm:$0xff]  ;;  %v73_v31 = vld [vmem:[%s396_s3 + $0x50] sm:$0xff] }
   0x9   :  { %113 = vmatprep.subr.mxu0 %v88_v8  ;;  %197 = vmatprep.subr.mxu1 %v88_v8  ;;  %v72_v32 = vld [vmem:[%s396_s3 + $0x48] sm:$0xff]  ;;  %v71_v33 = vld [vmem:[%s396_s3 + $0x40] sm:$0xff]  ;;  %v70_v34 = vld [vmem:[%s396_s3 + $0x38] sm:$0xff] }
   0xa   :  { %114 = vmatpush1.msra.mxu0 %v87_v9  ;;  %213 = vmatpush1.msra.mxu1 %v87_v9  ;;  %v69_v35 = vld [vmem:[%s396_s3 + $0x30] sm:$0xff]  ;;  %v68_v36 = vld [vmem:[%s396_s3 + $0x28] sm:$0xff]  ;;  %v67_v37 = vld [vmem:[%s396_s3 + $0x20] sm:$0xff] }
   0xb   :  { %115 = vmatprep.subr.mxu0 %v86_v18  ;;  %198 = vmatprep.subr.mxu1 %v86_v18  ;;  %v66_v38 = vld [vmem:[%s396_s3 + $0x18] sm:$0xff]  ;;  %v65_v39 = vld [vmem:[%s396_s3 + $0x10] sm:$0xff]  ;;  %v64_v40 = vld [vmem:[%s396_s3 + $0x8] sm:$0xff] }
   0xc   :  { %116 = vmatpush1.msra.mxu0 %v85_v19  ;;  %214 = vmatpush1.msra.mxu1 %v85_v19  ;;  %v63_v41 = vld [vmem:[%s396_s3] sm:$0xff] }
   0xd   :  { %117 = vmatprep.subr.mxu0 %v84_v20  ;;  %199 = vmatprep.subr.mxu1 %v84_v20  ;;  %v192_v50 = vld [vmem:[%s397_s1] ss:$0 sm:$0xff] }
   0xe   :  { %118 = vmatpush1.msra.mxu0 %v83_v21  ;;  %215 = vmatpush1.msra.mxu1 %v83_v21  ;;  %v193_v52 = vld [vmem:[%s398_s2] ss:$0 sm:$0xff] }
   0xf   :  { %119 = vmatprep.subr.mxu0 %v82_v22  ;;  %200 = vmatprep.subr.mxu1 %v82_v22  ;;  %v95_v62 = vld [vmem:[%s399_s4] sm:$0x3] }
  0x10   :  { %120 = vmatpush1.msra.mxu0 %v81_v23  ;;  %216 = vmatpush1.msra.mxu1 %v81_v23 }
  0x11   :  { %121 = vmatprep.subr.mxu0 %v80_v24  ;;  %201 = vmatprep.subr.mxu1 %v80_v24 }
  0x12   :  { %122 = vmatpush1.msra.mxu0 %v79_v25  ;;  %217 = vmatpush1.msra.mxu1 %v79_v25 }
  0x13   :  { %123 = vmatprep.subr.mxu0 %v78_v26  ;;  %202 = vmatprep.subr.mxu1 %v78_v26 }
  0x14   :  { %124 = vmatpush1.msra.mxu0 %v77_v27  ;;  %218 = vmatpush1.msra.mxu1 %v77_v27 }
  0x15   :  { %125 = vmatprep.subr.mxu0 %v76_v28  ;;  %203 = vmatprep.subr.mxu1 %v76_v28 }
  0x16   :  { %126 = vmatpush1.msra.mxu0 %v75_v29  ;;  %219 = vmatpush1.msra.mxu1 %v75_v29 }
  0x17   :  { %127 = vmatprep.subr.mxu0 %v74_v30  ;;  %204 = vmatprep.subr.mxu1 %v74_v30 }
  0x18   :  { %128 = vmatpush1.msra.mxu0 %v73_v31  ;;  %220 = vmatpush1.msra.mxu1 %v73_v31 }
  0x19   :  { %129 = vmatprep.subr.mxu0 %v72_v32  ;;  %205 = vmatprep.subr.mxu1 %v72_v32 }
  0x1a   :  { %130 = vmatpush1.msra.mxu0 %v71_v33  ;;  %221 = vmatpush1.msra.mxu1 %v71_v33 }
  0x1b   :  { %131 = vmatprep.subr.mxu0 %v70_v34  ;;  %206 = vmatprep.subr.mxu1 %v70_v34 }
  0x1c   :  { %132 = vmatpush1.msra.mxu0 %v69_v35  ;;  %222 = vmatpush1.msra.mxu1 %v69_v35 }
  0x1d   :  { %133 = vmatprep.subr.mxu0 %v68_v36  ;;  %207 = vmatprep.subr.mxu1 %v68_v36 }
  0x1e   :  { %134 = vmatpush1.msra.mxu0 %v67_v37  ;;  %223 = vmatpush1.msra.mxu1 %v67_v37 }
  0x1f   :  { %135 = vmatprep.subr.mxu0 %v66_v38  ;;  %208 = vmatprep.subr.mxu1 %v66_v38 }
  0x20   :  { %136 = vmatpush1.msra.mxu0 %v65_v39  ;;  %224 = vmatpush1.msra.mxu1 %v65_v39 }
  0x21   :  { %137 = vmatprep.subr.mxu0 %v64_v40  ;;  %209 = vmatprep.subr.mxu1 %v64_v40 }
  0x22   :  { %138 = vmatpush1.msra.mxu0 %v63_v41  ;;  %225 = vmatpush1.msra.mxu1 %v63_v41 }
  0x8b   :  { %v23_v10 = vpop.xlane.xlu0 %22 }
  0x8c   :  { %v27_v11 = vmul.f32 0.0078125, %v23_v10 }
  0x8e   :  { %v292_v12 = vsub.f32 %v20_v0, %v27_v11  ;;  %v100_v0 = vrot.slane %v95_v62, %v99_v61 }
  0x8f   :  { %v25_v13 = vpop.xlane.xlu0 %24 }
  0x90   :  { %v28_v14 = vmul.f32 0.0078125, %v25_v13  ;;  %v31_v15 = vmul.f32 %v292_v12, %v292_v12 }
  0x92   :  { %v296_v16 = vsub.f32 %v21_v1, %v28_v14  ;;  %33 = vadd.xlane.f32.xlu1 %v31_v15  ;;  %v104_v1 = vrot.slane %v95_v62, %v103_v63 }
  0x94   :  { %v32_v17 = vmul.f32 %v296_v16, %v296_v16 }
  0x96   :  { %35 = vadd.xlane.f32.xlu1 %v32_v17 }
 0x11b   :  { %v34_v43 = vpop.xlane.xlu1 %33 }
 0x11c   :  { %v37_v44 = vmul.f32 0.0078125, %v34_v43 }
 0x11e   :  { %v39_v45 = vadd.f32 1e-05, %v37_v44 }
 0x11f   :  { %v36_v46 = vpop.xlane.xlu1 %35 }
 0x120   :  { %227 = vrsqrt.f32 %v39_v45  ;;  %v38_v47 = vmul.f32 0.0078125, %v36_v46 }
 0x122   :  { %v40_v48 = vadd.f32 1e-05, %v38_v47 }
 0x124   :  { %229 = vrsqrt.f32 %v40_v48 }
 0x12d   :  { %v228_v49 = vpop.eup %227 }
 0x12e   :  { %v43_v51 = vmul.f32 %v228_v49, %v292_v12 }
 0x130   :  { %v52_v53 = vmul.f32 %v192_v50, %v43_v51 }
 0x131   :  { %v230_v54 = vpop.eup %229 }
 0x132   :  { %v61_v55 = vadd.f32 %v193_v52, %v52_v53  ;;  %v44_v56 = vmul.f32 %v230_v54, %v296_v16 }
 0x134   :  { %172 = vmatmul.mubr.f32.vlgmr.msra.gmra.mxu0 %v61_v55  ;;  %v53_v57 = vmul.f32 %v192_v50, %v44_v56 }
 0x136   :  { %v62_v58 = vadd.f32 %v193_v52, %v53_v57 }
 0x138   :  { %178 = vmatmul.mubr.f32.vlgmr.msra.gmra.mxu1 %v62_v58 }
 0x1f4   :  { %v173_v2 = vpop.f32.mrf.mxu0 }
 0x1f5   :  { %v174_v3 = vadd.f32 %v173_v2, %v100_v0 }
 0x1f6   :  { %v175_v4 = vpop.f32.mrf.mxu0 }
 0x1f7   :  { %184 = vst [vmem:[%s400_s5] sm:$0xff] %v174_v3  ;;  %v176_v5 = vadd.f32 %v175_v4, %v104_v1 }
 0x1f8   :  { %v179_v6 = vpop.f32.mrf.mxu1 }
 0x1f9   :  { %185 = vst [vmem:[%s400_s5 + $0x8] sm:$0xff] %v176_v5  ;;  %v180_v7 = vadd.f32 %v179_v6, %v100_v0 }
 0x1fa   :  { %v181_v8 = vpop.f32.mrf.mxu1 }
 0x1fb   :  { %186 = vst [vmem:[%s400_s5 + $0x10] sm:$0xff] %v180_v7  ;;  %v182_v9 = vadd.f32 %v181_v8, %v104_v1 }
 0x1fd   :  { %187 = vst [vmem:[%s400_s5 + $0x18] sm:$0xff] %v182_v9 }

// kernel: forward.9
= control target key start
LH: loop header
LB: loop body
LE: loop exit
PB: predicated region body
PF: predicated region fallthrough
CT: control target
= control target key end

     0   :  { %s3839_s27 = smov 0   ;;  %s4717_s0 = inlined_call_operand.vmem [shape: f32[2,8,128], index: 0, kind: input, shape index: {}]   ;;  %s4718_s1 = inlined_call_operand.vmem [shape: f32[2,8,128], index: 1, kind: input, shape index: {}]   ;;  %s4719_s2 = inlined_call_operand.vmem [shape: f32[2,8,8], index: 2, kind: input, shape index: {}]   ;;  %s4720_s3 = inlined_call_operand.vmem [shape: f32[2,8,8], index: 3, kind: input, shape index: {}]   ;;  %s4721_s4 = inlined_call_operand.vmem [shape: f32[128,128], index: 4, kind: input, shape index: {}]   ;;  %s4722_s5 = inlined_call_operand.vmem [shape: f32[1,128], index: 5, kind: input, shape index: {}]   ;;  %s4723_s6 = inlined_call_operand.vmem [shape: f32[128,256], index: 6, kind: input, shape index: {}]   ;;  %s4724_s7 = inlined_call_operand.vmem [shape: f32[1,256], index: 7, kind: input, shape index: {}]   ;;  %s4725_s8 = inlined_call_operand.vmem [shape: f32[128,128], index: 8, kind: input, shape index: {}]   ;;  %s4726_s9 = inlined_call_operand.vmem [shape: f32[1,128], index: 9, kind: input, shape index: {}]   ;;  %s4727_s10 = inlined_call_operand.vmem [shape: f32[1,128], index: 10, kind: input, shape index: {}]   ;;  %s4728_s11 = inlined_call_operand.vmem [shape: f32[1,128], index: 11, kind: input, shape index: {}]   ;;  %s4729_s12 = inlined_call_operand.vmem [shape: f32[128,128], index: 12, kind: input, shape index: {}]   ;;  %s4730_s13 = inlined_call_operand.vmem [shape: f32[1,128], index: 13, kind: input, shape index: {}]   ;;  %s4731_s14 = inlined_call_operand.vmem [shape: f32[128,256], index: 14, kind: input, shape index: {}]   ;;  %s4732_s15 = inlined_call_operand.vmem [shape: f32[1,256], index: 15, kind: input, shape index: {}]   ;;  %s4733_s16 = inlined_call_operand.vmem [shape: f32[128,128], index: 16, kind: input, shape index: {}]   ;;  %s4734_s17 = inlined_call_operand.vmem [shape: f32[1,128], index: 17, kind: input, shape index: {}]   ;;  %s4735_s18 = inlined_call_operand.vmem [shape: f32[1,128], index: 18, kind: input, shape index: {}]   ;;  %s4736_s19 = inlined_call_operand.vmem [shape: f32[1,128], index: 19, kind: input, shape index: {}]   ;;  %s4737_s20 = inlined_call_operand.vmem [shape: f32[128,128], index: 20, kind: input, shape index: {}]   ;;  %s4738_s21 = inlined_call_operand.vmem [shape: f32[1,128], index: 21, kind: input, shape index: {}]   ;;  %s4739_s22 = inlined_call_operand.vmem [shape: f32[128,128], index: 22, kind: input, shape index: {}]   ;;  %s4740_s23 = inlined_call_operand.vmem [shape: f32[1,128], index: 23, kind: input, shape index: {}]   ;;  %s4741_s24 = inlined_call_operand.vmem [shape: f32[1,128], index: 24, kind: input, shape index: {}]   ;;  %s4742_s25 = inlined_call_operand.vmem [shape: f32[1,128], index: 25, kind: input, shape index: {}]   ;;  %s4743_s26 = inlined_call_operand.vmem [shape: f32[2,8,128], index: 26, kind: output, shape index: {}]  }
   0x1   :  { %4754 = sst [smem:[#allocation2_spill]] %s4717_s0 }
   0x2   :  { %4755 = sst [smem:[#allocation3_spill]] %s4718_s1 }
   0x3   :  { %4756 = sst [smem:[#allocation4_spill]] %s4719_s2 }
   0x4   :  { %4757 = sst [smem:[#allocation5_spill]] %s4720_s3 }
   0x5   :  { %4758 = sst [smem:[#allocation6_spill]] %s4721_s4 }
   0x6   :  { %4759 = sst [smem:[#allocation7_spill]] %s4722_s5 }
   0x7   :  { %4760 = sst [smem:[#allocation8_spill]] %s4723_s6 }
   0x8   :  { %4761 = sst [smem:[#allocation9_spill]] %s4724_s7 }
   0x9   :  { %4762 = sst [smem:[#allocation10_spill]] %s4725_s8 }
   0xa   :  { %4763 = sst [smem:[#allocation11_spill]] %s4726_s9 }
   0xb   :  { %4764 = sst [smem:[#allocation12_spill]] %s4727_s10 }
   0xc LB: > { %s3168_s3 = sadd.s32 4294967295, %s3697_s27   ;;  %p3172_p0 = scmp.ge.s32.totalorder %s3697_s27, 1  ;;  %s3697_s27 = sphi %s3839_s27, %s36_s27  }
   0xd   : > { %p738_p1 = scmp.lt.s32.totalorder %s3697_s27, 3 }
   0xf   : > { %p739_p2 = pnand %p3172_p0, %p738_p1 }
  0x10   : > { %s4765_s8 = sld [smem:[#allocation8_spill]] (!%p739_p2)  ;;  %p3941_p3 = scmp.lt.s32.totalorder (!%p739_p2), %s3168_s3, 1 }
  0x11   : > { %742 = sbr.rel (%p739_p2) target bundleno = 6869 (0x1ad5), region = 124  ;;  %s4766_s5 = sld [smem:[#allocation6_spill]] (!%p739_p2) }
  0x12   : > { %s4768_s2 = sld [smem:[#allocation2_spill]] (!%p739_p2)  ;;  %s4751_s28 = smov (!%p739_p2), 96  }
  0x13   : > { %s4769_s30 = sld [smem:[#allocation9_spill]] (!%p739_p2)  ;;  %s4749_s29 = smov (!%p739_p2), 64  }
  0x14   : > { %s4770_s6 = sld [smem:[#allocation7_spill]] (!%p739_p2)  ;;  %s4747_s0 = smov (!%p739_p2), 32  }
  0x15   : > { %s4771_s7 = sld [smem:[#allocation4_spill]] (!%p739_p2) }
  0x16   : > { %v966_v0 = vld [vmem:[%s4765_s8 + $0xf8] sm:$0xff]  ;;  %v965_v1 = vld [vmem:[%s4765_s8 + $0xf0] sm:$0xff]  ;;  %v964_v2 = vld [vmem:[%s4765_s8 + $0xe8] sm:$0xff]  ;;  %v3699_v3 = vmov 0.0   ;;  %s4781_s3 = smov (!%p3941_p3, %s3168_s3), 1  ;;  %vm3700_vm0 = vmmov 0   ;;  %v969_v50 = vlaneseq }
  0x17   : > { %979 = vmatprep.subr.mxu1 %v966_v0  ;;  %3350 = vmatprep.subr.mxu0 %v3699_v3  ;;  %v857_v4 = vld [vmem:[%s4766_s5 + $0x78] sm:$0xff]  ;;  %v963_v5 = vld [vmem:[%s4765_s8 + $0xe0] sm:$0xff]  ;;  %v856_v7 = vld [vmem:[%s4766_s5 + $0x70] sm:$0xff]  ;;  %s3989_s9 = sshll.u32 %s4781_s3, 3  ;;  %vm1050_vm1 = vcmask 261120   ;;  %vm1129_vm2 = vcmask 64512  }
  0x18   : > { %980 = vmatpush1.msra.mxu1 %v965_v1  ;;  %3351 = vmatpush3.msra.mxu0 %v857_v4  ;;  %v962_v6 = vld [vmem:[%s4765_s8 + $0xd8] sm:$0xff]  ;;  %v961_v8 = vld [vmem:[%s4765_s8 + $0xd0] sm:$0xff]  ;;  %v855_v9 = vld [vmem:[%s4766_s5 + $0x68] sm:$0xff]  ;;  %s821_s10 = scalar_lea.vmem %s4768_s2, %s3989_s9  ;;  %v4036_v51 = vshrl.u32 %v969_v50, 7  ;;  %vm1729_vm3 = vcmask 523264   ;;  %vm1731_vm4 = vcmask 785408  }
  0x19   : > { %981 = vmatprep.subr.mxu1 %v964_v2  ;;  %3352 = vmatprep.subr.mxu0 %v3699_v3  ;;  %v960_v10 = vld [vmem:[%s4765_s8 + $0xc8] sm:$0xff]  ;;  %v959_v11 = vld [vmem:[%s4765_s8 + $0xc0] sm:$0xff]  ;;  %v958_v13 = vld [vmem:[%s4765_s8 + $0xb8] sm:$0xff]  ;;  %s4775_s1 = sld [smem:[#allocation12_spill]]  ;;  %s4778_s3 = smov 64  }
  0x1a   : > { %982 = vmatpush1.msra.mxu1 %v963_v5  ;;  %3353 = vmatpush3.msra.mxu0 %v856_v7  ;;  %v854_v12 = vld [vmem:[%s4766_s5 + $0x60] sm:$0xff]  ;;  %v957_v14 = vld [vmem:[%s4765_s8 + $0xb0] sm:$0xff]  ;;  %v853_v15 = vld [vmem:[%s4766_s5 + $0x58] sm:$0xff]  ;;  %v971_v52 = vsub.s32 0, %v4036_v51  ;;  %v975_v55 = vsub.s32 1, %v4036_v51 }
  0x1b   : > { %983 = vmatprep.subr.mxu1 %v962_v6  ;;  %3354 = vmatprep.subr.mxu0 %v3699_v3  ;;  %v956_v16 = vld [vmem:[%s4765_s8 + $0xa8] sm:$0xff]  ;;  %v955_v17 = vld [vmem:[%s4765_s8 + $0xa0] sm:$0xff]  ;;  %v852_v18 = vld [vmem:[%s4766_s5 + $0x50] sm:$0xff]  ;;  %s829_s4 = scalar_lea.vmem %s4771_s7, %s3989_s9 }
  0x1c   : > { %984 = vmatpush1.msra.mxu1 %v961_v8  ;;  %3355 = vmatpush3.msra.mxu0 %v855_v9  ;;  %v954_v19 = vld [vmem:[%s4765_s8 + $0x98] sm:$0xff]  ;;  %v953_v20 = vld [vmem:[%s4765_s8 + $0x90] sm:$0xff]  ;;  %v851_v21 = vld [vmem:[%s4766_s5 + $0x48] sm:$0xff] }
  0x1d   : > { %985 = vmatprep.subr.mxu1 %v960_v10  ;;  %3356 = vmatprep.subr.mxu0 %v3699_v3  ;;  %v952_v22 = vld [vmem:[%s4765_s8 + $0x88] sm:$0xff]  ;;  %v951_v23 = vld [vmem:[%s4765_s8 + $0x80] sm:$0xff]  ;;  %v950_v25 = vld [vmem:[%s4765_s8 + $0x78] sm:$0xff] }
  0x1e   : > { %986 = vmatpush1.msra.mxu1 %v959_v11  ;;  %3357 = vmatpush3.msra.mxu0 %v854_v12  ;;  %v850_v24 = vld [vmem:[%s4766_s5 + $0x40] sm:$0xff]  ;;  %v949_v26 = vld [vmem:[%s4765_s8 + $0x70] sm:$0xff]  ;;  %v849_v27 = vld [vmem:[%s4766_s5 + $0x38] sm:$0xff] }
  0x1f   : > { %987 = vmatprep.subr.mxu1 %v958_v13  ;;  %3358 = vmatprep.subr.mxu0 %v3699_v3  ;;  %v948_v28 = vld [vmem:[%s4765_s8 + $0x68] sm:$0xff]  ;;  %v947_v29 = vld [vmem:[%s4765_s8 + $0x60] sm:$0xff]  ;;  %v848_v30 = vld [vmem:[%s4766_s5 + $0x30] sm:$0xff] }
  0x20   : > { %988 = vmatpush1.msra.mxu1 %v957_v14  ;;  %3359 = vmatpush3.msra.mxu0 %v853_v15  ;;  %v946_v31 = vld [vmem:[%s4765_s8 + $0x58] sm:$0xff]  ;;  %v945_v32 = vld [vmem:[%s4765_s8 + $0x50] sm:$0xff]  ;;  %v847_v33 = vld [vmem:[%s4766_s5 + $0x28] sm:$0xff] }
  0x21   : > { %989 = vmatprep.subr.mxu1 %v956_v16  ;;  %3360 = vmatprep.subr.mxu0 %v3699_v3  ;;  %v944_v34 = vld [vmem:[%s4765_s8 + $0x48] sm:$0xff]  ;;  %v943_v35 = vld [vmem:[%s4765_s8 + $0x40] sm:$0xff]  ;;  %v942_v37 = vld [vmem:[%s4765_s8 + $0x38] sm:$0xff] }
  0x22   : > { %990 = vmatpush1.msra.mxu1 %v955_v17  ;;  %3361 = vmatpush3.msra.mxu0 %v852_v18  ;;  %v846_v36 = vld [vmem:[%s4766_s5 + $0x20] sm:$0xff]  ;;  %v941_v38 = vld [vmem:[%s4765_s8 + $0x30] sm:$0xff]  ;;  %v845_v39 = vld [vmem:[%s4766_s5 + $0x18] sm:$0xff] }
  0x23   : > { %991 = vmatprep.subr.mxu1 %v954_v19  ;;  %3362 = vmatprep.subr.mxu0 %v3699_v3  ;;  %v940_v40 = vld [vmem:[%s4765_s8 + $0x28] sm:$0xff]  ;;  %v939_v41 = vld [vmem:[%s4765_s8 + $0x20] sm:$0xff]  ;;  %v844_v42 = vld [vmem:[%s4766_s5 + $0x10] sm:$0xff] }
  0x24   : > { %992 = vmatpush1.msra.mxu1 %v953_v20  ;;  %3363 = vmatpush3.msra.mxu0 %v851_v21  ;;  %v938_v43 = vld [vmem:[%s4765_s8 + $0x18] sm:$0xff]  ;;  %v937_v44 = vld [vmem:[%s4765_s8 + $0x10] sm:$0xff]  ;;  %v843_v45 = vld [vmem:[%s4766_s5 + $0x8] sm:$0xff] }
  0x25   : > { %993 = vmatprep.subr.mxu1 %v952_v22  ;;  %3364 = vmatprep.subr.mxu0 %v3699_v3  ;;  %v936_v46 = vld [vmem:[%s4765_s8 + $0x8] sm:$0xff]  ;;  %v935_v47 = vld [vmem:[%s4765_s8] sm:$0xff] }
  0x26   : > { %994 = vmatpush1.msra.mxu1 %v951_v23  ;;  %3365 = vmatpush3.msra.mxu0 %v850_v24  ;;  %v4019_v48 = vld [vmem:[%s821_s10] sm:$0xff]  ;;  %s4772_s10 = sld [smem:[#allocation10_spill]] }
  0x27   : > { %995 = vmatprep.subr.mxu1 %v950_v25  ;;  %3366 = vmatprep.subr.mxu0 %v3699_v3  ;;  %v842_v49 = vld [vmem:[%s4766_s5] sm:$0xff] }
  0x28   : > { %996 = vmatpush1.msra.mxu1 %v949_v26  ;;  %3367 = vmatpush3.msra.mxu0 %v849_v27  ;;  %v967_v53 = vld [vmem:[%s4769_s30] sm:$0x3]  ;;  %s4774_s30 = sld [smem:[#allocation3_spill]] }
  0x29   : > { %997 = vmatprep.subr.mxu1 %v948_v28  ;;  %3368 = vmatprep.subr.mxu0 %v3699_v3  ;;  %v972_v54 = vrot.slane %v967_v53, %v971_v52  ;;  %v3178_v57 = vld [vmem:[%s4770_s6] ss:$0 sm:$0xff]  ;;  %v976_v59 = vrot.slane %v967_v53, %v975_v55  ;;  %s4773_s6 = sld [smem:[#allocation11_spill]] }
  0x2a   : > { %998 = vmatpush1.msra.mxu1 %v947_v29  ;;  %3369 = vmatpush3.msra.mxu0 %v848_v30  ;;  %v4073_v2 = vld [vmem:[%s829_s4] sm:$0xff] }
  0x2b   : > { %999 = vmatprep.subr.mxu1 %v946_v31  ;;  %3370 = vmatprep.subr.mxu0 %v3699_v3 }
  0x2c   : > { %1000 = vmatpush1.msra.mxu1 %v945_v32  ;;  %3371 = vmatpush3.msra.mxu0 %v847_v33 }
  0x2d   : > { %1001 = vmatprep.subr.mxu1 %v944_v34  ;;  %3372 = vmatprep.subr.mxu0 %v3699_v3 }
  0x2e   : > { %1002 = vmatpush1.msra.mxu1 %v943_v35  ;;  %3373 = vmatpush3.msra.mxu0 %v846_v36  ;;  %s825_s2 = scalar_lea.vmem %s4774_s30, %s3989_s9  ;;  %s837_s30 = scalar_lea.vmem %s4743_s26, %s3989_s9 }
  0x2f   : > { %1003 = vmatprep.subr.mxu1 %v942_v37  ;;  %3374 = vmatprep.subr.mxu0 %v3699_v3 }
  0x30   : > { %1004 = vmatpush1.msra.mxu1 %v941_v38  ;;  %3375 = vmatpush3.msra.mxu0 %v845_v39 }
  0x31   : > { %1005 = vmatprep.subr.mxu1 %v940_v40  ;;  %3376 = vmatprep.subr.mxu0 %v3699_v3 }
  0x32   : > { %1006 = vmatpush1.msra.mxu1 %v939_v41  ;;  %3377 = vmatpush3.msra.mxu0 %v844_v42 }
  0x33   : > { %1007 = vmatprep.subr.mxu1 %v938_v43  ;;  %3378 = vmatprep.subr.mxu0 %v3699_v3 }
  0x34   : > { %1008 = vmatpush1.msra.mxu1 %v937_v44  ;;  %3379 = vmatpush3.msra.mxu0 %v843_v45 }
  0x35   : > { %1009 = vmatprep.subr.mxu1 %v936_v46  ;;  %1043 = vmatprep.mubr.f32.mxu1 %v3699_v3 }
  0x36   : > { %1010 = vmatpush1.msra.mxu1 %v935_v47  ;;  %3380 = vmatprep.subr.mxu0 %v3699_v3 }
  0x37   : > { %1044 = vmatmul.mubr.f32.vlgmr.msra.gmra.mxu1 %v4019_v48  ;;  %3381 = vmatpush3.msra.mxu0 %v842_v49 }
  0x38   : > { %3382 = vmatprep.mubr.msk.f32.mxu0 %vm3700_vm0, %v3699_v3  ;;  %3385 = vmatprep.subr.mxu1 %v3699_v3 }
  0x39   : > { %3383 = vmatmul.mubr.f32.vlgmr.msra.gmra.mxu0 %v4019_v48  ;;  %3387 = vmatprep.mubr.msk.f32.mxu1 %vm3700_vm0, %v3699_v3 }
  0x3a   : > { %3425 = vmatprep.subr.mxu0 %v3699_v3  ;;  %3457 = vmatprep.mubr.msk.f32.mxu0 %vm3700_vm0, %v3699_v3 }
  0xf7   : > { %v1045_v56 = vpop.f32.mrf.mxu1 }
  0xf8   : > { %v4048_v58 = vadd.f32 %v1045_v56, %v972_v54 }
  0xf9   : > { %v931_v60 = vpop.f32.mrf.mxu0  ;;  %v1047_v61 = vpop.f32.mrf.mxu1 }
  0xfa   : > { %v4052_v62 = vadd.f32 %v3178_v57, %v931_v60  ;;  %1216 = vrot.lane.b32.xlu1 %v4048_v58, %s4751_s28  ;;  %3386 = vmatpush3.xpose.msk.msra.mxu1 %vm1050_vm1, %v4048_v58  ;;  %v4059_v0 = vadd.f32 %v1047_v61, %v976_v59 }
  0xfb   : > { %v3384_v63 = vpop.f32.mrf.mxu0  ;;  %3390 = vmatprep.subr.mxu1 %v3699_v3 }
  0xfd   : > { %3388 = vmatmul.mubr.msk.f32.vlgmr.msra.gmra.mxu1 %vm1050_vm1, %v4052_v62 }
  0xfe   : > { %1214 = vrot.lane.b32.xlu1 %v4052_v62, %s4751_s28  ;;  %3391 = vmatpush3.msra.mxu1 %v4059_v0 }
  0xff   : > { %3392 = vmatprep.mubr.msk.f32.mxu1 %vm3700_vm0, %v3699_v3  ;;  %3395 = vmatprep.subr.mxu1 %v3699_v3 }
 0x16c   : > { %v1217_v15 = vpop.permute.xlu1 %1216 }
 0x170   : > { %v1215_v17 = vpop.permute.xlu1 %1214 }
 0x1bd   : > { %v1123_v1 = vpop.f32.mrf.mxu1 }
 0x1be   : > { %v1127_v4 = vmul.f32 0.17677669, %v1123_v1 }
 0x1bf   : > { %v3389_v5 = vpop.f32.mrf.mxu1 }
 0x1c0   : > { %v1128_v6 = vadd.f32 %v1127_v4, %v4073_v2 }
 0x1c2   : > { %v1130_v7 = vsel %vm1129_vm2, %v1128_v6, -inf }
 0x1c3   : > { %1131 = vmax.xlane.f32.xlu0 %v1130_v7 }
 0x24c   : > { %v1132_v8 = vpop.xlane.xlu0 %1131 }
 0x24d   : > { %v1133_v9 = vsub.f32 %v1128_v6, %v1132_v8 }
 0x24f   : > { %v1134_v10 = vmul.f32 1.442695, %v1133_v9 }
 0x251   : > { %3653 = vpow2.f32 %v1134_v10 }
 0x25e   : > { %v3654_v11 = vpop.eup %3653 }
 0x25f   : > { %v1136_v12 = vsel %vm1129_vm2, %v3654_v11, 0.0 }
 0x260   : > { %1137 = vadd.xlane.f32.xlu0 %v1136_v12  ;;  %v1747_v12 = vld [vmem:[%s4772_s10 + $0x70] sm:$0xff] }
 0x2e9   : > { %v1138_v13 = vpop.xlane.xlu0 %1137 }
 0x2ea   : > { %3655 = vrcp.f32 %v1138_v13  ;;  %v1746_v13 = vld [vmem:[%s4772_s10 + $0x68] sm:$0xff] }
 0x2f7   : > { %v3656_v14 = vpop.eup %3655 }
 0x2f8   : > { %v1140_v16 = vmul.f32 %v3656_v14, %v3654_v11  ;;  %v1748_v11 = vld [vmem:[%s4772_s10 + $0x78] sm:$0xff]  ;;  %v1745_v14 = vld [vmem:[%s4772_s10 + $0x60] sm:$0xff] }
 0x2f9   : > { %3426 = vmatpush3.msra.mxu0 %v1748_v11  ;;  %v1863_v11 = vld [vmem:[%s4729_s12 + $0x40] sm:$0xff] }
 0x2fa   : > { %3393 = vmatmul.mubr.msk.f32.vlgmr.msra.gmra.mxu1 %vm1129_vm2, %v1140_v16  ;;  %3427 = vmatprep.subr.mxu0 %v3699_v3  ;;  %v1743_v16 = vld [vmem:[%s4772_s10 + $0x50] sm:$0xff] }
 0x2fb   : > { %3396 = vmatpush3.xpose.msk.msra.mxu1 %vm1050_vm1, %v1217_v15  ;;  %3397 = vmatprep.mubr.msk.f32.mxu1 %vm3700_vm0, %v3699_v3  ;;  %v1744_v15 = vld [vmem:[%s4772_s10 + $0x58] sm:$0xff] }
 0x2fc   : > { %3400 = vmatprep.subr.mxu1 %v3699_v3  ;;  %3428 = vmatpush3.msra.mxu0 %v1747_v12  ;;  %v1959_v12 = vld [vmem:[%s4731_s14 + $0x58] sm:$0xff] }
 0x2fd   : > { %3429 = vmatprep.subr.mxu0 %v3699_v3 }
 0x2fe   : > { %3398 = vmatmul.mubr.msk.f32.vlgmr.msra.gmra.mxu1 %vm1050_vm1, %v1215_v17  ;;  %3430 = vmatpush3.msra.mxu0 %v1746_v13  ;;  %v1742_v17 = vld [vmem:[%s4772_s10 + $0x48] sm:$0xff]  ;;  %v1958_v13 = vld [vmem:[%s4731_s14 + $0x50] sm:$0xff] }
 0x2ff   : > { %3402 = vmatprep.mubr.msk.f32.mxu1 %vm3700_vm0, %v3699_v3  ;;  %3431 = vmatprep.subr.mxu0 %v3699_v3 }
 0x300   : > { %3432 = vmatpush3.msra.mxu0 %v1745_v14  ;;  %v1862_v14 = vld [vmem:[%s4729_s12 + $0x38] sm:$0xff] }
 0x301   : > { %3433 = vmatprep.subr.mxu0 %v3699_v3 }
 0x302   : > { %3434 = vmatpush3.msra.mxu0 %v1744_v15  ;;  %v1957_v15 = vld [vmem:[%s4731_s14 + $0x48] sm:$0xff] }
 0x303   : > { %3435 = vmatprep.subr.mxu0 %v3699_v3 }
 0x304   : > { %3436 = vmatpush3.msra.mxu0 %v1743_v16  ;;  %v1956_v16 = vld [vmem:[%s4731_s14 + $0x40] sm:$0xff] }
 0x305   : > { %3437 = vmatprep.subr.mxu0 %v3699_v3 }
 0x306   : > { %3438 = vmatpush3.msra.mxu0 %v1742_v17  ;;  %v1861_v17 = vld [vmem:[%s4729_s12 + $0x30] sm:$0xff] }
 0x307   : > { %3439 = vmatprep.subr.mxu0 %v3699_v3 }
 0x3ba   : > { %v4086_v18 = vpop.f32.mrf.mxu1 }
 0x3bc   : > { %v3394_v19 = vpop.f32.mrf.mxu1 }
 0x3bd   : > { %v1741_v19 = vld [vmem:[%s4772_s10 + $0x40] sm:$0xff] }
 0x3be   : > { %v1288_v20 = vpop.f32.mrf.mxu1  ;;  %3440 = vmatpush3.msra.mxu0 %v1741_v19  ;;  %v1955_v19 = vld [vmem:[%s4731_s14 + $0x38] sm:$0xff] }
 0x3bf   : > { %v1292_v21 = vmul.f32 0.17677669, %v1288_v20  ;;  %v1740_v20 = vld [vmem:[%s4772_s10 + $0x38] sm:$0xff]  ;;  %3441 = vmatprep.subr.mxu0 %v3699_v3 }
 0x3c0   : > { %v3399_v22 = vpop.f32.mrf.mxu1  ;;  %3442 = vmatpush3.msra.mxu0 %v1740_v20  ;;  %v1954_v20 = vld [vmem:[%s4731_s14 + $0x30] sm:$0xff] }
 0x3c1   : > { %v1293_v23 = vadd.f32 %v1292_v21, %v4073_v2  ;;  %v1739_v21 = vld [vmem:[%s4772_s10 + $0x30] sm:$0xff]  ;;  %3443 = vmatprep.subr.mxu0 %v3699_v3  ;;  %v1738_v22 = vld [vmem:[%s4772_s10 + $0x28] sm:$0xff] }
 0x3c2   : > { %3444 = vmatpush3.msra.mxu0 %v1739_v21  ;;  %v1860_v21 = vld [vmem:[%s4729_s12 + $0x28] sm:$0xff] }
 0x3c3   : > { %v1294_v24 = vsel %vm1129_vm2, %v1293_v23, -inf  ;;  %3445 = vmatprep.subr.mxu0 %v3699_v3 }
 0x3c4   : > { %1295 = vmax.xlane.f32.xlu0 %v1294_v24  ;;  %3446 = vmatpush3.msra.mxu0 %v1738_v22  ;;  %v1736_v24 = vld [vmem:[%s4772_s10 + $0x18] sm:$0xff]  ;;  %v1953_v22 = vld [vmem:[%s4731_s14 + $0x28] sm:$0xff] }
 0x3c5   : > { %3447 = vmatprep.subr.mxu0 %v3699_v3 }
 0x3da   : > { %1306 = vrot.lane.b32.xlu0 %v4059_v0, %s4751_s28 }
 0x3de   : > { %1384 = vrot.lane.b32.xlu0 %v4048_v58, %s4749_s29 }
 0x3e2   : > { %1382 = vrot.lane.b32.xlu0 %v4052_v62, %s4749_s29 }
 0x44d   : > { %v1296_v25 = vpop.xlane.xlu0 %1295 }
 0x44e   : > { %v1297_v26 = vsub.f32 %v1293_v23, %v1296_v25  ;;  %v1737_v23 = vld [vmem:[%s4772_s10 + $0x20] sm:$0xff]  ;;  %v1735_v25 = vld [vmem:[%s4772_s10 + $0x10] sm:$0xff] }
 0x44f   : > { %3448 = vmatpush3.msra.mxu0 %v1737_v23  ;;  %v1952_v23 = vld [vmem:[%s4731_s14 + $0x20] sm:$0xff] }
 0x450   : > { %v1298_v27 = vmul.f32 1.442695, %v1297_v26  ;;  %3449 = vmatprep.subr.mxu0 %v3699_v3  ;;  %v1734_v26 = vld [vmem:[%s4772_s10 + $0x8] sm:$0xff] }
 0x451   : > { %v1307_v28 = vpop.permute.xlu0 %1306  ;;  %3450 = vmatpush3.msra.mxu0 %v1736_v24  ;;  %v1859_v24 = vld [vmem:[%s4729_s12 + $0x20] sm:$0xff] }
 0x452   : > { %3657 = vpow2.f32 %v1298_v27  ;;  %3401 = vmatpush3.msra.mxu1 %v1307_v28  ;;  %3451 = vmatprep.subr.mxu0 %v3699_v3  ;;  %v1733_v27 = vld [vmem:[%s4772_s10] sm:$0xff] }
 0x453   : > { %3405 = vmatprep.subr.mxu1 %v3699_v3  ;;  %3452 = vmatpush3.msra.mxu0 %v1735_v25  ;;  %v1951_v25 = vld [vmem:[%s4731_s14 + $0x18] sm:$0xff] }
 0x454   : > { %3453 = vmatprep.subr.mxu0 %v3699_v3 }
 0x455   : > { %v1385_v33 = vpop.permute.xlu0 %1384  ;;  %3454 = vmatpush3.msra.mxu0 %v1734_v26  ;;  %v1950_v26 = vld [vmem:[%s4731_s14 + $0x10] sm:$0xff] }
 0x456   : > { %3455 = vmatprep.subr.mxu0 %v3699_v3 }
 0x457   : > { %3456 = vmatpush3.msra.mxu0 %v1733_v27  ;;  %v1858_v27 = vld [vmem:[%s4729_s12 + $0x18] sm:$0xff] }
 0x459   : > { %v1383_v35 = vpop.permute.xlu0 %1382 }
 0x45f   : > { %v3658_v29 = vpop.eup %3657 }
 0x460   : > { %v1300_v30 = vsel %vm1129_vm2, %v3658_v29, 0.0 }
 0x461   : > { %1301 = vadd.xlane.f32.xlu1 %v1300_v30 }
 0x472   : > { %1473 = vrot.lane.b32.xlu1 %v4059_v0, %s4749_s29 }
 0x476   : > { %1551 = vrot.lane.b32.xlu1 %v4048_v58, %s4747_s0 }
 0x4ea   : > { %v1302_v31 = vpop.xlane.xlu1 %1301 }
 0x4eb   : > { %3659 = vrcp.f32 %v1302_v31 }
 0x4ee   : > { %v1474_v36 = vpop.permute.xlu1 %1473 }
 0x4f2   : > { %v1552_v50 = vpop.permute.xlu1 %1551 }
 0x4f8   : > { %v3660_v32 = vpop.eup %3659 }
 0x4f9   : > { %v1304_v34 = vmul.f32 %v3660_v32, %v3658_v29 }
 0x4fb   : > { %3403 = vmatmul.mubr.msk.f32.vlgmr.msra.gmra.mxu1 %vm1129_vm2, %v1304_v34 }
 0x4fc   : > { %3406 = vmatpush3.xpose.msk.msra.mxu1 %vm1050_vm1, %v1385_v33  ;;  %3407 = vmatprep.mubr.msk.f32.mxu1 %vm3700_vm0, %v3699_v3 }
 0x4fd   : > { %3410 = vmatprep.subr.mxu1 %v3699_v3 }
 0x4ff   : > { %3408 = vmatmul.mubr.msk.f32.vlgmr.msra.gmra.mxu1 %vm1050_vm1, %v1383_v35 }
 0x500   : > { %3411 = vmatpush3.msra.mxu1 %v1474_v36  ;;  %3412 = vmatprep.mubr.msk.f32.mxu1 %vm3700_vm0, %v3699_v3  ;;  %v3191_v36 = vld [vmem:[%s4773_s6] ss:$0 sm:$0xff] }
 0x501   : > { %3415 = vmatprep.subr.mxu1 %v3699_v3 }
 0x5bb   : > { %v1378_v37 = vpop.f32.mrf.mxu1 }
 0x5bd   : > { %v3404_v38 = vpop.f32.mrf.mxu1 }
 0x5bf   : > { %v1456_v39 = vpop.f32.mrf.mxu1 }
 0x5c0   : > { %v1460_v40 = vmul.f32 0.17677669, %v1456_v39 }
 0x5c1   : > { %v3409_v41 = vpop.f32.mrf.mxu1 }
 0x5c2   : > { %v1461_v42 = vadd.f32 %v1460_v40, %v4073_v2  ;;  %v1978_v41 = vld [vmem:[%s4731_s14 + $0xf0] sm:$0xff] }
 0x5c4   : > { %v1462_v43 = vsel %vm1129_vm2, %v1461_v42, -inf }
 0x5c5   : > { %1463 = vmax.xlane.f32.xlu0 %v1462_v43  ;;  %v1976_v43 = vld [vmem:[%s4731_s14 + $0xe0] sm:$0xff] }
 0x64e   : > { %v1464_v44 = vpop.xlane.xlu0 %1463 }
 0x64f   : > { %v1465_v45 = vsub.f32 %v1461_v42, %v1464_v44  ;;  %v1977_v42 = vld [vmem:[%s4731_s14 + $0xe8] sm:$0xff]  ;;  %v1870_v44 = vld [vmem:[%s4729_s12 + $0x78] sm:$0xff] }
 0x651   : > { %v1466_v46 = vmul.f32 1.442695, %v1465_v45  ;;  %v1974_v45 = vld [vmem:[%s4731_s14 + $0xd0] sm:$0xff] }
 0x653   : > { %3661 = vpow2.f32 %v1466_v46  ;;  %v1869_v46 = vld [vmem:[%s4729_s12 + $0x70] sm:$0xff] }
 0x660   : > { %v3662_v47 = vpop.eup %3661 }
 0x661   : > { %v1468_v49 = vsel %vm1129_vm2, %v3662_v47, 0.0 }
 0x662   : > { %1469 = vadd.xlane.f32.xlu1 %v1468_v49  ;;  %v1868_v49 = vld [vmem:[%s4729_s12 + $0x68] sm:$0xff] }
 0x673   : > { %1549 = vrot.lane.b32.xlu1 %v4052_v62, %s4747_s0 }
 0x6eb   : > { %v1470_v53 = vpop.xlane.xlu1 %1469 }
 0x6ec   : > { %3663 = vrcp.f32 %v1470_v53  ;;  %v1971_v53 = vld [vmem:[%s4731_s14 + $0xb8] sm:$0xff] }
 0x6ef   : > { %v1550_v57 = vpop.permute.xlu1 %1549 }
 0x6f9   : > { %v3664_v54 = vpop.eup %3663 }
 0x6fa   : > { %v1472_v56 = vmul.f32 %v3664_v54, %v3662_v47  ;;  %v1973_v47 = vld [vmem:[%s4731_s14 + $0xc8] sm:$0xff]  ;;  %v1867_v54 = vld [vmem:[%s4729_s12 + $0x60] sm:$0xff] }
 0x6fc   : > { %3413 = vmatmul.mubr.msk.f32.vlgmr.msra.gmra.mxu1 %vm1129_vm2, %v1472_v56  ;;  %v1970_v56 = vld [vmem:[%s4731_s14 + $0xb0] sm:$0xff] }
 0x6fd   : > { %3416 = vmatpush3.xpose.msk.msra.mxu1 %vm1050_vm1, %v1552_v50  ;;  %3417 = vmatprep.mubr.msk.f32.mxu1 %vm3700_vm0, %v3699_v3  ;;  %v1972_v50 = vld [vmem:[%s4731_s14 + $0xc0] sm:$0xff] }
 0x6fe   : > { %3420 = vmatprep.subr.mxu1 %v3699_v3 }
 0x700   : > { %3418 = vmatmul.mubr.msk.f32.vlgmr.msra.gmra.mxu1 %vm1050_vm1, %v1550_v57  ;;  %v1969_v57 = vld [vmem:[%s4731_s14 + $0xa8] sm:$0xff] }
 0x701   : > { %3422 = vmatprep.mubr.msk.f32.mxu1 %vm3700_vm0, %v3699_v3 }
 0x7bc   : > { %v1545_v58 = vpop.f32.mrf.mxu1 }
 0x7be   : > { %v3414_v59 = vpop.f32.mrf.mxu1 }
 0x7bf   : > { %v1967_v59 = vld [vmem:[%s4731_s14 + $0x98] sm:$0xff] }
 0x7c0   : > { %v1623_v60 = vpop.f32.mrf.mxu1 }
 0x7c1   : > { %v1627_v61 = vmul.f32 0.17677669, %v1623_v60 }
 0x7c2   : > { %v3419_v62 = vpop.f32.mrf.mxu1 }
 0x7c3   : > { %v1628_v63 = vadd.f32 %v1627_v61, %v4073_v2 }
 0x7c5   : > { %v1629_v1 = vsel %vm1129_vm2, %v1628_v63, -inf }
 0x7c6   : > { %1630 = vmax.xlane.f32.xlu0 %v1629_v1  ;;  %v1966_v1 = vld [vmem:[%s4731_s14 + $0x90] sm:$0xff] }
 0x7dc   : > { %1640 = vrot.lane.b32.xlu0 %v4059_v0, %s4747_s0 }
 0x7e0   : > { %1717 = vrot.lane.b32.xlu0 %v1378_v37, %s4747_s0  ;;  %s4779_s0 = smov 32  }
 0x7e4   : > { %1721 = vrot.lane.b32.xlu0 %v1545_v58, %s4749_s29  ;;  %v1968_v58 = vld [vmem:[%s4731_s14 + $0xa0] sm:$0xff] }
 0x84f   : > { %v1631_v4 = vpop.xlane.xlu0 %1630 }
 0x850   : > { %v1632_v5 = vsub.f32 %v1628_v63, %v1631_v4  ;;  %v1866_v4 = vld [vmem:[%s4729_s12 + $0x58] sm:$0xff] }
 0x852   : > { %v1633_v6 = vmul.f32 1.442695, %v1632_v5  ;;  %v1965_v5 = vld [vmem:[%s4731_s14 + $0x88] sm:$0xff] }
 0x853   : > { %v1641_v7 = vpop.permute.xlu0 %1640 }
 0x854   : > { %3665 = vpow2.f32 %v1633_v6  ;;  %3421 = vmatpush3.msra.mxu1 %v1641_v7  ;;  %v1964_v6 = vld [vmem:[%s4731_s14 + $0x80] sm:$0xff]  ;;  %v1865_v7 = vld [vmem:[%s4729_s12 + $0x50] sm:$0xff] }
 0x855   : > { %3460 = vmatprep.subr.mxu1 %v3699_v3 }
 0x857   : > { %v1718_v30 = vpop.permute.xlu0 %1717 }
 0x858   : > { %v1728_v32 = vsel %vm1050_vm1, %v4086_v18, %v1718_v30  ;;  %v1979_v18 = vld [vmem:[%s4731_s14 + $0xf8] sm:$0xff]  ;;  %v1857_v30 = vld [vmem:[%s4729_s12 + $0x10] sm:$0xff] }
 0x859   : > { %1992 = vmatprep.subr.mxu0 %v1979_v18 }
 0x85b   : > { %v1722_v31 = vpop.permute.xlu0 %1721 }
 0x85c   : > { %v1730_v33 = vsel %vm1729_vm3, %v1728_v32, %v1722_v31  ;;  %v841_v31 = vld [vmem:[%s825_s2] sm:$0xff]  ;;  %v1856_v32 = vld [vmem:[%s4729_s12 + $0x8] sm:$0xff]  ;;  %s4776_s2 = sld [smem:[#allocation5_spill]] }
 0x861   : > { %v3666_v8 = vpop.eup %3665 }
 0x862   : > { %v1635_v2 = vsel %vm1129_vm2, %v3666_v8, 0.0  ;;  %s833_s6 = scalar_lea.vmem %s4776_s2, %s3989_s9 }
 0x863   : > { %1636 = vadd.xlane.f32.xlu1 %v1635_v2  ;;  %v1962_v2 = vld [vmem:[%s4731_s14 + $0x70] sm:$0xff] }
 0x8ec   : > { %v1637_v9 = vpop.xlane.xlu1 %1636 }
 0x8ed   : > { %3667 = vrcp.f32 %v1637_v9  ;;  %v1864_v9 = vld [vmem:[%s4729_s12 + $0x48] sm:$0xff] }
 0x8fa   : > { %v3668_v10 = vpop.eup %3667 }
 0x8fb   : > { %v1639_v0 = vmul.f32 %v3668_v10, %v3666_v8  ;;  %v1963_v8 = vld [vmem:[%s4731_s14 + $0x78] sm:$0xff]  ;;  %v1961_v10 = vld [vmem:[%s4731_s14 + $0x68] sm:$0xff] }
 0x8fd   : > { %3423 = vmatmul.mubr.msk.f32.vlgmr.msra.gmra.mxu1 %vm1129_vm2, %v1639_v0  ;;  %v1960_v0 = vld [vmem:[%s4731_s14 + $0x60] sm:$0xff] }
 0x8fe   : > { %3492 = vmatprep.mubr.msk.f32.mxu1 %vm3700_vm0, %v3699_v3  ;;  %3461 = vmatpush3.msra.mxu1 %v1870_v44 }
 0x8ff   : > { %3462 = vmatprep.subr.mxu1 %v3699_v3 }
 0x900   : > { %3463 = vmatpush3.msra.mxu1 %v1869_v46  ;;  %v3194_v46 = vld [vmem:[%s4730_s13] ss:$0 sm:$0xff] }
 0x901   : > { %3464 = vmatprep.subr.mxu1 %v3699_v3 }
 0x902   : > { %3465 = vmatpush3.msra.mxu1 %v1868_v49 }
 0x903   : > { %3466 = vmatprep.subr.mxu1 %v3699_v3 }
 0x904   : > { %3467 = vmatpush3.msra.mxu1 %v1867_v54 }
 0x905   : > { %3468 = vmatprep.subr.mxu1 %v3699_v3 }
 0x906   : > { %3469 = vmatpush3.msra.mxu1 %v1866_v4 }
 0x907   : > { %3470 = vmatprep.subr.mxu1 %v3699_v3 }
 0x908   : > { %3471 = vmatpush3.msra.mxu1 %v1865_v7 }
 0x909   : > { %3472 = vmatprep.subr.mxu1 %v3699_v3 }
 0x90a   : > { %3473 = vmatpush3.msra.mxu1 %v1864_v9 }
 0x90b   : > { %3474 = vmatprep.subr.mxu1 %v3699_v3 }
 0x90c   : > { %3475 = vmatpush3.msra.mxu1 %v1863_v11 }
 0x90d   : > { %3476 = vmatprep.subr.mxu1 %v3699_v3 }
 0x90e   : > { %3477 = vmatpush3.msra.mxu1 %v1862_v14 }
 0x90f   : > { %3478 = vmatprep.subr.mxu1 %v3699_v3 }
 0x910   : > { %3479 = vmatpush3.msra.mxu1 %v1861_v17 }
 0x911   : > { %3480 = vmatprep.subr.mxu1 %v3699_v3 }
 0x912   : > { %3481 = vmatpush3.msra.mxu1 %v1860_v21 }
 0x913   : > { %3482 = vmatprep.subr.mxu1 %v3699_v3 }
 0x914   : > { %3483 = vmatpush3.msra.mxu1 %v1859_v24 }
 0x915   : > { %3484 = vmatprep.subr.mxu1 %v3699_v3 }
 0x916   : > { %3485 = vmatpush3.msra.mxu1 %v1858_v27 }
 0x917   : > { %3486 = vmatprep.subr.mxu1 %v3699_v3 }
 0x918   : > { %3487 = vmatpush3.msra.mxu1 %v1857_v30 }
 0x919   : > { %3488 = vmatprep.subr.mxu1 %v3699_v3 }
 0x91a   : > { %3489 = vmatpush3.msra.mxu1 %v1856_v32 }
 0x91b   : > { %3490 = vmatprep.subr.mxu1 %v3699_v3 }
 0x9bd   : > { %v1712_v28 = vpop.f32.mrf.mxu1 }
 0x9be   : > { %1725 = vrot.lane.b32.xlu0 %v1712_v28, %s4751_s28  ;;  %v1949_v28 = vld [vmem:[%s4731_s14 + $0x8] sm:$0xff] }
 0x9bf   : > { %v3424_v29 = vpop.f32.mrf.mxu1 }
 0x9c0   : > { %v1948_v29 = vld [vmem:[%s4731_s14] sm:$0xff] }
 0xa30   : > { %v1726_v34 = vpop.permute.xlu0 %1725 }
 0xa31   : > { %v1732_v35 = vsel %vm1731_vm4, %v1730_v33, %v1726_v34  ;;  %v1855_v33 = vld [vmem:[%s4729_s12] sm:$0xff] }
 0xa32   : > { %3458 = vmatmul.mubr.f32.vlgmr.msra.gmra.mxu0 %v1732_v35  ;;  %3491 = vmatpush3.msra.mxu1 %v1855_v33 }
 0xa33   : > { %2056 = vmatprep.mubr.f32.mxu0 %v3699_v3  ;;  %1993 = vmatpush1.msra.mxu0 %v1978_v41 }
 0xa34   : > { %1994 = vmatprep.subr.mxu0 %v1977_v42  ;;  %3495 = vmatprep.subr.mxu1 %v3699_v3  ;;  %v1980_v42 = vld [vmem:[%s4732_s15] sm:$0x3] }
 0xa35   : > { %1995 = vmatpush1.msra.mxu0 %v1976_v43  ;;  %v1985_v43 = vrot.slane %v1980_v42, %v971_v52 }
 0xaf2   : > { %v1822_v37 = vpop.f32.mrf.mxu0 }
 0xaf3   : > { %v1823_v38 = vadd.f32 %v3191_v36, %v1822_v37 }
 0xaf4   : > { %v3459_v39 = vpop.f32.mrf.mxu0 }
 0xaf5   : > { %v1826_v40 = vadd.f32 %v1823_v38, %v4019_v48  ;;  %v1975_v48 = vld [vmem:[%s4731_s14 + $0xd8] sm:$0xff]  ;;  %v3192_v38 = vld [vmem:[%s4775_s1] ss:$0 sm:$0xff]  ;;  %s4777_s1 = smov 96  }
 0xaf6   : > { %1996 = vmatprep.subr.mxu0 %v1975_v48 }
 0xaf7   : > { %1827 = vadd.xlane.f32.xlu1 %v1826_v40  ;;  %1997 = vmatpush1.msra.mxu0 %v1974_v45  ;;  %v1989_v45 = vrot.slane %v1980_v42, %v975_v55  ;;  %v4420_v55 = vld [vmem:[%s833_s6] sm:$0xff] }
 0xaf8   : > { %1998 = vmatprep.subr.mxu0 %v1973_v47 }
 0xaf9   : > { %1999 = vmatpush1.msra.mxu0 %v1972_v50 }
 0xafa   : > { %2000 = vmatprep.subr.mxu0 %v1971_v53 }
 0xafb   : > { %2001 = vmatpush1.msra.mxu0 %v1970_v56 }
 0xafc   : > { %2002 = vmatprep.subr.mxu0 %v1969_v57 }
 0xafd   : > { %2003 = vmatpush1.msra.mxu0 %v1968_v58 }
 0xafe   : > { %2004 = vmatprep.subr.mxu0 %v1967_v59 }
 0xaff   : > { %2005 = vmatpush1.msra.mxu0 %v1966_v1 }
 0xb00   : > { %2006 = vmatprep.subr.mxu0 %v1965_v5 }
 0xb01   : > { %2007 = vmatpush1.msra.mxu0 %v1964_v6 }
 0xb02   : > { %2008 = vmatprep.subr.mxu0 %v1963_v8 }
 0xb03   : > { %2009 = vmatpush1.msra.mxu0 %v1962_v2 }
 0xb04   : > { %2010 = vmatprep.subr.mxu0 %v1961_v10 }
 0xb05   : > { %2011 = vmatpush1.msra.mxu0 %v1960_v0 }
 0xb06   : > { %2012 = vmatprep.subr.mxu0 %v1959_v12 }
 0xb07   : > { %2013 = vmatpush1.msra.mxu0 %v1958_v13 }
 0xb08   : > { %2014 = vmatprep.subr.mxu0 %v1957_v15 }
 0xb09   : > { %2015 = vmatpush1.msra.mxu0 %v1956_v16 }
 0xb0a   : > { %2016 = vmatprep.subr.mxu0 %v1955_v19 }
 0xb0b   : > { %2017 = vmatpush1.msra.mxu0 %v1954_v20 }
 0xb0c   : > { %2018 = vmatprep.subr.mxu0 %v1953_v22 }
 0xb0d   : > { %2019 = vmatpush1.msra.mxu0 %v1952_v23 }
 0xb0e   : > { %2020 = vmatprep.subr.mxu0 %v1951_v25 }
 0xb0f   : > { %2021 = vmatpush1.msra.mxu0 %v1950_v26 }
 0xb10   : > { %2022 = vmatprep.subr.mxu0 %v1949_v28 }
 0xb11   : > { %2023 = vmatpush1.msra.mxu0 %v1948_v29 }
 0xb12   : > { %2057 = vmatmul.mubr.f32.vlgmr.msra.gmra.mxu0 %v841_v31  ;;  %3535 = vmatprep.subr.mxu0 %v3699_v3 }
 0xb13   : > { %3567 = vmatprep.mubr.msk.f32.mxu0 %vm3700_vm0, %v3699_v3 }
 0xb80   : > { %v1828_v60 = vpop.xlane.xlu1 %1827 }
 0xb81   : > { %v1830_v61 = vmul.f32 0.0078125, %v1828_v60 }
 0xb83   : > { %v4263_v62 = vsub.f32 %v1826_v40, %v1830_v61  ;;  %v3193_v40 = vld [vmem:[%s4728_s11] ss:$0 sm:$0xff] }
 0xb85   : > { %v1832_v63 = vmul.f32 %v4263_v62, %v4263_v62 }
 0xb87   : > { %1833 = vadd.xlane.f32.xlu0 %v1832_v63 }
 0xbd2   : > { %v2058_v48 = vpop.f32.mrf.mxu0 }
 0xbd3   : > { %v4396_v44 = vadd.f32 %v2058_v48, %v1985_v43 }
 0xbd4   : > { %v2060_v47 = vpop.f32.mrf.mxu0 }
 0xbd5   : > { %v4408_v52 = vadd.f32 %v2060_v47, %v1989_v45 }
 0xc10   : > { %v1834_v34 = vpop.xlane.xlu0 %1833 }
 0xc11   : > { %v1835_v35 = vmul.f32 0.0078125, %v1834_v34 }
 0xc13   : > { %v1836_v36 = vadd.f32 1e-05, %v1835_v35 }
 0xc15   : > { %3669 = vrsqrt.f32 %v1836_v36 }
 0xc22   : > { %v3670_v37 = vpop.eup %3669 }
 0xc23   : > { %v1838_v39 = vmul.f32 %v3670_v37, %v4263_v62 }
 0xc25   : > { %v1846_v18 = vmul.f32 %v3192_v38, %v1838_v39 }
 0xc27   : > { %v4386_v41 = vadd.f32 %v3193_v40, %v1846_v18 }
 0xc29   : > { %3493 = vmatmul.mubr.f32.vlgmr.msra.gmra.mxu1 %v4386_v41 }
 0xc2a   : > { %3497 = vmatprep.mubr.msk.f32.mxu1 %vm3700_vm0, %v3699_v3  ;;  %3496 = vmatpush3.xpose.msk.msra.mxu1 %vm1050_vm1, %v4396_v44 }
 0xc2b   : > { %3500 = vmatprep.subr.mxu1 %v3699_v3 }
 0xce9   : > { %v1944_v49 = vpop.f32.mrf.mxu1 }
 0xcea   : > { %v4406_v50 = vadd.f32 %v3194_v46, %v1944_v49 }
 0xceb   : > { %v3494_v53 = vpop.f32.mrf.mxu1 }
 0xcec   : > { %3498 = vmatmul.mubr.msk.f32.vlgmr.msra.gmra.mxu1 %vm1050_vm1, %v4406_v50 }
 0xced   : > { %3501 = vmatpush3.msra.mxu1 %v4408_v52  ;;  %3502 = vmatprep.mubr.msk.f32.mxu1 %vm3700_vm0, %v3699_v3 }
 0xcee   : > { %3505 = vmatprep.subr.mxu1 %v3699_v3 }
 0xdac   : > { %v2135_v51 = vpop.f32.mrf.mxu1 }
 0xdad   : > { %v2139_v54 = vmul.f32 0.17677669, %v2135_v51 }
 0xdae   : > { %v3499_v56 = vpop.f32.mrf.mxu1 }
 0xdaf   : > { %v2140_v57 = vadd.f32 %v2139_v54, %v4420_v55 }
 0xdb1   : > { %v2141_v58 = vsel %vm1129_vm2, %v2140_v57, -inf }
 0xdb2   : > { %2142 = vmax.xlane.f32.xlu1 %v2141_v58 }
 0xdc3   : > { %2227 = vrot.lane.b32.xlu1 %v4396_v44, %s4777_s1 }
 0xe3b   : > { %v2143_v59 = vpop.xlane.xlu1 %2142 }
 0xe3c   : > { %v2144_v60 = vsub.f32 %v2140_v57, %v2143_v59  ;;  %v2757_v59 = vld [vmem:[%s4733_s16 + $0x78] sm:$0xff] }
 0xe3d   : > { %3536 = vmatpush3.msra.mxu0 %v2757_v59 }
 0xe3e   : > { %v2145_v61 = vmul.f32 1.442695, %v2144_v60  ;;  %v2756_v60 = vld [vmem:[%s4733_s16 + $0x70] sm:$0xff]  ;;  %3537 = vmatprep.subr.mxu0 %v3699_v3 }
 0xe3f   : > { %v2228_v1 = vpop.permute.xlu1 %2227  ;;  %3538 = vmatpush3.msra.mxu0 %v2756_v60 }
 0xe40   : > { %3671 = vpow2.f32 %v2145_v61  ;;  %v2755_v61 = vld [vmem:[%s4733_s16 + $0x68] sm:$0xff]  ;;  %3539 = vmatprep.subr.mxu0 %v3699_v3 }
 0xe41   : > { %3540 = vmatpush3.msra.mxu0 %v2755_v61 }
 0xe42   : > { %3541 = vmatprep.subr.mxu0 %v3699_v3 }
 0xe4d   : > { %v3672_v62 = vpop.eup %3671 }
 0xe4e   : > { %v2147_v63 = vsel %vm1129_vm2, %v3672_v62, 0.0 }
 0xe4f   : > { %2148 = vadd.xlane.f32.xlu1 %v2147_v63  ;;  %v2753_v63 = vld [vmem:[%s4733_s16 + $0x58] sm:$0xff] }
 0xe60   : > { %2225 = vrot.lane.b32.xlu1 %v4406_v50, %s4777_s1 }
 0xed8   : > { %v2149_v4 = vpop.xlane.xlu1 %2148 }
 0xed9   : > { %3673 = vrcp.f32 %v2149_v4  ;;  %v2751_v4 = vld [vmem:[%s4733_s16 + $0x48] sm:$0xff] }
 0xedc   : > { %v2226_v7 = vpop.permute.xlu1 %2225 }
 0xee6   : > { %v3674_v5 = vpop.eup %3673 }
 0xee7   : > { %v2151_v6 = vmul.f32 %v3674_v5, %v3672_v62  ;;  %v2754_v62 = vld [vmem:[%s4733_s16 + $0x60] sm:$0xff] }
 0xee8   : > { %3542 = vmatpush3.msra.mxu0 %v2754_v62  ;;  %v2750_v5 = vld [vmem:[%s4733_s16 + $0x40] sm:$0xff] }
 0xee9   : > { %3503 = vmatmul.mubr.msk.f32.vlgmr.msra.gmra.mxu1 %vm1129_vm2, %v2151_v6  ;;  %3543 = vmatprep.subr.mxu0 %v3699_v3  ;;  %v2749_v6 = vld [vmem:[%s4733_s16 + $0x38] sm:$0xff]  ;;  %v3208_v62 = vld [vmem:[%s4735_s18] ss:$0 sm:$0xff] }
 0xeea   : > { %3506 = vmatpush3.xpose.msk.msra.mxu1 %vm1050_vm1, %v2228_v1  ;;  %3507 = vmatprep.mubr.msk.f32.mxu1 %vm3700_vm0, %v3699_v3  ;;  %v2752_v1 = vld [vmem:[%s4733_s16 + $0x50] sm:$0xff] }
 0xeeb   : > { %3510 = vmatprep.subr.mxu1 %v3699_v3  ;;  %3544 = vmatpush3.msra.mxu0 %v2753_v63 }
 0xeec   : > { %3545 = vmatprep.subr.mxu0 %v3699_v3 }
 0xeed   : > { %3508 = vmatmul.mubr.msk.f32.vlgmr.msra.gmra.mxu1 %vm1050_vm1, %v2226_v7  ;;  %3546 = vmatpush3.msra.mxu0 %v2752_v1  ;;  %v2748_v7 = vld [vmem:[%s4733_s16 + $0x30] sm:$0xff]  ;;  %v3209_v1 = vld [vmem:[%s4736_s19] ss:$0 sm:$0xff] }
 0xeee   : > { %3512 = vmatprep.mubr.msk.f32.mxu1 %vm3700_vm0, %v3699_v3  ;;  %3547 = vmatprep.subr.mxu0 %v3699_v3 }
 0xeef   : > { %3548 = vmatpush3.msra.mxu0 %v2751_v4 }
 0xef0   : > { %3549 = vmatprep.subr.mxu0 %v3699_v3 }
 0xef1   : > { %3550 = vmatpush3.msra.mxu0 %v2750_v5 }
 0xef2   : > { %3551 = vmatprep.subr.mxu0 %v3699_v3 }
 0xef3   : > { %3552 = vmatpush3.msra.mxu0 %v2749_v6  ;;  %v2959_v6 = vld [vmem:[%s4739_s22 + $0x10] sm:$0xff] }
 0xef4   : > { %3553 = vmatprep.subr.mxu0 %v3699_v3 }
 0xef5   : > { %3554 = vmatpush3.msra.mxu0 %v2748_v7  ;;  %v2958_v7 = vld [vmem:[%s4739_s22 + $0x8] sm:$0xff] }
 0xef6   : > { %3555 = vmatprep.subr.mxu0 %v3699_v3 }
 0xfa9   : > { %v4437_v8 = vpop.f32.mrf.mxu1 }
 0xfab   : > { %v3504_v2 = vpop.f32.mrf.mxu1 }
 0xfac   : > { %v2747_v2 = vld [vmem:[%s4733_s16 + $0x28] sm:$0xff] }
 0xfad   : > { %v2299_v9 = vpop.f32.mrf.mxu1  ;;  %3556 = vmatpush3.msra.mxu0 %v2747_v2  ;;  %v2957_v2 = vld [vmem:[%s4739_s22] sm:$0xff] }
 0xfae   : > { %v2303_v10 = vmul.f32 0.17677669, %v2299_v9  ;;  %v2746_v9 = vld [vmem:[%s4733_s16 + $0x20] sm:$0xff]  ;;  %3557 = vmatprep.subr.mxu0 %v3699_v3 }
 0xfaf   : > { %v3509_v0 = vpop.f32.mrf.mxu1  ;;  %3558 = vmatpush3.msra.mxu0 %v2746_v9  ;;  %v3210_v9 = vld [vmem:[%s4738_s21] ss:$0 sm:$0xff] }
 0xfb0   : > { %v2304_v11 = vadd.f32 %v2303_v10, %v4420_v55  ;;  %v2745_v10 = vld [vmem:[%s4733_s16 + $0x18] sm:$0xff]  ;;  %3559 = vmatprep.subr.mxu0 %v3699_v3  ;;  %v2744_v0 = vld [vmem:[%s4733_s16 + $0x10] sm:$0xff] }
 0xfb1   : > { %3560 = vmatpush3.msra.mxu0 %v2745_v10 }
 0xfb2   : > { %v2305_v12 = vsel %vm1129_vm2, %v2304_v11, -inf  ;;  %3561 = vmatprep.subr.mxu0 %v3699_v3 }
 0xfb3   : > { %2306 = vmax.xlane.f32.xlu0 %v2305_v12  ;;  %3562 = vmatpush3.msra.mxu0 %v2744_v0  ;;  %v2742_v12 = vld [vmem:[%s4733_s16] sm:$0xff] }
 0xfb4   : > { %3563 = vmatprep.subr.mxu0 %v3699_v3 }
 0xfc9   : > { %2317 = vrot.lane.b32.xlu0 %v4408_v52, %s4777_s1 }
 0xfcd   : > { %2395 = vrot.lane.b32.xlu0 %v4396_v44, %s4778_s3 }
 0xfd1   : > { %2393 = vrot.lane.b32.xlu0 %v4406_v50, %s4778_s3 }
0x103c   : > { %v2307_v13 = vpop.xlane.xlu0 %2306 }
0x103d   : > { %v2308_v14 = vsub.f32 %v2304_v11, %v2307_v13  ;;  %v2743_v11 = vld [vmem:[%s4733_s16 + $0x8] sm:$0xff] }
0x103e   : > { %3564 = vmatpush3.msra.mxu0 %v2743_v11 }
0x103f   : > { %v2309_v15 = vmul.f32 1.442695, %v2308_v14  ;;  %3565 = vmatprep.subr.mxu0 %v3699_v3 }
0x1040   : > { %v2318_v16 = vpop.permute.xlu0 %2317  ;;  %3566 = vmatpush3.msra.mxu0 %v2742_v12 }
0x1041   : > { %3675 = vpow2.f32 %v2309_v15  ;;  %3511 = vmatpush3.msra.mxu1 %v2318_v16  ;;  %3605 = vmatprep.subr.mxu0 %v3699_v3 }
0x1042   : > { %3515 = vmatprep.subr.mxu1 %v3699_v3 }
0x1044   : > { %v2396_v22 = vpop.permute.xlu0 %2395 }
0x1048   : > { %v2394_v24 = vpop.permute.xlu0 %2393 }
0x104e   : > { %v3676_v17 = vpop.eup %3675 }
0x104f   : > { %v2311_v19 = vsel %vm1129_vm2, %v3676_v17, 0.0 }
0x1050   : > { %2312 = vadd.xlane.f32.xlu1 %v2311_v19 }
0x1061   : > { %2484 = vrot.lane.b32.xlu1 %v4408_v52, %s4778_s3 }
0x1065   : > { %2562 = vrot.lane.b32.xlu1 %v4396_v44, %s4779_s0 }
0x10d9   : > { %v2313_v20 = vpop.xlane.xlu1 %2312 }
0x10da   : > { %3677 = vrcp.f32 %v2313_v20 }
0x10dd   : > { %v2485_v25 = vpop.permute.xlu1 %2484 }
0x10e1   : > { %v2563_v38 = vpop.permute.xlu1 %2562 }
0x10e7   : > { %v3678_v21 = vpop.eup %3677 }
0x10e8   : > { %v2315_v23 = vmul.f32 %v3678_v21, %v3676_v17 }
0x10ea   : > { %3513 = vmatmul.mubr.msk.f32.vlgmr.msra.gmra.mxu1 %vm1129_vm2, %v2315_v23 }
0x10eb   : > { %3516 = vmatpush3.xpose.msk.msra.mxu1 %vm1050_vm1, %v2396_v22  ;;  %3517 = vmatprep.mubr.msk.f32.mxu1 %vm3700_vm0, %v3699_v3  ;;  %v3207_v22 = vld [vmem:[%s4734_s17] ss:$0 sm:$0xff] }
0x10ec   : > { %3520 = vmatprep.subr.mxu1 %v3699_v3 }
0x10ee   : > { %3518 = vmatmul.mubr.msk.f32.vlgmr.msra.gmra.mxu1 %vm1050_vm1, %v2394_v24 }
0x10ef   : > { %3521 = vmatpush3.msra.mxu1 %v2485_v25  ;;  %3522 = vmatprep.mubr.msk.f32.mxu1 %vm3700_vm0, %v3699_v3 }
0x10f0   : > { %3525 = vmatprep.subr.mxu1 %v3699_v3 }
0x11aa   : > { %v2389_v26 = vpop.f32.mrf.mxu1 }
0x11ac   : > { %v3514_v27 = vpop.f32.mrf.mxu1 }
0x11ad   : > { %v2877_v27 = vld [vmem:[%s4737_s20 + $0x70] sm:$0xff] }
0x11ae   : > { %v2467_v28 = vpop.f32.mrf.mxu1 }
0x11af   : > { %v2471_v29 = vmul.f32 0.17677669, %v2467_v28  ;;  %v2876_v28 = vld [vmem:[%s4737_s20 + $0x68] sm:$0xff] }
0x11b0   : > { %v3519_v30 = vpop.f32.mrf.mxu1 }
0x11b1   : > { %v2472_v31 = vadd.f32 %v2471_v29, %v4420_v55 }
0x11b3   : > { %v2473_v32 = vsel %vm1129_vm2, %v2472_v31, -inf }
0x11b4   : > { %2474 = vmax.xlane.f32.xlu0 %v2473_v32 }
0x123d   : > { %v2475_v33 = vpop.xlane.xlu0 %2474 }
0x123e   : > { %v2476_v34 = vsub.f32 %v2472_v31, %v2475_v33  ;;  %v2874_v33 = vld [vmem:[%s4737_s20 + $0x58] sm:$0xff] }
0x1240   : > { %v2477_v35 = vmul.f32 1.442695, %v2476_v34  ;;  %v2873_v34 = vld [vmem:[%s4737_s20 + $0x50] sm:$0xff] }
0x1242   : > { %3679 = vpow2.f32 %v2477_v35  ;;  %v2872_v35 = vld [vmem:[%s4737_s20 + $0x48] sm:$0xff] }
0x124f   : > { %v3680_v36 = vpop.eup %3679 }
0x1250   : > { %v2479_v37 = vsel %vm1129_vm2, %v3680_v36, 0.0 }
0x1251   : > { %2480 = vadd.xlane.f32.xlu1 %v2479_v37  ;;  %v2870_v37 = vld [vmem:[%s4737_s20 + $0x38] sm:$0xff] }
0x1262   : > { %2560 = vrot.lane.b32.xlu1 %v4406_v50, %s4779_s0 }
0x12da   : > { %v2481_v39 = vpop.xlane.xlu1 %2480 }
0x12db   : > { %3681 = vrcp.f32 %v2481_v39  ;;  %v2868_v39 = vld [vmem:[%s4737_s20 + $0x28] sm:$0xff] }
0x12de   : > { %v2561_v42 = vpop.permute.xlu1 %2560 }
0x12e8   : > { %v3682_v40 = vpop.eup %3681 }
0x12e9   : > { %v2483_v18 = vmul.f32 %v3682_v40, %v3680_v36  ;;  %v2871_v36 = vld [vmem:[%s4737_s20 + $0x40] sm:$0xff] }
0x12ea   : > { %v2867_v40 = vld [vmem:[%s4737_s20 + $0x20] sm:$0xff] }
0x12eb   : > { %3523 = vmatmul.mubr.msk.f32.vlgmr.msra.gmra.mxu1 %vm1129_vm2, %v2483_v18  ;;  %v2866_v18 = vld [vmem:[%s4737_s20 + $0x18] sm:$0xff] }
0x12ec   : > { %3526 = vmatpush3.xpose.msk.msra.mxu1 %vm1050_vm1, %v2563_v38  ;;  %3527 = vmatprep.mubr.msk.f32.mxu1 %vm3700_vm0, %v3699_v3  ;;  %v2869_v38 = vld [vmem:[%s4737_s20 + $0x30] sm:$0xff] }
0x12ed   : > { %3530 = vmatprep.subr.mxu1 %v3699_v3 }
0x12ef   : > { %3528 = vmatmul.mubr.msk.f32.vlgmr.msra.gmra.mxu1 %vm1050_vm1, %v2561_v42  ;;  %v2865_v42 = vld [vmem:[%s4737_s20 + $0x10] sm:$0xff] }
0x12f0   : > { %3532 = vmatprep.mubr.msk.f32.mxu1 %vm3700_vm0, %v3699_v3 }
0x13ab   : > { %v2556_v43 = vpop.f32.mrf.mxu1 }
0x13ad   : > { %v3524_v48 = vpop.f32.mrf.mxu1 }
0x13ae   : > { %v2863_v48 = vld [vmem:[%s4737_s20] sm:$0xff] }
0x13af   : > { %v2634_v44 = vpop.f32.mrf.mxu1 }
0x13b0   : > { %v2638_v45 = vmul.f32 0.17677669, %v2634_v44  ;;  %v2972_v44 = vld [vmem:[%s4739_s22 + $0x78] sm:$0xff] }
0x13b1   : > { %v3529_v46 = vpop.f32.mrf.mxu1 }
0x13b2   : > { %v2639_v47 = vadd.f32 %v2638_v45, %v4420_v55  ;;  %v2971_v45 = vld [vmem:[%s4739_s22 + $0x70] sm:$0xff]  ;;  %v2970_v46 = vld [vmem:[%s4739_s22 + $0x68] sm:$0xff] }
0x13b4   : > { %v2640_v49 = vsel %vm1129_vm2, %v2639_v47, -inf }
0x13b5   : > { %2641 = vmax.xlane.f32.xlu0 %v2640_v49  ;;  %v2968_v49 = vld [vmem:[%s4739_s22 + $0x58] sm:$0xff] }
0x13cb   : > { %2651 = vrot.lane.b32.xlu0 %v4408_v52, %s4779_s0 }
0x13cf   : > { %2728 = vrot.lane.b32.xlu0 %v2389_v26, %s4779_s0 }
0x13d3   : > { %2732 = vrot.lane.b32.xlu0 %v2556_v43, %s4778_s3  ;;  %v2864_v43 = vld [vmem:[%s4737_s20 + $0x8] sm:$0xff] }
0x143e   : > { %v2642_v50 = vpop.xlane.xlu0 %2641 }
0x143f   : > { %v2643_v53 = vsub.f32 %v2639_v47, %v2642_v50  ;;  %v2969_v47 = vld [vmem:[%s4739_s22 + $0x60] sm:$0xff]  ;;  %v2967_v50 = vld [vmem:[%s4739_s22 + $0x50] sm:$0xff] }
0x1441   : > { %v2644_v51 = vmul.f32 1.442695, %v2643_v53  ;;  %v2966_v53 = vld [vmem:[%s4739_s22 + $0x48] sm:$0xff] }
0x1442   : > { %v2652_v54 = vpop.permute.xlu0 %2651 }
0x1443   : > { %3683 = vpow2.f32 %v2644_v51  ;;  %3531 = vmatpush3.msra.mxu1 %v2652_v54  ;;  %v2965_v51 = vld [vmem:[%s4739_s22 + $0x40] sm:$0xff]  ;;  %v2964_v54 = vld [vmem:[%s4739_s22 + $0x38] sm:$0xff] }
0x1444   : > { %3570 = vmatprep.subr.mxu1 %v3699_v3 }
0x1446   : > { %v2729_v15 = vpop.permute.xlu0 %2728 }
0x1447   : > { %v2739_v17 = vsel %vm1050_vm1, %v4437_v8, %v2729_v15  ;;  %v2878_v8 = vld [vmem:[%s4737_s20 + $0x78] sm:$0xff] }
0x144a   : > { %v2733_v16 = vpop.permute.xlu0 %2732 }
0x144b   : > { %v2740_v19 = vsel %vm1729_vm3, %v2739_v17, %v2733_v16 }
0x1450   : > { %v3684_v56 = vpop.eup %3683 }
0x1451   : > { %v2646_v55 = vsel %vm1129_vm2, %v3684_v56, 0.0 }
0x1452   : > { %2647 = vadd.xlane.f32.xlu1 %v2646_v55  ;;  %v2962_v55 = vld [vmem:[%s4739_s22 + $0x28] sm:$0xff] }
0x14db   : > { %v2648_v57 = vpop.xlane.xlu1 %2647 }
0x14dc   : > { %3685 = vrcp.f32 %v2648_v57  ;;  %v2961_v57 = vld [vmem:[%s4739_s22 + $0x20] sm:$0xff] }
0x14e9   : > { %v3686_v58 = vpop.eup %3685 }
0x14ea   : > { %v2650_v52 = vmul.f32 %v3686_v58, %v3684_v56  ;;  %v2963_v56 = vld [vmem:[%s4739_s22 + $0x30] sm:$0xff]  ;;  %v2960_v58 = vld [vmem:[%s4739_s22 + $0x18] sm:$0xff] }
0x14ec   : > { %3533 = vmatmul.mubr.msk.f32.vlgmr.msra.gmra.mxu1 %vm1129_vm2, %v2650_v52 }
0x14ed   : > { %3602 = vmatprep.mubr.msk.f32.mxu1 %vm3700_vm0, %v3699_v3  ;;  %3571 = vmatpush3.msra.mxu1 %v2878_v8 }
0x14ee   : > { %3572 = vmatprep.subr.mxu1 %v3699_v3 }
0x14ef   : > { %3573 = vmatpush3.msra.mxu1 %v2877_v27  ;;  %v3213_v27 = vld [vmem:[%s4742_s25] ss:$0 sm:$0xff] }
0x14f0   : > { %3574 = vmatprep.subr.mxu1 %v3699_v3 }
0x14f1   : > { %3575 = vmatpush3.msra.mxu1 %v2876_v28 }
0x14f2   : > { %3576 = vmatprep.subr.mxu1 %v3699_v3 }
0x15ac   : > { %v2723_v13 = vpop.f32.mrf.mxu1 }
0x15ad   : > { %2736 = vrot.lane.b32.xlu0 %v2723_v13, %s4777_s1  ;;  %v3211_v13 = vld [vmem:[%s4740_s23] ss:$0 sm:$0xff] }
0x15ae   : > { %v3534_v14 = vpop.f32.mrf.mxu1 }
0x161f   : > { %v2737_v20 = vpop.permute.xlu0 %2736 }
0x1620   : > { %v2741_v21 = vsel %vm1731_vm4, %v2740_v19, %v2737_v20 }
0x1621   : > { %3568 = vmatmul.mubr.f32.vlgmr.msra.gmra.mxu0 %v2741_v21 }
0x1622   : > { %3637 = vmatprep.mubr.msk.f32.mxu0 %vm3700_vm0, %v3699_v3  ;;  %3606 = vmatpush3.msra.mxu0 %v2972_v44 }
0x1623   : > { %3607 = vmatprep.subr.mxu0 %v3699_v3 }
0x1624   : > { %3608 = vmatpush3.msra.mxu0 %v2971_v45 }
0x1625   : > { %3609 = vmatprep.subr.mxu0 %v3699_v3 }
0x1626   : > { %3610 = vmatpush3.msra.mxu0 %v2970_v46 }
0x1627   : > { %3611 = vmatprep.subr.mxu0 %v3699_v3 }
0x1628   : > { %3612 = vmatpush3.msra.mxu0 %v2969_v47 }
0x1629   : > { %3613 = vmatprep.subr.mxu0 %v3699_v3 }
0x162a   : > { %3614 = vmatpush3.msra.mxu0 %v2968_v49 }
0x162b   : > { %3615 = vmatprep.subr.mxu0 %v3699_v3 }
0x162c   : > { %3616 = vmatpush3.msra.mxu0 %v2967_v50 }
0x162d   : > { %3617 = vmatprep.subr.mxu0 %v3699_v3 }
0x162e   : > { %3618 = vmatpush3.msra.mxu0 %v2966_v53 }
0x162f   : > { %3619 = vmatprep.subr.mxu0 %v3699_v3 }
0x1630   : > { %3620 = vmatpush3.msra.mxu0 %v2965_v51 }
0x1631   : > { %3621 = vmatprep.subr.mxu0 %v3699_v3 }
0x1632   : > { %3622 = vmatpush3.msra.mxu0 %v2964_v54 }
0x1633   : > { %3623 = vmatprep.subr.mxu0 %v3699_v3 }
0x1634   : > { %3624 = vmatpush3.msra.mxu0 %v2963_v56 }
0x1635   : > { %3625 = vmatprep.subr.mxu0 %v3699_v3 }
0x1636   : > { %3626 = vmatpush3.msra.mxu0 %v2962_v55 }
0x1637   : > { %3627 = vmatprep.subr.mxu0 %v3699_v3 }
0x1638   : > { %3628 = vmatpush3.msra.mxu0 %v2961_v57 }
0x1639   : > { %3629 = vmatprep.subr.mxu0 %v3699_v3 }
0x163a   : > { %3630 = vmatpush3.msra.mxu0 %v2960_v58 }
0x163b   : > { %3631 = vmatprep.subr.mxu0 %v3699_v3 }
0x163c   : > { %3632 = vmatpush3.msra.mxu0 %v2959_v6 }
0x163d   : > { %3633 = vmatprep.subr.mxu0 %v3699_v3 }
0x163e   : > { %3634 = vmatpush3.msra.mxu0 %v2958_v7 }
0x163f   : > { %3635 = vmatprep.subr.mxu0 %v3699_v3 }
0x1640   : > { %3636 = vmatpush3.msra.mxu0 %v2957_v2 }
0x16e1   : > { %v2831_v23 = vpop.f32.mrf.mxu0 }
0x16e2   : > { %v2832_v24 = vadd.f32 %v3207_v22, %v2831_v23 }
0x16e3   : > { %v3569_v25 = vpop.f32.mrf.mxu0 }
0x16e4   : > { %v2835_v26 = vadd.f32 %v2832_v24, %v4386_v41  ;;  %v2875_v41 = vld [vmem:[%s4737_s20 + $0x60] sm:$0xff] }
0x16e5   : > { %3577 = vmatpush3.msra.mxu1 %v2875_v41 }
0x16e6   : > { %2836 = vadd.xlane.f32.xlu1 %v2835_v26  ;;  %3578 = vmatprep.subr.mxu1 %v3699_v3 }
0x16e7   : > { %3579 = vmatpush3.msra.mxu1 %v2874_v33 }
0x16e8   : > { %3580 = vmatprep.subr.mxu1 %v3699_v3 }
0x16e9   : > { %3581 = vmatpush3.msra.mxu1 %v2873_v34 }
0x16ea   : > { %3582 = vmatprep.subr.mxu1 %v3699_v3 }
0x16eb   : > { %3583 = vmatpush3.msra.mxu1 %v2872_v35 }
0x16ec   : > { %3584 = vmatprep.subr.mxu1 %v3699_v3 }
0x16ed   : > { %3585 = vmatpush3.msra.mxu1 %v2871_v36 }
0x16ee   : > { %3586 = vmatprep.subr.mxu1 %v3699_v3 }
0x16ef   : > { %3587 = vmatpush3.msra.mxu1 %v2870_v37 }
0x16f0   : > { %3588 = vmatprep.subr.mxu1 %v3699_v3 }
0x16f1   : > { %3589 = vmatpush3.msra.mxu1 %v2869_v38 }
0x16f2   : > { %3590 = vmatprep.subr.mxu1 %v3699_v3 }
0x16f3   : > { %3591 = vmatpush3.msra.mxu1 %v2868_v39 }
0x16f4   : > { %3592 = vmatprep.subr.mxu1 %v3699_v3 }
0x16f5   : > { %3593 = vmatpush3.msra.mxu1 %v2867_v40 }
0x16f6   : > { %3594 = vmatprep.subr.mxu1 %v3699_v3 }
0x16f7   : > { %3595 = vmatpush3.msra.mxu1 %v2866_v18 }
0x16f8   : > { %3596 = vmatprep.subr.mxu1 %v3699_v3 }
0x16f9   : > { %3597 = vmatpush3.msra.mxu1 %v2865_v42 }
0x16fa   : > { %3598 = vmatprep.subr.mxu1 %v3699_v3 }
0x16fb   : > { %3599 = vmatpush3.msra.mxu1 %v2864_v43 }
0x16fc   : > { %3600 = vmatprep.subr.mxu1 %v3699_v3 }
0x16fd   : > { %3601 = vmatpush3.msra.mxu1 %v2863_v48 }
0x176f   : > { %v2837_v29 = vpop.xlane.xlu1 %2836 }
0x1770   : > { %v2838_v30 = vmul.f32 0.0078125, %v2837_v29 }
0x1772   : > { %v4577_v31 = vsub.f32 %v2835_v26, %v2838_v30  ;;  %v3212_v26 = vld [vmem:[%s4741_s24] ss:$0 sm:$0xff] }
0x1774   : > { %v2840_v32 = vmul.f32 %v4577_v31, %v4577_v31 }
0x1776   : > { %2841 = vadd.xlane.f32.xlu0 %v2840_v32 }
0x17ff   : > { %v2842_v52 = vpop.xlane.xlu0 %2841 }
0x1800   : > { %v2843_v59 = vmul.f32 0.0078125, %v2842_v52 }
0x1802   : > { %v2844_v60 = vadd.f32 1e-05, %v2843_v59 }
0x1804   : > { %3687 = vrsqrt.f32 %v2844_v60 }
0x1811   : > { %v3688_v61 = vpop.eup %3687 }
0x1812   : > { %v2846_v63 = vmul.f32 %v3688_v61, %v4577_v31 }
0x1814   : > { %v2854_v4 = vmul.f32 %v3208_v62, %v2846_v63 }
0x1816   : > { %v2862_v5 = vadd.f32 %v3209_v1, %v2854_v4 }
0x1818   : > { %3603 = vmatmul.mubr.f32.vlgmr.msra.gmra.mxu1 %v2862_v5 }
0x18d8   : > { %v2952_v10 = vpop.f32.mrf.mxu1 }
0x18d9   : > { %v2953_v0 = vadd.f32 %v3210_v9, %v2952_v10 }
0x18da   : > { %v3604_v11 = vpop.f32.mrf.mxu1 }
0x18db   : > { %v2956_v12 = vmax.f32 %v2953_v0, 0.0 }
0x18dd   : > { %3638 = vmatmul.mubr.f32.vlgmr.msra.gmra.mxu0 %v2956_v12 }
0x199d   : > { %v3046_v14 = vpop.f32.mrf.mxu0 }
0x199e   : > { %v3047_v15 = vadd.f32 %v3211_v13, %v3046_v14 }
0x199f   : > { %v3639_v16 = vpop.f32.mrf.mxu0 }
0x19a0   : > { %v3050_v17 = vadd.f32 %v3047_v15, %v2862_v5 }
0x19a2   : > { %3051 = vadd.xlane.f32.xlu1 %v3050_v17 }
0x1a2b   : > { %v3052_v3 = vpop.xlane.xlu1 %3051 }
0x1a2c   : > { %v3053_v19 = vmul.f32 0.0078125, %v3052_v3 }
0x1a2e   : > { %v3054_v20 = vsub.f32 %v3050_v17, %v3053_v19 }
0x1a30   : > { %v3055_v21 = vmul.f32 %v3054_v20, %v3054_v20 }
0x1a32   : > { %3056 = vadd.xlane.f32.xlu1 %v3055_v21 }
0x1abb   : > { %v3057_v22 = vpop.xlane.xlu1 %3056 }
0x1abc   : > { %v3058_v23 = vmul.f32 0.0078125, %v3057_v22 }
0x1abe   : > { %v3059_v24 = vadd.f32 1e-05, %v3058_v23 }
0x1ac0   : > { %3689 = vrsqrt.f32 %v3059_v24 }
0x1acd   : > { %v3690_v25 = vpop.eup %3689 }
0x1ace   : > { %v3061_v8 = vmul.f32 %v3690_v25, %v3054_v20 }
0x1ad0   : > { %v3069_v28 = vmul.f32 %v3212_v26, %v3061_v8 }
0x1ad2   : > { %v3077_v41 = vadd.f32 %v3213_v27, %v3069_v28 }
0x1ad4   : > { %3078 = vst [vmem:[%s837_s30] sm:$0xff] %v3077_v41 }
0x1ad5 PF: > { %s36_s27 = sadd.s32 1, %s3697_s27  }
0x1ad6   : > { %p33_p4 = scmp.ge.s32.totalorder %s36_s27, 4  }
0x1ad8   :  { %35 = sbr.rel (!%p33_p4) target bundleno = 12 (0xc), region = 163 }

// kernel: forward.10
= control target key start
LH: loop header
LB: loop body
LE: loop exit
PB: predicated region body
PF: predicated region fallthrough
CT: control target
= control target key end

     0   :  { %s5111_s0 = inlined_call_operand.vmem [shape: f32[2,8,128], index: 0, kind: input, shape index: {}]   ;;  %s5112_s1 = inlined_call_operand.vmem [shape: f32[2,8,128], index: 1, kind: input, shape index: {}]   ;;  %s5113_s2 = inlined_call_operand.vmem [shape: f32[2,8,8], index: 2, kind: input, shape index: {}]   ;;  %s5114_s3 = inlined_call_operand.vmem [shape: f32[2,8,8], index: 3, kind: input, shape index: {}]   ;;  %s5115_s4 = inlined_call_operand.vmem [shape: f32[128,128], index: 4, kind: input, shape index: {}]   ;;  %s5116_s5 = inlined_call_operand.vmem [shape: f32[1,128], index: 5, kind: input, shape index: {}]   ;;  %s5117_s6 = inlined_call_operand.vmem [shape: f32[128,256], index: 6, kind: input, shape index: {}]   ;;  %s5118_s7 = inlined_call_operand.vmem [shape: f32[1,256], index: 7, kind: input, shape index: {}]   ;;  %s5119_s8 = inlined_call_operand.vmem [shape: f32[128,128], index: 8, kind: input, shape index: {}]   ;;  %s5120_s9 = inlined_call_operand.vmem [shape: f32[1,128], index: 9, kind: input, shape index: {}]   ;;  %s5121_s10 = inlined_call_operand.vmem [shape: f32[1,128], index: 10, kind: input, shape index: {}]   ;;  %s5122_s11 = inlined_call_operand.vmem [shape: f32[1,128], index: 11, kind: input, shape index: {}]   ;;  %s5123_s12 = inlined_call_operand.vmem [shape: f32[128,128], index: 12, kind: input, shape index: {}]   ;;  %s5124_s13 = inlined_call_operand.vmem [shape: f32[1,128], index: 13, kind: input, shape index: {}]   ;;  %s5125_s14 = inlined_call_operand.vmem [shape: f32[128,256], index: 14, kind: input, shape index: {}]   ;;  %s5126_s15 = inlined_call_operand.vmem [shape: f32[1,256], index: 15, kind: input, shape index: {}]   ;;  %s5127_s16 = inlined_call_operand.vmem [shape: f32[128,128], index: 16, kind: input, shape index: {}]   ;;  %s5128_s17 = inlined_call_operand.vmem [shape: f32[1,128], index: 17, kind: input, shape index: {}]   ;;  %s5129_s18 = inlined_call_operand.vmem [shape: f32[1,128], index: 18, kind: input, shape index: {}]   ;;  %s5130_s19 = inlined_call_operand.hbm [shape: f32[1,128], index: 19, kind: input, shape index: {}]   ;;  %s5131_s20 = inlined_call_operand.vmem [shape: f32[128,128], index: 20, kind: input, shape index: {}]   ;;  %s5132_s21 = inlined_call_operand.hbm [shape: f32[1,128], index: 21, kind: input, shape index: {}]   ;;  %s5133_s22 = inlined_call_operand.vmem [shape: f32[128,128], index: 22, kind: input, shape index: {}]   ;;  %s5134_s23 = inlined_call_operand.hbm [shape: f32[1,128], index: 23, kind: input, shape index: {}]   ;;  %s5135_s24 = inlined_call_operand.hbm [shape: f32[1,128], index: 24, kind: input, shape index: {}]   ;;  %s5136_s25 = inlined_call_operand.hbm [shape: f32[1,128], index: 25, kind: input, shape index: {}]   ;;  %s5137_s26 = inlined_call_operand.vmem [shape: f32[2,8,128], index: 26, kind: output, shape index: {}]  }
   0x1   :  { %5148 = sst [smem:[#allocation13_spill]] %s5111_s0 }
   0x2   :  { %5149 = sst [smem:[#allocation14_spill]] %s5112_s1 }
   0x3   :  { %5150 = sst [smem:[#allocation15_spill]] %s5113_s2 }
   0x4   :  { %5151 = sst [smem:[#allocation16_spill]] %s5114_s3 }
   0x5   :  { %5152 = sst [smem:[#allocation17_spill]] %s5115_s4 }
   0x6   :  { %5153 = sst [smem:[#allocation18_spill]] %s5116_s5 }
   0x7   :  { %5154 = sst [smem:[#allocation19_spill]] %s5117_s6 }
   0x8   :  { %5155 = sst [smem:[#allocation20_spill]] %s5118_s7 }
   0x9   :  { %5156 = sst [smem:[#allocation21_spill]] %s5119_s8 }
   0xa   :  { %5157 = sst [smem:[#allocation22_spill]] %s5120_s9 }
   0xb   :  { %5158 = sst [smem:[#allocation23_spill]] %s5121_s10 }
   0xc   :  { %31 = vsyncpa [#allocation3], 0 }
   0xd   :  { %32 = vsyncpa [#allocation5], 0 }
   0xe   :  { %33 = vsyncpa [#allocation8], 0  ;;  %s4160_s27 = smov 0  }
   0xf LB: > { %s4015_s3 = smov [#allocation4]   ;;  %s4166_s28 = sadd.s32 4294967295, %s4013_s27   ;;  %s4013_s27 = sphi %s4160_s27, %s39_s27  }
  0x10   : > { %s708_s7 = sshll.u32 %s4015_s3, 4  ;;  %p3283_p0 = scmp.ge.s32.totalorder %s4013_s27, 1  ;;  %s709_s7 = int_to_ptr.vmem [resolvable:$true] %s708_s7 }
  0x11   : > { %p636_p1 = scmp.lt.s32.totalorder %s4013_s27, 3  ;;  %p3799_p2 = scmp.eq.s32.totalorder %s4166_s28, 0 }
  0x12   : > { %s4016_s4 = smov [#allocation7]   ;;  %s4017_s0 = smov [#allocation2]  }
  0x13   : > { %p4171_p3 = pnand %p3283_p0, %p636_p1  ;;  %s733_s29 = sshll.u32 %s4016_s4, 4  ;;  %s4177_s29 = int_to_ptr.vmem [resolvable:$true] %s733_s29 }
  0x14   : > { %s694_s9 = sshll.u32 %s4017_s0, 4  ;;  %s4018_s2 = smov [#allocation6]   ;;  %s4185_s9 = int_to_ptr.vmem [resolvable:$true] %s694_s9 }
  0x15   : > { %p3783_p4 = pneg %p4171_p3  ;;  %s722_s5 = sshll.u32 %s4018_s2, 4  ;;  %s4187_s5 = int_to_ptr.vmem [resolvable:$true] %s722_s5 }
  0x16   : > { %s3876_s6 = scalar_lea.vmem %s709_s7, 16  ;;  %s3883_s1 = scalar_lea.vmem %s709_s7, 32 }
  0x17   : > { %p4181_p5 = pnand %p3799_p2, %p3783_p4  ;;  %p3877_p7 = scmp.ne.s32.totalorder %s709_s7, %s3876_s6 }
  0x18   : > { %p3884_p10 = scmp.lt.s32.totalorder %s709_s7, %s709_s7  ;;  %p3885_p11 = scmp.lt.s32.totalorder %s3883_s1, %s3876_s6 }
  0x19   : > { %p4191_p6 = pneg %p4181_p5 }
  0x1a   : > { %p3886_p12 = por %p3885_p11, %p3884_p10 }
  0x1b   : > { %p3879_p8 = pnand %p3877_p7, %p4191_p6 }
  0x1d   : > { %p3880_p9 = pneg %p3879_p8 }
  0x1f   : > { %p3887_p13 = pnand %p3886_p12, %p3880_p9 }
  0x21   : > { %3890 = shalt.err (!%p3887_p13)
}
  0x22   : > { %3789 = dma.hbm_to_vmem [thread:$0]  (!%p4181_p5), %s5132_s21, 16, %s709_s7, [#allocation5]  }
  0x23   : > { %s3902_s0 = scalar_lea.vmem %s4177_s29, 16  ;;  %s3909_s2 = scalar_lea.vmem %s4177_s29, 32 }
  0x24   : > { %p3903_p0 = scmp.ne.s32.totalorder %s4177_s29, %s3902_s0  ;;  %p3910_p7 = scmp.lt.s32.totalorder %s4177_s29, %s4177_s29 }
  0x25   : > { %p3911_p8 = scmp.lt.s32.totalorder %s3909_s2, %s3902_s0 }
  0x26   : > { %p3905_p1 = pnand %p3903_p0, %p4191_p6 }
  0x27   : > { %p3912_p9 = por %p3911_p8, %p3910_p7 }
  0x28   : > { %p3906_p4 = pneg %p3905_p1 }
  0x2a   : > { %p3913_p10 = pnand %p3912_p9, %p3906_p4 }
  0x2c   : > { %3916 = shalt.err (!%p3913_p10)
}
  0x2d   : > { %3795 = dma.hbm_to_vmem [thread:$0]  (!%p4181_p5), %s5135_s24, 16, %s4177_s29, [#allocation8]  }
  0x2e   : > { %s3928_s7 = scalar_lea.vmem %s4185_s9, 16  ;;  %s3935_s3 = scalar_lea.vmem %s4185_s9, 32 }
  0x2f   : > { %p3929_p11 = scmp.ne.s32.totalorder %s4185_s9, %s3928_s7  ;;  %p3936_p0 = scmp.lt.s32.totalorder %s4185_s9, %s4185_s9 }
  0x30   : > { %p3937_p1 = scmp.lt.s32.totalorder %s3935_s3, %s3928_s7 }
  0x31   : > { %p3931_p12 = pnand %p3929_p11, %p4191_p6 }
  0x32   : > { %p3938_p4 = por %p3937_p1, %p3936_p0 }
  0x33   : > { %p3932_p13 = pneg %p3931_p12 }
  0x35   : > { %p3939_p7 = pnand %p3938_p4, %p3932_p13 }
  0x37   : > { %3942 = shalt.err (!%p3939_p7)
}
  0x38   : > { %3786 = dma.hbm_to_vmem [thread:$0]  (!%p4181_p5), %s5130_s19, 16, %s4185_s9, [#allocation3]  }
  0x39   : > { %s3954_s29 = scalar_lea.vmem %s4187_s5, 16  ;;  %s3961_s2 = scalar_lea.vmem %s4187_s5, 32 }
  0x3a   : > { %p3955_p8 = scmp.ne.s32.totalorder %s4187_s5, %s3954_s29  ;;  %p3962_p11 = scmp.lt.s32.totalorder %s4187_s5, %s4187_s5 }
  0x3b   : > { %p3963_p12 = scmp.lt.s32.totalorder %s3961_s2, %s3954_s29 }
  0x3c   : > { %p3957_p9 = pnand %p3955_p8, %p4191_p6 }
  0x3d   : > { %p3964_p13 = por %p3963_p12, %p3962_p11 }
  0x3e   : > { %p3958_p10 = pneg %p3957_p9 }
  0x40   : > { %p3965_p0 = pnand %p3964_p13, %p3958_p10 }
  0x42   : > { %3968 = shalt.err (!%p3965_p0)
}
  0x43   : > { %3792 = dma.hbm_to_vmem [thread:$0]  (!%p4181_p5), %s5134_s23, 16, %s4187_s5, [#allocation5]  }
  0x44   : > { %s4019_s9 = smov [#allocation9]  }
  0x45   : > { %s744_s7 = sshll.u32 %s4019_s9, 4  ;;  %s745_s7 = int_to_ptr.vmem [resolvable:$true] %s744_s7 }
  0x46   : > { %s3980_s3 = scalar_lea.vmem %s745_s7, 16  ;;  %s3987_s4 = scalar_lea.vmem %s745_s7, 32 }
  0x47   : > { %p3981_p1 = scmp.ne.s32.totalorder %s745_s7, %s3980_s3  ;;  %p3988_p8 = scmp.lt.s32.totalorder %s745_s7, %s745_s7 }
  0x48   : > { %p3989_p9 = scmp.lt.s32.totalorder %s3987_s4, %s3980_s3 }
  0x49   : > { %p3983_p4 = pnand %p3981_p1, %p4191_p6 }
  0x4a   : > { %p3990_p10 = por %p3989_p9, %p3988_p8 }
  0x4b   : > { %p3984_p7 = pneg %p3983_p4 }
  0x4d   : > { %p3991_p11 = pnand %p3990_p10, %p3984_p7 }
  0x4f   : > { %3994 = shalt.err (!%p3991_p11)
}
  0x50   : > { %3798 = dma.hbm_to_vmem [thread:$0]  (!%p4181_p5), %s5136_s25, 16, %s745_s7, [#allocation8]  }
  0x51   : > { %785 = sbr.rel (%p4171_p3) target bundleno = 6944 (0x1b20), region = 124 }
  0x56   : > { %4000 = dma.done.wait (%p3799_p2), [#allocation3], 16  }
  0x57   : > { %4002 = vsyncadd (%p3799_p2), [#allocation3], 4294967280 }
  0x58   : > { %4004 = dma.done.wait (%p3799_p2), [#allocation5], 32  }
  0x59   : > { %4006 = vsyncadd (%p3799_p2), [#allocation5], 4294967264 }
  0x5a   : > { %4008 = dma.done.wait (%p3799_p2), [#allocation8], 32  }
  0x5b   : > { %4010 = vsyncadd (%p3799_p2), [#allocation8], 4294967264  ;;  %v4020_v0 = vmov 0.0   ;;  %vm4021_vm0 = vmmov 0   ;;  %s5162_s5 = sld [smem:[#allocation19_spill]]  ;;  %p881_p2 = scmp.lt.s32.totalorder %s4166_s28, 1  ;;  %v1032_v50 = vlaneseq }
  0x5c   : > { %3473 = vmatprep.subr.mxu0 %v4020_v0  ;;  %1106 = vmatprep.mubr.f32.mxu1 %v4020_v0  ;;  %s5163_s3 = sld [smem:[#allocation17_spill]]  ;;  %vm1113_vm1 = vcmask 261120   ;;  %s5145_s4 = smov 96   ;;  %vm1192_vm2 = vcmask 64512   ;;  %vm1792_vm3 = vcmask 523264   ;;  %vm1794_vm4 = vcmask 785408  }
  0x5d   : > { %3505 = vmatprep.mubr.msk.f32.mxu0 %vm4021_vm0, %v4020_v0  ;;  %s5177_s28 = smov (!%p881_p2, %s4166_s28), 1  ;;  %s5164_s1 = sld [smem:[#allocation13_spill]]  ;;  %v4445_v51 = vshrl.u32 %v1032_v50, 7 }
  0x5e   : > { %s4401_s2 = sshll.u32 %s5177_s28, 3  ;;  %s5165_s6 = sld [smem:[#allocation20_spill]] }
  0x5f   : > { %v1034_v52 = vsub.s32 0, %v4445_v51  ;;  %v1038_v55 = vsub.s32 1, %v4445_v51  ;;  %s5166_s7 = sld [smem:[#allocation18_spill]]  ;;  %s5143_s30 = smov 64  }
  0x60   : > { %s5167_s29 = sld [smem:[#allocation15_spill]]  ;;  %s5141_s10 = smov 32  }
  0x61   : > { %v1029_v1 = vld [vmem:[%s5162_s5 + $0xf8] sm:$0xff]  ;;  %v1028_v2 = vld [vmem:[%s5162_s5 + $0xf0] sm:$0xff]  ;;  %v1027_v3 = vld [vmem:[%s5162_s5 + $0xe8] sm:$0xff]  ;;  %s5171_s0 = sld [smem:[#allocation23_spill]]  ;;  %s5174_s28 = smov 64  }
  0x62   : > { %1042 = vmatprep.subr.mxu1 %v1029_v1  ;;  %v920_v4 = vld [vmem:[%s5163_s3 + $0x78] sm:$0xff]  ;;  %v1026_v5 = vld [vmem:[%s5162_s5 + $0xe0] sm:$0xff]  ;;  %v919_v7 = vld [vmem:[%s5163_s3 + $0x70] sm:$0xff] }
  0x63   : > { %1043 = vmatpush1.msra.mxu1 %v1028_v2  ;;  %3474 = vmatpush3.msra.mxu0 %v920_v4  ;;  %v1025_v6 = vld [vmem:[%s5162_s5 + $0xd8] sm:$0xff]  ;;  %v1024_v8 = vld [vmem:[%s5162_s5 + $0xd0] sm:$0xff]  ;;  %v918_v9 = vld [vmem:[%s5163_s3 + $0x68] sm:$0xff]  ;;  %s884_s9 = scalar_lea.vmem %s5164_s1, %s4401_s2 }
  0x64   : > { %1044 = vmatprep.subr.mxu1 %v1027_v3  ;;  %3475 = vmatprep.subr.mxu0 %v4020_v0  ;;  %v1023_v10 = vld [vmem:[%s5162_s5 + $0xc8] sm:$0xff]  ;;  %v1022_v11 = vld [vmem:[%s5162_s5 + $0xc0] sm:$0xff]  ;;  %v1021_v13 = vld [vmem:[%s5162_s5 + $0xb8] sm:$0xff] }
  0x65   : > { %1045 = vmatpush1.msra.mxu1 %v1026_v5  ;;  %3476 = vmatpush3.msra.mxu0 %v919_v7  ;;  %v917_v12 = vld [vmem:[%s5163_s3 + $0x60] sm:$0xff]  ;;  %v1020_v14 = vld [vmem:[%s5162_s5 + $0xb0] sm:$0xff]  ;;  %v916_v15 = vld [vmem:[%s5163_s3 + $0x58] sm:$0xff] }
  0x66   : > { %1046 = vmatprep.subr.mxu1 %v1025_v6  ;;  %3477 = vmatprep.subr.mxu0 %v4020_v0  ;;  %v1019_v16 = vld [vmem:[%s5162_s5 + $0xa8] sm:$0xff]  ;;  %v1018_v17 = vld [vmem:[%s5162_s5 + $0xa0] sm:$0xff]  ;;  %v915_v18 = vld [vmem:[%s5163_s3 + $0x50] sm:$0xff]  ;;  %s892_s8 = scalar_lea.vmem %s5167_s29, %s4401_s2 }
  0x67   : > { %1047 = vmatpush1.msra.mxu1 %v1024_v8  ;;  %3478 = vmatpush3.msra.mxu0 %v918_v9  ;;  %v1017_v19 = vld [vmem:[%s5162_s5 + $0x98] sm:$0xff]  ;;  %v1016_v20 = vld [vmem:[%s5162_s5 + $0x90] sm:$0xff]  ;;  %v914_v21 = vld [vmem:[%s5163_s3 + $0x48] sm:$0xff] }
  0x68   : > { %1048 = vmatprep.subr.mxu1 %v1023_v10  ;;  %3479 = vmatprep.subr.mxu0 %v4020_v0  ;;  %v1015_v22 = vld [vmem:[%s5162_s5 + $0x88] sm:$0xff]  ;;  %v1014_v23 = vld [vmem:[%s5162_s5 + $0x80] sm:$0xff]  ;;  %v1013_v25 = vld [vmem:[%s5162_s5 + $0x78] sm:$0xff] }
  0x69   : > { %1049 = vmatpush1.msra.mxu1 %v1022_v11  ;;  %3480 = vmatpush3.msra.mxu0 %v917_v12  ;;  %v913_v24 = vld [vmem:[%s5163_s3 + $0x40] sm:$0xff]  ;;  %v1012_v26 = vld [vmem:[%s5162_s5 + $0x70] sm:$0xff]  ;;  %v912_v27 = vld [vmem:[%s5163_s3 + $0x38] sm:$0xff] }
  0x6a   : > { %1050 = vmatprep.subr.mxu1 %v1021_v13  ;;  %3481 = vmatprep.subr.mxu0 %v4020_v0  ;;  %v1011_v28 = vld [vmem:[%s5162_s5 + $0x68] sm:$0xff]  ;;  %v1010_v29 = vld [vmem:[%s5162_s5 + $0x60] sm:$0xff]  ;;  %v911_v30 = vld [vmem:[%s5163_s3 + $0x30] sm:$0xff] }
  0x6b   : > { %1051 = vmatpush1.msra.mxu1 %v1020_v14  ;;  %3482 = vmatpush3.msra.mxu0 %v916_v15  ;;  %v1009_v31 = vld [vmem:[%s5162_s5 + $0x58] sm:$0xff]  ;;  %v1008_v32 = vld [vmem:[%s5162_s5 + $0x50] sm:$0xff]  ;;  %v910_v33 = vld [vmem:[%s5163_s3 + $0x28] sm:$0xff] }
  0x6c   : > { %1052 = vmatprep.subr.mxu1 %v1019_v16  ;;  %3483 = vmatprep.subr.mxu0 %v4020_v0  ;;  %v1007_v34 = vld [vmem:[%s5162_s5 + $0x48] sm:$0xff]  ;;  %v1006_v35 = vld [vmem:[%s5162_s5 + $0x40] sm:$0xff]  ;;  %v1005_v37 = vld [vmem:[%s5162_s5 + $0x38] sm:$0xff] }
  0x6d   : > { %1053 = vmatpush1.msra.mxu1 %v1018_v17  ;;  %3484 = vmatpush3.msra.mxu0 %v915_v18  ;;  %v909_v36 = vld [vmem:[%s5163_s3 + $0x20] sm:$0xff]  ;;  %v1004_v38 = vld [vmem:[%s5162_s5 + $0x30] sm:$0xff]  ;;  %v908_v39 = vld [vmem:[%s5163_s3 + $0x18] sm:$0xff] }
  0x6e   : > { %1054 = vmatprep.subr.mxu1 %v1017_v19  ;;  %3485 = vmatprep.subr.mxu0 %v4020_v0  ;;  %v1003_v40 = vld [vmem:[%s5162_s5 + $0x28] sm:$0xff]  ;;  %v1002_v41 = vld [vmem:[%s5162_s5 + $0x20] sm:$0xff]  ;;  %v907_v42 = vld [vmem:[%s5163_s3 + $0x10] sm:$0xff] }
  0x6f   : > { %1055 = vmatpush1.msra.mxu1 %v1016_v20  ;;  %3486 = vmatpush3.msra.mxu0 %v914_v21  ;;  %v1001_v43 = vld [vmem:[%s5162_s5 + $0x18] sm:$0xff]  ;;  %v1000_v44 = vld [vmem:[%s5162_s5 + $0x10] sm:$0xff]  ;;  %v906_v45 = vld [vmem:[%s5163_s3 + $0x8] sm:$0xff] }
  0x70   : > { %1056 = vmatprep.subr.mxu1 %v1015_v22  ;;  %3487 = vmatprep.subr.mxu0 %v4020_v0  ;;  %v999_v46 = vld [vmem:[%s5162_s5 + $0x8] sm:$0xff]  ;;  %v998_v47 = vld [vmem:[%s5162_s5] sm:$0xff] }
  0x71   : > { %1057 = vmatpush1.msra.mxu1 %v1014_v23  ;;  %3488 = vmatpush3.msra.mxu0 %v913_v24  ;;  %v905_v48 = vld [vmem:[%s5163_s3] sm:$0xff] }
  0x72   : > { %1058 = vmatprep.subr.mxu1 %v1013_v25  ;;  %3489 = vmatprep.subr.mxu0 %v4020_v0  ;;  %v4434_v49 = vld [vmem:[%s884_s9] sm:$0xff]  ;;  %s5168_s9 = sld [smem:[#allocation21_spill]] }
  0x73   : > { %1059 = vmatpush1.msra.mxu1 %v1012_v26  ;;  %3490 = vmatpush3.msra.mxu0 %v912_v27  ;;  %v1030_v53 = vld [vmem:[%s5165_s6] sm:$0x3]  ;;  %s5170_s6 = sld [smem:[#allocation14_spill]] }
  0x74   : > { %1060 = vmatprep.subr.mxu1 %v1011_v28  ;;  %3491 = vmatprep.subr.mxu0 %v4020_v0  ;;  %v1035_v54 = vrot.slane %v1030_v53, %v1034_v52  ;;  %v3301_v56 = vld [vmem:[%s5166_s7] ss:$0 sm:$0xff]  ;;  %v1039_v60 = vrot.slane %v1030_v53, %v1038_v55  ;;  %s5169_s7 = sld [smem:[#allocation22_spill]] }
  0x75   : > { %1061 = vmatpush1.msra.mxu1 %v1010_v29  ;;  %3492 = vmatpush3.msra.mxu0 %v911_v30  ;;  %v4482_v3 = vld [vmem:[%s892_s8] sm:$0xff] }
  0x76   : > { %1062 = vmatprep.subr.mxu1 %v1009_v31  ;;  %3493 = vmatprep.subr.mxu0 %v4020_v0 }
  0x77   : > { %1063 = vmatpush1.msra.mxu1 %v1008_v32  ;;  %3494 = vmatpush3.msra.mxu0 %v910_v33 }
  0x78   : > { %1064 = vmatprep.subr.mxu1 %v1007_v34  ;;  %3495 = vmatprep.subr.mxu0 %v4020_v0 }
  0x79   : > { %1065 = vmatpush1.msra.mxu1 %v1006_v35  ;;  %3496 = vmatpush3.msra.mxu0 %v909_v36  ;;  %s888_s1 = scalar_lea.vmem %s5170_s6, %s4401_s2 }
  0x7a   : > { %1066 = vmatprep.subr.mxu1 %v1005_v37  ;;  %3497 = vmatprep.subr.mxu0 %v4020_v0 }
  0x7b   : > { %1067 = vmatpush1.msra.mxu1 %v1004_v38  ;;  %3498 = vmatpush3.msra.mxu0 %v908_v39 }
  0x7c   : > { %1068 = vmatprep.subr.mxu1 %v1003_v40  ;;  %3499 = vmatprep.subr.mxu0 %v4020_v0 }
  0x7d   : > { %1069 = vmatpush1.msra.mxu1 %v1002_v41  ;;  %3500 = vmatpush3.msra.mxu0 %v907_v42 }
  0x7e   : > { %1070 = vmatprep.subr.mxu1 %v1001_v43  ;;  %3501 = vmatprep.subr.mxu0 %v4020_v0 }
  0x7f   : > { %1071 = vmatpush1.msra.mxu1 %v1000_v44  ;;  %3502 = vmatpush3.msra.mxu0 %v906_v45 }
  0x80   : > { %1072 = vmatprep.subr.mxu1 %v999_v46  ;;  %3503 = vmatprep.subr.mxu0 %v4020_v0 }
  0x81   : > { %1073 = vmatpush1.msra.mxu1 %v998_v47  ;;  %3504 = vmatpush3.msra.mxu0 %v905_v48 }
  0x82   : > { %1107 = vmatmul.mubr.f32.vlgmr.msra.gmra.mxu1 %v4434_v49  ;;  %3506 = vmatmul.mubr.f32.vlgmr.msra.gmra.mxu0 %v4434_v49 }
  0x83   : > { %3508 = vmatprep.subr.mxu1 %v4020_v0  ;;  %3510 = vmatprep.mubr.msk.f32.mxu1 %vm4021_vm0, %v4020_v0 }
  0x84   : > { %3548 = vmatprep.subr.mxu0 %v4020_v0  ;;  %3580 = vmatprep.mubr.msk.f32.mxu0 %vm4021_vm0, %v4020_v0 }
 0x142   : > { %v1108_v57 = vpop.f32.mrf.mxu1  ;;  %v994_v58 = vpop.f32.mrf.mxu0 }
 0x143   : > { %v4457_v59 = vadd.f32 %v1108_v57, %v1035_v54  ;;  %v4461_v61 = vadd.f32 %v3301_v56, %v994_v58 }
 0x144   : > { %v1110_v62 = vpop.f32.mrf.mxu1  ;;  %v3507_v63 = vpop.f32.mrf.mxu0 }
 0x145   : > { %1279 = vrot.lane.b32.xlu1 %v4457_v59, %s5145_s4  ;;  %3509 = vmatpush3.xpose.msk.msra.mxu1 %vm1113_vm1, %v4457_v59  ;;  %v4468_v1 = vadd.f32 %v1110_v62, %v1039_v60 }
 0x146   : > { %3513 = vmatprep.subr.mxu1 %v4020_v0 }
 0x148   : > { %3511 = vmatmul.mubr.msk.f32.vlgmr.msra.gmra.mxu1 %vm1113_vm1, %v4461_v61 }
 0x149   : > { %1277 = vrot.lane.b32.xlu1 %v4461_v61, %s5145_s4  ;;  %3514 = vmatpush3.msra.mxu1 %v4468_v1 }
 0x14a   : > { %3515 = vmatprep.mubr.msk.f32.mxu1 %vm4021_vm0, %v4020_v0  ;;  %3518 = vmatprep.subr.mxu1 %v4020_v0 }
 0x1b7   : > { %v1280_v15 = vpop.permute.xlu1 %1279 }
 0x1bb   : > { %v1278_v17 = vpop.permute.xlu1 %1277 }
 0x208   : > { %v1186_v2 = vpop.f32.mrf.mxu1 }
 0x209   : > { %v1190_v4 = vmul.f32 0.17677669, %v1186_v2 }
 0x20a   : > { %v3512_v5 = vpop.f32.mrf.mxu1 }
 0x20b   : > { %v1191_v6 = vadd.f32 %v1190_v4, %v4482_v3 }
 0x20d   : > { %v1193_v7 = vsel %vm1192_vm2, %v1191_v6, -inf }
 0x20e   : > { %1194 = vmax.xlane.f32.xlu0 %v1193_v7 }
 0x297   : > { %v1195_v8 = vpop.xlane.xlu0 %1194 }
 0x298   : > { %v1196_v9 = vsub.f32 %v1191_v6, %v1195_v8 }
 0x29a   : > { %v1197_v10 = vmul.f32 1.442695, %v1196_v9 }
 0x29c   : > { %3827 = vpow2.f32 %v1197_v10 }
 0x2a9   : > { %v3828_v11 = vpop.eup %3827 }
 0x2aa   : > { %v1199_v12 = vsel %vm1192_vm2, %v3828_v11, 0.0 }
 0x2ab   : > { %1200 = vadd.xlane.f32.xlu0 %v1199_v12  ;;  %v1810_v12 = vld [vmem:[%s5168_s9 + $0x70] sm:$0xff] }
 0x334   : > { %v1201_v13 = vpop.xlane.xlu0 %1200 }
 0x335   : > { %3829 = vrcp.f32 %v1201_v13  ;;  %v1809_v13 = vld [vmem:[%s5168_s9 + $0x68] sm:$0xff] }
 0x342   : > { %v3830_v14 = vpop.eup %3829 }
 0x343   : > { %v1203_v16 = vmul.f32 %v3830_v14, %v3828_v11  ;;  %v1811_v11 = vld [vmem:[%s5168_s9 + $0x78] sm:$0xff]  ;;  %v1808_v14 = vld [vmem:[%s5168_s9 + $0x60] sm:$0xff] }
 0x344   : > { %3549 = vmatpush3.msra.mxu0 %v1811_v11  ;;  %v1926_v11 = vld [vmem:[%s5123_s12 + $0x40] sm:$0xff] }
 0x345   : > { %3516 = vmatmul.mubr.msk.f32.vlgmr.msra.gmra.mxu1 %vm1192_vm2, %v1203_v16  ;;  %3550 = vmatprep.subr.mxu0 %v4020_v0  ;;  %v1806_v16 = vld [vmem:[%s5168_s9 + $0x50] sm:$0xff] }
 0x346   : > { %3519 = vmatpush3.xpose.msk.msra.mxu1 %vm1113_vm1, %v1280_v15  ;;  %3520 = vmatprep.mubr.msk.f32.mxu1 %vm4021_vm0, %v4020_v0  ;;  %v1807_v15 = vld [vmem:[%s5168_s9 + $0x58] sm:$0xff] }
 0x347   : > { %3523 = vmatprep.subr.mxu1 %v4020_v0  ;;  %3551 = vmatpush3.msra.mxu0 %v1810_v12  ;;  %v2022_v12 = vld [vmem:[%s5125_s14 + $0x58] sm:$0xff] }
 0x348   : > { %3552 = vmatprep.subr.mxu0 %v4020_v0 }
 0x349   : > { %3521 = vmatmul.mubr.msk.f32.vlgmr.msra.gmra.mxu1 %vm1113_vm1, %v1278_v17  ;;  %3553 = vmatpush3.msra.mxu0 %v1809_v13  ;;  %v1805_v17 = vld [vmem:[%s5168_s9 + $0x48] sm:$0xff]  ;;  %v2021_v13 = vld [vmem:[%s5125_s14 + $0x50] sm:$0xff] }
 0x34a   : > { %3525 = vmatprep.mubr.msk.f32.mxu1 %vm4021_vm0, %v4020_v0  ;;  %3554 = vmatprep.subr.mxu0 %v4020_v0 }
 0x34b   : > { %3555 = vmatpush3.msra.mxu0 %v1808_v14  ;;  %v1925_v14 = vld [vmem:[%s5123_s12 + $0x38] sm:$0xff] }
 0x34c   : > { %3556 = vmatprep.subr.mxu0 %v4020_v0 }
 0x34d   : > { %3557 = vmatpush3.msra.mxu0 %v1807_v15  ;;  %v2020_v15 = vld [vmem:[%s5125_s14 + $0x48] sm:$0xff] }
 0x34e   : > { %3558 = vmatprep.subr.mxu0 %v4020_v0 }
 0x34f   : > { %3559 = vmatpush3.msra.mxu0 %v1806_v16  ;;  %v2019_v16 = vld [vmem:[%s5125_s14 + $0x40] sm:$0xff] }
 0x350   : > { %3560 = vmatprep.subr.mxu0 %v4020_v0 }
 0x351   : > { %3561 = vmatpush3.msra.mxu0 %v1805_v17  ;;  %v1924_v17 = vld [vmem:[%s5123_s12 + $0x30] sm:$0xff] }
 0x352   : > { %3562 = vmatprep.subr.mxu0 %v4020_v0 }
 0x405   : > { %v4495_v18 = vpop.f32.mrf.mxu1 }
 0x407   : > { %v3517_v19 = vpop.f32.mrf.mxu1 }
 0x408   : > { %v1804_v19 = vld [vmem:[%s5168_s9 + $0x40] sm:$0xff] }
 0x409   : > { %v1351_v20 = vpop.f32.mrf.mxu1  ;;  %3563 = vmatpush3.msra.mxu0 %v1804_v19  ;;  %v2018_v19 = vld [vmem:[%s5125_s14 + $0x38] sm:$0xff] }
 0x40a   : > { %v1355_v21 = vmul.f32 0.17677669, %v1351_v20  ;;  %v1803_v20 = vld [vmem:[%s5168_s9 + $0x38] sm:$0xff]  ;;  %3564 = vmatprep.subr.mxu0 %v4020_v0 }
 0x40b   : > { %v3522_v22 = vpop.f32.mrf.mxu1  ;;  %3565 = vmatpush3.msra.mxu0 %v1803_v20  ;;  %v2017_v20 = vld [vmem:[%s5125_s14 + $0x30] sm:$0xff] }
 0x40c   : > { %v1356_v23 = vadd.f32 %v1355_v21, %v4482_v3  ;;  %v1802_v21 = vld [vmem:[%s5168_s9 + $0x30] sm:$0xff]  ;;  %3566 = vmatprep.subr.mxu0 %v4020_v0  ;;  %v1801_v22 = vld [vmem:[%s5168_s9 + $0x28] sm:$0xff] }
 0x40d   : > { %3567 = vmatpush3.msra.mxu0 %v1802_v21  ;;  %v1923_v21 = vld [vmem:[%s5123_s12 + $0x28] sm:$0xff] }
 0x40e   : > { %v1357_v24 = vsel %vm1192_vm2, %v1356_v23, -inf  ;;  %3568 = vmatprep.subr.mxu0 %v4020_v0 }
 0x40f   : > { %1358 = vmax.xlane.f32.xlu0 %v1357_v24  ;;  %3569 = vmatpush3.msra.mxu0 %v1801_v22  ;;  %v1799_v24 = vld [vmem:[%s5168_s9 + $0x18] sm:$0xff]  ;;  %v2016_v22 = vld [vmem:[%s5125_s14 + $0x28] sm:$0xff] }
 0x410   : > { %3570 = vmatprep.subr.mxu0 %v4020_v0 }
 0x425   : > { %1369 = vrot.lane.b32.xlu0 %v4468_v1, %s5145_s4 }
 0x429   : > { %1447 = vrot.lane.b32.xlu0 %v4457_v59, %s5143_s30 }
 0x42d   : > { %1445 = vrot.lane.b32.xlu0 %v4461_v61, %s5143_s30 }
 0x498   : > { %v1359_v25 = vpop.xlane.xlu0 %1358 }
 0x499   : > { %v1360_v26 = vsub.f32 %v1356_v23, %v1359_v25  ;;  %v1800_v23 = vld [vmem:[%s5168_s9 + $0x20] sm:$0xff]  ;;  %v1798_v25 = vld [vmem:[%s5168_s9 + $0x10] sm:$0xff] }
 0x49a   : > { %3571 = vmatpush3.msra.mxu0 %v1800_v23  ;;  %v2015_v23 = vld [vmem:[%s5125_s14 + $0x20] sm:$0xff] }
 0x49b   : > { %v1361_v27 = vmul.f32 1.442695, %v1360_v26  ;;  %3572 = vmatprep.subr.mxu0 %v4020_v0  ;;  %v1797_v26 = vld [vmem:[%s5168_s9 + $0x8] sm:$0xff] }
 0x49c   : > { %v1370_v28 = vpop.permute.xlu0 %1369  ;;  %3573 = vmatpush3.msra.mxu0 %v1799_v24  ;;  %v1922_v24 = vld [vmem:[%s5123_s12 + $0x20] sm:$0xff] }
 0x49d   : > { %3831 = vpow2.f32 %v1361_v27  ;;  %3524 = vmatpush3.msra.mxu1 %v1370_v28  ;;  %3574 = vmatprep.subr.mxu0 %v4020_v0  ;;  %v1796_v27 = vld [vmem:[%s5168_s9] sm:$0xff] }
 0x49e   : > { %3528 = vmatprep.subr.mxu1 %v4020_v0  ;;  %3575 = vmatpush3.msra.mxu0 %v1798_v25  ;;  %v2014_v25 = vld [vmem:[%s5125_s14 + $0x18] sm:$0xff] }
 0x49f   : > { %3576 = vmatprep.subr.mxu0 %v4020_v0 }
 0x4a0   : > { %v1448_v33 = vpop.permute.xlu0 %1447  ;;  %3577 = vmatpush3.msra.mxu0 %v1797_v26  ;;  %v2013_v26 = vld [vmem:[%s5125_s14 + $0x10] sm:$0xff] }
 0x4a1   : > { %3578 = vmatprep.subr.mxu0 %v4020_v0 }
 0x4a2   : > { %3579 = vmatpush3.msra.mxu0 %v1796_v27  ;;  %v1921_v27 = vld [vmem:[%s5123_s12 + $0x18] sm:$0xff] }
 0x4a4   : > { %v1446_v35 = vpop.permute.xlu0 %1445 }
 0x4aa   : > { %v3832_v29 = vpop.eup %3831 }
 0x4ab   : > { %v1363_v30 = vsel %vm1192_vm2, %v3832_v29, 0.0 }
 0x4ac   : > { %1364 = vadd.xlane.f32.xlu1 %v1363_v30 }
 0x4bd   : > { %1536 = vrot.lane.b32.xlu1 %v4468_v1, %s5143_s30 }
 0x4c1   : > { %1614 = vrot.lane.b32.xlu1 %v4457_v59, %s5141_s10 }
 0x535   : > { %v1365_v31 = vpop.xlane.xlu1 %1364 }
 0x536   : > { %3833 = vrcp.f32 %v1365_v31 }
 0x539   : > { %v1537_v36 = vpop.permute.xlu1 %1536 }
 0x53d   : > { %v1615_v50 = vpop.permute.xlu1 %1614 }
 0x543   : > { %v3834_v32 = vpop.eup %3833 }
 0x544   : > { %v1367_v34 = vmul.f32 %v3834_v32, %v3832_v29 }
 0x546   : > { %3526 = vmatmul.mubr.msk.f32.vlgmr.msra.gmra.mxu1 %vm1192_vm2, %v1367_v34 }
 0x547   : > { %3529 = vmatpush3.xpose.msk.msra.mxu1 %vm1113_vm1, %v1448_v33  ;;  %3530 = vmatprep.mubr.msk.f32.mxu1 %vm4021_vm0, %v4020_v0 }
 0x548   : > { %3533 = vmatprep.subr.mxu1 %v4020_v0 }
 0x54a   : > { %3531 = vmatmul.mubr.msk.f32.vlgmr.msra.gmra.mxu1 %vm1113_vm1, %v1446_v35 }
 0x54b   : > { %3534 = vmatpush3.msra.mxu1 %v1537_v36  ;;  %3535 = vmatprep.mubr.msk.f32.mxu1 %vm4021_vm0, %v4020_v0  ;;  %v3314_v36 = vld [vmem:[%s5169_s7] ss:$0 sm:$0xff] }
 0x54c   : > { %3538 = vmatprep.subr.mxu1 %v4020_v0 }
 0x606   : > { %v1441_v37 = vpop.f32.mrf.mxu1 }
 0x608   : > { %v3527_v38 = vpop.f32.mrf.mxu1 }
 0x60a   : > { %v1519_v39 = vpop.f32.mrf.mxu1 }
 0x60b   : > { %v1523_v40 = vmul.f32 0.17677669, %v1519_v39 }
 0x60c   : > { %v3532_v41 = vpop.f32.mrf.mxu1 }
 0x60d   : > { %v1524_v42 = vadd.f32 %v1523_v40, %v4482_v3  ;;  %v2041_v41 = vld [vmem:[%s5125_s14 + $0xf0] sm:$0xff] }
 0x60f   : > { %v1525_v43 = vsel %vm1192_vm2, %v1524_v42, -inf }
 0x610   : > { %1526 = vmax.xlane.f32.xlu0 %v1525_v43  ;;  %v2039_v43 = vld [vmem:[%s5125_s14 + $0xe0] sm:$0xff] }
 0x699   : > { %v1527_v44 = vpop.xlane.xlu0 %1526 }
 0x69a   : > { %v1528_v45 = vsub.f32 %v1524_v42, %v1527_v44  ;;  %v2040_v42 = vld [vmem:[%s5125_s14 + $0xe8] sm:$0xff]  ;;  %v1933_v44 = vld [vmem:[%s5123_s12 + $0x78] sm:$0xff] }
 0x69c   : > { %v1529_v46 = vmul.f32 1.442695, %v1528_v45  ;;  %v2037_v45 = vld [vmem:[%s5125_s14 + $0xd0] sm:$0xff] }
 0x69e   : > { %3835 = vpow2.f32 %v1529_v46  ;;  %v1932_v46 = vld [vmem:[%s5123_s12 + $0x70] sm:$0xff] }
 0x6ab   : > { %v3836_v47 = vpop.eup %3835 }
 0x6ac   : > { %v1531_v48 = vsel %vm1192_vm2, %v3836_v47, 0.0 }
 0x6ad   : > { %1532 = vadd.xlane.f32.xlu1 %v1531_v48  ;;  %v1931_v48 = vld [vmem:[%s5123_s12 + $0x68] sm:$0xff] }
 0x6be   : > { %1612 = vrot.lane.b32.xlu1 %v4461_v61, %s5141_s10 }
 0x736   : > { %v1533_v53 = vpop.xlane.xlu1 %1532 }
 0x737   : > { %3837 = vrcp.f32 %v1533_v53  ;;  %v2034_v53 = vld [vmem:[%s5125_s14 + $0xb8] sm:$0xff] }
 0x73a   : > { %v1613_v57 = vpop.permute.xlu1 %1612 }
 0x744   : > { %v3838_v54 = vpop.eup %3837 }
 0x745   : > { %v1535_v56 = vmul.f32 %v3838_v54, %v3836_v47  ;;  %v2036_v47 = vld [vmem:[%s5125_s14 + $0xc8] sm:$0xff]  ;;  %v1930_v54 = vld [vmem:[%s5123_s12 + $0x60] sm:$0xff] }
 0x747   : > { %3536 = vmatmul.mubr.msk.f32.vlgmr.msra.gmra.mxu1 %vm1192_vm2, %v1535_v56  ;;  %v2033_v56 = vld [vmem:[%s5125_s14 + $0xb0] sm:$0xff] }
 0x748   : > { %3539 = vmatpush3.xpose.msk.msra.mxu1 %vm1113_vm1, %v1615_v50  ;;  %3540 = vmatprep.mubr.msk.f32.mxu1 %vm4021_vm0, %v4020_v0  ;;  %v2035_v50 = vld [vmem:[%s5125_s14 + $0xc0] sm:$0xff] }
 0x749   : > { %3543 = vmatprep.subr.mxu1 %v4020_v0 }
 0x74b   : > { %3541 = vmatmul.mubr.msk.f32.vlgmr.msra.gmra.mxu1 %vm1113_vm1, %v1613_v57  ;;  %v2032_v57 = vld [vmem:[%s5125_s14 + $0xa8] sm:$0xff] }
 0x74c   : > { %3545 = vmatprep.mubr.msk.f32.mxu1 %vm4021_vm0, %v4020_v0 }
 0x807   : > { %v1608_v58 = vpop.f32.mrf.mxu1 }
 0x809   : > { %v3537_v59 = vpop.f32.mrf.mxu1 }
 0x80a   : > { %v2030_v59 = vld [vmem:[%s5125_s14 + $0x98] sm:$0xff] }
 0x80b   : > { %v1686_v60 = vpop.f32.mrf.mxu1 }
 0x80c   : > { %v1690_v61 = vmul.f32 0.17677669, %v1686_v60 }
 0x80d   : > { %v3542_v62 = vpop.f32.mrf.mxu1 }
 0x80e   : > { %v1691_v63 = vadd.f32 %v1690_v61, %v4482_v3 }
 0x810   : > { %v1692_v2 = vsel %vm1192_vm2, %v1691_v63, -inf }
 0x811   : > { %1693 = vmax.xlane.f32.xlu0 %v1692_v2  ;;  %v2029_v2 = vld [vmem:[%s5125_s14 + $0x90] sm:$0xff] }
 0x827   : > { %1703 = vrot.lane.b32.xlu0 %v4468_v1, %s5141_s10 }
 0x82b   : > { %1780 = vrot.lane.b32.xlu0 %v1441_v37, %s5141_s10  ;;  %s5175_s10 = smov 32  }
 0x82f   : > { %1784 = vrot.lane.b32.xlu0 %v1608_v58, %s5143_s30  ;;  %v2031_v58 = vld [vmem:[%s5125_s14 + $0xa0] sm:$0xff] }
 0x89a   : > { %v1694_v4 = vpop.xlane.xlu0 %1693 }
 0x89b   : > { %v1695_v5 = vsub.f32 %v1691_v63, %v1694_v4  ;;  %v1929_v4 = vld [vmem:[%s5123_s12 + $0x58] sm:$0xff] }
 0x89d   : > { %v1696_v6 = vmul.f32 1.442695, %v1695_v5  ;;  %v2028_v5 = vld [vmem:[%s5125_s14 + $0x88] sm:$0xff] }
 0x89e   : > { %v1704_v7 = vpop.permute.xlu0 %1703 }
 0x89f   : > { %3839 = vpow2.f32 %v1696_v6  ;;  %3544 = vmatpush3.msra.mxu1 %v1704_v7  ;;  %v2027_v6 = vld [vmem:[%s5125_s14 + $0x80] sm:$0xff]  ;;  %v1928_v7 = vld [vmem:[%s5123_s12 + $0x50] sm:$0xff] }
 0x8a0   : > { %3583 = vmatprep.subr.mxu1 %v4020_v0 }
 0x8a2   : > { %v1781_v30 = vpop.permute.xlu0 %1780 }
 0x8a3   : > { %v1791_v32 = vsel %vm1113_vm1, %v4495_v18, %v1781_v30  ;;  %v2042_v18 = vld [vmem:[%s5125_s14 + $0xf8] sm:$0xff]  ;;  %v1920_v30 = vld [vmem:[%s5123_s12 + $0x10] sm:$0xff] }
 0x8a4   : > { %2055 = vmatprep.subr.mxu0 %v2042_v18 }
 0x8a6   : > { %v1785_v31 = vpop.permute.xlu0 %1784 }
 0x8a7   : > { %v1793_v33 = vsel %vm1792_vm3, %v1791_v32, %v1785_v31  ;;  %v904_v31 = vld [vmem:[%s888_s1] sm:$0xff]  ;;  %v1919_v32 = vld [vmem:[%s5123_s12 + $0x8] sm:$0xff]  ;;  %s5172_s1 = sld [smem:[#allocation16_spill]] }
 0x8ac   : > { %v3840_v8 = vpop.eup %3839 }
 0x8ad   : > { %v1698_v3 = vsel %vm1192_vm2, %v3840_v8, 0.0  ;;  %s896_s7 = scalar_lea.vmem %s5172_s1, %s4401_s2 }
 0x8ae   : > { %1699 = vadd.xlane.f32.xlu1 %v1698_v3  ;;  %v2025_v3 = vld [vmem:[%s5125_s14 + $0x70] sm:$0xff] }
 0x937   : > { %v1700_v9 = vpop.xlane.xlu1 %1699 }
 0x938   : > { %3841 = vrcp.f32 %v1700_v9  ;;  %v1927_v9 = vld [vmem:[%s5123_s12 + $0x48] sm:$0xff] }
 0x945   : > { %v3842_v10 = vpop.eup %3841 }
 0x946   : > { %v1702_v1 = vmul.f32 %v3842_v10, %v3840_v8  ;;  %v2026_v8 = vld [vmem:[%s5125_s14 + $0x78] sm:$0xff]  ;;  %v2024_v10 = vld [vmem:[%s5125_s14 + $0x68] sm:$0xff] }
 0x948   : > { %3546 = vmatmul.mubr.msk.f32.vlgmr.msra.gmra.mxu1 %vm1192_vm2, %v1702_v1  ;;  %v2023_v1 = vld [vmem:[%s5125_s14 + $0x60] sm:$0xff] }
 0x949   : > { %3615 = vmatprep.mubr.msk.f32.mxu1 %vm4021_vm0, %v4020_v0  ;;  %3584 = vmatpush3.msra.mxu1 %v1933_v44 }
 0x94a   : > { %3585 = vmatprep.subr.mxu1 %v4020_v0 }
 0x94b   : > { %3586 = vmatpush3.msra.mxu1 %v1932_v46  ;;  %v3317_v46 = vld [vmem:[%s5124_s13] ss:$0 sm:$0xff] }
 0x94c   : > { %3587 = vmatprep.subr.mxu1 %v4020_v0 }
 0x94d   : > { %3588 = vmatpush3.msra.mxu1 %v1931_v48 }
 0x94e   : > { %3589 = vmatprep.subr.mxu1 %v4020_v0 }
 0x94f   : > { %3590 = vmatpush3.msra.mxu1 %v1930_v54 }
 0x950   : > { %3591 = vmatprep.subr.mxu1 %v4020_v0 }
 0x951   : > { %3592 = vmatpush3.msra.mxu1 %v1929_v4 }
 0x952   : > { %3593 = vmatprep.subr.mxu1 %v4020_v0 }
 0x953   : > { %3594 = vmatpush3.msra.mxu1 %v1928_v7 }
 0x954   : > { %3595 = vmatprep.subr.mxu1 %v4020_v0 }
 0x955   : > { %3596 = vmatpush3.msra.mxu1 %v1927_v9 }
 0x956   : > { %3597 = vmatprep.subr.mxu1 %v4020_v0 }
 0x957   : > { %3598 = vmatpush3.msra.mxu1 %v1926_v11 }
 0x958   : > { %3599 = vmatprep.subr.mxu1 %v4020_v0 }
 0x959   : > { %3600 = vmatpush3.msra.mxu1 %v1925_v14 }
 0x95a   : > { %3601 = vmatprep.subr.mxu1 %v4020_v0 }
 0x95b   : > { %3602 = vmatpush3.msra.mxu1 %v1924_v17 }
 0x95c   : > { %3603 = vmatprep.subr.mxu1 %v4020_v0 }
 0x95d   : > { %3604 = vmatpush3.msra.mxu1 %v1923_v21 }
 0x95e   : > { %3605 = vmatprep.subr.mxu1 %v4020_v0 }
 0x95f   : > { %3606 = vmatpush3.msra.mxu1 %v1922_v24 }
 0x960   : > { %3607 = vmatprep.subr.mxu1 %v4020_v0 }
 0x961   : > { %3608 = vmatpush3.msra.mxu1 %v1921_v27 }
 0x962   : > { %3609 = vmatprep.subr.mxu1 %v4020_v0 }
 0x963   : > { %3610 = vmatpush3.msra.mxu1 %v1920_v30 }
 0x964   : > { %3611 = vmatprep.subr.mxu1 %v4020_v0 }
 0x965   : > { %3612 = vmatpush3.msra.mxu1 %v1919_v32 }
 0x966   : > { %3613 = vmatprep.subr.mxu1 %v4020_v0 }
 0xa08   : > { %v1775_v28 = vpop.f32.mrf.mxu1 }
 0xa09   : > { %1788 = vrot.lane.b32.xlu0 %v1775_v28, %s5145_s4  ;;  %v2012_v28 = vld [vmem:[%s5125_s14 + $0x8] sm:$0xff]  ;;  %s900_s4 = scalar_lea.vmem %s5137_s26, %s4401_s2 }
 0xa0a   : > { %v3547_v29 = vpop.f32.mrf.mxu1 }
 0xa0b   : > { %v2011_v29 = vld [vmem:[%s5125_s14] sm:$0xff] }
 0xa7b   : > { %v1789_v34 = vpop.permute.xlu0 %1788 }
 0xa7c   : > { %v1795_v35 = vsel %vm1794_vm4, %v1793_v33, %v1789_v34  ;;  %v1918_v33 = vld [vmem:[%s5123_s12] sm:$0xff] }
 0xa7d   : > { %3581 = vmatmul.mubr.f32.vlgmr.msra.gmra.mxu0 %v1795_v35  ;;  %3614 = vmatpush3.msra.mxu1 %v1918_v33 }
 0xa7e   : > { %2119 = vmatprep.mubr.f32.mxu0 %v4020_v0  ;;  %2056 = vmatpush1.msra.mxu0 %v2041_v41 }
 0xa7f   : > { %2057 = vmatprep.subr.mxu0 %v2040_v42  ;;  %3618 = vmatprep.subr.mxu1 %v4020_v0  ;;  %v2043_v42 = vld [vmem:[%s5126_s15] sm:$0x3] }
 0xa80   : > { %2058 = vmatpush1.msra.mxu0 %v2039_v43  ;;  %v2048_v43 = vrot.slane %v2043_v42, %v1034_v52 }
 0xb3d   : > { %v1885_v37 = vpop.f32.mrf.mxu0 }
 0xb3e   : > { %v1886_v38 = vadd.f32 %v3314_v36, %v1885_v37 }
 0xb3f   : > { %v3582_v39 = vpop.f32.mrf.mxu0 }
 0xb40   : > { %v1889_v40 = vadd.f32 %v1886_v38, %v4434_v49  ;;  %v2038_v49 = vld [vmem:[%s5125_s14 + $0xd8] sm:$0xff]  ;;  %v3315_v38 = vld [vmem:[%s5171_s0] ss:$0 sm:$0xff]  ;;  %s5173_s0 = smov 96  }
 0xb41   : > { %2059 = vmatprep.subr.mxu0 %v2038_v49 }
 0xb42   : > { %1890 = vadd.xlane.f32.xlu1 %v1889_v40  ;;  %2060 = vmatpush1.msra.mxu0 %v2037_v45  ;;  %v2052_v45 = vrot.slane %v2043_v42, %v1038_v55  ;;  %v4829_v55 = vld [vmem:[%s896_s7] sm:$0xff] }
 0xb43   : > { %2061 = vmatprep.subr.mxu0 %v2036_v47 }
 0xb44   : > { %2062 = vmatpush1.msra.mxu0 %v2035_v50 }
 0xb45   : > { %2063 = vmatprep.subr.mxu0 %v2034_v53 }
 0xb46   : > { %2064 = vmatpush1.msra.mxu0 %v2033_v56 }
 0xb47   : > { %2065 = vmatprep.subr.mxu0 %v2032_v57 }
 0xb48   : > { %2066 = vmatpush1.msra.mxu0 %v2031_v58 }
 0xb49   : > { %2067 = vmatprep.subr.mxu0 %v2030_v59 }
 0xb4a   : > { %2068 = vmatpush1.msra.mxu0 %v2029_v2 }
 0xb4b   : > { %2069 = vmatprep.subr.mxu0 %v2028_v5 }
 0xb4c   : > { %2070 = vmatpush1.msra.mxu0 %v2027_v6 }
 0xb4d   : > { %2071 = vmatprep.subr.mxu0 %v2026_v8 }
 0xb4e   : > { %2072 = vmatpush1.msra.mxu0 %v2025_v3 }
 0xb4f   : > { %2073 = vmatprep.subr.mxu0 %v2024_v10 }
 0xb50   : > { %2074 = vmatpush1.msra.mxu0 %v2023_v1 }
 0xb51   : > { %2075 = vmatprep.subr.mxu0 %v2022_v12 }
 0xb52   : > { %2076 = vmatpush1.msra.mxu0 %v2021_v13 }
 0xb53   : > { %2077 = vmatprep.subr.mxu0 %v2020_v15 }
 0xb54   : > { %2078 = vmatpush1.msra.mxu0 %v2019_v16 }
 0xb55   : > { %2079 = vmatprep.subr.mxu0 %v2018_v19 }
 0xb56   : > { %2080 = vmatpush1.msra.mxu0 %v2017_v20 }
 0xb57   : > { %2081 = vmatprep.subr.mxu0 %v2016_v22 }
 0xb58   : > { %2082 = vmatpush1.msra.mxu0 %v2015_v23 }
 0xb59   : > { %2083 = vmatprep.subr.mxu0 %v2014_v25 }
 0xb5a   : > { %2084 = vmatpush1.msra.mxu0 %v2013_v26 }
 0xb5b   : > { %2085 = vmatprep.subr.mxu0 %v2012_v28 }
 0xb5c   : > { %2086 = vmatpush1.msra.mxu0 %v2011_v29 }
 0xb5d   : > { %2120 = vmatmul.mubr.f32.vlgmr.msra.gmra.mxu0 %v904_v31  ;;  %3658 = vmatprep.subr.mxu0 %v4020_v0 }
 0xb5e   : > { %3690 = vmatprep.mubr.msk.f32.mxu0 %vm4021_vm0, %v4020_v0 }
 0xbcb   : > { %v1891_v60 = vpop.xlane.xlu1 %1890 }
 0xbcc   : > { %v1893_v61 = vmul.f32 0.0078125, %v1891_v60 }
 0xbce   : > { %v4672_v62 = vsub.f32 %v1889_v40, %v1893_v61  ;;  %v3316_v40 = vld [vmem:[%s5122_s11] ss:$0 sm:$0xff] }
 0xbd0   : > { %v1895_v63 = vmul.f32 %v4672_v62, %v4672_v62 }
 0xbd2   : > { %1896 = vadd.xlane.f32.xlu0 %v1895_v63 }
 0xc1d   : > { %v2121_v49 = vpop.f32.mrf.mxu0 }
 0xc1e   : > { %v4805_v44 = vadd.f32 %v2121_v49, %v2048_v43 }
 0xc1f   : > { %v2123_v47 = vpop.f32.mrf.mxu0 }
 0xc20   : > { %v4817_v52 = vadd.f32 %v2123_v47, %v2052_v45 }
 0xc5b   : > { %v1897_v34 = vpop.xlane.xlu0 %1896 }
 0xc5c   : > { %v1898_v35 = vmul.f32 0.0078125, %v1897_v34 }
 0xc5e   : > { %v1899_v36 = vadd.f32 1e-05, %v1898_v35 }
 0xc60   : > { %3843 = vrsqrt.f32 %v1899_v36 }
 0xc6d   : > { %v3844_v37 = vpop.eup %3843 }
 0xc6e   : > { %v1901_v39 = vmul.f32 %v3844_v37, %v4672_v62 }
 0xc70   : > { %v1909_v18 = vmul.f32 %v3315_v38, %v1901_v39 }
 0xc72   : > { %v4795_v41 = vadd.f32 %v3316_v40, %v1909_v18 }
 0xc74   : > { %3616 = vmatmul.mubr.f32.vlgmr.msra.gmra.mxu1 %v4795_v41 }
 0xc75   : > { %3620 = vmatprep.mubr.msk.f32.mxu1 %vm4021_vm0, %v4020_v0  ;;  %3619 = vmatpush3.xpose.msk.msra.mxu1 %vm1113_vm1, %v4805_v44 }
 0xc76   : > { %3623 = vmatprep.subr.mxu1 %v4020_v0 }
 0xd34   : > { %v2007_v48 = vpop.f32.mrf.mxu1 }
 0xd35   : > { %v4815_v50 = vadd.f32 %v3317_v46, %v2007_v48 }
 0xd36   : > { %v3617_v53 = vpop.f32.mrf.mxu1 }
 0xd37   : > { %3621 = vmatmul.mubr.msk.f32.vlgmr.msra.gmra.mxu1 %vm1113_vm1, %v4815_v50 }
 0xd38   : > { %3624 = vmatpush3.msra.mxu1 %v4817_v52  ;;  %3625 = vmatprep.mubr.msk.f32.mxu1 %vm4021_vm0, %v4020_v0 }
 0xd39   : > { %3628 = vmatprep.subr.mxu1 %v4020_v0 }
 0xdf7   : > { %v2198_v51 = vpop.f32.mrf.mxu1 }
 0xdf8   : > { %v2202_v54 = vmul.f32 0.17677669, %v2198_v51 }
 0xdf9   : > { %v3622_v56 = vpop.f32.mrf.mxu1 }
 0xdfa   : > { %v2203_v57 = vadd.f32 %v2202_v54, %v4829_v55 }
 0xdfc   : > { %v2204_v58 = vsel %vm1192_vm2, %v2203_v57, -inf }
 0xdfd   : > { %2205 = vmax.xlane.f32.xlu1 %v2204_v58 }
 0xe0e   : > { %2290 = vrot.lane.b32.xlu1 %v4805_v44, %s5173_s0 }
 0xe86   : > { %v2206_v59 = vpop.xlane.xlu1 %2205 }
 0xe87   : > { %v2207_v60 = vsub.f32 %v2203_v57, %v2206_v59  ;;  %v2820_v59 = vld [vmem:[%s5127_s16 + $0x78] sm:$0xff] }
 0xe88   : > { %3659 = vmatpush3.msra.mxu0 %v2820_v59 }
 0xe89   : > { %v2208_v61 = vmul.f32 1.442695, %v2207_v60  ;;  %v2819_v60 = vld [vmem:[%s5127_s16 + $0x70] sm:$0xff]  ;;  %3660 = vmatprep.subr.mxu0 %v4020_v0 }
 0xe8a   : > { %v2291_v2 = vpop.permute.xlu1 %2290  ;;  %3661 = vmatpush3.msra.mxu0 %v2819_v60 }
 0xe8b   : > { %3845 = vpow2.f32 %v2208_v61  ;;  %v2818_v61 = vld [vmem:[%s5127_s16 + $0x68] sm:$0xff]  ;;  %3662 = vmatprep.subr.mxu0 %v4020_v0 }
 0xe8c   : > { %3663 = vmatpush3.msra.mxu0 %v2818_v61 }
 0xe8d   : > { %3664 = vmatprep.subr.mxu0 %v4020_v0 }
 0xe98   : > { %v3846_v62 = vpop.eup %3845 }
 0xe99   : > { %v2210_v63 = vsel %vm1192_vm2, %v3846_v62, 0.0 }
 0xe9a   : > { %2211 = vadd.xlane.f32.xlu1 %v2210_v63  ;;  %v2816_v63 = vld [vmem:[%s5127_s16 + $0x58] sm:$0xff] }
 0xeab   : > { %2288 = vrot.lane.b32.xlu1 %v4815_v50, %s5173_s0 }
 0xf23   : > { %v2212_v4 = vpop.xlane.xlu1 %2211 }
 0xf24   : > { %3847 = vrcp.f32 %v2212_v4  ;;  %v2814_v4 = vld [vmem:[%s5127_s16 + $0x48] sm:$0xff] }
 0xf27   : > { %v2289_v7 = vpop.permute.xlu1 %2288 }
 0xf31   : > { %v3848_v5 = vpop.eup %3847 }
 0xf32   : > { %v2214_v6 = vmul.f32 %v3848_v5, %v3846_v62  ;;  %v2817_v62 = vld [vmem:[%s5127_s16 + $0x60] sm:$0xff] }
 0xf33   : > { %3665 = vmatpush3.msra.mxu0 %v2817_v62  ;;  %v2813_v5 = vld [vmem:[%s5127_s16 + $0x40] sm:$0xff] }
 0xf34   : > { %3626 = vmatmul.mubr.msk.f32.vlgmr.msra.gmra.mxu1 %vm1192_vm2, %v2214_v6  ;;  %3666 = vmatprep.subr.mxu0 %v4020_v0  ;;  %v2812_v6 = vld [vmem:[%s5127_s16 + $0x38] sm:$0xff]  ;;  %v3331_v62 = vld [vmem:[%s5129_s18] ss:$0 sm:$0xff] }
 0xf35   : > { %3629 = vmatpush3.xpose.msk.msra.mxu1 %vm1113_vm1, %v2291_v2  ;;  %3630 = vmatprep.mubr.msk.f32.mxu1 %vm4021_vm0, %v4020_v0  ;;  %v2815_v2 = vld [vmem:[%s5127_s16 + $0x50] sm:$0xff] }
 0xf36   : > { %3633 = vmatprep.subr.mxu1 %v4020_v0  ;;  %3667 = vmatpush3.msra.mxu0 %v2816_v63 }
 0xf37   : > { %3668 = vmatprep.subr.mxu0 %v4020_v0 }
 0xf38   : > { %3631 = vmatmul.mubr.msk.f32.vlgmr.msra.gmra.mxu1 %vm1113_vm1, %v2289_v7  ;;  %3669 = vmatpush3.msra.mxu0 %v2815_v2  ;;  %v2811_v7 = vld [vmem:[%s5127_s16 + $0x30] sm:$0xff]  ;;  %v3332_v2 = vld [vmem:[#allocation2] ss:$0 sm:$0xff] }
 0xf39   : > { %3635 = vmatprep.mubr.msk.f32.mxu1 %vm4021_vm0, %v4020_v0  ;;  %3670 = vmatprep.subr.mxu0 %v4020_v0 }
 0xf3a   : > { %3671 = vmatpush3.msra.mxu0 %v2814_v4 }
 0xf3b   : > { %3672 = vmatprep.subr.mxu0 %v4020_v0 }
 0xf3c   : > { %3673 = vmatpush3.msra.mxu0 %v2813_v5 }
 0xf3d   : > { %3674 = vmatprep.subr.mxu0 %v4020_v0 }
 0xf3e   : > { %3675 = vmatpush3.msra.mxu0 %v2812_v6  ;;  %v3022_v6 = vld [vmem:[%s5133_s22 + $0x10] sm:$0xff] }
 0xf3f   : > { %3676 = vmatprep.subr.mxu0 %v4020_v0 }
 0xf40   : > { %3677 = vmatpush3.msra.mxu0 %v2811_v7  ;;  %v3021_v7 = vld [vmem:[%s5133_s22 + $0x8] sm:$0xff] }
 0xf41   : > { %3678 = vmatprep.subr.mxu0 %v4020_v0 }
 0xff4   : > { %v4846_v8 = vpop.f32.mrf.mxu1 }
 0xff6   : > { %v3627_v3 = vpop.f32.mrf.mxu1 }
 0xff7   : > { %v2810_v3 = vld [vmem:[%s5127_s16 + $0x28] sm:$0xff] }
 0xff8   : > { %v2362_v9 = vpop.f32.mrf.mxu1  ;;  %3679 = vmatpush3.msra.mxu0 %v2810_v3  ;;  %v3020_v3 = vld [vmem:[%s5133_s22] sm:$0xff] }
 0xff9   : > { %v2366_v10 = vmul.f32 0.17677669, %v2362_v9  ;;  %v2809_v9 = vld [vmem:[%s5127_s16 + $0x20] sm:$0xff]  ;;  %3680 = vmatprep.subr.mxu0 %v4020_v0 }
 0xffa   : > { %v3632_v1 = vpop.f32.mrf.mxu1  ;;  %3681 = vmatpush3.msra.mxu0 %v2809_v9  ;;  %v3333_v9 = vld [vmem:[#allocation4] ss:$0 sm:$0xff] }
 0xffb   : > { %v2367_v11 = vadd.f32 %v2366_v10, %v4829_v55  ;;  %v2808_v10 = vld [vmem:[%s5127_s16 + $0x18] sm:$0xff]  ;;  %3682 = vmatprep.subr.mxu0 %v4020_v0  ;;  %v2807_v1 = vld [vmem:[%s5127_s16 + $0x10] sm:$0xff] }
 0xffc   : > { %3683 = vmatpush3.msra.mxu0 %v2808_v10 }
 0xffd   : > { %v2368_v12 = vsel %vm1192_vm2, %v2367_v11, -inf  ;;  %3684 = vmatprep.subr.mxu0 %v4020_v0 }
 0xffe   : > { %2369 = vmax.xlane.f32.xlu0 %v2368_v12  ;;  %3685 = vmatpush3.msra.mxu0 %v2807_v1  ;;  %v2805_v12 = vld [vmem:[%s5127_s16] sm:$0xff] }
 0xfff   : > { %3686 = vmatprep.subr.mxu0 %v4020_v0 }
0x1014   : > { %2380 = vrot.lane.b32.xlu0 %v4817_v52, %s5173_s0 }
0x1018   : > { %2458 = vrot.lane.b32.xlu0 %v4805_v44, %s5174_s28 }
0x101c   : > { %2456 = vrot.lane.b32.xlu0 %v4815_v50, %s5174_s28 }
0x1087   : > { %v2370_v13 = vpop.xlane.xlu0 %2369 }
0x1088   : > { %v2371_v14 = vsub.f32 %v2367_v11, %v2370_v13  ;;  %v2806_v11 = vld [vmem:[%s5127_s16 + $0x8] sm:$0xff] }
0x1089   : > { %3687 = vmatpush3.msra.mxu0 %v2806_v11 }
0x108a   : > { %v2372_v15 = vmul.f32 1.442695, %v2371_v14  ;;  %3688 = vmatprep.subr.mxu0 %v4020_v0 }
0x108b   : > { %v2381_v16 = vpop.permute.xlu0 %2380  ;;  %3689 = vmatpush3.msra.mxu0 %v2805_v12 }
0x108c   : > { %3849 = vpow2.f32 %v2372_v15  ;;  %3634 = vmatpush3.msra.mxu1 %v2381_v16  ;;  %3728 = vmatprep.subr.mxu0 %v4020_v0 }
0x108d   : > { %3638 = vmatprep.subr.mxu1 %v4020_v0 }
0x108f   : > { %v2459_v22 = vpop.permute.xlu0 %2458 }
0x1093   : > { %v2457_v24 = vpop.permute.xlu0 %2456 }
0x1099   : > { %v3850_v17 = vpop.eup %3849 }
0x109a   : > { %v2374_v19 = vsel %vm1192_vm2, %v3850_v17, 0.0 }
0x109b   : > { %2375 = vadd.xlane.f32.xlu1 %v2374_v19 }
0x10ac   : > { %2547 = vrot.lane.b32.xlu1 %v4817_v52, %s5174_s28 }
0x10b0   : > { %2625 = vrot.lane.b32.xlu1 %v4805_v44, %s5175_s10 }
0x1124   : > { %v2376_v20 = vpop.xlane.xlu1 %2375 }
0x1125   : > { %3851 = vrcp.f32 %v2376_v20 }
0x1128   : > { %v2548_v25 = vpop.permute.xlu1 %2547 }
0x112c   : > { %v2626_v38 = vpop.permute.xlu1 %2625 }
0x1132   : > { %v3852_v21 = vpop.eup %3851 }
0x1133   : > { %v2378_v23 = vmul.f32 %v3852_v21, %v3850_v17 }
0x1135   : > { %3636 = vmatmul.mubr.msk.f32.vlgmr.msra.gmra.mxu1 %vm1192_vm2, %v2378_v23 }
0x1136   : > { %3639 = vmatpush3.xpose.msk.msra.mxu1 %vm1113_vm1, %v2459_v22  ;;  %3640 = vmatprep.mubr.msk.f32.mxu1 %vm4021_vm0, %v4020_v0  ;;  %v3330_v22 = vld [vmem:[%s5128_s17] ss:$0 sm:$0xff] }
0x1137   : > { %3643 = vmatprep.subr.mxu1 %v4020_v0 }
0x1139   : > { %3641 = vmatmul.mubr.msk.f32.vlgmr.msra.gmra.mxu1 %vm1113_vm1, %v2457_v24 }
0x113a   : > { %3644 = vmatpush3.msra.mxu1 %v2548_v25  ;;  %3645 = vmatprep.mubr.msk.f32.mxu1 %vm4021_vm0, %v4020_v0 }
0x113b   : > { %3648 = vmatprep.subr.mxu1 %v4020_v0 }
0x11f5   : > { %v2452_v26 = vpop.f32.mrf.mxu1 }
0x11f7   : > { %v3637_v27 = vpop.f32.mrf.mxu1 }
0x11f8   : > { %v2940_v27 = vld [vmem:[%s5131_s20 + $0x70] sm:$0xff] }
0x11f9   : > { %v2530_v28 = vpop.f32.mrf.mxu1 }
0x11fa   : > { %v2534_v29 = vmul.f32 0.17677669, %v2530_v28  ;;  %v2939_v28 = vld [vmem:[%s5131_s20 + $0x68] sm:$0xff] }
0x11fb   : > { %v3642_v30 = vpop.f32.mrf.mxu1 }
0x11fc   : > { %v2535_v31 = vadd.f32 %v2534_v29, %v4829_v55 }
0x11fe   : > { %v2536_v32 = vsel %vm1192_vm2, %v2535_v31, -inf }
0x11ff   : > { %2537 = vmax.xlane.f32.xlu0 %v2536_v32 }
0x1288   : > { %v2538_v33 = vpop.xlane.xlu0 %2537 }
0x1289   : > { %v2539_v34 = vsub.f32 %v2535_v31, %v2538_v33  ;;  %v2937_v33 = vld [vmem:[%s5131_s20 + $0x58] sm:$0xff] }
0x128b   : > { %v2540_v35 = vmul.f32 1.442695, %v2539_v34  ;;  %v2936_v34 = vld [vmem:[%s5131_s20 + $0x50] sm:$0xff] }
0x128d   : > { %3853 = vpow2.f32 %v2540_v35  ;;  %v2935_v35 = vld [vmem:[%s5131_s20 + $0x48] sm:$0xff] }
0x129a   : > { %v3854_v36 = vpop.eup %3853 }
0x129b   : > { %v2542_v37 = vsel %vm1192_vm2, %v3854_v36, 0.0 }
0x129c   : > { %2543 = vadd.xlane.f32.xlu1 %v2542_v37  ;;  %v2933_v37 = vld [vmem:[%s5131_s20 + $0x38] sm:$0xff] }
0x12ad   : > { %2623 = vrot.lane.b32.xlu1 %v4815_v50, %s5175_s10 }
0x1325   : > { %v2544_v39 = vpop.xlane.xlu1 %2543 }
0x1326   : > { %3855 = vrcp.f32 %v2544_v39  ;;  %v2931_v39 = vld [vmem:[%s5131_s20 + $0x28] sm:$0xff] }
0x1329   : > { %v2624_v42 = vpop.permute.xlu1 %2623 }
0x1333   : > { %v3856_v40 = vpop.eup %3855 }
0x1334   : > { %v2546_v18 = vmul.f32 %v3856_v40, %v3854_v36  ;;  %v2934_v36 = vld [vmem:[%s5131_s20 + $0x40] sm:$0xff] }
0x1335   : > { %v2930_v40 = vld [vmem:[%s5131_s20 + $0x20] sm:$0xff] }
0x1336   : > { %3646 = vmatmul.mubr.msk.f32.vlgmr.msra.gmra.mxu1 %vm1192_vm2, %v2546_v18  ;;  %v2929_v18 = vld [vmem:[%s5131_s20 + $0x18] sm:$0xff] }
0x1337   : > { %3649 = vmatpush3.xpose.msk.msra.mxu1 %vm1113_vm1, %v2626_v38  ;;  %3650 = vmatprep.mubr.msk.f32.mxu1 %vm4021_vm0, %v4020_v0  ;;  %v2932_v38 = vld [vmem:[%s5131_s20 + $0x30] sm:$0xff] }
0x1338   : > { %3653 = vmatprep.subr.mxu1 %v4020_v0 }
0x133a   : > { %3651 = vmatmul.mubr.msk.f32.vlgmr.msra.gmra.mxu1 %vm1113_vm1, %v2624_v42  ;;  %v2928_v42 = vld [vmem:[%s5131_s20 + $0x10] sm:$0xff] }
0x133b   : > { %3655 = vmatprep.mubr.msk.f32.mxu1 %vm4021_vm0, %v4020_v0 }
0x13f6   : > { %v2619_v43 = vpop.f32.mrf.mxu1 }
0x13f8   : > { %v3647_v49 = vpop.f32.mrf.mxu1 }
0x13f9   : > { %v2926_v49 = vld [vmem:[%s5131_s20] sm:$0xff] }
0x13fa   : > { %v2697_v44 = vpop.f32.mrf.mxu1 }
0x13fb   : > { %v2701_v45 = vmul.f32 0.17677669, %v2697_v44  ;;  %v3035_v44 = vld [vmem:[%s5133_s22 + $0x78] sm:$0xff] }
0x13fc   : > { %v3652_v46 = vpop.f32.mrf.mxu1 }
0x13fd   : > { %v2702_v47 = vadd.f32 %v2701_v45, %v4829_v55  ;;  %v3034_v45 = vld [vmem:[%s5133_s22 + $0x70] sm:$0xff]  ;;  %v3033_v46 = vld [vmem:[%s5133_s22 + $0x68] sm:$0xff] }
0x13ff   : > { %v2703_v48 = vsel %vm1192_vm2, %v2702_v47, -inf }
0x1400   : > { %2704 = vmax.xlane.f32.xlu0 %v2703_v48  ;;  %v3031_v48 = vld [vmem:[%s5133_s22 + $0x58] sm:$0xff] }
0x1416   : > { %2714 = vrot.lane.b32.xlu0 %v4817_v52, %s5175_s10 }
0x141a   : > { %2791 = vrot.lane.b32.xlu0 %v2452_v26, %s5175_s10 }
0x141e   : > { %2795 = vrot.lane.b32.xlu0 %v2619_v43, %s5174_s28  ;;  %v2927_v43 = vld [vmem:[%s5131_s20 + $0x8] sm:$0xff] }
0x1489   : > { %v2705_v50 = vpop.xlane.xlu0 %2704 }
0x148a   : > { %v2706_v53 = vsub.f32 %v2702_v47, %v2705_v50  ;;  %v3032_v47 = vld [vmem:[%s5133_s22 + $0x60] sm:$0xff]  ;;  %v3030_v50 = vld [vmem:[%s5133_s22 + $0x50] sm:$0xff] }
0x148c   : > { %v2707_v51 = vmul.f32 1.442695, %v2706_v53  ;;  %v3029_v53 = vld [vmem:[%s5133_s22 + $0x48] sm:$0xff] }
0x148d   : > { %v2715_v54 = vpop.permute.xlu0 %2714 }
0x148e   : > { %3857 = vpow2.f32 %v2707_v51  ;;  %3654 = vmatpush3.msra.mxu1 %v2715_v54  ;;  %v3028_v51 = vld [vmem:[%s5133_s22 + $0x40] sm:$0xff]  ;;  %v3027_v54 = vld [vmem:[%s5133_s22 + $0x38] sm:$0xff] }
0x148f   : > { %3693 = vmatprep.subr.mxu1 %v4020_v0 }
0x1491   : > { %v2792_v15 = vpop.permute.xlu0 %2791 }
0x1492   : > { %v2802_v17 = vsel %vm1113_vm1, %v4846_v8, %v2792_v15  ;;  %v2941_v8 = vld [vmem:[%s5131_s20 + $0x78] sm:$0xff] }
0x1495   : > { %v2796_v16 = vpop.permute.xlu0 %2795 }
0x1496   : > { %v2803_v19 = vsel %vm1792_vm3, %v2802_v17, %v2796_v16 }
0x149b   : > { %v3858_v56 = vpop.eup %3857 }
0x149c   : > { %v2709_v55 = vsel %vm1192_vm2, %v3858_v56, 0.0 }
0x149d   : > { %2710 = vadd.xlane.f32.xlu1 %v2709_v55  ;;  %v3025_v55 = vld [vmem:[%s5133_s22 + $0x28] sm:$0xff] }
0x1526   : > { %v2711_v57 = vpop.xlane.xlu1 %2710 }
0x1527   : > { %3859 = vrcp.f32 %v2711_v57  ;;  %v3024_v57 = vld [vmem:[%s5133_s22 + $0x20] sm:$0xff] }
0x1534   : > { %v3860_v58 = vpop.eup %3859 }
0x1535   : > { %v2713_v52 = vmul.f32 %v3860_v58, %v3858_v56  ;;  %v3026_v56 = vld [vmem:[%s5133_s22 + $0x30] sm:$0xff]  ;;  %v3023_v58 = vld [vmem:[%s5133_s22 + $0x18] sm:$0xff] }
0x1537   : > { %3656 = vmatmul.mubr.msk.f32.vlgmr.msra.gmra.mxu1 %vm1192_vm2, %v2713_v52 }
0x1538   : > { %3725 = vmatprep.mubr.msk.f32.mxu1 %vm4021_vm0, %v4020_v0  ;;  %3694 = vmatpush3.msra.mxu1 %v2941_v8 }
0x1539   : > { %3695 = vmatprep.subr.mxu1 %v4020_v0 }
0x153a   : > { %3696 = vmatpush3.msra.mxu1 %v2940_v27  ;;  %v3336_v27 = vld [vmem:[#allocation9] ss:$0 sm:$0xff] }
0x153b   : > { %3697 = vmatprep.subr.mxu1 %v4020_v0 }
0x153c   : > { %3698 = vmatpush3.msra.mxu1 %v2939_v28 }
0x153d   : > { %3699 = vmatprep.subr.mxu1 %v4020_v0 }
0x15f7   : > { %v2786_v13 = vpop.f32.mrf.mxu1 }
0x15f8   : > { %2799 = vrot.lane.b32.xlu0 %v2786_v13, %s5173_s0  ;;  %v3334_v13 = vld [vmem:[#allocation6] ss:$0 sm:$0xff] }
0x15f9   : > { %v3657_v14 = vpop.f32.mrf.mxu1 }
0x166a   : > { %v2800_v20 = vpop.permute.xlu0 %2799 }
0x166b   : > { %v2804_v21 = vsel %vm1794_vm4, %v2803_v19, %v2800_v20 }
0x166c   : > { %3691 = vmatmul.mubr.f32.vlgmr.msra.gmra.mxu0 %v2804_v21 }
0x166d   : > { %3760 = vmatprep.mubr.msk.f32.mxu0 %vm4021_vm0, %v4020_v0  ;;  %3729 = vmatpush3.msra.mxu0 %v3035_v44 }
0x166e   : > { %3730 = vmatprep.subr.mxu0 %v4020_v0 }
0x166f   : > { %3731 = vmatpush3.msra.mxu0 %v3034_v45 }
0x1670   : > { %3732 = vmatprep.subr.mxu0 %v4020_v0 }
0x1671   : > { %3733 = vmatpush3.msra.mxu0 %v3033_v46 }
0x1672   : > { %3734 = vmatprep.subr.mxu0 %v4020_v0 }
0x1673   : > { %3735 = vmatpush3.msra.mxu0 %v3032_v47 }
0x1674   : > { %3736 = vmatprep.subr.mxu0 %v4020_v0 }
0x1675   : > { %3737 = vmatpush3.msra.mxu0 %v3031_v48 }
0x1676   : > { %3738 = vmatprep.subr.mxu0 %v4020_v0 }
0x1677   : > { %3739 = vmatpush3.msra.mxu0 %v3030_v50 }
0x1678   : > { %3740 = vmatprep.subr.mxu0 %v4020_v0 }
0x1679   : > { %3741 = vmatpush3.msra.mxu0 %v3029_v53 }
0x167a   : > { %3742 = vmatprep.subr.mxu0 %v4020_v0 }
0x167b   : > { %3743 = vmatpush3.msra.mxu0 %v3028_v51 }
0x167c   : > { %3744 = vmatprep.subr.mxu0 %v4020_v0 }
0x167d   : > { %3745 = vmatpush3.msra.mxu0 %v3027_v54 }
0x167e   : > { %3746 = vmatprep.subr.mxu0 %v4020_v0 }
0x167f   : > { %3747 = vmatpush3.msra.mxu0 %v3026_v56 }
0x1680   : > { %3748 = vmatprep.subr.mxu0 %v4020_v0 }
0x1681   : > { %3749 = vmatpush3.msra.mxu0 %v3025_v55 }
0x1682   : > { %3750 = vmatprep.subr.mxu0 %v4020_v0 }
0x1683   : > { %3751 = vmatpush3.msra.mxu0 %v3024_v57 }
0x1684   : > { %3752 = vmatprep.subr.mxu0 %v4020_v0 }
0x1685   : > { %3753 = vmatpush3.msra.mxu0 %v3023_v58 }
0x1686   : > { %3754 = vmatprep.subr.mxu0 %v4020_v0 }
0x1687   : > { %3755 = vmatpush3.msra.mxu0 %v3022_v6 }
0x1688   : > { %3756 = vmatprep.subr.mxu0 %v4020_v0 }
0x1689   : > { %3757 = vmatpush3.msra.mxu0 %v3021_v7 }
0x168a   : > { %3758 = vmatprep.subr.mxu0 %v4020_v0 }
0x168b   : > { %3759 = vmatpush3.msra.mxu0 %v3020_v3 }
0x172c   : > { %v2894_v23 = vpop.f32.mrf.mxu0 }
0x172d   : > { %v2895_v24 = vadd.f32 %v3330_v22, %v2894_v23 }
0x172e   : > { %v3692_v25 = vpop.f32.mrf.mxu0 }
0x172f   : > { %v2898_v26 = vadd.f32 %v2895_v24, %v4795_v41  ;;  %v2938_v41 = vld [vmem:[%s5131_s20 + $0x60] sm:$0xff] }
0x1730   : > { %3700 = vmatpush3.msra.mxu1 %v2938_v41 }
0x1731   : > { %2899 = vadd.xlane.f32.xlu1 %v2898_v26  ;;  %3701 = vmatprep.subr.mxu1 %v4020_v0 }
0x1732   : > { %3702 = vmatpush3.msra.mxu1 %v2937_v33 }
0x1733   : > { %3703 = vmatprep.subr.mxu1 %v4020_v0 }
0x1734   : > { %3704 = vmatpush3.msra.mxu1 %v2936_v34 }
0x1735   : > { %3705 = vmatprep.subr.mxu1 %v4020_v0 }
0x1736   : > { %3706 = vmatpush3.msra.mxu1 %v2935_v35 }
0x1737   : > { %3707 = vmatprep.subr.mxu1 %v4020_v0 }
0x1738   : > { %3708 = vmatpush3.msra.mxu1 %v2934_v36 }
0x1739   : > { %3709 = vmatprep.subr.mxu1 %v4020_v0 }
0x173a   : > { %3710 = vmatpush3.msra.mxu1 %v2933_v37 }
0x173b   : > { %3711 = vmatprep.subr.mxu1 %v4020_v0 }
0x173c   : > { %3712 = vmatpush3.msra.mxu1 %v2932_v38 }
0x173d   : > { %3713 = vmatprep.subr.mxu1 %v4020_v0 }
0x173e   : > { %3714 = vmatpush3.msra.mxu1 %v2931_v39 }
0x173f   : > { %3715 = vmatprep.subr.mxu1 %v4020_v0 }
0x1740   : > { %3716 = vmatpush3.msra.mxu1 %v2930_v40 }
0x1741   : > { %3717 = vmatprep.subr.mxu1 %v4020_v0 }
0x1742   : > { %3718 = vmatpush3.msra.mxu1 %v2929_v18 }
0x1743   : > { %3719 = vmatprep.subr.mxu1 %v4020_v0 }
0x1744   : > { %3720 = vmatpush3.msra.mxu1 %v2928_v42 }
0x1745   : > { %3721 = vmatprep.subr.mxu1 %v4020_v0 }
0x1746   : > { %3722 = vmatpush3.msra.mxu1 %v2927_v43 }
0x1747   : > { %3723 = vmatprep.subr.mxu1 %v4020_v0 }
0x1748   : > { %3724 = vmatpush3.msra.mxu1 %v2926_v49 }
0x17ba   : > { %v2900_v29 = vpop.xlane.xlu1 %2899 }
0x17bb   : > { %v2901_v30 = vmul.f32 0.0078125, %v2900_v29 }
0x17bd   : > { %v4986_v31 = vsub.f32 %v2898_v26, %v2901_v30  ;;  %v3335_v26 = vld [vmem:[#allocation7] ss:$0 sm:$0xff] }
0x17bf   : > { %v2903_v32 = vmul.f32 %v4986_v31, %v4986_v31 }
0x17c1   : > { %2904 = vadd.xlane.f32.xlu0 %v2903_v32 }
0x184a   : > { %v2905_v52 = vpop.xlane.xlu0 %2904 }
0x184b   : > { %v2906_v59 = vmul.f32 0.0078125, %v2905_v52 }
0x184d   : > { %v2907_v60 = vadd.f32 1e-05, %v2906_v59 }
0x184f   : > { %3861 = vrsqrt.f32 %v2907_v60 }
0x185c   : > { %v3862_v61 = vpop.eup %3861 }
0x185d   : > { %v2909_v63 = vmul.f32 %v3862_v61, %v4986_v31 }
0x185f   : > { %v2917_v4 = vmul.f32 %v3331_v62, %v2909_v63 }
0x1861   : > { %v2925_v5 = vadd.f32 %v3332_v2, %v2917_v4 }
0x1863   : > { %3726 = vmatmul.mubr.f32.vlgmr.msra.gmra.mxu1 %v2925_v5 }
0x1923   : > { %v3015_v10 = vpop.f32.mrf.mxu1 }
0x1924   : > { %v3016_v1 = vadd.f32 %v3333_v9, %v3015_v10 }
0x1925   : > { %v3727_v11 = vpop.f32.mrf.mxu1 }
0x1926   : > { %v3019_v12 = vmax.f32 %v3016_v1, 0.0 }
0x1928   : > { %3761 = vmatmul.mubr.f32.vlgmr.msra.gmra.mxu0 %v3019_v12 }
0x19e8   : > { %v3109_v14 = vpop.f32.mrf.mxu0 }
0x19e9   : > { %v3110_v15 = vadd.f32 %v3334_v13, %v3109_v14 }
0x19ea   : > { %v3762_v16 = vpop.f32.mrf.mxu0 }
0x19eb   : > { %v3113_v17 = vadd.f32 %v3110_v15, %v2925_v5 }
0x19ed   : > { %3114 = vadd.xlane.f32.xlu1 %v3113_v17 }
0x1a76   : > { %v3115_v19 = vpop.xlane.xlu1 %3114 }
0x1a77   : > { %v3116_v20 = vmul.f32 0.0078125, %v3115_v19 }
0x1a79   : > { %v3117_v21 = vsub.f32 %v3113_v17, %v3116_v20 }
0x1a7b   : > { %v3118_v22 = vmul.f32 %v3117_v21, %v3117_v21 }
0x1a7d   : > { %3119 = vadd.xlane.f32.xlu1 %v3118_v22 }
0x1b06   : > { %v3120_v0 = vpop.xlane.xlu1 %3119 }
0x1b07   : > { %v3121_v23 = vmul.f32 0.0078125, %v3120_v0 }
0x1b09   : > { %v3122_v24 = vadd.f32 1e-05, %v3121_v23 }
0x1b0b   : > { %3863 = vrsqrt.f32 %v3122_v24 }
0x1b18   : > { %v3864_v25 = vpop.eup %3863 }
0x1b19   : > { %v3124_v8 = vmul.f32 %v3864_v25, %v3117_v21 }
0x1b1b   : > { %v3132_v28 = vmul.f32 %v3335_v26, %v3124_v8 }
0x1b1d   : > { %v3140_v41 = vadd.f32 %v3336_v27, %v3132_v28 }
0x1b1f   : > { %3141 = vst [vmem:[%s900_s4] sm:$0xff] %v3140_v41 }
0x1b20 PF: > { %s39_s27 = sadd.s32 1, %s4013_s27  }
0x1b21   : > { %p36_p3 = scmp.ge.s32.totalorder %s39_s27, 4  }
0x1b23   :  { %38 = sbr.rel (!%p36_p3) target bundleno = 15 (0xf), region = 184 }
0x1b28   :  { %3161 = vsyncpa [#allocation3], 1 }
0x1b29   :  { %3163 = vsyncpa [#allocation3 + $0x1], 1 }
0x1b2a   :  { %3164 = vsyncpa [#allocation5], 1 }
0x1b2b   :  { %3165 = vsyncpa [#allocation8], 1 }

</bundles_post_ra>
